<compile_context>
chip_gen: v5e
topology: v5e:2x2
jax: 0.10.0
libtpu: 0.0.40
codegen_flags: <defaults>
</compile_context>

<pallas_src>
import jax
import jax.numpy as jnp
from jax.experimental import pallas as pl
from jax.experimental.pallas import tpu as pltpu

H = 51                 # true hidden size of both LSTM cells
HP = 128               # padded hidden size (one full 128-lane slab per gate)
GP = 4 * HP            # padded gate width (i | f | o | g slabs)
XROW = H               # spare row of whh1 holding the cell-1 input weights (wih1)
BROW = H + 1           # spare row of whh1 holding the fused cell-1 bias (b_ih1+b_hh1)
# PyTorch LSTMCell packs gate rows as [i, f, g, o]; kernel slab order is [i, f, o, g].
_SLAB_TO_TORCH = (0, 1, 3, 2)


# ----------------------------------------------------------------------------
# Kernel
# ----------------------------------------------------------------------------
def seq_kernel(x_ref, whh1_ref, w2_ref, b2_ref, wlin_ref, blin_ref,
               out_ref, h2_scr):
    T, B, _ = x_ref.shape  # x: (T, B_pad, 1) raw input column, time-major

    # Initial states: ones on the 51 valid lanes, zeros on the padded lanes.
    lane = jax.lax.broadcasted_iota(jnp.int32, (B, HP), 1)
    ones_valid = (lane < H).astype(jnp.float32)
    h1 = ones_valid
    c1 = ones_valid
    h2 = ones_valid
    c2 = ones_valid

    # Constant lane masks (hoisted out of the unrolled loop): x rides on lane
    # XROW, the constant 1.0 for the fused bias rides on lane BROW.
    is_xrow = lane == XROW
    bias_onehot = (lane == BROW).astype(jnp.float32)

    # Hoist the bias broadcasts out of the (unrolled) loop.
    b2 = jnp.broadcast_to(b2_ref[...], (B, GP))
    blin = blin_ref[...]

    def lstm_update(gates, c_prev):
        # i/f/o columns were pre-scaled by 0.5 at pack time, so a SINGLE tanh
        # over the whole (B, GP) slab yields both sigmoid(i|f|o) and tanh(g).
        t_all = jnp.tanh(gates)                       # one EUP launch, 4 vregs
        sig = 0.5 * t_all[:, 0:3 * HP] + 0.5          # sigmoid(i|f|o)
        g = t_all[:, 3 * HP:4 * HP]
        i = sig[:, 0:HP]
        f = sig[:, HP:2 * HP]
        o = sig[:, 2 * HP:3 * HP]
        c_new = f * c_prev + i * g
        h_new = o * jnp.tanh(c_new)
        return h_new, c_new

    # Fully serial recurrence -> static full unroll gives the LLO scheduler
    # cross-iteration visibility (T is small & static).
    for t in range(T):
        # ---- LSTM cell 1: x and the bias ride along spare padded lanes so a
        #      single (B,128)@(128,512) matmul produces x@Wih1^T + h1@Whh1^T + b1.
        x_b = jnp.broadcast_to(x_ref[t], (B, HP))     # (B,1) -> (B,HP) lane bcast
        h1_in = jnp.where(is_xrow, x_b, h1 + bias_onehot)
        gates1 = jnp.dot(h1_in, whh1_ref[...],
                         preferred_element_type=jnp.float32)
        h1, c1 = lstm_update(gates1, c1)

        # ---- LSTM cell 2: fused single matmul over [h1 | h2] ----
        hcat = jnp.concatenate([h1, h2], axis=1)      # (B, 2*HP)
        gates2 = jnp.dot(hcat, w2_ref[...],
                         preferred_element_type=jnp.float32) + b2
        h2, c2 = lstm_update(gates2, c2)

        # Bound live ranges: park h2 in VMEM scratch (no Python-list history).
        h2_scr[t * B:(t + 1) * B, :] = h2

    # ---- Linear head, batched over all time steps (off the serial chain) ----
    y = jnp.dot(h2_scr[...], wlin_ref[...],
                preferred_element_type=jnp.float32) + blin
    out_ref[...] = y.astype(out_ref.dtype)            # one dense (T*B,128) store


# ----------------------------------------------------------------------------
# Wrapper
# ----------------------------------------------------------------------------
def sequence_forward(x, kp):
    """x: (B, T) float32 -> (B, T) float32 (future=0, matching the module)."""
    # TODO(synk): the future>0 autoregressive branch of Sequence.forward is not
    # implemented (the module's default call uses future=0).
    B, T = x.shape
    B_pad = max(8, ((B + 7) // 8) * 8)                 # sublane multiple

    # Only preprocessing left in the wrapper: pad the batch and lay x out
    # time-major as a tiny (T, B_pad, 1) column (32 floats/step).
    x_col = jnp.zeros((T, B_pad, 1), jnp.float32).at[:, :B, 0].set(jnp.transpose(x))

    vmem = pl.BlockSpec(memory_space=pltpu.MemorySpace.VMEM)

    flops = T * (2 * B_pad * HP * GP + 2 * B_pad * (2 * HP) * GP) \
        + 2 * (T * B_pad) * HP * HP
    transcendentals = T * 2 * (B_pad * GP + B_pad * HP)
    bytes_accessed = 4 * (HP * GP + 2 * HP * GP + GP + HP * HP + HP
                          + T * B_pad + T * B_pad * HP)

    out = pl.pallas_call(
        seq_kernel,
        out_shape=jax.ShapeDtypeStruct((T * B_pad, HP), jnp.float32),
        in_specs=[vmem] * 6,
        out_specs=vmem,
        scratch_shapes=[pltpu.VMEM((T * B_pad, HP), jnp.float32)],
        compiler_params=pltpu.CompilerParams(vmem_limit_bytes=8 * 1024 * 1024),
        cost_estimate=pl.CostEstimate(flops=flops,
                                      transcendentals=transcendentals,
                                      bytes_accessed=bytes_accessed),
    )(x_col, kp["whh1"], kp["w2"], kp["b2"], kp["wlin"], kp["blin"])

    y = out.reshape(T, B_pad, HP)[:, :B, 0]            # (T, B)
    return jnp.transpose(y)                            # (B, T)


sequence_forward = jax.jit(sequence_forward)


# ----------------------------------------------------------------------------
# Parameter construction / packing
# ----------------------------------------------------------------------------
def make_params(key):
    """Deterministic synthetic parameters in the PyTorch nn.Module layout."""
    ks = jax.random.split(key, 10)
    s = 0.1

    def rnd(k, shape):
        return jax.random.normal(k, shape, jnp.float32) * s

    return {
        "wih1": rnd(ks[0], (4 * H, 1)),   "whh1": rnd(ks[1], (4 * H, H)),
        "b_ih1": rnd(ks[2], (4 * H,)),    "b_hh1": rnd(ks[3], (4 * H,)),
        "wih2": rnd(ks[4], (4 * H, H)),   "whh2": rnd(ks[5], (4 * H, H)),
        "b_ih2": rnd(ks[6], (4 * H,)),    "b_hh2": rnd(ks[7], (4 * H,)),
        "wlin": rnd(ks[8], (1, H)),       "blin": rnd(ks[9], (1,)),
    }


def _pack_gate_matrix(w):
    """(4H, K) torch gate matrix -> (HP, GP) kernel layout (K on rows, gate slabs on lanes)."""
    K = w.shape[1]
    out = jnp.zeros((HP, GP), jnp.float32)
    for s, g in enumerate(_SLAB_TO_TORCH):
        out = out.at[:K, s * HP:s * HP + H].set(jnp.transpose(w[g * H:(g + 1) * H, :]))
    return out


def _pack_gate_vector(v):
    """(4H,) torch gate vector -> (GP,) gate-slab layout."""
    out = jnp.zeros((GP,), jnp.float32)
    for s, g in enumerate(_SLAB_TO_TORCH):
        out = out.at[s * HP:s * HP + H].set(v[g * H:(g + 1) * H])
    return out


def _prescale_ifo(m):
    """Exact identity sigmoid(z)=0.5*tanh(z/2)+0.5: bake the /2 of the i/f/o
    pre-activations into the packed weights/biases (0.5 is a power of two)."""
    return m.at[..., :3 * HP].multiply(0.5)


def pack_params(p):
    """Pad / reorder / fuse PyTorch-layout params into the kernel layout."""
    whh1 = _pack_gate_matrix(p["whh1"])                                 # (HP, GP)
    # Fold the cell-1 input projection and bias into spare padded rows of whh1.
    whh1 = whh1.at[XROW].set(_pack_gate_vector(p["wih1"][:, 0]))
    whh1 = whh1.at[BROW].set(_pack_gate_vector(p["b_ih1"] + p["b_hh1"]))
    w2 = jnp.concatenate([_pack_gate_matrix(p["wih2"]),
                          _pack_gate_matrix(p["whh2"])], axis=0)        # (2*HP, GP)
    b2 = _pack_gate_vector(p["b_ih2"] + p["b_hh2"])[None, :]            # (1, GP)
    wlin = jnp.zeros((HP, HP), jnp.float32).at[:H, 0].set(p["wlin"][0]) # (HP, HP)
    blin = jnp.zeros((1, HP), jnp.float32).at[0, 0].set(p["blin"][0])   # (1, HP)
    return {"whh1": _prescale_ifo(whh1), "w2": _prescale_ifo(w2),
            "b2": _prescale_ifo(b2), "wlin": wlin, "blin": blin}


# ----------------------------------------------------------------------------
# Pure-JAX reference (mirrors the PyTorch forward, future=0)
# ----------------------------------------------------------------------------
def reference_forward(x, p):
    B, T = x.shape
    ones = jnp.ones((B, H), jnp.float32)
    h1, c1, h2, c2 = ones, ones, ones, ones

    def cell(gates, c):
        i = jax.nn.sigmoid(gates[:, 0:H])
        f = jax.nn.sigmoid(gates[:, H:2 * H])
        g = jnp.tanh(gates[:, 2 * H:3 * H])
        o = jax.nn.sigmoid(gates[:, 3 * H:4 * H])
        c_new = f * c + i * g
        return o * jnp.tanh(c_new), c_new

    outs = []
    for t in range(T):
        x_t = x[:, t:t + 1]
        g1 = x_t @ p["wih1"].T + h1 @ p["whh1"].T + p["b_ih1"] + p["b_hh1"]
        h1, c1 = cell(g1, c1)
        g2 = h1 @ p["wih2"].T + h2 @ p["whh2"].T + p["b_ih2"] + p["b_hh2"]
        h2, c2 = cell(g2, c2)
        outs.append(h2 @ p["wlin"].T + p["blin"])
    return jnp.concatenate(outs, axis=1)                                # (B, T)


if __name__ == "__main__":
    key = jax.random.PRNGKey(0)
    kx, kparam = jax.random.split(key)

    B, T = 2, 8
    x = jax.random.normal(kx, (B, T), jnp.float32)
    params = make_params(kparam)
    packed = pack_params(params)

    out = jax.block_until_ready(sequence_forward(x, packed))
    ref = reference_forward(x, params)

    assert out.shape == (B, T)
    assert jnp.allclose(out, ref, atol=5e-4, rtol=5e-4), (out, ref)
    print("KERNEL_OK")
</pallas_src>

<mosaic_0001>
module attributes {stable_mosaic.version = 11 : i64} {
  func.func @seq_kernel(%arg0: memref<8x8x1xf32, #tpu.memory_space<vmem>>, %arg1: memref<128x512xf32, #tpu.memory_space<vmem>>, %arg2: memref<256x512xf32, #tpu.memory_space<vmem>>, %arg3: memref<1x512xf32, #tpu.memory_space<vmem>>, %arg4: memref<128x128xf32, #tpu.memory_space<vmem>>, %arg5: memref<1x128xf32, #tpu.memory_space<vmem>>, %arg6: memref<64x128xf32, #tpu.memory_space<vmem>>, %arg7: memref<64x128xf32, #tpu.memory_space<vmem>>) attributes {dimension_semantics = [], scalar_prefetch = 0 : i64, scratch_operands = 1 : i64, tpu.core_type = #tpu.core_type<tc>} {
    %0 = tpu.iota {dimensions = array<i32: 1>} : vector<8x128xi32>
    %c51_i32 = arith.constant 51 : i32
    %1 = vector.broadcast %c51_i32 : i32 to vector<8x128xi32>
    %2 = arith.cmpi slt, %0, %1 : vector<8x128xi32>
    %3 = arith.extui %2 : vector<8x128xi1> to vector<8x128xi32>
    %4 = arith.sitofp %3 : vector<8x128xi32> to vector<8x128xf32>
    %c51_i32_0 = arith.constant 51 : i32
    %5 = vector.broadcast %c51_i32_0 : i32 to vector<8x128xi32>
    %6 = arith.cmpi eq, %0, %5 : vector<8x128xi32>
    %c52_i32 = arith.constant 52 : i32
    %7 = vector.broadcast %c52_i32 : i32 to vector<8x128xi32>
    %8 = arith.cmpi eq, %0, %7 : vector<8x128xi32>
    %9 = arith.extui %8 : vector<8x128xi1> to vector<8x128xi32>
    %10 = arith.sitofp %9 : vector<8x128xi32> to vector<8x128xf32>
    %c0 = arith.constant 0 : index
    %c0_1 = arith.constant 0 : index
    %11 = vector.load %arg3[%c0, %c0_1] : memref<1x512xf32, #tpu.memory_space<vmem>>, vector<1x512xf32>
    %12 = vector.shape_cast %11 : vector<1x512xf32> to vector<1x512xf32>
    %13 = vector.broadcast %12 : vector<1x512xf32> to vector<8x512xf32>
    %c0_2 = arith.constant 0 : index
    %c0_3 = arith.constant 0 : index
    %14 = vector.load %arg5[%c0_2, %c0_3] : memref<1x128xf32, #tpu.memory_space<vmem>>, vector<1x128xf32>
    %c0_4 = arith.constant 0 : index
    %c0_5 = arith.constant 0 : index
    %c0_6 = arith.constant 0 : index
    %15 = vector.load %arg0[%c0_4, %c0_5, %c0_6] : memref<8x8x1xf32, #tpu.memory_space<vmem>>, vector<1x8x1xf32>
    %16 = vector.shape_cast %15 : vector<1x8x1xf32> to vector<8x1xf32>
    %17 = vector.shape_cast %16 : vector<8x1xf32> to vector<8x1xf32>
    %18 = vector.broadcast %17 : vector<8x1xf32> to vector<8x128xf32>
    %19 = arith.addf %4, %10 : vector<8x128xf32>
    %20 = arith.select %6, %18, %19 : vector<8x128xi1>, vector<8x128xf32>
    %c0_7 = arith.constant 0 : index
    %c0_8 = arith.constant 0 : index
    %21 = vector.load %arg1[%c0_7, %c0_8] : memref<128x512xf32, #tpu.memory_space<vmem>>, vector<128x512xf32>
    %cst = arith.constant dense<0.000000e+00> : vector<8x512xf32>
    %22 = tpu.matmul %20, %21, %cst {dimension_numbers = #tpu.dot_dimension_numbers<[1], [0], [0], [1], [0, 0, 1, 1], [], []>} : vector<8x128xf32>, vector<128x512xf32>, vector<8x512xf32> -> vector<8x512xf32>
    %23 = math.tanh %22 : vector<8x512xf32>
    %24 = vector.extract_strided_slice %23 {offsets = [0, 0], sizes = [8, 384], strides = [1, 1]} : vector<8x512xf32> to vector<8x384xf32>
    %cst_9 = arith.constant 5.000000e-01 : f32
    %25 = vector.broadcast %cst_9 : f32 to vector<8x384xf32>
    %26 = arith.mulf %25, %24 : vector<8x384xf32>
    %cst_10 = arith.constant 5.000000e-01 : f32
    %27 = vector.broadcast %cst_10 : f32 to vector<8x384xf32>
    %28 = arith.addf %26, %27 : vector<8x384xf32>
    %29 = vector.extract_strided_slice %23 {offsets = [0, 384], sizes = [8, 128], strides = [1, 1]} : vector<8x512xf32> to vector<8x128xf32>
    %30 = vector.extract_strided_slice %28 {offsets = [0, 0], sizes = [8, 128], strides = [1, 1]} : vector<8x384xf32> to vector<8x128xf32>
    %31 = vector.extract_strided_slice %28 {offsets = [0, 128], sizes = [8, 128], strides = [1, 1]} : vector<8x384xf32> to vector<8x128xf32>
    %32 = vector.extract_strided_slice %28 {offsets = [0, 256], sizes = [8, 128], strides = [1, 1]} : vector<8x384xf32> to vector<8x128xf32>
    %33 = arith.mulf %31, %4 : vector<8x128xf32>
    %34 = arith.mulf %30, %29 : vector<8x128xf32>
    %35 = arith.addf %33, %34 : vector<8x128xf32>
    %36 = math.tanh %35 : vector<8x128xf32>
    %37 = arith.mulf %32, %36 : vector<8x128xf32>
    %38 = tpu.concatenate %37, %4 in 1 : vector<8x128xf32>, vector<8x128xf32> -> vector<8x256xf32>
    %c0_11 = arith.constant 0 : index
    %c0_12 = arith.constant 0 : index
    %39 = vector.load %arg2[%c0_11, %c0_12] : memref<256x512xf32, #tpu.memory_space<vmem>>, vector<256x512xf32>
    %cst_13 = arith.constant dense<0.000000e+00> : vector<8x512xf32>
    %40 = tpu.matmul %38, %39, %cst_13 {dimension_numbers = #tpu.dot_dimension_numbers<[1], [0], [0], [1], [0, 0, 1, 1], [], []>} : vector<8x256xf32>, vector<256x512xf32>, vector<8x512xf32> -> vector<8x512xf32>
    %41 = arith.addf %40, %13 : vector<8x512xf32>
    %42 = math.tanh %41 : vector<8x512xf32>
    %43 = vector.extract_strided_slice %42 {offsets = [0, 0], sizes = [8, 384], strides = [1, 1]} : vector<8x512xf32> to vector<8x384xf32>
    %cst_14 = arith.constant 5.000000e-01 : f32
    %44 = vector.broadcast %cst_14 : f32 to vector<8x384xf32>
    %45 = arith.mulf %44, %43 : vector<8x384xf32>
    %cst_15 = arith.constant 5.000000e-01 : f32
    %46 = vector.broadcast %cst_15 : f32 to vector<8x384xf32>
    %47 = arith.addf %45, %46 : vector<8x384xf32>
    %48 = vector.extract_strided_slice %42 {offsets = [0, 384], sizes = [8, 128], strides = [1, 1]} : vector<8x512xf32> to vector<8x128xf32>
    %49 = vector.extract_strided_slice %47 {offsets = [0, 0], sizes = [8, 128], strides = [1, 1]} : vector<8x384xf32> to vector<8x128xf32>
    %50 = vector.extract_strided_slice %47 {offsets = [0, 128], sizes = [8, 128], strides = [1, 1]} : vector<8x384xf32> to vector<8x128xf32>
    %51 = vector.extract_strided_slice %47 {offsets = [0, 256], sizes = [8, 128], strides = [1, 1]} : vector<8x384xf32> to vector<8x128xf32>
    %52 = arith.mulf %50, %4 : vector<8x128xf32>
    %53 = arith.mulf %49, %48 : vector<8x128xf32>
    %54 = arith.addf %52, %53 : vector<8x128xf32>
    %55 = math.tanh %54 : vector<8x128xf32>
    %56 = arith.mulf %51, %55 : vector<8x128xf32>
    %c0_16 = arith.constant 0 : index
    %c0_17 = arith.constant 0 : index
    %57 = vector.load %arg7[%c0_16, %c0_17] : memref<64x128xf32, #tpu.memory_space<vmem>>, vector<8x128xf32>
    tpu.vector_store %arg7[%c0_16, %c0_17], %56 {strides = array<i32>} : memref<64x128xf32, #tpu.memory_space<vmem>>, vector<8x128xf32>,
    %c1 = arith.constant 1 : index
    %c0_18 = arith.constant 0 : index
    %c0_19 = arith.constant 0 : index
    %58 = vector.load %arg0[%c1, %c0_18, %c0_19] : memref<8x8x1xf32, #tpu.memory_space<vmem>>, vector<1x8x1xf32>
    %59 = vector.shape_cast %58 : vector<1x8x1xf32> to vector<8x1xf32>
    %60 = vector.shape_cast %59 : vector<8x1xf32> to vector<8x1xf32>
    %61 = vector.broadcast %60 : vector<8x1xf32> to vector<8x128xf32>
    %62 = arith.addf %37, %10 : vector<8x128xf32>
    %63 = arith.select %6, %61, %62 : vector<8x128xi1>, vector<8x128xf32>
    %c0_20 = arith.constant 0 : index
    %c0_21 = arith.constant 0 : index
    %64 = vector.load %arg1[%c0_20, %c0_21] : memref<128x512xf32, #tpu.memory_space<vmem>>, vector<128x512xf32>
    %cst_22 = arith.constant dense<0.000000e+00> : vector<8x512xf32>
    %65 = tpu.matmul %63, %64, %cst_22 {dimension_numbers = #tpu.dot_dimension_numbers<[1], [0], [0], [1], [0, 0, 1, 1], [], []>} : vector<8x128xf32>, vector<128x512xf32>, vector<8x512xf32> -> vector<8x512xf32>
    %66 = math.tanh %65 : vector<8x512xf32>
    %67 = vector.extract_strided_slice %66 {offsets = [0, 0], sizes = [8, 384], strides = [1, 1]} : vector<8x512xf32> to vector<8x384xf32>
    %cst_23 = arith.constant 5.000000e-01 : f32
    %68 = vector.broadcast %cst_23 : f32 to vector<8x384xf32>
    %69 = arith.mulf %68, %67 : vector<8x384xf32>
    %cst_24 = arith.constant 5.000000e-01 : f32
    %70 = vector.broadcast %cst_24 : f32 to vector<8x384xf32>
    %71 = arith.addf %69, %70 : vector<8x384xf32>
    %72 = vector.extract_strided_slice %66 {offsets = [0, 384], sizes = [8, 128], strides = [1, 1]} : vector<8x512xf32> to vector<8x128xf32>
    %73 = vector.extract_strided_slice %71 {offsets = [0, 0], sizes = [8, 128], strides = [1, 1]} : vector<8x384xf32> to vector<8x128xf32>
    %74 = vector.extract_strided_slice %71 {offsets = [0, 128], sizes = [8, 128], strides = [1, 1]} : vector<8x384xf32> to vector<8x128xf32>
    %75 = vector.extract_strided_slice %71 {offsets = [0, 256], sizes = [8, 128], strides = [1, 1]} : vector<8x384xf32> to vector<8x128xf32>
    %76 = arith.mulf %74, %35 : vector<8x128xf32>
    %77 = arith.mulf %73, %72 : vector<8x128xf32>
    %78 = arith.addf %76, %77 : vector<8x128xf32>
    %79 = math.tanh %78 : vector<8x128xf32>
    %80 = arith.mulf %75, %79 : vector<8x128xf32>
    %81 = tpu.concatenate %80, %56 in 1 : vector<8x128xf32>, vector<8x128xf32> -> vector<8x256xf32>
    %c0_25 = arith.constant 0 : index
    %c0_26 = arith.constant 0 : index
    %82 = vector.load %arg2[%c0_25, %c0_26] : memref<256x512xf32, #tpu.memory_space<vmem>>, vector<256x512xf32>
    %cst_27 = arith.constant dense<0.000000e+00> : vector<8x512xf32>
    %83 = tpu.matmul %81, %82, %cst_27 {dimension_numbers = #tpu.dot_dimension_numbers<[1], [0], [0], [1], [0, 0, 1, 1], [], []>} : vector<8x256xf32>, vector<256x512xf32>, vector<8x512xf32> -> vector<8x512xf32>
    %84 = arith.addf %83, %13 : vector<8x512xf32>
    %85 = math.tanh %84 : vector<8x512xf32>
    %86 = vector.extract_strided_slice %85 {offsets = [0, 0], sizes = [8, 384], strides = [1, 1]} : vector<8x512xf32> to vector<8x384xf32>
    %cst_28 = arith.constant 5.000000e-01 : f32
    %87 = vector.broadcast %cst_28 : f32 to vector<8x384xf32>
    %88 = arith.mulf %87, %86 : vector<8x384xf32>
    %cst_29 = arith.constant 5.000000e-01 : f32
    %89 = vector.broadcast %cst_29 : f32 to vector<8x384xf32>
    %90 = arith.addf %88, %89 : vector<8x384xf32>
    %91 = vector.extract_strided_slice %85 {offsets = [0, 384], sizes = [8, 128], strides = [1, 1]} : vector<8x512xf32> to vector<8x128xf32>
    %92 = vector.extract_strided_slice %90 {offsets = [0, 0], sizes = [8, 128], strides = [1, 1]} : vector<8x384xf32> to vector<8x128xf32>
    %93 = vector.extract_strided_slice %90 {offsets = [0, 128], sizes = [8, 128], strides = [1, 1]} : vector<8x384xf32> to vector<8x128xf32>
    %94 = vector.extract_strided_slice %90 {offsets = [0, 256], sizes = [8, 128], strides = [1, 1]} : vector<8x384xf32> to vector<8x128xf32>
    %95 = arith.mulf %93, %54 : vector<8x128xf32>
    %96 = arith.mulf %92, %91 : vector<8x128xf32>
    %97 = arith.addf %95, %96 : vector<8x128xf32>
    %98 = math.tanh %97 : vector<8x128xf32>
    %99 = arith.mulf %94, %98 : vector<8x128xf32>
    %c8 = arith.constant 8 : index
    %c0_30 = arith.constant 0 : index
    %100 = vector.load %arg7[%c8, %c0_30] : memref<64x128xf32, #tpu.memory_space<vmem>>, vector<8x128xf32>
    tpu.vector_store %arg7[%c8, %c0_30], %99 {strides = array<i32>} : memref<64x128xf32, #tpu.memory_space<vmem>>, vector<8x128xf32>,
    %c2 = arith.constant 2 : index
    %c0_31 = arith.constant 0 : index
    %c0_32 = arith.constant 0 : index
    %101 = vector.load %arg0[%c2, %c0_31, %c0_32] : memref<8x8x1xf32, #tpu.memory_space<vmem>>, vector<1x8x1xf32>
    %102 = vector.shape_cast %101 : vector<1x8x1xf32> to vector<8x1xf32>
    %103 = vector.shape_cast %102 : vector<8x1xf32> to vector<8x1xf32>
    %104 = vector.broadcast %103 : vector<8x1xf32> to vector<8x128xf32>
    %105 = arith.addf %80, %10 : vector<8x128xf32>
    %106 = arith.select %6, %104, %105 : vector<8x128xi1>, vector<8x128xf32>
    %c0_33 = arith.constant 0 : index
    %c0_34 = arith.constant 0 : index
    %107 = vector.load %arg1[%c0_33, %c0_34] : memref<128x512xf32, #tpu.memory_space<vmem>>, vector<128x512xf32>
    %cst_35 = arith.constant dense<0.000000e+00> : vector<8x512xf32>
    %108 = tpu.matmul %106, %107, %cst_35 {dimension_numbers = #tpu.dot_dimension_numbers<[1], [0], [0], [1], [0, 0, 1, 1], [], []>} : vector<8x128xf32>, vector<128x512xf32>, vector<8x512xf32> -> vector<8x512xf32>
    %109 = math.tanh %108 : vector<8x512xf32>
    %110 = vector.extract_strided_slice %109 {offsets = [0, 0], sizes = [8, 384], strides = [1, 1]} : vector<8x512xf32> to vector<8x384xf32>
    %cst_36 = arith.constant 5.000000e-01 : f32
    %111 = vector.broadcast %cst_36 : f32 to vector<8x384xf32>
    %112 = arith.mulf %111, %110 : vector<8x384xf32>
    %cst_37 = arith.constant 5.000000e-01 : f32
    %113 = vector.broadcast %cst_37 : f32 to vector<8x384xf32>
    %114 = arith.addf %112, %113 : vector<8x384xf32>
    %115 = vector.extract_strided_slice %109 {offsets = [0, 384], sizes = [8, 128], strides = [1, 1]} : vector<8x512xf32> to vector<8x128xf32>
    %116 = vector.extract_strided_slice %114 {offsets = [0, 0], sizes = [8, 128], strides = [1, 1]} : vector<8x384xf32> to vector<8x128xf32>
    %117 = vector.extract_strided_slice %114 {offsets = [0, 128], sizes = [8, 128], strides = [1, 1]} : vector<8x384xf32> to vector<8x128xf32>
    %118 = vector.extract_strided_slice %114 {offsets = [0, 256], sizes = [8, 128], strides = [1, 1]} : vector<8x384xf32> to vector<8x128xf32>
    %119 = arith.mulf %117, %78 : vector<8x128xf32>
    %120 = arith.mulf %116, %115 : vector<8x128xf32>
    %121 = arith.addf %119, %120 : vector<8x128xf32>
    %122 = math.tanh %121 : vector<8x128xf32>
    %123 = arith.mulf %118, %122 : vector<8x128xf32>
    %124 = tpu.concatenate %123, %99 in 1 : vector<8x128xf32>, vector<8x128xf32> -> vector<8x256xf32>
    %c0_38 = arith.constant 0 : index
    %c0_39 = arith.constant 0 : index
    %125 = vector.load %arg2[%c0_38, %c0_39] : memref<256x512xf32, #tpu.memory_space<vmem>>, vector<256x512xf32>
    %cst_40 = arith.constant dense<0.000000e+00> : vector<8x512xf32>
    %126 = tpu.matmul %124, %125, %cst_40 {dimension_numbers = #tpu.dot_dimension_numbers<[1], [0], [0], [1], [0, 0, 1, 1], [], []>} : vector<8x256xf32>, vector<256x512xf32>, vector<8x512xf32> -> vector<8x512xf32>
    %127 = arith.addf %126, %13 : vector<8x512xf32>
    %128 = math.tanh %127 : vector<8x512xf32>
    %129 = vector.extract_strided_slice %128 {offsets = [0, 0], sizes = [8, 384], strides = [1, 1]} : vector<8x512xf32> to vector<8x384xf32>
    %cst_41 = arith.constant 5.000000e-01 : f32
    %130 = vector.broadcast %cst_41 : f32 to vector<8x384xf32>
    %131 = arith.mulf %130, %129 : vector<8x384xf32>
    %cst_42 = arith.constant 5.000000e-01 : f32
    %132 = vector.broadcast %cst_42 : f32 to vector<8x384xf32>
    %133 = arith.addf %131, %132 : vector<8x384xf32>
    %134 = vector.extract_strided_slice %128 {offsets = [0, 384], sizes = [8, 128], strides = [1, 1]} : vector<8x512xf32> to vector<8x128xf32>
    %135 = vector.extract_strided_slice %133 {offsets = [0, 0], sizes = [8, 128], strides = [1, 1]} : vector<8x384xf32> to vector<8x128xf32>
    %136 = vector.extract_strided_slice %133 {offsets = [0, 128], sizes = [8, 128], strides = [1, 1]} : vector<8x384xf32> to vector<8x128xf32>
    %137 = vector.extract_strided_slice %133 {offsets = [0, 256], sizes = [8, 128], strides = [1, 1]} : vector<8x384xf32> to vector<8x128xf32>
    %138 = arith.mulf %136, %97 : vector<8x128xf32>
    %139 = arith.mulf %135, %134 : vector<8x128xf32>
    %140 = arith.addf %138, %139 : vector<8x128xf32>
    %141 = math.tanh %140 : vector<8x128xf32>
    %142 = arith.mulf %137, %141 : vector<8x128xf32>
    %c16 = arith.constant 16 : index
    %c0_43 = arith.constant 0 : index
    %143 = vector.load %arg7[%c16, %c0_43] : memref<64x128xf32, #tpu.memory_space<vmem>>, vector<8x128xf32>
    tpu.vector_store %arg7[%c16, %c0_43], %142 {strides = array<i32>} : memref<64x128xf32, #tpu.memory_space<vmem>>, vector<8x128xf32>,
    %c3 = arith.constant 3 : index
    %c0_44 = arith.constant 0 : index
    %c0_45 = arith.constant 0 : index
    %144 = vector.load %arg0[%c3, %c0_44, %c0_45] : memref<8x8x1xf32, #tpu.memory_space<vmem>>, vector<1x8x1xf32>
    %145 = vector.shape_cast %144 : vector<1x8x1xf32> to vector<8x1xf32>
    %146 = vector.shape_cast %145 : vector<8x1xf32> to vector<8x1xf32>
    %147 = vector.broadcast %146 : vector<8x1xf32> to vector<8x128xf32>
    %148 = arith.addf %123, %10 : vector<8x128xf32>
    %149 = arith.select %6, %147, %148 : vector<8x128xi1>, vector<8x128xf32>
    %c0_46 = arith.constant 0 : index
    %c0_47 = arith.constant 0 : index
    %150 = vector.load %arg1[%c0_46, %c0_47] : memref<128x512xf32, #tpu.memory_space<vmem>>, vector<128x512xf32>
    %cst_48 = arith.constant dense<0.000000e+00> : vector<8x512xf32>
    %151 = tpu.matmul %149, %150, %cst_48 {dimension_numbers = #tpu.dot_dimension_numbers<[1], [0], [0], [1], [0, 0, 1, 1], [], []>} : vector<8x128xf32>, vector<128x512xf32>, vector<8x512xf32> -> vector<8x512xf32>
    %152 = math.tanh %151 : vector<8x512xf32>
    %153 = vector.extract_strided_slice %152 {offsets = [0, 0], sizes = [8, 384], strides = [1, 1]} : vector<8x512xf32> to vector<8x384xf32>
    %cst_49 = arith.constant 5.000000e-01 : f32
    %154 = vector.broadcast %cst_49 : f32 to vector<8x384xf32>
    %155 = arith.mulf %154, %153 : vector<8x384xf32>
    %cst_50 = arith.constant 5.000000e-01 : f32
    %156 = vector.broadcast %cst_50 : f32 to vector<8x384xf32>
    %157 = arith.addf %155, %156 : vector<8x384xf32>
    %158 = vector.extract_strided_slice %152 {offsets = [0, 384], sizes = [8, 128], strides = [1, 1]} : vector<8x512xf32> to vector<8x128xf32>
    %159 = vector.extract_strided_slice %157 {offsets = [0, 0], sizes = [8, 128], strides = [1, 1]} : vector<8x384xf32> to vector<8x128xf32>
    %160 = vector.extract_strided_slice %157 {offsets = [0, 128], sizes = [8, 128], strides = [1, 1]} : vector<8x384xf32> to vector<8x128xf32>
    %161 = vector.extract_strided_slice %157 {offsets = [0, 256], sizes = [8, 128], strides = [1, 1]} : vector<8x384xf32> to vector<8x128xf32>
    %162 = arith.mulf %160, %121 : vector<8x128xf32>
    %163 = arith.mulf %159, %158 : vector<8x128xf32>
    %164 = arith.addf %162, %163 : vector<8x128xf32>
    %165 = math.tanh %164 : vector<8x128xf32>
    %166 = arith.mulf %161, %165 : vector<8x128xf32>
    %167 = tpu.concatenate %166, %142 in 1 : vector<8x128xf32>, vector<8x128xf32> -> vector<8x256xf32>
    %c0_51 = arith.constant 0 : index
    %c0_52 = arith.constant 0 : index
    %168 = vector.load %arg2[%c0_51, %c0_52] : memref<256x512xf32, #tpu.memory_space<vmem>>, vector<256x512xf32>
    %cst_53 = arith.constant dense<0.000000e+00> : vector<8x512xf32>
    %169 = tpu.matmul %167, %168, %cst_53 {dimension_numbers = #tpu.dot_dimension_numbers<[1], [0], [0], [1], [0, 0, 1, 1], [], []>} : vector<8x256xf32>, vector<256x512xf32>, vector<8x512xf32> -> vector<8x512xf32>
    %170 = arith.addf %169, %13 : vector<8x512xf32>
    %171 = math.tanh %170 : vector<8x512xf32>
    %172 = vector.extract_strided_slice %171 {offsets = [0, 0], sizes = [8, 384], strides = [1, 1]} : vector<8x512xf32> to vector<8x384xf32>
    %cst_54 = arith.constant 5.000000e-01 : f32
    %173 = vector.broadcast %cst_54 : f32 to vector<8x384xf32>
    %174 = arith.mulf %173, %172 : vector<8x384xf32>
    %cst_55 = arith.constant 5.000000e-01 : f32
    %175 = vector.broadcast %cst_55 : f32 to vector<8x384xf32>
    %176 = arith.addf %174, %175 : vector<8x384xf32>
    %177 = vector.extract_strided_slice %171 {offsets = [0, 384], sizes = [8, 128], strides = [1, 1]} : vector<8x512xf32> to vector<8x128xf32>
    %178 = vector.extract_strided_slice %176 {offsets = [0, 0], sizes = [8, 128], strides = [1, 1]} : vector<8x384xf32> to vector<8x128xf32>
    %179 = vector.extract_strided_slice %176 {offsets = [0, 128], sizes = [8, 128], strides = [1, 1]} : vector<8x384xf32> to vector<8x128xf32>
    %180 = vector.extract_strided_slice %176 {offsets = [0, 256], sizes = [8, 128], strides = [1, 1]} : vector<8x384xf32> to vector<8x128xf32>
    %181 = arith.mulf %179, %140 : vector<8x128xf32>
    %182 = arith.mulf %178, %177 : vector<8x128xf32>
    %183 = arith.addf %181, %182 : vector<8x128xf32>
    %184 = math.tanh %183 : vector<8x128xf32>
    %185 = arith.mulf %180, %184 : vector<8x128xf32>
    %c24 = arith.constant 24 : index
    %c0_56 = arith.constant 0 : index
    %186 = vector.load %arg7[%c24, %c0_56] : memref<64x128xf32, #tpu.memory_space<vmem>>, vector<8x128xf32>
    tpu.vector_store %arg7[%c24, %c0_56], %185 {strides = array<i32>} : memref<64x128xf32, #tpu.memory_space<vmem>>, vector<8x128xf32>,
    %c4 = arith.constant 4 : index
    %c0_57 = arith.constant 0 : index
    %c0_58 = arith.constant 0 : index
    %187 = vector.load %arg0[%c4, %c0_57, %c0_58] : memref<8x8x1xf32, #tpu.memory_space<vmem>>, vector<1x8x1xf32>
    %188 = vector.shape_cast %187 : vector<1x8x1xf32> to vector<8x1xf32>
    %189 = vector.shape_cast %188 : vector<8x1xf32> to vector<8x1xf32>
    %190 = vector.broadcast %189 : vector<8x1xf32> to vector<8x128xf32>
    %191 = arith.addf %166, %10 : vector<8x128xf32>
    %192 = arith.select %6, %190, %191 : vector<8x128xi1>, vector<8x128xf32>
    %c0_59 = arith.constant 0 : index
    %c0_60 = arith.constant 0 : index
    %193 = vector.load %arg1[%c0_59, %c0_60] : memref<128x512xf32, #tpu.memory_space<vmem>>, vector<128x512xf32>
    %cst_61 = arith.constant dense<0.000000e+00> : vector<8x512xf32>
    %194 = tpu.matmul %192, %193, %cst_61 {dimension_numbers = #tpu.dot_dimension_numbers<[1], [0], [0], [1], [0, 0, 1, 1], [], []>} : vector<8x128xf32>, vector<128x512xf32>, vector<8x512xf32> -> vector<8x512xf32>
    %195 = math.tanh %194 : vector<8x512xf32>
    %196 = vector.extract_strided_slice %195 {offsets = [0, 0], sizes = [8, 384], strides = [1, 1]} : vector<8x512xf32> to vector<8x384xf32>
    %cst_62 = arith.constant 5.000000e-01 : f32
    %197 = vector.broadcast %cst_62 : f32 to vector<8x384xf32>
    %198 = arith.mulf %197, %196 : vector<8x384xf32>
    %cst_63 = arith.constant 5.000000e-01 : f32
    %199 = vector.broadcast %cst_63 : f32 to vector<8x384xf32>
    %200 = arith.addf %198, %199 : vector<8x384xf32>
    %201 = vector.extract_strided_slice %195 {offsets = [0, 384], sizes = [8, 128], strides = [1, 1]} : vector<8x512xf32> to vector<8x128xf32>
    %202 = vector.extract_strided_slice %200 {offsets = [0, 0], sizes = [8, 128], strides = [1, 1]} : vector<8x384xf32> to vector<8x128xf32>
    %203 = vector.extract_strided_slice %200 {offsets = [0, 128], sizes = [8, 128], strides = [1, 1]} : vector<8x384xf32> to vector<8x128xf32>
    %204 = vector.extract_strided_slice %200 {offsets = [0, 256], sizes = [8, 128], strides = [1, 1]} : vector<8x384xf32> to vector<8x128xf32>
    %205 = arith.mulf %203, %164 : vector<8x128xf32>
    %206 = arith.mulf %202, %201 : vector<8x128xf32>
    %207 = arith.addf %205, %206 : vector<8x128xf32>
    %208 = math.tanh %207 : vector<8x128xf32>
    %209 = arith.mulf %204, %208 : vector<8x128xf32>
    %210 = tpu.concatenate %209, %185 in 1 : vector<8x128xf32>, vector<8x128xf32> -> vector<8x256xf32>
    %c0_64 = arith.constant 0 : index
    %c0_65 = arith.constant 0 : index
    %211 = vector.load %arg2[%c0_64, %c0_65] : memref<256x512xf32, #tpu.memory_space<vmem>>, vector<256x512xf32>
    %cst_66 = arith.constant dense<0.000000e+00> : vector<8x512xf32>
    %212 = tpu.matmul %210, %211, %cst_66 {dimension_numbers = #tpu.dot_dimension_numbers<[1], [0], [0], [1], [0, 0, 1, 1], [], []>} : vector<8x256xf32>, vector<256x512xf32>, vector<8x512xf32> -> vector<8x512xf32>
    %213 = arith.addf %212, %13 : vector<8x512xf32>
    %214 = math.tanh %213 : vector<8x512xf32>
    %215 = vector.extract_strided_slice %214 {offsets = [0, 0], sizes = [8, 384], strides = [1, 1]} : vector<8x512xf32> to vector<8x384xf32>
    %cst_67 = arith.constant 5.000000e-01 : f32
    %216 = vector.broadcast %cst_67 : f32 to vector<8x384xf32>
    %217 = arith.mulf %216, %215 : vector<8x384xf32>
    %cst_68 = arith.constant 5.000000e-01 : f32
    %218 = vector.broadcast %cst_68 : f32 to vector<8x384xf32>
    %219 = arith.addf %217, %218 : vector<8x384xf32>
    %220 = vector.extract_strided_slice %214 {offsets = [0, 384], sizes = [8, 128], strides = [1, 1]} : vector<8x512xf32> to vector<8x128xf32>
    %221 = vector.extract_strided_slice %219 {offsets = [0, 0], sizes = [8, 128], strides = [1, 1]} : vector<8x384xf32> to vector<8x128xf32>
    %222 = vector.extract_strided_slice %219 {offsets = [0, 128], sizes = [8, 128], strides = [1, 1]} : vector<8x384xf32> to vector<8x128xf32>
    %223 = vector.extract_strided_slice %219 {offsets = [0, 256], sizes = [8, 128], strides = [1, 1]} : vector<8x384xf32> to vector<8x128xf32>
    %224 = arith.mulf %222, %183 : vector<8x128xf32>
    %225 = arith.mulf %221, %220 : vector<8x128xf32>
    %226 = arith.addf %224, %225 : vector<8x128xf32>
    %227 = math.tanh %226 : vector<8x128xf32>
    %228 = arith.mulf %223, %227 : vector<8x128xf32>
    %c32 = arith.constant 32 : index
    %c0_69 = arith.constant 0 : index
    %229 = vector.load %arg7[%c32, %c0_69] : memref<64x128xf32, #tpu.memory_space<vmem>>, vector<8x128xf32>
    tpu.vector_store %arg7[%c32, %c0_69], %228 {strides = array<i32>} : memref<64x128xf32, #tpu.memory_space<vmem>>, vector<8x128xf32>,
    %c5 = arith.constant 5 : index
    %c0_70 = arith.constant 0 : index
    %c0_71 = arith.constant 0 : index
    %230 = vector.load %arg0[%c5, %c0_70, %c0_71] : memref<8x8x1xf32, #tpu.memory_space<vmem>>, vector<1x8x1xf32>
    %231 = vector.shape_cast %230 : vector<1x8x1xf32> to vector<8x1xf32>
    %232 = vector.shape_cast %231 : vector<8x1xf32> to vector<8x1xf32>
    %233 = vector.broadcast %232 : vector<8x1xf32> to vector<8x128xf32>
    %234 = arith.addf %209, %10 : vector<8x128xf32>
    %235 = arith.select %6, %233, %234 : vector<8x128xi1>, vector<8x128xf32>
    %c0_72 = arith.constant 0 : index
    %c0_73 = arith.constant 0 : index
    %236 = vector.load %arg1[%c0_72, %c0_73] : memref<128x512xf32, #tpu.memory_space<vmem>>, vector<128x512xf32>
    %cst_74 = arith.constant dense<0.000000e+00> : vector<8x512xf32>
    %237 = tpu.matmul %235, %236, %cst_74 {dimension_numbers = #tpu.dot_dimension_numbers<[1], [0], [0], [1], [0, 0, 1, 1], [], []>} : vector<8x128xf32>, vector<128x512xf32>, vector<8x512xf32> -> vector<8x512xf32>
    %238 = math.tanh %237 : vector<8x512xf32>
    %239 = vector.extract_strided_slice %238 {offsets = [0, 0], sizes = [8, 384], strides = [1, 1]} : vector<8x512xf32> to vector<8x384xf32>
    %cst_75 = arith.constant 5.000000e-01 : f32
    %240 = vector.broadcast %cst_75 : f32 to vector<8x384xf32>
    %241 = arith.mulf %240, %239 : vector<8x384xf32>
    %cst_76 = arith.constant 5.000000e-01 : f32
    %242 = vector.broadcast %cst_76 : f32 to vector<8x384xf32>
    %243 = arith.addf %241, %242 : vector<8x384xf32>
    %244 = vector.extract_strided_slice %238 {offsets = [0, 384], sizes = [8, 128], strides = [1, 1]} : vector<8x512xf32> to vector<8x128xf32>
    %245 = vector.extract_strided_slice %243 {offsets = [0, 0], sizes = [8, 128], strides = [1, 1]} : vector<8x384xf32> to vector<8x128xf32>
    %246 = vector.extract_strided_slice %243 {offsets = [0, 128], sizes = [8, 128], strides = [1, 1]} : vector<8x384xf32> to vector<8x128xf32>
    %247 = vector.extract_strided_slice %243 {offsets = [0, 256], sizes = [8, 128], strides = [1, 1]} : vector<8x384xf32> to vector<8x128xf32>
    %248 = arith.mulf %246, %207 : vector<8x128xf32>
    %249 = arith.mulf %245, %244 : vector<8x128xf32>
    %250 = arith.addf %248, %249 : vector<8x128xf32>
    %251 = math.tanh %250 : vector<8x128xf32>
    %252 = arith.mulf %247, %251 : vector<8x128xf32>
    %253 = tpu.concatenate %252, %228 in 1 : vector<8x128xf32>, vector<8x128xf32> -> vector<8x256xf32>
    %c0_77 = arith.constant 0 : index
    %c0_78 = arith.constant 0 : index
    %254 = vector.load %arg2[%c0_77, %c0_78] : memref<256x512xf32, #tpu.memory_space<vmem>>, vector<256x512xf32>
    %cst_79 = arith.constant dense<0.000000e+00> : vector<8x512xf32>
    %255 = tpu.matmul %253, %254, %cst_79 {dimension_numbers = #tpu.dot_dimension_numbers<[1], [0], [0], [1], [0, 0, 1, 1], [], []>} : vector<8x256xf32>, vector<256x512xf32>, vector<8x512xf32> -> vector<8x512xf32>
    %256 = arith.addf %255, %13 : vector<8x512xf32>
    %257 = math.tanh %256 : vector<8x512xf32>
    %258 = vector.extract_strided_slice %257 {offsets = [0, 0], sizes = [8, 384], strides = [1, 1]} : vector<8x512xf32> to vector<8x384xf32>
    %cst_80 = arith.constant 5.000000e-01 : f32
    %259 = vector.broadcast %cst_80 : f32 to vector<8x384xf32>
    %260 = arith.mulf %259, %258 : vector<8x384xf32>
    %cst_81 = arith.constant 5.000000e-01 : f32
    %261 = vector.broadcast %cst_81 : f32 to vector<8x384xf32>
    %262 = arith.addf %260, %261 : vector<8x384xf32>
    %263 = vector.extract_strided_slice %257 {offsets = [0, 384], sizes = [8, 128], strides = [1, 1]} : vector<8x512xf32> to vector<8x128xf32>
    %264 = vector.extract_strided_slice %262 {offsets = [0, 0], sizes = [8, 128], strides = [1, 1]} : vector<8x384xf32> to vector<8x128xf32>
    %265 = vector.extract_strided_slice %262 {offsets = [0, 128], sizes = [8, 128], strides = [1, 1]} : vector<8x384xf32> to vector<8x128xf32>
    %266 = vector.extract_strided_slice %262 {offsets = [0, 256], sizes = [8, 128], strides = [1, 1]} : vector<8x384xf32> to vector<8x128xf32>
    %267 = arith.mulf %265, %226 : vector<8x128xf32>
    %268 = arith.mulf %264, %263 : vector<8x128xf32>
    %269 = arith.addf %267, %268 : vector<8x128xf32>
    %270 = math.tanh %269 : vector<8x128xf32>
    %271 = arith.mulf %266, %270 : vector<8x128xf32>
    %c40 = arith.constant 40 : index
    %c0_82 = arith.constant 0 : index
    %272 = vector.load %arg7[%c40, %c0_82] : memref<64x128xf32, #tpu.memory_space<vmem>>, vector<8x128xf32>
    tpu.vector_store %arg7[%c40, %c0_82], %271 {strides = array<i32>} : memref<64x128xf32, #tpu.memory_space<vmem>>, vector<8x128xf32>,
    %c6 = arith.constant 6 : index
    %c0_83 = arith.constant 0 : index
    %c0_84 = arith.constant 0 : index
    %273 = vector.load %arg0[%c6, %c0_83, %c0_84] : memref<8x8x1xf32, #tpu.memory_space<vmem>>, vector<1x8x1xf32>
    %274 = vector.shape_cast %273 : vector<1x8x1xf32> to vector<8x1xf32>
    %275 = vector.shape_cast %274 : vector<8x1xf32> to vector<8x1xf32>
    %276 = vector.broadcast %275 : vector<8x1xf32> to vector<8x128xf32>
    %277 = arith.addf %252, %10 : vector<8x128xf32>
    %278 = arith.select %6, %276, %277 : vector<8x128xi1>, vector<8x128xf32>
    %c0_85 = arith.constant 0 : index
    %c0_86 = arith.constant 0 : index
    %279 = vector.load %arg1[%c0_85, %c0_86] : memref<128x512xf32, #tpu.memory_space<vmem>>, vector<128x512xf32>
    %cst_87 = arith.constant dense<0.000000e+00> : vector<8x512xf32>
    %280 = tpu.matmul %278, %279, %cst_87 {dimension_numbers = #tpu.dot_dimension_numbers<[1], [0], [0], [1], [0, 0, 1, 1], [], []>} : vector<8x128xf32>, vector<128x512xf32>, vector<8x512xf32> -> vector<8x512xf32>
    %281 = math.tanh %280 : vector<8x512xf32>
    %282 = vector.extract_strided_slice %281 {offsets = [0, 0], sizes = [8, 384], strides = [1, 1]} : vector<8x512xf32> to vector<8x384xf32>
    %cst_88 = arith.constant 5.000000e-01 : f32
    %283 = vector.broadcast %cst_88 : f32 to vector<8x384xf32>
    %284 = arith.mulf %283, %282 : vector<8x384xf32>
    %cst_89 = arith.constant 5.000000e-01 : f32
    %285 = vector.broadcast %cst_89 : f32 to vector<8x384xf32>
    %286 = arith.addf %284, %285 : vector<8x384xf32>
    %287 = vector.extract_strided_slice %281 {offsets = [0, 384], sizes = [8, 128], strides = [1, 1]} : vector<8x512xf32> to vector<8x128xf32>
    %288 = vector.extract_strided_slice %286 {offsets = [0, 0], sizes = [8, 128], strides = [1, 1]} : vector<8x384xf32> to vector<8x128xf32>
    %289 = vector.extract_strided_slice %286 {offsets = [0, 128], sizes = [8, 128], strides = [1, 1]} : vector<8x384xf32> to vector<8x128xf32>
    %290 = vector.extract_strided_slice %286 {offsets = [0, 256], sizes = [8, 128], strides = [1, 1]} : vector<8x384xf32> to vector<8x128xf32>
    %291 = arith.mulf %289, %250 : vector<8x128xf32>
    %292 = arith.mulf %288, %287 : vector<8x128xf32>
    %293 = arith.addf %291, %292 : vector<8x128xf32>
    %294 = math.tanh %293 : vector<8x128xf32>
    %295 = arith.mulf %290, %294 : vector<8x128xf32>
    %296 = tpu.concatenate %295, %271 in 1 : vector<8x128xf32>, vector<8x128xf32> -> vector<8x256xf32>
    %c0_90 = arith.constant 0 : index
    %c0_91 = arith.constant 0 : index
    %297 = vector.load %arg2[%c0_90, %c0_91] : memref<256x512xf32, #tpu.memory_space<vmem>>, vector<256x512xf32>
    %cst_92 = arith.constant dense<0.000000e+00> : vector<8x512xf32>
    %298 = tpu.matmul %296, %297, %cst_92 {dimension_numbers = #tpu.dot_dimension_numbers<[1], [0], [0], [1], [0, 0, 1, 1], [], []>} : vector<8x256xf32>, vector<256x512xf32>, vector<8x512xf32> -> vector<8x512xf32>
    %299 = arith.addf %298, %13 : vector<8x512xf32>
    %300 = math.tanh %299 : vector<8x512xf32>
    %301 = vector.extract_strided_slice %300 {offsets = [0, 0], sizes = [8, 384], strides = [1, 1]} : vector<8x512xf32> to vector<8x384xf32>
    %cst_93 = arith.constant 5.000000e-01 : f32
    %302 = vector.broadcast %cst_93 : f32 to vector<8x384xf32>
    %303 = arith.mulf %302, %301 : vector<8x384xf32>
    %cst_94 = arith.constant 5.000000e-01 : f32
    %304 = vector.broadcast %cst_94 : f32 to vector<8x384xf32>
    %305 = arith.addf %303, %304 : vector<8x384xf32>
    %306 = vector.extract_strided_slice %300 {offsets = [0, 384], sizes = [8, 128], strides = [1, 1]} : vector<8x512xf32> to vector<8x128xf32>
    %307 = vector.extract_strided_slice %305 {offsets = [0, 0], sizes = [8, 128], strides = [1, 1]} : vector<8x384xf32> to vector<8x128xf32>
    %308 = vector.extract_strided_slice %305 {offsets = [0, 128], sizes = [8, 128], strides = [1, 1]} : vector<8x384xf32> to vector<8x128xf32>
    %309 = vector.extract_strided_slice %305 {offsets = [0, 256], sizes = [8, 128], strides = [1, 1]} : vector<8x384xf32> to vector<8x128xf32>
    %310 = arith.mulf %308, %269 : vector<8x128xf32>
    %311 = arith.mulf %307, %306 : vector<8x128xf32>
    %312 = arith.addf %310, %311 : vector<8x128xf32>
    %313 = math.tanh %312 : vector<8x128xf32>
    %314 = arith.mulf %309, %313 : vector<8x128xf32>
    %c48 = arith.constant 48 : index
    %c0_95 = arith.constant 0 : index
    %315 = vector.load %arg7[%c48, %c0_95] : memref<64x128xf32, #tpu.memory_space<vmem>>, vector<8x128xf32>
    tpu.vector_store %arg7[%c48, %c0_95], %314 {strides = array<i32>} : memref<64x128xf32, #tpu.memory_space<vmem>>, vector<8x128xf32>,
    %c7 = arith.constant 7 : index
    %c0_96 = arith.constant 0 : index
    %c0_97 = arith.constant 0 : index
    %316 = vector.load %arg0[%c7, %c0_96, %c0_97] : memref<8x8x1xf32, #tpu.memory_space<vmem>>, vector<1x8x1xf32>
    %317 = vector.shape_cast %316 : vector<1x8x1xf32> to vector<8x1xf32>
    %318 = vector.shape_cast %317 : vector<8x1xf32> to vector<8x1xf32>
    %319 = vector.broadcast %318 : vector<8x1xf32> to vector<8x128xf32>
    %320 = arith.addf %295, %10 : vector<8x128xf32>
    %321 = arith.select %6, %319, %320 : vector<8x128xi1>, vector<8x128xf32>
    %c0_98 = arith.constant 0 : index
    %c0_99 = arith.constant 0 : index
    %322 = vector.load %arg1[%c0_98, %c0_99] : memref<128x512xf32, #tpu.memory_space<vmem>>, vector<128x512xf32>
    %cst_100 = arith.constant dense<0.000000e+00> : vector<8x512xf32>
    %323 = tpu.matmul %321, %322, %cst_100 {dimension_numbers = #tpu.dot_dimension_numbers<[1], [0], [0], [1], [0, 0, 1, 1], [], []>} : vector<8x128xf32>, vector<128x512xf32>, vector<8x512xf32> -> vector<8x512xf32>
    %324 = math.tanh %323 : vector<8x512xf32>
    %325 = vector.extract_strided_slice %324 {offsets = [0, 0], sizes = [8, 384], strides = [1, 1]} : vector<8x512xf32> to vector<8x384xf32>
    %cst_101 = arith.constant 5.000000e-01 : f32
    %326 = vector.broadcast %cst_101 : f32 to vector<8x384xf32>
    %327 = arith.mulf %326, %325 : vector<8x384xf32>
    %cst_102 = arith.constant 5.000000e-01 : f32
    %328 = vector.broadcast %cst_102 : f32 to vector<8x384xf32>
    %329 = arith.addf %327, %328 : vector<8x384xf32>
    %330 = vector.extract_strided_slice %324 {offsets = [0, 384], sizes = [8, 128], strides = [1, 1]} : vector<8x512xf32> to vector<8x128xf32>
    %331 = vector.extract_strided_slice %329 {offsets = [0, 0], sizes = [8, 128], strides = [1, 1]} : vector<8x384xf32> to vector<8x128xf32>
    %332 = vector.extract_strided_slice %329 {offsets = [0, 128], sizes = [8, 128], strides = [1, 1]} : vector<8x384xf32> to vector<8x128xf32>
    %333 = vector.extract_strided_slice %329 {offsets = [0, 256], sizes = [8, 128], strides = [1, 1]} : vector<8x384xf32> to vector<8x128xf32>
    %334 = arith.mulf %332, %293 : vector<8x128xf32>
    %335 = arith.mulf %331, %330 : vector<8x128xf32>
    %336 = arith.addf %334, %335 : vector<8x128xf32>
    %337 = math.tanh %336 : vector<8x128xf32>
    %338 = arith.mulf %333, %337 : vector<8x128xf32>
    %339 = tpu.concatenate %338, %314 in 1 : vector<8x128xf32>, vector<8x128xf32> -> vector<8x256xf32>
    %c0_103 = arith.constant 0 : index
    %c0_104 = arith.constant 0 : index
    %340 = vector.load %arg2[%c0_103, %c0_104] : memref<256x512xf32, #tpu.memory_space<vmem>>, vector<256x512xf32>
    %cst_105 = arith.constant dense<0.000000e+00> : vector<8x512xf32>
    %341 = tpu.matmul %339, %340, %cst_105 {dimension_numbers = #tpu.dot_dimension_numbers<[1], [0], [0], [1], [0, 0, 1, 1], [], []>} : vector<8x256xf32>, vector<256x512xf32>, vector<8x512xf32> -> vector<8x512xf32>
    %342 = arith.addf %341, %13 : vector<8x512xf32>
    %343 = math.tanh %342 : vector<8x512xf32>
    %344 = vector.extract_strided_slice %343 {offsets = [0, 0], sizes = [8, 384], strides = [1, 1]} : vector<8x512xf32> to vector<8x384xf32>
    %cst_106 = arith.constant 5.000000e-01 : f32
    %345 = vector.broadcast %cst_106 : f32 to vector<8x384xf32>
    %346 = arith.mulf %345, %344 : vector<8x384xf32>
    %cst_107 = arith.constant 5.000000e-01 : f32
    %347 = vector.broadcast %cst_107 : f32 to vector<8x384xf32>
    %348 = arith.addf %346, %347 : vector<8x384xf32>
    %349 = vector.extract_strided_slice %343 {offsets = [0, 384], sizes = [8, 128], strides = [1, 1]} : vector<8x512xf32> to vector<8x128xf32>
    %350 = vector.extract_strided_slice %348 {offsets = [0, 0], sizes = [8, 128], strides = [1, 1]} : vector<8x384xf32> to vector<8x128xf32>
    %351 = vector.extract_strided_slice %348 {offsets = [0, 128], sizes = [8, 128], strides = [1, 1]} : vector<8x384xf32> to vector<8x128xf32>
    %352 = vector.extract_strided_slice %348 {offsets = [0, 256], sizes = [8, 128], strides = [1, 1]} : vector<8x384xf32> to vector<8x128xf32>
    %353 = arith.mulf %351, %312 : vector<8x128xf32>
    %354 = arith.mulf %350, %349 : vector<8x128xf32>
    %355 = arith.addf %353, %354 : vector<8x128xf32>
    %356 = math.tanh %355 : vector<8x128xf32>
    %357 = arith.mulf %352, %356 : vector<8x128xf32>
    %c56 = arith.constant 56 : index
    %c0_108 = arith.constant 0 : index
    %358 = vector.load %arg7[%c56, %c0_108] : memref<64x128xf32, #tpu.memory_space<vmem>>, vector<8x128xf32>
    tpu.vector_store %arg7[%c56, %c0_108], %357 {strides = array<i32>} : memref<64x128xf32, #tpu.memory_space<vmem>>, vector<8x128xf32>,
    %c0_109 = arith.constant 0 : index
    %c0_110 = arith.constant 0 : index
    %359 = vector.load %arg7[%c0_109, %c0_110] : memref<64x128xf32, #tpu.memory_space<vmem>>, vector<64x128xf32>
    %c0_111 = arith.constant 0 : index
    %c0_112 = arith.constant 0 : index
    %360 = vector.load %arg4[%c0_111, %c0_112] : memref<128x128xf32, #tpu.memory_space<vmem>>, vector<128x128xf32>
    %cst_113 = arith.constant dense<0.000000e+00> : vector<64x128xf32>
    %361 = tpu.matmul %359, %360, %cst_113 {dimension_numbers = #tpu.dot_dimension_numbers<[1], [0], [0], [1], [0, 0, 1, 1], [], []>} : vector<64x128xf32>, vector<128x128xf32>, vector<64x128xf32> -> vector<64x128xf32>
    %362 = vector.broadcast %14 : vector<1x128xf32> to vector<64x128xf32>
    %363 = arith.addf %361, %362 : vector<64x128xf32>
    %c0_114 = arith.constant 0 : index
    %c0_115 = arith.constant 0 : index
    %364 = vector.load %arg6[%c0_114, %c0_115] : memref<64x128xf32, #tpu.memory_space<vmem>>, vector<64x128xf32>
    tpu.vector_store %arg6[%c0_114, %c0_115], %363 {strides = array<i32>} : memref<64x128xf32, #tpu.memory_space<vmem>>, vector<64x128xf32>,
    return
  }
}

</mosaic_0001>

<bundles_post_ra>
// kernel: sequence_forward.1
= control target key start
LH: loop header
LB: loop body
LE: loop exit
PB: predicated region body
PF: predicated region fallthrough
CT: control target
= control target key end

     0   :  { %11 = vsyncpa [#allocation4], 0  ;;  %s7491_s0 = inlined_call_operand.vmem [shape: f32[8,8,1], index: 0, kind: input, shape index: {}]   ;;  %s7492_s1 = inlined_call_operand.hbm [shape: f32[128,512], index: 1, kind: input, shape index: {}]   ;;  %s7493_s2 = inlined_call_operand.hbm [shape: f32[256,512], index: 2, kind: input, shape index: {}]   ;;  %s7494_s3 = inlined_call_operand.vmem [shape: f32[1,512], index: 3, kind: input, shape index: {}]   ;;  %s7495_s4 = inlined_call_operand.hbm [shape: f32[128,128], index: 4, kind: input, shape index: {}]   ;;  %s7496_s5 = inlined_call_operand.vmem [shape: f32[1,128], index: 5, kind: input, shape index: {}]   ;;  %s7497_s6 = inlined_call_operand.vmem [shape: f32[64,128], index: 6, kind: output, shape index: {}]  }
   0x1   :  { %12 = vsyncpa [#allocation6], 0  ;;  %s32_s23 = sshll.u32 %s7493_s2, 4  ;;  %s4222_s24 = smov [#allocation5]   ;;  %s33_s23 = int_to_ptr.hbm [resolvable:$true] %s32_s23 }
   0x2   :  { %s34_s25 = sshll.u32 %s4222_s24, 4  ;;  %s19_s28 = sshll.u32 %s7492_s1, 4  ;;  %s35_s25 = int_to_ptr.vmem [resolvable:$true] %s34_s25  ;;  %s20_s28 = int_to_ptr.hbm [resolvable:$true] %s19_s28 }
   0x3   :  { %s4223_s29 = smov 512   ;;  %s4224_s30 = smov 32  }
   0x4   :  { %40 = dma.hbm_to_vmem [thread:$0]  %s33_s23, 16384, %s35_s25, [#allocation6], %s4223_s29, %s4223_s29, %s4224_s30  }
   0x5   :  { %s4225_s7 = smov [#allocation3]   ;;  %s47_s11 = sshll.u32 %s7495_s4, 4  ;;  %s48_s11 = int_to_ptr.hbm [resolvable:$true] %s47_s11 }
   0x6   :  { %s21_s8 = sshll.u32 %s4225_s7, 4  ;;  %s4226_s2 = smov [#allocation7]   ;;  %s22_s8 = int_to_ptr.vmem [resolvable:$true] %s21_s8 }
   0x7   :  { %27 = dma.hbm_to_vmem [thread:$0]  %s20_s28, 8192, %s22_s8, [#allocation4], %s4223_s29, %s4223_s29, %s4224_s30  }
   0x8   :  { %s49_s12 = sshll.u32 %s4226_s2, 4  ;;  %s4227_s13 = smov 128   ;;  %s50_s12 = int_to_ptr.vmem [resolvable:$true] %s49_s12 }
   0x9   :  { %s4228_s14 = smov 8  }
   0xa   :  { %55 = dma.hbm_to_vmem [thread:$0]  %s48_s11, 2048, %s50_s12, [#allocation6], %s4227_s13, %s4227_s13, %s4228_s14  }
   0xb   :  { %4218 = dma.done.wait [#allocation4], 8192  }
   0xc   :  { %4219 = vsyncadd [#allocation4], 4294959104 }
   0xd   :  { %4220 = dma.done.wait [#allocation6], 18432  }
   0xe   :  { %4221 = vsyncadd [#allocation6], 4294948864  ;;  %v4229_v0 = vmov 0   ;;  %v90_v1 = vld [vmem:[%s7491_s0] sm:$0xff]  ;;  %v160_v6 = vld [vmem:[#allocation3 + $0x1f0] sm:$0xff] }
   0xf   :  { %3970 = vset.pattern.permute.xlu0 %v4229_v0  ;;  %3971 = vset.pattern.permute.xlu1 %v4229_v0  ;;  %v4279_v2 = vld [vmem:[#allocation3 + $0x1e0] sm:$0xff]  ;;  %v4289_v7 = vld [vmem:[#allocation3 + $0x1f8] sm:$0xff]  ;;  %v3953_v8 = vld [vmem:[%s7491_s0 + $0x8] sm:$0xff] }
  0x10   :  { %3972 = vset.pattern.permute.xlu2 %v4229_v0  ;;  %93 = vperm.xlu0 %3970, %v90_v1   ;;  %v4281_v3 = vld [vmem:[#allocation3 + $0x1c0] sm:$0xff]  ;;  %v156_v9 = vld [vmem:[#allocation3 + $0x1d0] sm:$0xff]  ;;  %v4295_v10 = vld [vmem:[#allocation3 + $0x1d8] sm:$0xff] }
  0x11   :  { %162 = vmatpush.msra.mxu1 %v4279_v2  ;;  %v4284_v4 = vld [vmem:[#allocation3 + $0x1a0] sm:$0xff]  ;;  %202 = vmatpush.msra.mxu2 %v160_v6  ;;  %v152_v12 = vld [vmem:[#allocation3 + $0x1b0] sm:$0xff]  ;;  %v4301_v13 = vld [vmem:[#allocation3 + $0x1b8] sm:$0xff] }
  0x12   :  { %v4287_v5 = vld [vmem:[#allocation3 + $0x180] sm:$0xff]  ;;  %222 = vmatpush.msra.mxu3 %v4289_v7  ;;  %v148_v15 = vld [vmem:[#allocation3 + $0x190] sm:$0xff]  ;;  %v4307_v16 = vld [vmem:[#allocation3 + $0x198] sm:$0xff] }
  0x13   :  { %163 = vmatpush.msra.mxu1 %v4281_v3  ;;  %v4297_v11 = vld [vmem:[#allocation3 + $0x160] sm:$0xff]  ;;  %203 = vmatpush.msra.mxu2 %v156_v9  ;;  %v144_v18 = vld [vmem:[#allocation3 + $0x170] sm:$0xff]  ;;  %v4313_v19 = vld [vmem:[#allocation3 + $0x178] sm:$0xff]  ;;  %v70_v9 = vlaneseq }
  0x14   :  { %v4303_v14 = vld [vmem:[#allocation3 + $0x140] sm:$0xff]  ;;  %223 = vmatpush.msra.mxu3 %v4295_v10  ;;  %v140_v21 = vld [vmem:[#allocation3 + $0x150] sm:$0xff]  ;;  %v4322_v23 = vld [vmem:[#allocation3 + $0x158] sm:$0xff] }
  0x15   :  { %164 = vmatpush.msra.mxu1 %v4284_v4  ;;  %204 = vmatpush.msra.mxu2 %v152_v12  ;;  %v4309_v17 = vld [vmem:[#allocation3 + $0x120] sm:$0xff]  ;;  %v3958_v22 = vld [vmem:[%s7491_s0 + $0x30] sm:$0xff]  ;;  %v4328_v26 = vld [vmem:[#allocation3 + $0x138] sm:$0xff] }
  0x16   :  { %224 = vmatpush.msra.mxu3 %v4301_v13  ;;  %v4315_v20 = vld [vmem:[#allocation3 + $0x100] sm:$0xff]  ;;  %v136_v25 = vld [vmem:[#allocation3 + $0x130] sm:$0xff]  ;;  %v4334_v29 = vld [vmem:[#allocation3 + $0x118] sm:$0xff] }
  0x17   :  { %165 = vmatpush.msra.mxu1 %v4287_v5  ;;  %205 = vmatpush.msra.mxu2 %v148_v15  ;;  %v4324_v24 = vld [vmem:[#allocation3 + $0xe0] sm:$0xff]  ;;  %v132_v28 = vld [vmem:[#allocation3 + $0x110] sm:$0xff]  ;;  %v4340_v32 = vld [vmem:[#allocation3 + $0xf8] sm:$0xff] }
  0x18   :  { %565 = vperm.xlu0 %3970, %v3953_v8   ;;  %225 = vmatpush.msra.mxu3 %v4307_v16  ;;  %v4330_v27 = vld [vmem:[#allocation3 + $0xc0] sm:$0xff]  ;;  %v128_v31 = vld [vmem:[#allocation3 + $0xf0] sm:$0xff]  ;;  %v4346_v35 = vld [vmem:[#allocation3 + $0xd8] sm:$0xff] }
  0x19   :  { %166 = vmatpush.msra.mxu1 %v4297_v11  ;;  %206 = vmatpush.msra.mxu2 %v144_v18  ;;  %v4336_v30 = vld [vmem:[#allocation3 + $0xa0] sm:$0xff]  ;;  %v124_v34 = vld [vmem:[#allocation3 + $0xd0] sm:$0xff]  ;;  %v4352_v38 = vld [vmem:[#allocation3 + $0xb8] sm:$0xff] }
  0x1a   :  { %226 = vmatpush.msra.mxu3 %v4313_v19  ;;  %v4342_v33 = vld [vmem:[#allocation3 + $0x80] sm:$0xff]  ;;  %v120_v37 = vld [vmem:[#allocation3 + $0xb0] sm:$0xff]  ;;  %v4358_v41 = vld [vmem:[#allocation3 + $0x98] sm:$0xff] }
  0x1b   :  { %167 = vmatpush.msra.mxu1 %v4303_v14  ;;  %207 = vmatpush.msra.mxu2 %v140_v21  ;;  %v4348_v36 = vld [vmem:[#allocation3 + $0x60] sm:$0xff]  ;;  %v116_v40 = vld [vmem:[#allocation3 + $0x90] sm:$0xff]  ;;  %v4366_v44 = vld [vmem:[#allocation3 + $0x78] sm:$0xff]  ;;  %v4448_v21 = vand.u32 127, %v70_v9 }
  0x1c   :  { %227 = vmatpush.msra.mxu3 %v4322_v23  ;;  %v4354_v39 = vld [vmem:[#allocation3 + $0x40] sm:$0xff]  ;;  %v4363_v43 = vld [vmem:[#allocation3 + $0x70] sm:$0xff]  ;;  %v4374_v47 = vld [vmem:[#allocation3 + $0x1e8] sm:$0xff] }
  0x1d   :  { %168 = vmatpush.msra.mxu1 %v4309_v17  ;;  %208 = vmatpush.msra.mxu2 %v136_v25  ;;  %v4360_v42 = vld [vmem:[#allocation3 + $0x20] sm:$0xff]  ;;  %7998 = vst [vmem:[#allocation10_spill] sm:$0xff] %v4363_v43  ;;  %v4371_v46 = vld [vmem:[#allocation3 + $0x50] sm:$0xff]  ;;  %v4377_v48 = vld [vmem:[#allocation3 + $0x58] sm:$0xff]  ;;  %vm72_vm0 = vcmp.lt.s32.totalorder %v4448_v21, 51  ;;  %vm76_vm1 = vcmp.eq.s32.totalorder %v4448_v21, 52 }
  0x1e   :  { %228 = vmatpush.msra.mxu3 %v4328_v26  ;;  %v4368_v45 = vld [vmem:[#allocation3] sm:$0xff]  ;;  %8000 = vst [vmem:[#allocation12_spill] sm:$0xff] %v4371_v46  ;;  %v4380_v49 = vld [vmem:[#allocation3 + $0x30] sm:$0xff]  ;;  %v4383_v50 = vld [vmem:[#allocation3 + $0x1c8] sm:$0xff]  ;;  %vm75_vm2 = vcmp.eq.s32.totalorder %v4448_v21, 51 }
  0x1f   :  { %169 = vmatpush.msra.mxu1 %v4315_v20  ;;  %209 = vmatpush.msra.mxu2 %v132_v28  ;;  %7999 = vst [vmem:[#allocation11_spill] sm:$0xff] %v4368_v45  ;;  %v4386_v51 = vld [vmem:[#allocation3 + $0x38] sm:$0xff]  ;;  %v4390_v52 = vld [vmem:[#allocation3 + $0x1a8] sm:$0xff]  ;;  %v4422_v62 = vld [vmem:[#allocation3 + $0x10] sm:$0xff] }
  0x20   :  { %2925 = vperm.xlu0 %3970, %v3958_v22   ;;  %229 = vmatpush.msra.mxu3 %v4334_v29  ;;  %8001 = vst [vmem:[#allocation13_spill] sm:$0xff] %v4380_v49  ;;  %v4395_v53 = vld [vmem:[#allocation3 + $0x188] sm:$0xff]  ;;  %v4424_v63 = vld [vmem:[#allocation3 + $0x18] sm:$0xff] }
  0x21   :  { %170 = vmatpush.msra.mxu1 %v4324_v24  ;;  %210 = vmatpush.msra.mxu2 %v128_v31  ;;  %v4398_v54 = vld [vmem:[#allocation3 + $0x168] sm:$0xff]  ;;  %8002 = vst [vmem:[#allocation14_spill] sm:$0xff] %v4422_v62  ;;  %v4230_v31 = vmov 0.0  }
  0x22   :  { %230 = vmatpush.msra.mxu3 %v4340_v32  ;;  %v4401_v55 = vld [vmem:[#allocation3 + $0x148] sm:$0xff]  ;;  %8004 = vst [vmem:[#allocation16_spill] sm:$0xff] %v4448_v21  ;;  %v5223_v21 = vld [vmem:[#allocation5 + $0x3c0] sm:$0xff] }
  0x23   :  { %171 = vmatpush.msra.mxu1 %v4330_v27  ;;  %211 = vmatpush.msra.mxu2 %v124_v34  ;;  %v4404_v56 = vld [vmem:[#allocation3 + $0x128] sm:$0xff]  ;;  %v4464_v34 = vsel %vm72_vm0, 1.0, %v4230_v31 }
  0x24   :  { %231 = vmatpush.msra.mxu3 %v4346_v35  ;;  %v4407_v57 = vld [vmem:[#allocation3 + $0x108] sm:$0xff]  ;;  %8008 = vst [vmem:[#allocation20_spill] sm:$0xff] %v4464_v34 }
  0x25   :  { %172 = vmatpush.msra.mxu1 %v4336_v30  ;;  %212 = vmatpush.msra.mxu2 %v120_v37  ;;  %v4410_v58 = vld [vmem:[#allocation3 + $0xe8] sm:$0xff]  ;;  %v4466_v37 = vsel %vm76_vm1, 1.0, %v4230_v31  ;;  %v4483_v31 = vld [vmem:[#allocation5 + $0x1c0] sm:$0xff] }
  0x26   :  { %232 = vmatpush.msra.mxu3 %v4352_v38  ;;  %v4413_v59 = vld [vmem:[#allocation3 + $0xc8] sm:$0xff]  ;;  %8009 = vst [vmem:[#allocation21_spill] sm:$0xff] %v4466_v37 }
  0x27   :  { %173 = vmatpush.msra.mxu1 %v4342_v33  ;;  %213 = vmatpush.msra.mxu2 %v116_v40  ;;  %v4416_v60 = vld [vmem:[#allocation3 + $0xa8] sm:$0xff]  ;;  %8014 = vst [vmem:[#allocation26_spill] sm:$0xff] %v4483_v31 }
  0x28   :  { %233 = vmatpush.msra.mxu3 %v4358_v41  ;;  %v4420_v61 = vld [vmem:[#allocation3 + $0x88] sm:$0xff] }
  0x29   :  { %174 = vmatpush.msra.mxu1 %v4348_v36  ;;  %214 = vmatpush.msra.mxu2 %v4363_v43  ;;  %v4429_v0 = vld [vmem:[#allocation3 + $0x68] sm:$0xff] }
  0x2a   :  { %234 = vmatpush.msra.mxu3 %v4366_v44  ;;  %v4431_v1 = vld [vmem:[#allocation3 + $0x48] sm:$0xff] }
  0x2b   :  { %175 = vmatpush.msra.mxu1 %v4354_v39  ;;  %215 = vmatpush.msra.mxu2 %v4371_v46  ;;  %v4434_v6 = vld [vmem:[#allocation3 + $0x28] sm:$0xff] }
  0x2c   :  { %235 = vmatpush.msra.mxu3 %v4377_v48  ;;  %v4438_v8 = vld [vmem:[#allocation3 + $0x8] sm:$0xff] }
  0x2d   :  { %176 = vmatpush.msra.mxu1 %v4360_v42  ;;  %216 = vmatpush.msra.mxu2 %v4380_v49  ;;  %v4441_v12 = vld [vmem:[#allocation5 + $0x3e8] sm:$0xff]  ;;  %v4476_v49 = vld [vmem:[#allocation5 + $0x1e0] sm:$0xff] }
  0x2e   :  { %236 = vmatpush.msra.mxu3 %v4386_v51  ;;  %v4444_v15 = vld [vmem:[#allocation5 + $0x3c8] sm:$0xff]  ;;  %8012 = vst [vmem:[#allocation24_spill] sm:$0xff] %v4476_v49 }
  0x2f   :  { %177 = vmatpush.msra.mxu1 %v4368_v45  ;;  %217 = vmatpush.msra.mxu2 %v4422_v62  ;;  %v4446_v18 = vld [vmem:[#allocation5 + $0x3a8] sm:$0xff]  ;;  %v96_v62 = vadd.f32 %v4466_v37, %v4464_v34  ;;  %v4493_v34 = vld [vmem:[#allocation5 + $0x3c0] sm:$0xff]  ;;  %v315_v45 = vld [vmem:[#allocation5 + $0x1d0] sm:$0xff] }
  0x30   :  { %237 = vmatpush.msra.mxu3 %v4424_v63  ;;  %8003 = vst [vmem:[#allocation15_spill] sm:$0xff] %v4446_v18  ;;  %v4451_v22 = vld [vmem:[#allocation5 + $0x388] sm:$0xff] }
  0x31   :  { %182 = vmatpush.msrb.mxu1 %v4374_v47  ;;  %8005 = vst [vmem:[#allocation17_spill] sm:$0xff] %v4451_v22  ;;  %v4454_v25 = vld [vmem:[#allocation5 + $0x368] sm:$0xff]  ;;  %385 = vmatpush.msrb.mxu2 %v4476_v49  ;;  %v4495_v49 = vld [vmem:[#allocation5 + $0x1a0] sm:$0xff] }
  0x32   :  { %445 = vmatpush.msrb.mxu3 %v4441_v12  ;;  %8006 = vst [vmem:[#allocation18_spill] sm:$0xff] %v4454_v25  ;;  %v4459_v28 = vld [vmem:[#allocation5 + $0x348] sm:$0xff] }
  0x33   :  { %183 = vmatpush.msrb.mxu1 %v4383_v50  ;;  %8007 = vst [vmem:[#allocation19_spill] sm:$0xff] %v4459_v28  ;;  %v4468_v40 = vld [vmem:[#allocation5 + $0x328] sm:$0xff]  ;;  %386 = vmatpush.msrb.mxu2 %v4483_v31  ;;  %v4509_v31 = vld [vmem:[#allocation5 + $0x380] sm:$0xff] }
  0x34   :  { %446 = vmatpush.msrb.mxu3 %v4444_v15  ;;  %8010 = vst [vmem:[#allocation22_spill] sm:$0xff] %v4468_v40  ;;  %v4471_v9 = vld [vmem:[#allocation5 + $0x308] sm:$0xff] }
  0x35   :  { %184 = vmatpush.msrb.mxu1 %v4390_v52  ;;  %8011 = vst [vmem:[#allocation23_spill] sm:$0xff] %v4471_v9  ;;  %v4479_v46 = vld [vmem:[#allocation5 + $0x2e8] sm:$0xff]  ;;  %387 = vmatpush.msrb.mxu2 %v4495_v49 }
  0x36   :  { %447 = vmatpush.msrb.mxu3 %v4446_v18  ;;  %8013 = vst [vmem:[#allocation25_spill] sm:$0xff] %v4479_v46  ;;  %v4522_v18 = vld [vmem:[#allocation5 + $0x140] sm:$0xff] }
  0x37   :  { %185 = vmatpush.msrb.mxu1 %v4395_v53  ;;  %8016 = vst [vmem:[#allocation28_spill] sm:$0xff] %v4495_v49  ;;  %v4518_v49 = vld [vmem:[#allocation5 + $0x360] sm:$0xff] }
  0x38   :  { %448 = vmatpush.msrb.mxu3 %v4451_v22  ;;  %8021 = vst [vmem:[#allocation33_spill] sm:$0xff] %v4509_v31  ;;  %v319_v22 = vld [vmem:[#allocation5 + $0x1f0] sm:$0xff] }
  0x39   :  { %186 = vmatpush.msrb.mxu1 %v4398_v54  ;;  %465 = vmatpush.msra.mxu0 %v319_v22  ;;  %8024 = vst [vmem:[#allocation36_spill] sm:$0xff] %v4518_v49  ;;  %v4530_v22 = vld [vmem:[#allocation5 + $0x120] sm:$0xff] }
  0x3a   :  { %449 = vmatpush.msrb.mxu3 %v4454_v25  ;;  %v4500_v25 = vld [vmem:[#allocation5 + $0x3a0] sm:$0xff]  ;;  %8025 = vst [vmem:[#allocation37_spill] sm:$0xff] %v4522_v18 }
  0x3b   :  { %187 = vmatpush.msrb.mxu1 %v4401_v55  ;;  %8018 = vst [vmem:[#allocation30_spill] sm:$0xff] %v4500_v25  ;;  %466 = vmatpush.msra.mxu0 %v315_v45  ;;  %v4539_v45 = vld [vmem:[#allocation5 + $0x100] sm:$0xff] }
  0x3c   :  { %450 = vmatpush.msrb.mxu3 %v4459_v28  ;;  %v4485_v28 = vld [vmem:[#allocation5 + $0x3e0] sm:$0xff]  ;;  %8028 = vst [vmem:[#allocation40_spill] sm:$0xff] %v4530_v22 }
  0x3d   :  { %188 = vmatpush.msrb.mxu1 %v4404_v56  ;;  %8031 = vst [vmem:[#allocation43_spill] sm:$0xff] %v4539_v45 }
  0x3e   :  { %451 = vmatpush.msrb.mxu3 %v4468_v40  ;;  %v4491_v40 = vld [vmem:[#allocation5 + $0x2c8] sm:$0xff] }
  0x3f   :  { %189 = vmatpush.msrb.mxu1 %v4407_v57  ;;  %8015 = vst [vmem:[#allocation27_spill] sm:$0xff] %v4491_v40 }
  0x40   :  { %452 = vmatpush.msrb.mxu3 %v4471_v9  ;;  %v4498_v9 = vld [vmem:[#allocation5 + $0x2a8] sm:$0xff] }
  0x41   :  { %190 = vmatpush.msrb.mxu1 %v4410_v58  ;;  %8017 = vst [vmem:[#allocation29_spill] sm:$0xff] %v4498_v9 }
  0x42   :  { %453 = vmatpush.msrb.mxu3 %v4479_v46  ;;  %v4513_v46 = vld [vmem:[#allocation5 + $0x160] sm:$0xff] }
  0x43   :  { %191 = vmatpush.msrb.mxu1 %v4413_v59  ;;  %8022 = vst [vmem:[#allocation34_spill] sm:$0xff] %v4513_v46 }
  0x44   :  { %454 = vmatpush.msrb.mxu3 %v4491_v40  ;;  %v4516_v40 = vld [vmem:[#allocation5 + $0x268] sm:$0xff] }
  0x45   :  { %192 = vmatpush.msrb.mxu1 %v4416_v60  ;;  %8023 = vst [vmem:[#allocation35_spill] sm:$0xff] %v4516_v40 }
  0x46   :  { %455 = vmatpush.msrb.mxu3 %v4498_v9  ;;  %v4527_v9 = vld [vmem:[#allocation5 + $0x340] sm:$0xff] }
  0x47   :  { %193 = vmatpush.msrb.mxu1 %v4420_v61  ;;  %8027 = vst [vmem:[#allocation39_spill] sm:$0xff] %v4527_v9 }
  0x49   :  { %194 = vmatpush.msrb.mxu1 %v4429_v0 }
  0x4b   :  { %195 = vmatpush.msrb.mxu1 %v4431_v1 }
  0x4d   :  { %196 = vmatpush.msrb.mxu1 %v4434_v6 }
  0x4f   :  { %197 = vmatpush.msrb.mxu1 %v4438_v8 }
  0x82   :  { %v94_v43 = vpop.permute.xlu0 %93 }
  0x83   :  { %v97_v37 = vsel %vm75_vm2, %v94_v43, %v96_v62  ;;  %v4504_v43 = vld [vmem:[#allocation5 + $0x180] sm:$0xff]  ;;  %v4507_v62 = vld [vmem:[#allocation5 + $0x288] sm:$0xff] }
  0x84   :  { %178 = vmatmul.f32.vlgmr.msra.gmra.mxu1 %v97_v37  ;;  %218 = vmatmul.f32.vlgmr.msra.gmra.mxu2 %v97_v37  ;;  %8019 = vst [vmem:[#allocation31_spill] sm:$0xff] %v4504_v43 }
  0x85   :  { %238 = vmatmul.f32.vlgmr.msra.gmra.mxu3 %v97_v37  ;;  %405 = vmatpush.msra.mxu1 %v4485_v28  ;;  %8020 = vst [vmem:[#allocation32_spill] sm:$0xff] %v4507_v62 }
  0x86   :  { %388 = vmatpush.msrb.mxu2 %v4504_v43  ;;  %456 = vmatpush.msrb.mxu3 %v4507_v62  ;;  %v4525_v43 = vld [vmem:[#allocation5 + $0x248] sm:$0xff] }
  0x87   :  { %406 = vmatpush.msra.mxu1 %v4493_v34  ;;  %8026 = vst [vmem:[#allocation38_spill] sm:$0xff] %v4525_v43  ;;  %v4533_v62 = vld [vmem:[#allocation5 + $0x228] sm:$0xff] }
  0x88   :  { %389 = vmatpush.msrb.mxu2 %v4513_v46  ;;  %457 = vmatpush.msrb.mxu3 %v4516_v40  ;;  %8029 = vst [vmem:[#allocation41_spill] sm:$0xff] %v4533_v62  ;;  %v4536_v46 = vld [vmem:[#allocation5 + $0x320] sm:$0xff]  ;;  %v4542_v40 = vld [vmem:[#allocation5 + $0x208] sm:$0xff] }
  0x89   :  { %407 = vmatpush.msra.mxu1 %v4500_v25  ;;  %v311_v25 = vld [vmem:[#allocation5 + $0x1b0] sm:$0xff]  ;;  %8030 = vst [vmem:[#allocation42_spill] sm:$0xff] %v4536_v46 }
  0x8a   :  { %390 = vmatpush.msrb.mxu2 %v4522_v18  ;;  %458 = vmatpush.msrb.mxu3 %v4525_v43  ;;  %8032 = vst [vmem:[#allocation44_spill] sm:$0xff] %v4542_v40  ;;  %v303_v18 = vld [vmem:[#allocation5 + $0x170] sm:$0xff]  ;;  %v4554_v43 = vld [vmem:[#allocation5 + $0x2e0] sm:$0xff] }
  0x8b   :  { %408 = vmatpush.msra.mxu1 %v4509_v31  ;;  %467 = vmatpush.msra.mxu0 %v311_v25  ;;  %v4545_v31 = vld [vmem:[#allocation5 + $0x300] sm:$0xff]  ;;  %8036 = vst [vmem:[#allocation48_spill] sm:$0xff] %v4554_v43 }
  0x8c   :  { %198 = vmatmul.f32.vlgmr.msrb.gmra.mxu1 %v97_v37  ;;  %v307_v37 = vld [vmem:[#allocation5 + $0x190] sm:$0xff]  ;;  %391 = vmatpush.msrb.mxu2 %v4530_v22  ;;  %8033 = vst [vmem:[#allocation45_spill] sm:$0xff] %v4545_v31  ;;  %v4552_v25 = vld [vmem:[#allocation5 + $0xe0] sm:$0xff] }
  0x8d   :  { %409 = vmatpush.msra.mxu1 %v4518_v49  ;;  %459 = vmatpush.msrb.mxu3 %v4533_v62  ;;  %v4548_v49 = vld [vmem:[#allocation5 + $0x3f8] sm:$0xff]  ;;  %8035 = vst [vmem:[#allocation47_spill] sm:$0xff] %v4552_v25  ;;  %v299_v22 = vld [vmem:[#allocation5 + $0x150] sm:$0xff]  ;;  %v4563_v62 = vld [vmem:[#allocation5 + $0x2c0] sm:$0xff] }
  0x8e   :  { %8034 = vst [vmem:[#allocation46_spill] sm:$0xff] %v4548_v49  ;;  %468 = vmatpush.msra.mxu0 %v307_v37  ;;  %392 = vmatpush.msrb.mxu2 %v4539_v45  ;;  %v4561_v37 = vld [vmem:[#allocation5 + $0xc0] sm:$0xff]  ;;  %v295_v45 = vld [vmem:[#allocation5 + $0x130] sm:$0xff] }
  0x8f   :  { %410 = vmatpush.msra.mxu1 %v4527_v9  ;;  %460 = vmatpush.msrb.mxu3 %v4542_v40  ;;  %v4557_v9 = vld [vmem:[#allocation5 + $0x3d8] sm:$0xff]  ;;  %8038 = vst [vmem:[#allocation50_spill] sm:$0xff] %v4561_v37  ;;  %v4572_v40 = vld [vmem:[#allocation5 + $0x2a0] sm:$0xff] }
  0x90   :  { %8037 = vst [vmem:[#allocation49_spill] sm:$0xff] %v4557_v9  ;;  %469 = vmatpush.msra.mxu0 %v303_v18  ;;  %393 = vmatpush.msrb.mxu2 %v4552_v25  ;;  %v4570_v18 = vld [vmem:[#allocation5 + $0xa0] sm:$0xff] }
  0x91   :  { %411 = vmatpush.msra.mxu1 %v4536_v46  ;;  %525 = vmatpush.msra.mxu3 %v4548_v49  ;;  %8039 = vst [vmem:[#allocation51_spill] sm:$0xff] %v4563_v62  ;;  %v4565_v46 = vld [vmem:[#allocation5 + $0x3b8] sm:$0xff]  ;;  %v291_v49 = vld [vmem:[#allocation5 + $0x110] sm:$0xff]  ;;  %v4581_v25 = vld [vmem:[#allocation5 + $0x280] sm:$0xff] }
  0x92   :  { %8040 = vst [vmem:[#allocation52_spill] sm:$0xff] %v4565_v46  ;;  %470 = vmatpush.msra.mxu0 %v299_v22  ;;  %394 = vmatpush.msrb.mxu2 %v4561_v37  ;;  %v4579_v22 = vld [vmem:[#allocation5 + $0x80] sm:$0xff] }
  0x93   :  { %412 = vmatpush.msra.mxu1 %v4545_v31  ;;  %526 = vmatpush.msra.mxu3 %v4557_v9  ;;  %8041 = vst [vmem:[#allocation53_spill] sm:$0xff] %v4570_v18  ;;  %v4574_v31 = vld [vmem:[#allocation5 + $0x398] sm:$0xff]  ;;  %v287_v9 = vld [vmem:[#allocation5 + $0xf0] sm:$0xff]  ;;  %v4590_v37 = vld [vmem:[#allocation5 + $0x260] sm:$0xff] }
  0x94   :  { %8042 = vst [vmem:[#allocation54_spill] sm:$0xff] %v4572_v40  ;;  %471 = vmatpush.msra.mxu0 %v295_v45  ;;  %395 = vmatpush.msrb.mxu2 %v4570_v18  ;;  %v4588_v45 = vld [vmem:[#allocation5 + $0x60] sm:$0xff] }
  0x95   :  { %413 = vmatpush.msra.mxu1 %v4554_v43  ;;  %8043 = vst [vmem:[#allocation55_spill] sm:$0xff] %v4574_v31  ;;  %527 = vmatpush.msra.mxu3 %v4565_v46  ;;  %v4583_v43 = vld [vmem:[#allocation5 + $0x378] sm:$0xff]  ;;  %v283_v46 = vld [vmem:[#allocation5 + $0xd0] sm:$0xff]  ;;  %v4599_v18 = vld [vmem:[#allocation5 + $0x240] sm:$0xff] }
  0x96   :  { %8044 = vst [vmem:[#allocation56_spill] sm:$0xff] %v4579_v22  ;;  %472 = vmatpush.msra.mxu0 %v291_v49  ;;  %396 = vmatpush.msrb.mxu2 %v4579_v22  ;;  %v4597_v49 = vld [vmem:[#allocation5 + $0x40] sm:$0xff] }
  0x97   :  { %414 = vmatpush.msra.mxu1 %v4563_v62  ;;  %8045 = vst [vmem:[#allocation57_spill] sm:$0xff] %v4581_v25  ;;  %528 = vmatpush.msra.mxu3 %v4574_v31  ;;  %v4592_v62 = vld [vmem:[#allocation5 + $0x358] sm:$0xff]  ;;  %v279_v31 = vld [vmem:[#allocation5 + $0xb0] sm:$0xff]  ;;  %v4608_v22 = vld [vmem:[#allocation5 + $0x220] sm:$0xff] }
  0x98   :  { %8046 = vst [vmem:[#allocation58_spill] sm:$0xff] %v4583_v43  ;;  %473 = vmatpush.msra.mxu0 %v287_v9  ;;  %397 = vmatpush.msrb.mxu2 %v4588_v45  ;;  %v4606_v9 = vld [vmem:[#allocation5 + $0x20] sm:$0xff] }
  0x99   :  { %415 = vmatpush.msra.mxu1 %v4572_v40  ;;  %8047 = vst [vmem:[#allocation59_spill] sm:$0xff] %v4588_v45  ;;  %529 = vmatpush.msra.mxu3 %v4583_v43  ;;  %v4601_v40 = vld [vmem:[#allocation5 + $0x338] sm:$0xff]  ;;  %v4615_v45 = vld [vmem:[#allocation5 + $0x200] sm:$0xff] }
  0x9a   :  { %8048 = vst [vmem:[#allocation60_spill] sm:$0xff] %v4592_v62  ;;  %474 = vmatpush.msra.mxu0 %v283_v46  ;;  %398 = vmatpush.msrb.mxu2 %v4597_v49  ;;  %v4617_v46 = vld [vmem:[#allocation5 + $0x2f8] sm:$0xff] }
  0x9b   :  { %416 = vmatpush.msra.mxu1 %v4581_v25  ;;  %8049 = vst [vmem:[#allocation61_spill] sm:$0xff] %v4597_v49  ;;  %530 = vmatpush.msra.mxu3 %v4592_v62  ;;  %v4610_v25 = vld [vmem:[#allocation5 + $0x318] sm:$0xff]  ;;  %v4621_v62 = vld [vmem:[#allocation5 + $0x3f0] sm:$0xff] }
  0x9c   :  { %8050 = vst [vmem:[#allocation62_spill] sm:$0xff] %v4601_v40  ;;  %475 = vmatpush.msra.mxu0 %v279_v31  ;;  %399 = vmatpush.msrb.mxu2 %v4606_v9  ;;  %v4624_v43 = vld [vmem:[#allocation5 + $0x2d8] sm:$0xff]  ;;  %v4627_v31 = vld [vmem:[#allocation5 + $0x3d0] sm:$0xff] }
  0x9d   :  { %417 = vmatpush.msra.mxu1 %v4590_v37  ;;  %8051 = vst [vmem:[#allocation63_spill] sm:$0xff] %v4606_v9  ;;  %531 = vmatpush.msra.mxu3 %v4601_v40  ;;  %v4631_v49 = vld [vmem:[#allocation5 + $0x2b8] sm:$0xff]  ;;  %v4633_v40 = vld [vmem:[#allocation5 + $0x3b0] sm:$0xff] }
  0x9e   :  { %8052 = vst [vmem:[#allocation64_spill] sm:$0xff] %v4610_v25  ;;  %v4637_v9 = vld [vmem:[#allocation5 + $0x298] sm:$0xff] }
  0x9f   :  { %418 = vmatpush.msra.mxu1 %v4599_v18  ;;  %8053 = vst [vmem:[#allocation65_spill] sm:$0xff] %v4615_v45  ;;  %532 = vmatpush.msra.mxu3 %v4610_v25  ;;  %v4639_v25 = vld [vmem:[#allocation5 + $0x390] sm:$0xff] }
  0xa0   :  { %8054 = vst [vmem:[#allocation66_spill] sm:$0xff] %v4617_v46 }
  0xa1   :  { %419 = vmatpush.msra.mxu1 %v4608_v22  ;;  %8055 = vst [vmem:[#allocation67_spill] sm:$0xff] %v4621_v62  ;;  %533 = vmatpush.msra.mxu3 %v4617_v46  ;;  %v4645_v46 = vld [vmem:[#allocation5 + $0x370] sm:$0xff] }
  0xa2   :  { %8056 = vst [vmem:[#allocation68_spill] sm:$0xff] %v4624_v43 }
  0xa3   :  { %420 = vmatpush.msra.mxu1 %v4615_v45  ;;  %8057 = vst [vmem:[#allocation69_spill] sm:$0xff] %v4631_v49  ;;  %534 = vmatpush.msra.mxu3 %v4624_v43  ;;  %v4643_v45 = vld [vmem:[#allocation5 + $0x278] sm:$0xff]  ;;  %v4653_v43 = vld [vmem:[#allocation5 + $0x330] sm:$0xff] }
  0xa4   :  { %8058 = vst [vmem:[#allocation70_spill] sm:$0xff] %v4633_v40 }
  0xa5   :  { %485 = vmatpush.msrb.mxu1 %v4621_v62  ;;  %8059 = vst [vmem:[#allocation71_spill] sm:$0xff] %v4637_v9  ;;  %535 = vmatpush.msra.mxu3 %v4631_v49  ;;  %v4649_v62 = vld [vmem:[#allocation5 + $0x350] sm:$0xff] }
  0xa6   :  { %8060 = vst [vmem:[#allocation72_spill] sm:$0xff] %v4639_v25  ;;  %v4656_v49 = vld [vmem:[#allocation5 + $0x310] sm:$0xff] }
  0xa7   :  { %486 = vmatpush.msrb.mxu1 %v4627_v31  ;;  %8061 = vst [vmem:[#allocation73_spill] sm:$0xff] %v4643_v45  ;;  %536 = vmatpush.msra.mxu3 %v4637_v9  ;;  %v4662_v9 = vld [vmem:[#allocation5 + $0x2d0] sm:$0xff] }
  0xa8   :  { %8062 = vst [vmem:[#allocation74_spill] sm:$0xff] %v4645_v46 }
  0xa9   :  { %487 = vmatpush.msrb.mxu1 %v4633_v40  ;;  %8063 = vst [vmem:[#allocation75_spill] sm:$0xff] %v4649_v62  ;;  %537 = vmatpush.msra.mxu3 %v4643_v45  ;;  %v4659_v40 = vld [vmem:[#allocation5 + $0x2f0] sm:$0xff] }
  0xaa   :  { %8064 = vst [vmem:[#allocation76_spill] sm:$0xff] %v4653_v43  ;;  %v4668_v45 = vld [vmem:[#allocation5 + $0x290] sm:$0xff] }
  0xab   :  { %488 = vmatpush.msrb.mxu1 %v4639_v25  ;;  %8065 = vst [vmem:[#allocation77_spill] sm:$0xff] %v4656_v49  ;;  %v4665_v25 = vld [vmem:[#allocation5 + $0x2b0] sm:$0xff] }
  0xac   :  { %8066 = vst [vmem:[#allocation78_spill] sm:$0xff] %v4659_v40 }
  0xad   :  { %489 = vmatpush.msrb.mxu1 %v4645_v46  ;;  %8067 = vst [vmem:[#allocation79_spill] sm:$0xff] %v4662_v9  ;;  %v4686_v46 = vld [vmem:[#allocation5 + $0x230] sm:$0xff] }
  0xae   :  { %8068 = vst [vmem:[#allocation80_spill] sm:$0xff] %v4665_v25 }
  0xaf   :  { %490 = vmatpush.msrb.mxu1 %v4649_v62  ;;  %8069 = vst [vmem:[#allocation81_spill] sm:$0xff] %v4668_v45  ;;  %v4671_v62 = vld [vmem:[#allocation5 + $0x270] sm:$0xff] }
  0xb0   :  { %8070 = vst [vmem:[#allocation82_spill] sm:$0xff] %v4671_v62 }
  0xb1   :  { %491 = vmatpush.msrb.mxu1 %v4653_v43  ;;  %v4675_v43 = vld [vmem:[#allocation5 + $0x250] sm:$0xff] }
  0xb2   :  { %8071 = vst [vmem:[#allocation83_spill] sm:$0xff] %v4675_v43 }
  0xb3   :  { %492 = vmatpush.msrb.mxu1 %v4656_v49  ;;  %v4677_v49 = vld [vmem:[#allocation5 + $0x258] sm:$0xff] }
  0xb4   :  { %8072 = vst [vmem:[#allocation84_spill] sm:$0xff] %v4677_v49  ;;  %538 = vmatpush.msra.mxu3 %v4677_v49  ;;  %v4693_v49 = vld [vmem:[#allocation5 + $0x1c8] sm:$0xff] }
  0xb5   :  { %493 = vmatpush.msrb.mxu1 %v4659_v40  ;;  %v4681_v40 = vld [vmem:[#allocation5] sm:$0xff]  ;;  %8076 = vst [vmem:[#allocation88_spill] sm:$0xff] %v4693_v49 }
  0xb6   :  { %8073 = vst [vmem:[#allocation85_spill] sm:$0xff] %v4681_v40  ;;  %400 = vmatpush.msrb.mxu2 %v4681_v40  ;;  %v4697_v40 = vld [vmem:[#allocation5 + $0x218] sm:$0xff] }
  0xb7   :  { %494 = vmatpush.msrb.mxu1 %v4662_v9  ;;  %v275_v9 = vld [vmem:[#allocation5 + $0x90] sm:$0xff]  ;;  %8078 = vst [vmem:[#allocation90_spill] sm:$0xff] %v4697_v40 }
  0xb8   :  { %476 = vmatpush.msra.mxu0 %v275_v9  ;;  %v267_v9 = vld [vmem:[#allocation5 + $0x50] sm:$0xff] }
  0xb9   :  { %495 = vmatpush.msrb.mxu1 %v4665_v25  ;;  %v4684_v25 = vld [vmem:[#allocation5 + $0x1e8] sm:$0xff] }
  0xba   :  { %8074 = vst [vmem:[#allocation86_spill] sm:$0xff] %v4684_v25  ;;  %425 = vmatpush.msra.mxu2 %v4684_v25  ;;  %v4231_v25 = vmov 1.0  }
  0xbb   :  { %496 = vmatpush.msrb.mxu1 %v4668_v45  ;;  %v4688_v45 = vld [vmem:[#allocation5 + $0x238] sm:$0xff]  ;;  %3950 = vmatmul.msk.f32.vlgmr.msrb.gmra.mxu3 %vm72_vm0, %v4231_v25 }
  0xbc   :  { %8075 = vst [vmem:[#allocation87_spill] sm:$0xff] %v4688_v45  ;;  %539 = vmatpush.msra.mxu3 %v4688_v45  ;;  %426 = vmatpush.msra.mxu2 %v4693_v49  ;;  %v4705_v45 = vld [vmem:[#allocation5 + $0x1a8] sm:$0xff] }
  0xbd   :  { %497 = vmatpush.msrb.mxu1 %v4671_v62  ;;  %v271_v62 = vld [vmem:[#allocation5 + $0x70] sm:$0xff]  ;;  %v4712_v49 = vld [vmem:[#allocation5 + $0x188] sm:$0xff] }
  0xbe   :  { %477 = vmatpush.msra.mxu0 %v271_v62  ;;  %540 = vmatpush.msra.mxu3 %v4697_v40  ;;  %v263_v62 = vld [vmem:[#allocation5 + $0x30] sm:$0xff] }
  0xbf   :  { %498 = vmatpush.msrb.mxu1 %v4675_v43  ;;  %v4695_v43 = vld [vmem:[#allocation5 + $0x210] sm:$0xff]  ;;  %427 = vmatpush.msra.mxu2 %v4705_v45 }
  0xc0   :  { %8077 = vst [vmem:[#allocation89_spill] sm:$0xff] %v4695_v43  ;;  %3949 = vmatmul.msk.f32.vlgmr.msra.gmra.mxu1 %vm72_vm0, %v4231_v25  ;;  %478 = vmatpush.msra.mxu0 %v267_v9  ;;  %v259_v40 = vld [vmem:[#allocation5 + $0x10] sm:$0xff]  ;;  %v4839_v9 = vld [vmem:[#allocation5 + $0x1d8] sm:$0xff] }
  0xc1   :  { %499 = vmatpush.msrb.mxu1 %v4686_v46  ;;  %694 = vmatpush.msrb.mxu3 %v4289_v7  ;;  %v4722_v7 = vld [vmem:[#allocation5 + $0x148] sm:$0xff] }
  0xc2   :  { %479 = vmatpush.msra.mxu0 %v263_v62  ;;  %428 = vmatpush.msra.mxu2 %v4712_v49  ;;  %v8101_v62 = vld [vmem:[#allocation21_spill] sm:$0xff] }
  0xc3   :  { %500 = vmatpush.msrb.mxu1 %v4695_v43  ;;  %695 = vmatpush.msrb.mxu3 %v4295_v10  ;;  %v4717_v43 = vld [vmem:[#allocation5 + $0x168] sm:$0xff] }
  0xc4   :  { %480 = vmatpush.msra.mxu0 %v259_v40  ;;  %429 = vmatpush.msra.mxu2 %v4717_v43  ;;  %v4728_v10 = vld [vmem:[#allocation5 + $0x128] sm:$0xff]  ;;  %v4833_v40 = vld [vmem:[#allocation5 + $0x1f8] sm:$0xff] }
  0xc5   :  { %654 = vmatpush.msra.mxu1 %v4374_v47  ;;  %696 = vmatpush.msrb.mxu3 %v4301_v13  ;;  %v4734_v13 = vld [vmem:[#allocation5 + $0x108] sm:$0xff] }
  0xc6   :  { %634 = vmatpush.msrb.mxu0 %v4279_v2  ;;  %430 = vmatpush.msra.mxu2 %v4722_v7  ;;  %v4740_v2 = vld [vmem:[#allocation5 + $0xe8] sm:$0xff] }
  0xc7   :  { %655 = vmatpush.msra.mxu1 %v4383_v50  ;;  %697 = vmatpush.msrb.mxu3 %v4307_v16  ;;  %v4780_v16 = vld [vmem:[#allocation5 + $0x28] sm:$0xff] }
  0xc8   :  { %635 = vmatpush.msrb.mxu0 %v4281_v3  ;;  %431 = vmatpush.msra.mxu2 %v4728_v10  ;;  %v4746_v3 = vld [vmem:[#allocation5 + $0xc8] sm:$0xff] }
  0xc9   :  { %656 = vmatpush.msra.mxu1 %v4390_v52  ;;  %698 = vmatpush.msrb.mxu3 %v4313_v19  ;;  %v4788_v19 = vld [vmem:[#allocation5 + $0x8] sm:$0xff]  ;;  %v8088_v52 = vld [vmem:[#allocation20_spill] sm:$0xff] }
  0xca   :  { %636 = vmatpush.msrb.mxu0 %v4284_v4  ;;  %432 = vmatpush.msra.mxu2 %v4734_v13  ;;  %v4752_v4 = vld [vmem:[#allocation5 + $0xa8] sm:$0xff] }
  0xcb   :  { %657 = vmatpush.msra.mxu1 %v4395_v53  ;;  %699 = vmatpush.msrb.mxu3 %v4322_v23  ;;  %v8087_v50 = vld [vmem:[#allocation19_spill] sm:$0xff] }
  0xcc   :  { %637 = vmatpush.msrb.mxu0 %v4287_v5  ;;  %433 = vmatpush.msra.mxu2 %v4740_v2  ;;  %v4758_v5 = vld [vmem:[#allocation5 + $0x88] sm:$0xff] }
  0xcd   :  { %658 = vmatpush.msra.mxu1 %v4398_v54  ;;  %700 = vmatpush.msrb.mxu3 %v4328_v26  ;;  %v8079_v26 = vld [vmem:[#allocation11_spill] sm:$0xff]  ;;  %v8089_v54 = vld [vmem:[#allocation42_spill] sm:$0xff] }
  0xce   :  { %638 = vmatpush.msrb.mxu0 %v4297_v11  ;;  %434 = vmatpush.msra.mxu2 %v4746_v3  ;;  %v4764_v11 = vld [vmem:[#allocation5 + $0x68] sm:$0xff] }
  0xcf   :  { %659 = vmatpush.msra.mxu1 %v4401_v55  ;;  %701 = vmatpush.msrb.mxu3 %v4334_v29  ;;  %v8090_v55 = vld [vmem:[#allocation22_spill] sm:$0xff] }
  0xd0   :  { %639 = vmatpush.msrb.mxu0 %v4303_v14  ;;  %435 = vmatpush.msra.mxu2 %v4752_v4  ;;  %v4770_v14 = vld [vmem:[#allocation5 + $0x48] sm:$0xff] }
  0xd1   :  { %660 = vmatpush.msra.mxu1 %v4404_v56  ;;  %702 = vmatpush.msrb.mxu3 %v4340_v32 }
  0xd2   :  { %640 = vmatpush.msrb.mxu0 %v4309_v17  ;;  %436 = vmatpush.msra.mxu2 %v4758_v5 }
  0xd3   :  { %661 = vmatpush.msra.mxu1 %v4407_v57  ;;  %703 = vmatpush.msrb.mxu3 %v4346_v35 }
  0xd4   :  { %641 = vmatpush.msrb.mxu0 %v4315_v20  ;;  %437 = vmatpush.msra.mxu2 %v4764_v11 }
  0xd5   :  { %662 = vmatpush.msra.mxu1 %v4410_v58  ;;  %704 = vmatpush.msrb.mxu3 %v4352_v38  ;;  %v8091_v58 = vld [vmem:[#allocation45_spill] sm:$0xff] }
  0xd6   :  { %642 = vmatpush.msrb.mxu0 %v4324_v24  ;;  %438 = vmatpush.msra.mxu2 %v4770_v14 }
  0xd7   :  { %663 = vmatpush.msra.mxu1 %v4413_v59  ;;  %705 = vmatpush.msrb.mxu3 %v4358_v41  ;;  %v8092_v59 = vld [vmem:[#allocation23_spill] sm:$0xff] }
  0xd8   :  { %3951 = vmatmul.msk.f32.vlgmr.msrb.gmra.mxu1 %vm72_vm0, %v4231_v25  ;;  %3952 = vmatmul.msk.f32.vlgmr.msra.gmra.mxu3 %vm72_vm0, %v4231_v25  ;;  %v8100_v25 = vld [vmem:[#allocation32_spill] sm:$0xff] }
  0xd9   :  { %664 = vmatpush.msra.mxu1 %v4416_v60  ;;  %643 = vmatpush.msrb.mxu0 %v4330_v27  ;;  %v8080_v27 = vld [vmem:[#allocation30_spill] sm:$0xff]  ;;  %v8093_v60 = vld [vmem:[#allocation48_spill] sm:$0xff] }
  0xda   :  { %706 = vmatpush.msrb.mxu3 %v4366_v44  ;;  %439 = vmatpush.msra.mxu2 %v4780_v16 }
  0xdb   :  { %665 = vmatpush.msra.mxu1 %v4420_v61  ;;  %644 = vmatpush.msrb.mxu0 %v4336_v30  ;;  %v8081_v30 = vld [vmem:[#allocation15_spill] sm:$0xff] }
  0xdc   :  { %707 = vmatpush.msrb.mxu3 %v4377_v48  ;;  %440 = vmatpush.msra.mxu2 %v4788_v19  ;;  %v8086_v48 = vld [vmem:[#allocation39_spill] sm:$0xff] }
  0xdd   :  { %666 = vmatpush.msra.mxu1 %v4429_v0  ;;  %645 = vmatpush.msrb.mxu0 %v4342_v33  ;;  %v8082_v33 = vld [vmem:[#allocation33_spill] sm:$0xff]  ;;  %v8095_v0 = vld [vmem:[#allocation51_spill] sm:$0xff] }
  0xde   :  { %708 = vmatpush.msrb.mxu3 %v4386_v51 }
  0xdf   :  { %667 = vmatpush.msra.mxu1 %v4431_v1  ;;  %646 = vmatpush.msrb.mxu0 %v4348_v36  ;;  %v8083_v36 = vld [vmem:[#allocation17_spill] sm:$0xff]  ;;  %v8096_v1 = vld [vmem:[#allocation27_spill] sm:$0xff] }
  0xe0   :  { %709 = vmatpush.msrb.mxu3 %v4424_v63  ;;  %v8094_v63 = vld [vmem:[#allocation25_spill] sm:$0xff] }
  0xe1   :  { %668 = vmatpush.msra.mxu1 %v4434_v6  ;;  %647 = vmatpush.msrb.mxu0 %v4354_v39  ;;  %v8084_v39 = vld [vmem:[#allocation36_spill] sm:$0xff]  ;;  %v8097_v6 = vld [vmem:[#allocation54_spill] sm:$0xff] }
  0xe2   :  { %917 = vmatpush.msra.mxu3 %v4441_v12  ;;  %v8098_v12 = vld [vmem:[#allocation29_spill] sm:$0xff] }
  0xe3   :  { %669 = vmatpush.msra.mxu1 %v4438_v8  ;;  %648 = vmatpush.msrb.mxu0 %v4360_v42  ;;  %v8085_v42 = vld [vmem:[#allocation18_spill] sm:$0xff] }
  0xe4   :  { %918 = vmatpush.msra.mxu3 %v4444_v15 }
  0xe5   :  { %877 = vmatpush.msrb.mxu1 %v4485_v28  ;;  %649 = vmatpush.msrb.mxu0 %v8079_v26  ;;  %v8099_v28 = vld [vmem:[#allocation57_spill] sm:$0xff] }
  0xe6   :  { %919 = vmatpush.msra.mxu3 %v8081_v30  ;;  %v4849_v26 = vld [vmem:[#allocation5 + $0x1b8] sm:$0xff]  ;;  %v8105_v30 = vld [vmem:[#allocation38_spill] sm:$0xff] }
  0xe7   :  { %878 = vmatpush.msrb.mxu1 %v4493_v34 }
  0xe8   :  { %920 = vmatpush.msra.mxu3 %v8083_v36  ;;  %v8108_v36 = vld [vmem:[#allocation31_spill] sm:$0xff] }
  0xe9   :  { %879 = vmatpush.msrb.mxu1 %v8080_v27  ;;  %v4856_v27 = vld [vmem:[#allocation5 + $0x198] sm:$0xff] }
  0xea   :  { %921 = vmatpush.msra.mxu3 %v8085_v42  ;;  %v4879_v42 = vld [vmem:[#allocation5 + $0x118] sm:$0xff] }
  0xeb   :  { %880 = vmatpush.msrb.mxu1 %v8082_v33  ;;  %v8106_v33 = vld [vmem:[#allocation28_spill] sm:$0xff] }
  0xec   :  { %922 = vmatpush.msra.mxu3 %v8087_v50  ;;  %v4885_v50 = vld [vmem:[#allocation5 + $0xf8] sm:$0xff] }
  0xed   :  { %881 = vmatpush.msrb.mxu1 %v8084_v39  ;;  %v8109_v39 = vld [vmem:[#allocation65_spill] sm:$0xff] }
  0xee   :  { %923 = vmatpush.msra.mxu3 %v8090_v55  ;;  %v8117_v55 = vld [vmem:[#allocation70_spill] sm:$0xff] }
  0xef   :  { %882 = vmatpush.msrb.mxu1 %v8086_v48  ;;  %v8114_v48 = vld [vmem:[#allocation37_spill] sm:$0xff] }
  0xf0   :  { %924 = vmatpush.msra.mxu3 %v8092_v59  ;;  %v4897_v59 = vld [vmem:[#allocation5 + $0xb8] sm:$0xff] }
  0xf1   :  { %883 = vmatpush.msrb.mxu1 %v8089_v54  ;;  %v4891_v54 = vld [vmem:[#allocation5 + $0xd8] sm:$0xff] }
  0xf2   :  { %925 = vmatpush.msra.mxu3 %v8094_v63  ;;  %v4903_v63 = vld [vmem:[#allocation5 + $0x98] sm:$0xff] }
  0xf3   :  { %884 = vmatpush.msrb.mxu1 %v8091_v58  ;;  %v8119_v58 = vld [vmem:[#allocation43_spill] sm:$0xff] }
  0xf4   :  { %926 = vmatpush.msra.mxu3 %v8096_v1  ;;  %v8124_v1 = vld [vmem:[#allocation58_spill] sm:$0xff] }
  0xf5   :  { %885 = vmatpush.msrb.mxu1 %v8093_v60  ;;  %v8120_v60 = vld [vmem:[#allocation72_spill] sm:$0xff] }
  0xf6   :  { %927 = vmatpush.msra.mxu3 %v8098_v12  ;;  %v8126_v12 = vld [vmem:[#allocation75_spill] sm:$0xff] }
  0xf7   :  { %886 = vmatpush.msrb.mxu1 %v8095_v0  ;;  %v8123_v0 = vld [vmem:[#allocation74_spill] sm:$0xff] }
  0xf8   :  { %928 = vmatpush.msra.mxu3 %v8100_v25  ;;  %v4915_v25 = vld [vmem:[#allocation5 + $0x58] sm:$0xff] }
  0xf9   :  { %887 = vmatpush.msrb.mxu1 %v8097_v6  ;;  %v8125_v6 = vld [vmem:[#allocation50_spill] sm:$0xff] }
  0xfb   :  { %888 = vmatpush.msrb.mxu1 %v8099_v28  ;;  %v8128_v28 = vld [vmem:[#allocation53_spill] sm:$0xff] }
  0xfd   :  { %889 = vmatpush.msrb.mxu1 %v4590_v37  ;;  %v8103_v37 = vld [vmem:[#allocation35_spill] sm:$0xff] }
  0xfe   :  { %929 = vmatpush.msra.mxu3 %v8103_v37  ;;  %v4921_v37 = vld [vmem:[#allocation5 + $0x38] sm:$0xff] }
  0xff   :  { %890 = vmatpush.msrb.mxu1 %v4599_v18  ;;  %v8107_v18 = vld [vmem:[#allocation41_spill] sm:$0xff] }
 0x100   :  { %930 = vmatpush.msra.mxu3 %v8105_v30  ;;  %v8133_v30 = vld [vmem:[#allocation64_spill] sm:$0xff] }
 0x101   :  { %v179_v17 = vpop.f32.mrf.mxu1  ;;  %891 = vmatpush.msrb.mxu1 %v4608_v22  ;;  %v8111_v22 = vld [vmem:[#allocation34_spill] sm:$0xff] }
 0x102   :  { %3974 = vtanh.f32 %v179_v17  ;;  %931 = vmatpush.msra.mxu3 %v8107_v18  ;;  %v4927_v18 = vld [vmem:[#allocation5 + $0x18] sm:$0xff] }
 0x103   :  { %892 = vmatpush.msrb.mxu1 %v8109_v39  ;;  %v8136_v39 = vld [vmem:[#allocation66_spill] sm:$0xff] }
 0x107   :  { %v219_v29 = vpop.f32.mrf.mxu2 }
 0x108   :  { %v239_v20 = vpop.f32.mrf.mxu3  ;;  %v3975_v24 = vpop.eup %3974 }
 0x109   :  { %v199_v23 = vpop.f32.mrf.mxu1  ;;  %v246_v32 = vmul.f32 0.5, %v3975_v24 }
 0x10a   :  { %3976 = vtanh.f32 %v199_v23  ;;  %v8102_v23 = vld [vmem:[#allocation24_spill] sm:$0xff] }
 0x10b   :  { %3978 = vtanh.f32 %v239_v20  ;;  %v249_v44 = vadd.f32 0.5, %v246_v32  ;;  %v566_v20 = vpop.permute.xlu0 %565  ;;  %v4861_v32 = vld [vmem:[#allocation5 + $0x178] sm:$0xff] }
 0x10c   :  { %3980 = vtanh.f32 %v219_v29  ;;  %v8104_v29 = vld [vmem:[#allocation26_spill] sm:$0xff] }
 0x10d   :  { %8183 = vst [vmem:[#allocation26_spill] sm:$0xff] %v5223_v21 }
 0x110   :  { %v3977_v35 = vpop.eup %3976 }
 0x111   :  { %v247_v38 = vmul.f32 0.5, %v3977_v35  ;;  %v3979_v41 = vpop.eup %3978  ;;  %v4869_v35 = vld [vmem:[#allocation5 + $0x158] sm:$0xff] }
 0x112   :  { %v253_v51 = vmul.f32 %v3979_v41, %v249_v44  ;;  %v3981_v56 = vpop.eup %3980  ;;  %v8110_v41 = vld [vmem:[#allocation44_spill] sm:$0xff]  ;;  %v8112_v44 = vld [vmem:[#allocation67_spill] sm:$0xff] }
 0x113   :  { %v250_v47 = vadd.f32 0.5, %v247_v38  ;;  %v248_v61 = vmul.f32 0.5, %v3981_v56  ;;  %v4873_v38 = vld [vmem:[#allocation5 + $0x138] sm:$0xff]  ;;  %932 = vmatpush.msra.mxu3 %v8110_v41  ;;  %v8118_v56 = vld [vmem:[#allocation52_spill] sm:$0xff] }
 0x114   :  { %v8137_v41 = vld [vmem:[#allocation61_spill] sm:$0xff] }
 0x115   :  { %v252_v53 = vmul.f32 %v8088_v52, %v250_v47  ;;  %v251_v8 = vadd.f32 0.5, %v248_v61  ;;  %v8113_v47 = vld [vmem:[#allocation46_spill] sm:$0xff]  ;;  %v8122_v61 = vld [vmem:[#allocation47_spill] sm:$0xff] }
 0x117   :  { %v4819_v57 = vadd.f32 %v253_v51, %v252_v53  ;;  %v8115_v51 = vld [vmem:[#allocation49_spill] sm:$0xff]  ;;  %v8116_v53 = vld [vmem:[#allocation40_spill] sm:$0xff] }
 0x119   :  { %3982 = vtanh.f32 %v4819_v57 }
 0x11f   :  { %v3983_v15 = vpop.eup %3982 }
 0x120   :  { %v4831_v34 = vmul.f32 %v3983_v15, %v251_v8  ;;  %v4909_v8 = vld [vmem:[#allocation5 + $0x78] sm:$0xff]  ;;  %v8127_v15 = vld [vmem:[#allocation60_spill] sm:$0xff] }
 0x122   :  { %401 = vmatmul.f32.vlgmr.msrb.gmra.mxu2 %v4831_v34  ;;  %481 = vmatmul.f32.vlgmr.msra.gmra.mxu0 %v4831_v34  ;;  %v568_v17 = vadd.f32 %v8101_v62, %v4831_v34 }
 0x123   :  { %505 = vmatpush.msrb.mxu2 %v4833_v40  ;;  %857 = vmatpush.msra.mxu0 %v8102_v23  ;;  %v8131_v23 = vld [vmem:[#allocation56_spill] sm:$0xff] }
 0x124   :  { %v4847_v24 = vsel %vm75_vm2, %v566_v20, %v568_v17  ;;  %v8129_v17 = vld [vmem:[#allocation76_spill] sm:$0xff]  ;;  %v8130_v20 = vld [vmem:[#allocation62_spill] sm:$0xff] }
 0x125   :  { %506 = vmatpush.msrb.mxu2 %v4839_v9  ;;  %670 = vmatmul.f32.vlgmr.msra.gmra.mxu1 %v4847_v24 }
 0x126   :  { %710 = vmatmul.f32.vlgmr.msrb.gmra.mxu3 %v4847_v24  ;;  %858 = vmatpush.msra.mxu0 %v8104_v29  ;;  %v8132_v29 = vld [vmem:[#allocation77_spill] sm:$0xff] }
 0x127   :  { %507 = vmatpush.msrb.mxu2 %v4849_v26  ;;  %957 = vmatpush.msra.mxu1 %v8112_v44  ;;  %v8139_v44 = vld [vmem:[#allocation68_spill] sm:$0xff] }
 0x128   :  { %859 = vmatpush.msra.mxu0 %v8106_v33  ;;  %997 = vmatpush.msrb.mxu3 %v8113_v47  ;;  %v8134_v33 = vld [vmem:[#allocation59_spill] sm:$0xff] }
 0x129   :  { %508 = vmatpush.msrb.mxu2 %v4856_v27  ;;  %958 = vmatpush.msra.mxu1 %v4627_v31  ;;  %v8121_v31 = vld [vmem:[#allocation55_spill] sm:$0xff] }
 0x12a   :  { %441 = vmatmul.f32.vlgmr.msra.gmra.mxu2 %v4831_v34  ;;  %650 = vmatmul.f32.vlgmr.msrb.gmra.mxu0 %v4847_v24  ;;  %v8140_v47 = vld [vmem:[#allocation63_spill] sm:$0xff] }
 0x12b   :  { %509 = vmatpush.msrb.mxu2 %v4861_v32  ;;  %860 = vmatpush.msra.mxu0 %v8108_v36  ;;  %v8135_v36 = vld [vmem:[#allocation78_spill] sm:$0xff] }
 0x12c   :  { %998 = vmatpush.msrb.mxu3 %v8115_v51  ;;  %959 = vmatpush.msra.mxu1 %v8117_v55  ;;  %v8141_v51 = vld [vmem:[#allocation80_spill] sm:$0xff]  ;;  %v8142_v55 = vld [vmem:[#allocation85_spill] sm:$0xff] }
 0x12d   :  { %510 = vmatpush.msrb.mxu2 %v4869_v35  ;;  %861 = vmatpush.msra.mxu0 %v8111_v22  ;;  %v8138_v22 = vld [vmem:[#allocation79_spill] sm:$0xff] }
 0x12e   :  { %999 = vmatpush.msrb.mxu3 %v8118_v56  ;;  %960 = vmatpush.msra.mxu1 %v8120_v60  ;;  %v8143_v56 = vld [vmem:[#allocation69_spill] sm:$0xff] }
 0x12f   :  { %511 = vmatpush.msrb.mxu2 %v4873_v38  ;;  %862 = vmatpush.msra.mxu0 %v8114_v48  ;;  %v3954_v48 = vld [vmem:[%s7491_s0 + $0x10] sm:$0xff]  ;;  %v8144_v60 = vld [vmem:[#allocation81_spill] sm:$0xff] }
 0x130   :  { %1000 = vmatpush.msrb.mxu3 %v8121_v31  ;;  %961 = vmatpush.msra.mxu1 %v8123_v0  ;;  %v8145_v31 = vld [vmem:[#allocation71_spill] sm:$0xff]  ;;  %v3955_v0 = vld [vmem:[%s7491_s0 + $0x18] sm:$0xff] }
 0x131   :  { %512 = vmatpush.msrb.mxu2 %v4879_v42  ;;  %863 = vmatpush.msra.mxu0 %v8116_v53  ;;  %v4134_v53 = vld [vmem:[#allocation3 + $0x1f0] sm:$0xff] }
 0x132   :  { %1001 = vmatpush.msrb.mxu3 %v8124_v1  ;;  %962 = vmatpush.msra.mxu1 %v8126_v12  ;;  %v8147_v1 = vld [vmem:[#allocation73_spill] sm:$0xff]  ;;  %v8148_v12 = vld [vmem:[#allocation83_spill] sm:$0xff] }
 0x133   :  { %513 = vmatpush.msrb.mxu2 %v4885_v50  ;;  %864 = vmatpush.msra.mxu0 %v8119_v58  ;;  %v4135_v58 = vld [vmem:[#allocation3 + $0x1d0] sm:$0xff] }
 0x134   :  { %1002 = vmatpush.msrb.mxu3 %v8127_v15  ;;  %963 = vmatpush.msra.mxu1 %v8129_v17  ;;  %v8149_v15 = vld [vmem:[#allocation84_spill] sm:$0xff]  ;;  %v8150_v17 = vld [vmem:[#allocation87_spill] sm:$0xff] }
 0x135   :  { %514 = vmatpush.msrb.mxu2 %v4891_v54  ;;  %865 = vmatpush.msra.mxu0 %v8122_v61  ;;  %v8146_v61 = vld [vmem:[#allocation82_spill] sm:$0xff] }
 0x136   :  { %1003 = vmatpush.msrb.mxu3 %v8130_v20  ;;  %964 = vmatpush.msra.mxu1 %v8132_v29  ;;  %v4139_v20 = vld [vmem:[#allocation3 + $0x150] sm:$0xff]  ;;  %v8152_v29 = vld [vmem:[#allocation90_spill] sm:$0xff] }
 0x137   :  { %515 = vmatpush.msrb.mxu2 %v4897_v59  ;;  %866 = vmatpush.msra.mxu0 %v8125_v6  ;;  %v4137_v6 = vld [vmem:[#allocation3 + $0x190] sm:$0xff] }
 0x138   :  { %1004 = vmatpush.msrb.mxu3 %v8133_v30  ;;  %965 = vmatpush.msra.mxu1 %v8135_v36  ;;  %v4140_v30 = vld [vmem:[#allocation3 + $0x130] sm:$0xff] }
 0x139   :  { %516 = vmatpush.msrb.mxu2 %v4903_v63  ;;  %867 = vmatpush.msra.mxu0 %v8128_v28  ;;  %v4138_v28 = vld [vmem:[#allocation3 + $0x170] sm:$0xff] }
 0x13a   :  { %1005 = vmatpush.msrb.mxu3 %v8136_v39  ;;  %966 = vmatpush.msra.mxu1 %v8138_v22  ;;  %v4141_v36 = vld [vmem:[#allocation3 + $0x110] sm:$0xff] }
 0x13b   :  { %517 = vmatpush.msrb.mxu2 %v4909_v8  ;;  %868 = vmatpush.msra.mxu0 %v8131_v23  ;;  %v8151_v23 = vld [vmem:[#allocation89_spill] sm:$0xff]  ;;  %v4142_v39 = vld [vmem:[#allocation3 + $0xf0] sm:$0xff] }
 0x13c   :  { %1006 = vmatpush.msrb.mxu3 %v8139_v44  ;;  %967 = vmatpush.msra.mxu1 %v8141_v51  ;;  %v4145_v22 = vld [vmem:[#allocation3 + $0x90] sm:$0xff]  ;;  %v8153_v44 = vld [vmem:[#allocation10_spill] sm:$0xff] }
 0x13d   :  { %518 = vmatpush.msrb.mxu2 %v4915_v25  ;;  %869 = vmatpush.msra.mxu0 %v8134_v33  ;;  %v3959_v33 = vld [vmem:[%s7491_s0 + $0x38] sm:$0xff]  ;;  %v8156_v51 = vld [vmem:[#allocation14_spill] sm:$0xff] }
 0x13e   :  { %1037 = vperm.xlu1 %3971, %v3954_v48   ;;  %1007 = vmatpush.msrb.mxu3 %v8143_v56  ;;  %v8155_v48 = vld [vmem:[#allocation13_spill] sm:$0xff] }
 0x13f   :  { %519 = vmatpush.msrb.mxu2 %v4921_v37  ;;  %870 = vmatpush.msra.mxu0 %v8137_v41  ;;  %v4144_v41 = vld [vmem:[#allocation3 + $0xb0] sm:$0xff] }
 0x140   :  { %968 = vmatpush.msra.mxu1 %v8144_v60  ;;  %1008 = vmatpush.msrb.mxu3 %v8145_v31 }
 0x141   :  { %520 = vmatpush.msrb.mxu2 %v4927_v18  ;;  %871 = vmatpush.msra.mxu0 %v8140_v47  ;;  %v8154_v47 = vld [vmem:[#allocation12_spill] sm:$0xff] }
 0x142   :  { %521 = vmatmul.f32.vlgmr.msrb.gmra.mxu2 %v4831_v34  ;;  %v4136_v34 = vld [vmem:[#allocation3 + $0x1b0] sm:$0xff]  ;;  %969 = vmatpush.msra.mxu1 %v8146_v61 }
 0x143   :  { %674 = vmatpush.msra.mxu2 %v4134_v53  ;;  %872 = vmatpush.msra.mxu0 %v8142_v55  ;;  %v8157_v53 = vld [vmem:[#allocation86_spill] sm:$0xff]  ;;  %v8158_v55 = vld [vmem:[#allocation88_spill] sm:$0xff] }
 0x144   :  { %1009 = vmatpush.msrb.mxu3 %v8147_v1  ;;  %970 = vmatpush.msra.mxu1 %v8148_v12 }
 0x145   :  { %675 = vmatpush.msra.mxu2 %v4135_v58 }
 0x146   :  { %1010 = vmatpush.msrb.mxu3 %v8149_v15  ;;  %1509 = vperm.xlu1 %3971, %v3955_v0   ;;  %v5048_v0 = vld [vmem:[#allocation5 + $0x70] sm:$0xff] }
 0x147   :  { %676 = vmatpush.msra.mxu2 %v4136_v34  ;;  %971 = vmatpush.msra.mxu1 %v4686_v46  ;;  %v4143_v46 = vld [vmem:[#allocation3 + $0xd0] sm:$0xff] }
 0x148   :  { %1011 = vmatpush.msrb.mxu3 %v8150_v17  ;;  %v5045_v34 = vld [vmem:[#allocation5 + $0x90] sm:$0xff] }
 0x149   :  { %677 = vmatpush.msra.mxu2 %v4137_v6  ;;  %972 = vmatpush.msra.mxu1 %v8151_v23  ;;  %v5051_v6 = vld [vmem:[#allocation5 + $0x50] sm:$0xff] }
 0x14a   :  { %1012 = vmatpush.msrb.mxu3 %v8152_v29 }
 0x14b   :  { %678 = vmatpush.msra.mxu2 %v4138_v28  ;;  %v5054_v28 = vld [vmem:[#allocation5 + $0x30] sm:$0xff] }
 0x14d   :  { %679 = vmatpush.msra.mxu2 %v4139_v20 }
 0x14e   :  { %3397 = vperm.xlu1 %3971, %v3959_v33  }
 0x14f   :  { %680 = vmatpush.msra.mxu2 %v4140_v30  ;;  %v5058_v30 = vld [vmem:[#allocation5 + $0x10] sm:$0xff] }
 0x151   :  { %681 = vmatpush.msra.mxu2 %v4141_v36 }
 0x153   :  { %682 = vmatpush.msra.mxu2 %v4142_v39 }
 0x155   :  { %683 = vmatpush.msra.mxu2 %v4143_v46 }
 0x157   :  { %684 = vmatpush.msra.mxu2 %v4144_v41 }
 0x159   :  { %685 = vmatpush.msra.mxu2 %v4145_v22 }
 0x15b   :  { %686 = vmatpush.msra.mxu2 %v8153_v44 }
 0x15d   :  { %687 = vmatpush.msra.mxu2 %v8154_v47 }
 0x15f   :  { %688 = vmatpush.msra.mxu2 %v8155_v48 }
 0x161   :  { %689 = vmatpush.msra.mxu2 %v8156_v51 }
 0x162   :  { %690 = vmatmul.f32.vlgmr.msra.gmra.mxu2 %v4847_v24 }
 0x163   :  { %897 = vmatpush.msrb.mxu2 %v8157_v53  ;;  %v5066_v53 = vld [vmem:[#allocation3 + $0x1e8] sm:$0xff] }
 0x165   :  { %898 = vmatpush.msrb.mxu2 %v8158_v55  ;;  %v5068_v55 = vld [vmem:[#allocation3 + $0x1f8] sm:$0xff] }
 0x167   :  { %899 = vmatpush.msrb.mxu2 %v4705_v45  ;;  %v79_v45 = vld [vmem:[%s7494_s3] sm:$0xf] }
 0x169   :  { %900 = vmatpush.msrb.mxu2 %v4712_v49  ;;  %v5000_v49 = vld [vmem:[#allocation5 + $0x1f0] sm:$0xff] }
 0x16a   :  { %937 = vmatpush.msrb.mxu0 %v5000_v49 }
 0x16b   :  { %901 = vmatpush.msrb.mxu2 %v4717_v43 }
 0x16d   :  { %902 = vmatpush.msrb.mxu2 %v4722_v7  ;;  %v5002_v7 = vperm.slane %v79_v45, 1 }
 0x16f   :  { %903 = vmatpush.msrb.mxu2 %v4728_v10  ;;  %8159 = vst [vmem:[#allocation11_spill] sm:$0xff] %v5002_v7 }
 0x171   :  { %904 = vmatpush.msrb.mxu2 %v4734_v13  ;;  %v5005_v13 = vld [vmem:[#allocation5 + $0x1d0] sm:$0xff] }
 0x172   :  { %938 = vmatpush.msrb.mxu0 %v5005_v13 }
 0x173   :  { %905 = vmatpush.msrb.mxu2 %v4740_v2  ;;  %v5007_v2 = vld [vmem:[#allocation5 + $0x1b0] sm:$0xff] }
 0x174   :  { %939 = vmatpush.msrb.mxu0 %v5007_v2 }
 0x175   :  { %906 = vmatpush.msrb.mxu2 %v4746_v3  ;;  %v5009_v3 = vperm.slane %v79_v45, 0 }
 0x177   :  { %907 = vmatpush.msrb.mxu2 %v4752_v4  ;;  %8160 = vst [vmem:[#allocation30_spill] sm:$0xff] %v5009_v3  ;;  %v5012_v4 = vld [vmem:[#allocation5 + $0x190] sm:$0xff] }
 0x178   :  { %940 = vmatpush.msrb.mxu0 %v5012_v4 }
 0x179   :  { %908 = vmatpush.msrb.mxu2 %v4758_v5 }
 0x17b   :  { %909 = vmatpush.msrb.mxu2 %v4764_v11  ;;  %v5016_v11 = vld [vmem:[#allocation5 + $0x170] sm:$0xff] }
 0x17c   :  { %941 = vmatpush.msrb.mxu0 %v5016_v11 }
 0x17d   :  { %910 = vmatpush.msrb.mxu2 %v4770_v14 }
 0x17f   :  { %911 = vmatpush.msrb.mxu2 %v4780_v16  ;;  %v462_v16 = vpop.f32.mrf.mxu3 }
 0x181   :  { %912 = vmatpush.msrb.mxu2 %v4788_v19  ;;  %v5020_v19 = vld [vmem:[#allocation5 + $0x150] sm:$0xff] }
 0x182   :  { %942 = vmatpush.msrb.mxu0 %v5020_v19 }
 0x183   :  { %977 = vmatpush.msra.mxu2 %v4833_v40  ;;  %v422_v40 = vpop.f32.mrf.mxu1 }
 0x185   :  { %978 = vmatpush.msra.mxu2 %v4839_v9 }
 0x187   :  { %979 = vmatpush.msra.mxu2 %v4849_v26  ;;  %v5024_v26 = vld [vmem:[#allocation5 + $0x130] sm:$0xff] }
 0x188   :  { %943 = vmatpush.msrb.mxu0 %v5024_v26 }
 0x189   :  { %980 = vmatpush.msra.mxu2 %v4856_v27  ;;  %v5027_v27 = vperm.slane %v79_v45, 2 }
 0x18b   :  { %981 = vmatpush.msra.mxu2 %v4861_v32  ;;  %8161 = vst [vmem:[#allocation15_spill] sm:$0xff] %v5027_v27  ;;  %v5029_v32 = vld [vmem:[#allocation5 + $0x110] sm:$0xff] }
 0x18c   :  { %944 = vmatpush.msrb.mxu0 %v5029_v32 }
 0x18d   :  { %982 = vmatpush.msra.mxu2 %v4869_v35 }
 0x18f   :  { %983 = vmatpush.msra.mxu2 %v4873_v38  ;;  %v5031_v38 = vperm.slane %v79_v45, 3  ;;  %v5072_v45 = vld [vmem:[#allocation3 + $0x1c8] sm:$0xff] }
 0x191   :  { %984 = vmatpush.msra.mxu2 %v4879_v42  ;;  %8162 = vst [vmem:[#allocation33_spill] sm:$0xff] %v5031_v38  ;;  %v5034_v42 = vld [vmem:[#allocation5 + $0xf0] sm:$0xff] }
 0x192   :  { %945 = vmatpush.msrb.mxu0 %v5034_v42 }
 0x193   :  { %985 = vmatpush.msra.mxu2 %v4885_v50 }
 0x195   :  { %986 = vmatpush.msra.mxu2 %v4891_v54 }
 0x197   :  { %987 = vmatpush.msra.mxu2 %v4897_v59  ;;  %v5038_v59 = vld [vmem:[#allocation5 + $0xd0] sm:$0xff] }
 0x198   :  { %946 = vmatpush.msrb.mxu0 %v5038_v59 }
 0x199   :  { %988 = vmatpush.msra.mxu2 %v4903_v63 }
 0x19b   :  { %989 = vmatpush.msra.mxu2 %v4909_v8  ;;  %v502_v8 = vpop.f32.mrf.mxu1 }
 0x19d   :  { %990 = vmatpush.msra.mxu2 %v4915_v25 }
 0x19f   :  { %991 = vmatpush.msra.mxu2 %v4921_v37  ;;  %v482_v35 = vpop.f32.mrf.mxu0  ;;  %v542_v37 = vpop.f32.mrf.mxu3 }
 0x1a0   :  { %v483_v50 = vadd.f32 %v482_v35, %v5027_v27  ;;  %v5086_v35 = vld [vmem:[#allocation3 + $0x198] sm:$0xff] }
 0x1a1   :  { %992 = vmatpush.msra.mxu2 %v4927_v18  ;;  %v5042_v18 = vld [vmem:[#allocation5 + $0xb0] sm:$0xff] }
 0x1a2   :  { %947 = vmatpush.msrb.mxu0 %v5042_v18  ;;  %v503_v60 = vadd.f32 %v502_v8, %v483_v50 }
 0x1a3   :  { %v671_v20 = vpop.f32.mrf.mxu1 }
 0x1a4   :  { %948 = vmatpush.msrb.mxu0 %v5045_v34 }
 0x1a5   :  { %v402_v43 = vpop.f32.mrf.mxu2 }
 0x1a6   :  { %v403_v14 = vadd.f32 %v402_v43, %v5009_v3  ;;  %949 = vmatpush.msrb.mxu0 %v5048_v0 }
 0x1a7   :  { %v651_v12 = vpop.f32.mrf.mxu0 }
 0x1a8   :  { %v423_v24 = vadd.f32 %v422_v40, %v403_v14  ;;  %950 = vmatpush.msrb.mxu0 %v5051_v6  ;;  %v5078_v14 = vld [vmem:[#allocation3 + $0x1a8] sm:$0xff] }
 0x1a9   :  { %v711_v41 = vpop.f32.mrf.mxu3 }
 0x1aa   :  { %951 = vmatpush.msrb.mxu0 %v5054_v28 }
 0x1ac   :  { %952 = vmatpush.msrb.mxu0 %v5058_v30 }
 0x1ad   :  { %v442_v10 = vpop.f32.mrf.mxu2 }
 0x1ae   :  { %v443_v5 = vadd.f32 %v442_v10, %v5002_v7  ;;  %v5074_v10 = vld [vmem:[#allocation3 + $0x1d8] sm:$0xff] }
 0x1b0   :  { %v463_v9 = vadd.f32 %v462_v16, %v443_v5  ;;  %v5080_v16 = vld [vmem:[#allocation3 + $0x1b8] sm:$0xff] }
 0x1b2   :  { %3984 = vtanh.f32 %v463_v9 }
 0x1b3   :  { %3986 = vtanh.f32 %v423_v24  ;;  %v5084_v24 = vld [vmem:[#allocation3 + $0x188] sm:$0xff] }
 0x1b8   :  { %v3985_v63 = vpop.eup %3984 }
 0x1b9   :  { %v3987_v56 = vpop.eup %3986  ;;  %v550_v31 = vmul.f32 0.5, %v3985_v63  ;;  %v5093_v63 = vld [vmem:[#allocation3 + $0x178] sm:$0xff] }
 0x1ba   :  { %v549_v61 = vmul.f32 0.5, %v3987_v56  ;;  %v5103_v56 = vld [vmem:[#allocation3 + $0x158] sm:$0xff] }
 0x1bb   :  { %v553_v1 = vadd.f32 0.5, %v550_v31  ;;  %v5116_v31 = vld [vmem:[#allocation3 + $0x118] sm:$0xff] }
 0x1bc   :  { %v552_v15 = vadd.f32 0.5, %v549_v61 }
 0x1bd   :  { %v555_v23 = vmul.f32 %v8088_v52, %v553_v1  ;;  %v5120_v1 = vld [vmem:[#allocation3 + $0xe8] sm:$0xff] }
 0x1c5   :  { %v522_v54 = vpop.f32.mrf.mxu2 }
 0x1c6   :  { %v523_v25 = vadd.f32 %v522_v54, %v5031_v38  ;;  %v5091_v54 = vld [vmem:[#allocation3 + $0x168] sm:$0xff] }
 0x1c8   :  { %v543_v58 = vadd.f32 %v542_v37, %v523_v25  ;;  %v5101_v37 = vld [vmem:[#allocation3 + $0x148] sm:$0xff] }
 0x1ca   :  { %3988 = vtanh.f32 %v543_v58  ;;  %v5109_v58 = vld [vmem:[#allocation3 + $0x138] sm:$0xff] }
 0x1cb   :  { %3990 = vtanh.f32 %v503_v60  ;;  %v5114_v60 = vld [vmem:[#allocation3 + $0x108] sm:$0xff] }
 0x1cc   :  { %3992 = vtanh.f32 %v651_v12  ;;  %v5122_v12 = vld [vmem:[#allocation3 + $0xf8] sm:$0xff] }
 0x1cd   :  { %3994 = vtanh.f32 %v671_v20  ;;  %v5128_v20 = vld [vmem:[#allocation3 + $0xd8] sm:$0xff] }
 0x1d0   :  { %v3989_v17 = vpop.eup %3988 }
 0x1d1   :  { %v556_v29 = vmul.f32 %v3989_v17, %v552_v15  ;;  %v3991_v33 = vpop.eup %3990  ;;  %v5126_v17 = vld [vmem:[#allocation3 + $0xc8] sm:$0xff] }
 0x1d2   :  { %v551_v39 = vmul.f32 0.5, %v3991_v33  ;;  %v3993_v46 = vpop.eup %3992 }
 0x1d3   :  { %v5061_v36 = vadd.f32 %v556_v29, %v555_v23  ;;  %v3995_v22 = vpop.eup %3994  ;;  %v718_v47 = vmul.f32 0.5, %v3993_v46  ;;  %v5136_v46 = vld [vmem:[#allocation3 + $0xa8] sm:$0xff] }
 0x1d4   :  { %v554_v44 = vadd.f32 0.5, %v551_v39  ;;  %v719_v52 = vmul.f32 0.5, %v3995_v22  ;;  %v5134_v39 = vld [vmem:[#allocation3 + $0x1e0] sm:$0xff]  ;;  %v5140_v22 = vld [vmem:[#allocation3 + $0xb8] sm:$0xff] }
 0x1d5   :  { %3996 = vtanh.f32 %v5061_v36  ;;  %v721_v43 = vadd.f32 0.5, %v718_v47  ;;  %v5144_v47 = vld [vmem:[#allocation3 + $0x88] sm:$0xff] }
 0x1d6   :  { %3998 = vtanh.f32 %v711_v41  ;;  %v722_v5 = vadd.f32 0.5, %v719_v52  ;;  %v5138_v41 = vld [vmem:[#allocation3 + $0x1f0] sm:$0xff]  ;;  %v5150_v52 = vld [vmem:[#allocation3 + $0x98] sm:$0xff] }
 0x1d7   :  { %8164 = vst [vmem:[#allocation36_spill] sm:$0xff] %v5150_v52 }
 0x1d8   :  { %v724_v50 = vmul.f32 %v722_v5, %v4819_v57  ;;  %v5107_v57 = vld [vmem:[#allocation3 + $0x128] sm:$0xff] }
 0x1d9   :  { %v5156_v5 = vld [vmem:[#allocation3 + $0x68] sm:$0xff] }
 0x1da   :  { %8165 = vst [vmem:[#allocation18_spill] sm:$0xff] %v5156_v5 }
 0x1db   :  { %v3997_v48 = vpop.eup %3996 }
 0x1dc   :  { %v5064_v51 = vmul.f32 %v3997_v48, %v554_v44  ;;  %v3999_v40 = vpop.eup %3998  ;;  %v5142_v44 = vld [vmem:[#allocation3 + $0x1c0] sm:$0xff]  ;;  %v5148_v48 = vld [vmem:[#allocation3 + $0x1d0] sm:$0xff] }
 0x1dd   :  { %v725_v9 = vmul.f32 %v3999_v40, %v721_v43  ;;  %v5154_v43 = vld [vmem:[#allocation3 + $0x1a0] sm:$0xff]  ;;  %v5160_v40 = vld [vmem:[#allocation3 + $0x1b0] sm:$0xff] }
 0x1de   :  { %8163 = vst [vmem:[#allocation17_spill] sm:$0xff] %v5064_v51  ;;  %893 = vmatmul.f32.vlgmr.msrb.gmra.mxu1 %v5064_v51  ;;  %933 = vmatmul.f32.vlgmr.msra.gmra.mxu3 %v5064_v51 }
 0x1df   :  { %1126 = vmatpush.msrb.mxu1 %v5066_v53  ;;  %1166 = vmatpush.msra.mxu3 %v5068_v55  ;;  %v5097_v25 = vadd.f32 %v725_v9, %v724_v50  ;;  %v5162_v9 = vld [vmem:[#allocation3 + $0x78] sm:$0xff]  ;;  %v5166_v50 = vld [vmem:[#allocation3 + $0x180] sm:$0xff] }
 0x1e0   :  { %8166 = vst [vmem:[#allocation39_spill] sm:$0xff] %v5162_v9 }
 0x1e1   :  { %1127 = vmatpush.msrb.mxu1 %v5072_v45  ;;  %1167 = vmatpush.msra.mxu3 %v5074_v10  ;;  %8167 = vst [vmem:[#allocation19_spill] sm:$0xff] %v5166_v50 }
 0x1e3   :  { %1128 = vmatpush.msrb.mxu1 %v5078_v14  ;;  %1168 = vmatpush.msra.mxu3 %v5080_v16 }
 0x1e5   :  { %v691_v8 = vpop.f32.mrf.mxu2  ;;  %1129 = vmatpush.msrb.mxu1 %v5084_v24  ;;  %1169 = vmatpush.msra.mxu3 %v5086_v35 }
 0x1e6   :  { %4000 = vtanh.f32 %v691_v8  ;;  %973 = vmatmul.f32.vlgmr.msra.gmra.mxu1 %v5064_v51  ;;  %1013 = vmatmul.f32.vlgmr.msrb.gmra.mxu3 %v5064_v51  ;;  %v5168_v8 = vld [vmem:[#allocation3 + $0x48] sm:$0xff]  ;;  %v5186_v51 = vld [vmem:[#allocation3 + $0x170] sm:$0xff] }
 0x1e7   :  { %1130 = vmatpush.msrb.mxu1 %v5091_v54  ;;  %1170 = vmatpush.msra.mxu3 %v5093_v63  ;;  %4002 = vtanh.f32 %v5097_v25  ;;  %8168 = vst [vmem:[#allocation20_spill] sm:$0xff] %v5168_v8 }
 0x1e8   :  { %8173 = vst [vmem:[#allocation48_spill] sm:$0xff] %v5186_v51 }
 0x1e9   :  { %1131 = vmatpush.msrb.mxu1 %v5101_v37  ;;  %1171 = vmatpush.msra.mxu3 %v5103_v56 }
 0x1eb   :  { %1132 = vmatpush.msrb.mxu1 %v5107_v57  ;;  %1172 = vmatpush.msra.mxu3 %v5109_v58 }
 0x1ec   :  { %v4001_v61 = vpop.eup %4000 }
 0x1ed   :  { %v720_v15 = vmul.f32 0.5, %v4001_v61  ;;  %1133 = vmatpush.msrb.mxu1 %v5114_v60  ;;  %1173 = vmatpush.msra.mxu3 %v5116_v31  ;;  %v4003_v29 = vpop.eup %4002  ;;  %v5172_v61 = vld [vmem:[#allocation3 + $0x190] sm:$0xff] }
 0x1ee   :  { %8169 = vst [vmem:[#allocation42_spill] sm:$0xff] %v5172_v61 }
 0x1ef   :  { %v723_v23 = vadd.f32 0.5, %v720_v15  ;;  %1134 = vmatpush.msrb.mxu1 %v5120_v1  ;;  %1174 = vmatpush.msra.mxu3 %v5122_v12  ;;  %v5174_v15 = vld [vmem:[#allocation3 + $0x58] sm:$0xff] }
 0x1f0   :  { %8170 = vst [vmem:[#allocation22_spill] sm:$0xff] %v5174_v15 }
 0x1f1   :  { %v728_v33 = vmul.f32 %v4003_v29, %v723_v23  ;;  %1135 = vmatpush.msrb.mxu1 %v5126_v17  ;;  %1175 = vmatpush.msra.mxu3 %v5128_v20  ;;  %v5180_v23 = vld [vmem:[#allocation3 + $0x160] sm:$0xff]  ;;  %v5182_v29 = vld [vmem:[#allocation3 + $0x28] sm:$0xff] }
 0x1f2   :  { %8171 = vst [vmem:[#allocation45_spill] sm:$0xff] %v5180_v23 }
 0x1f3   :  { %873 = vmatmul.f32.vlgmr.msra.gmra.mxu0 %v728_v33  ;;  %913 = vmatmul.f32.vlgmr.msrb.gmra.mxu2 %v728_v33  ;;  %8172 = vst [vmem:[#allocation23_spill] sm:$0xff] %v5182_v29 }
 0x1f4   :  { %1106 = vmatpush.msra.mxu0 %v5134_v39  ;;  %1136 = vmatpush.msrb.mxu1 %v5136_v46 }
 0x1f5   :  { %1146 = vmatpush.msrb.mxu2 %v5138_v41  ;;  %1176 = vmatpush.msra.mxu3 %v5140_v22 }
 0x1f6   :  { %1107 = vmatpush.msra.mxu0 %v5142_v44  ;;  %1137 = vmatpush.msrb.mxu1 %v5144_v47 }
 0x1f7   :  { %1147 = vmatpush.msrb.mxu2 %v5148_v48  ;;  %1177 = vmatpush.msra.mxu3 %v5150_v52  ;;  %v1040_v52 = vadd.f32 %v8101_v62, %v728_v33  ;;  %v5207_v62 = vld [vmem:[#allocation3 + $0x130] sm:$0xff] }
 0x1f8   :  { %1108 = vmatpush.msra.mxu0 %v5154_v43  ;;  %1138 = vmatpush.msrb.mxu1 %v5156_v5  ;;  %v5188_v5 = vld [vmem:[#allocation3 + $0x38] sm:$0xff]  ;;  %8179 = vst [vmem:[#allocation57_spill] sm:$0xff] %v5207_v62 }
 0x1f9   :  { %1148 = vmatpush.msrb.mxu2 %v5160_v40  ;;  %1178 = vmatpush.msra.mxu3 %v5162_v9  ;;  %8174 = vst [vmem:[#allocation25_spill] sm:$0xff] %v5188_v5  ;;  %v5191_v9 = vld [vmem:[#allocation3 + $0x140] sm:$0xff] }
 0x1fa   :  { %1109 = vmatpush.msra.mxu0 %v5166_v50  ;;  %1139 = vmatpush.msrb.mxu1 %v5168_v8  ;;  %v5193_v50 = vld [vmem:[#allocation3 + $0x8] sm:$0xff]  ;;  %v1038_v8 = vpop.permute.xlu1 %1037 }
 0x1fb   :  { %1149 = vmatpush.msrb.mxu2 %v5172_v61  ;;  %1179 = vmatpush.msra.mxu3 %v5174_v15  ;;  %8175 = vst [vmem:[#allocation51_spill] sm:$0xff] %v5193_v50  ;;  %v5197_v61 = vld [vmem:[#allocation3 + $0x150] sm:$0xff]  ;;  %v5199_v15 = vld [vmem:[#allocation3 + $0x18] sm:$0xff] }
 0x1fc   :  { %953 = vmatmul.f32.vlgmr.msrb.gmra.mxu0 %v728_v33  ;;  %993 = vmatmul.f32.vlgmr.msra.gmra.mxu2 %v728_v33  ;;  %8176 = vst [vmem:[#allocation27_spill] sm:$0xff] %v5197_v61  ;;  %v5205_v33 = vld [vmem:[#allocation3 + $0x120] sm:$0xff] }
 0x1fd   :  { %1110 = vmatpush.msra.mxu0 %v5180_v23  ;;  %1140 = vmatpush.msrb.mxu1 %v5182_v29  ;;  %8177 = vst [vmem:[#allocation54_spill] sm:$0xff] %v5199_v15  ;;  %v1041_v23 = vsel %vm75_vm2, %v1038_v8, %v1040_v52  ;;  %v5213_v29 = vld [vmem:[#allocation5 + $0x3e0] sm:$0xff]  ;;  %v5225_v52 = vld [vmem:[#allocation5 + $0x3c8] sm:$0xff] }
 0x1fe   :  { %1150 = vmatpush.msrb.mxu2 %v5186_v51  ;;  %1180 = vmatpush.msra.mxu3 %v5188_v5  ;;  %8178 = vst [vmem:[#allocation29_spill] sm:$0xff] %v5205_v33  ;;  %v5215_v51 = vld [vmem:[#allocation5 + $0x3e8] sm:$0xff]  ;;  %v5217_v5 = vld [vmem:[#allocation3 + $0x100] sm:$0xff] }
 0x1ff   :  { %1111 = vmatpush.msra.mxu0 %v5191_v9  ;;  %1141 = vmatpush.msrb.mxu1 %v5193_v50  ;;  %8180 = vst [vmem:[#allocation32_spill] sm:$0xff] %v5213_v29  ;;  %v5219_v50 = vld [vmem:[#allocation3 + $0x110] sm:$0xff]  ;;  %v5227_v8 = vld [vmem:[#allocation3 + $0xe0] sm:$0xff] }
 0x200   :  { %1151 = vmatpush.msrb.mxu2 %v5197_v61  ;;  %1181 = vmatpush.msra.mxu3 %v5199_v15  ;;  %8181 = vst [vmem:[#allocation24_spill] sm:$0xff] %v5215_v51  ;;  %v5229_v15 = vld [vmem:[#allocation3 + $0xf0] sm:$0xff]  ;;  %v5235_v61 = vld [vmem:[#allocation3 + $0xc0] sm:$0xff] }
 0x201   :  { %1142 = vmatmul.f32.vlgmr.msrb.gmra.mxu1 %v1041_v23  ;;  %1182 = vmatmul.f32.vlgmr.msra.gmra.mxu3 %v1041_v23  ;;  %8182 = vst [vmem:[#allocation35_spill] sm:$0xff] %v5219_v50 }
 0x202   :  { %1112 = vmatpush.msra.mxu0 %v5205_v33  ;;  %1152 = vmatpush.msrb.mxu2 %v5207_v62  ;;  %8184 = vst [vmem:[#allocation38_spill] sm:$0xff] %v5225_v52  ;;  %v5237_v33 = vld [vmem:[#allocation3 + $0xd0] sm:$0xff]  ;;  %v5243_v62 = vld [vmem:[#allocation3 + $0xa0] sm:$0xff] }
 0x203   :  { %8185 = vst [vmem:[#allocation28_spill] sm:$0xff] %v5229_v15  ;;  %1349 = vmatpush.msra.mxu1 %v5213_v29  ;;  %1389 = vmatpush.msrb.mxu3 %v5215_v51  ;;  %v5245_v29 = vld [vmem:[#allocation3 + $0xb0] sm:$0xff]  ;;  %v5249_v51 = vld [vmem:[#allocation3 + $0x80] sm:$0xff] }
 0x204   :  { %1113 = vmatpush.msra.mxu0 %v5217_v5  ;;  %1153 = vmatpush.msrb.mxu2 %v5219_v50  ;;  %8186 = vst [vmem:[#allocation41_spill] sm:$0xff] %v5235_v61  ;;  %v5251_v50 = vld [vmem:[#allocation3 + $0x90] sm:$0xff] }
 0x205   :  { %8187 = vst [vmem:[#allocation31_spill] sm:$0xff] %v5237_v33  ;;  %1350 = vmatpush.msra.mxu1 %v5223_v21  ;;  %1390 = vmatpush.msrb.mxu3 %v5225_v52  ;;  %v5255_v52 = vld [vmem:[#allocation3 + $0x60] sm:$0xff]  ;;  %v5257_v21 = vld [vmem:[#allocation3 + $0x70] sm:$0xff] }
 0x206   :  { %1114 = vmatpush.msra.mxu0 %v5227_v8  ;;  %1154 = vmatpush.msrb.mxu2 %v5229_v15  ;;  %8188 = vst [vmem:[#allocation65_spill] sm:$0xff] %v5243_v62  ;;  %v5261_v15 = vld [vmem:[#allocation3 + $0x40] sm:$0xff] }
 0x207   :  { %8189 = vst [vmem:[#allocation44_spill] sm:$0xff] %v5245_v29 }
 0x208   :  { %1115 = vmatpush.msra.mxu0 %v5235_v61  ;;  %1155 = vmatpush.msrb.mxu2 %v5237_v33  ;;  %8190 = vst [vmem:[#allocation34_spill] sm:$0xff] %v5249_v51  ;;  %v5263_v61 = vld [vmem:[#allocation3 + $0x50] sm:$0xff]  ;;  %v5267_v33 = vld [vmem:[#allocation3 + $0x20] sm:$0xff] }
 0x209   :  { %8191 = vst [vmem:[#allocation67_spill] sm:$0xff] %v5251_v50 }
 0x20a   :  { %1116 = vmatpush.msra.mxu0 %v5243_v62  ;;  %1156 = vmatpush.msrb.mxu2 %v5245_v29  ;;  %8192 = vst [vmem:[#allocation46_spill] sm:$0xff] %v5255_v52  ;;  %v5269_v62 = vld [vmem:[#allocation3 + $0x30] sm:$0xff]  ;;  %v5273_v29 = vld [vmem:[#allocation3] sm:$0xff] }
 0x20b   :  { %8193 = vst [vmem:[#allocation37_spill] sm:$0xff] %v5257_v21 }
 0x20c   :  { %1117 = vmatpush.msra.mxu0 %v5249_v51  ;;  %1157 = vmatpush.msrb.mxu2 %v5251_v50  ;;  %8194 = vst [vmem:[#allocation49_spill] sm:$0xff] %v5261_v15  ;;  %v5275_v51 = vld [vmem:[#allocation3 + $0x10] sm:$0xff]  ;;  %v5307_v50 = vld [vmem:[#allocation5 + $0x328] sm:$0xff] }
 0x20d   :  { %8195 = vst [vmem:[#allocation40_spill] sm:$0xff] %v5263_v61 }
 0x20e   :  { %1118 = vmatpush.msra.mxu0 %v5255_v52  ;;  %1158 = vmatpush.msrb.mxu2 %v5257_v21  ;;  %8196 = vst [vmem:[#allocation70_spill] sm:$0xff] %v5267_v33  ;;  %v5281_v21 = vld [vmem:[#allocation5 + $0x3a0] sm:$0xff]  ;;  %v5283_v52 = vld [vmem:[#allocation5 + $0x3a8] sm:$0xff] }
 0x20f   :  { %8197 = vst [vmem:[#allocation52_spill] sm:$0xff] %v5269_v62  ;;  %1351 = vmatpush.msra.mxu1 %v5281_v21  ;;  %1391 = vmatpush.msrb.mxu3 %v5283_v52 }
 0x210   :  { %1119 = vmatpush.msra.mxu0 %v5261_v15  ;;  %1159 = vmatpush.msrb.mxu2 %v5263_v61  ;;  %8198 = vst [vmem:[#allocation43_spill] sm:$0xff] %v5273_v29  ;;  %v5285_v15 = vld [vmem:[#allocation5 + $0x380] sm:$0xff]  ;;  %v5289_v61 = vld [vmem:[#allocation5 + $0x388] sm:$0xff] }
 0x211   :  { %8199 = vst [vmem:[#allocation72_spill] sm:$0xff] %v5275_v51  ;;  %1352 = vmatpush.msra.mxu1 %v5285_v15  ;;  %1392 = vmatpush.msrb.mxu3 %v5289_v61 }
 0x212   :  { %1120 = vmatpush.msra.mxu0 %v5267_v33  ;;  %1160 = vmatpush.msrb.mxu2 %v5269_v62  ;;  %8200 = vst [vmem:[#allocation55_spill] sm:$0xff] %v5281_v21  ;;  %v5291_v33 = vld [vmem:[#allocation5 + $0x360] sm:$0xff]  ;;  %v5293_v62 = vld [vmem:[#allocation5 + $0x368] sm:$0xff] }
 0x213   :  { %8201 = vst [vmem:[#allocation47_spill] sm:$0xff] %v5283_v52  ;;  %1353 = vmatpush.msra.mxu1 %v5291_v33  ;;  %1393 = vmatpush.msrb.mxu3 %v5293_v62  ;;  %v5309_v52 = vld [vmem:[#allocation5 + $0x300] sm:$0xff]  ;;  %v5351_v21 = vld [vmem:[#allocation5 + $0x288] sm:$0xff] }
 0x214   :  { %1121 = vmatpush.msra.mxu0 %v5273_v29  ;;  %1161 = vmatpush.msrb.mxu2 %v5275_v51  ;;  %8202 = vst [vmem:[#allocation74_spill] sm:$0xff] %v5285_v15  ;;  %v5301_v51 = vld [vmem:[#allocation5 + $0x348] sm:$0xff]  ;;  %v5305_v29 = vld [vmem:[#allocation5 + $0x320] sm:$0xff] }
 0x215   :  { %1122 = vmatmul.f32.vlgmr.msra.gmra.mxu0 %v1041_v23  ;;  %1162 = vmatmul.f32.vlgmr.msrb.gmra.mxu2 %v1041_v23  ;;  %8203 = vst [vmem:[#allocation58_spill] sm:$0xff] %v5289_v61  ;;  %v5299_v23 = vld [vmem:[#allocation5 + $0x340] sm:$0xff]  ;;  %v5317_v61 = vld [vmem:[#allocation5 + $0x2e8] sm:$0xff] }
 0x216   :  { %8204 = vst [vmem:[#allocation50_spill] sm:$0xff] %v5291_v33  ;;  %1354 = vmatpush.msra.mxu1 %v5299_v23  ;;  %1394 = vmatpush.msrb.mxu3 %v5301_v51  ;;  %v5313_v33 = vld [vmem:[#allocation5 + $0x308] sm:$0xff]  ;;  %v5333_v15 = vld [vmem:[#allocation5 + $0x1c0] sm:$0xff] }
 0x217   :  { %8205 = vst [vmem:[#allocation75_spill] sm:$0xff] %v5293_v62  ;;  %v5315_v62 = vld [vmem:[#allocation5 + $0x2e0] sm:$0xff] }
 0x218   :  { %8206 = vst [vmem:[#allocation60_spill] sm:$0xff] %v5299_v23  ;;  %1355 = vmatpush.msra.mxu1 %v5305_v29  ;;  %1395 = vmatpush.msrb.mxu3 %v5307_v50  ;;  %v5325_v23 = vld [vmem:[#allocation5 + $0x1e8] sm:$0xff] }
 0x219   :  { %8207 = vst [vmem:[#allocation53_spill] sm:$0xff] %v5301_v51  ;;  %v5323_v51 = vld [vmem:[#allocation5 + $0x1e0] sm:$0xff]  ;;  %1369 = vmatpush.msra.mxu2 %v5325_v23 }
 0x21a   :  { %8208 = vst [vmem:[#allocation76_spill] sm:$0xff] %v5305_v29  ;;  %1356 = vmatpush.msra.mxu1 %v5309_v52  ;;  %1396 = vmatpush.msrb.mxu3 %v5313_v33  ;;  %v5327_v29 = vld [vmem:[#allocation5 + $0x2c0] sm:$0xff] }
 0x21b   :  { %8209 = vst [vmem:[#allocation62_spill] sm:$0xff] %v5307_v50  ;;  %1329 = vmatpush.msrb.mxu0 %v5323_v51  ;;  %v5331_v50 = vld [vmem:[#allocation5 + $0x2c8] sm:$0xff] }
 0x21c   :  { %8210 = vst [vmem:[#allocation56_spill] sm:$0xff] %v5309_v52  ;;  %1357 = vmatpush.msra.mxu1 %v5315_v62  ;;  %1397 = vmatpush.msrb.mxu3 %v5317_v61  ;;  %v5335_v52 = vld [vmem:[#allocation5 + $0x1c8] sm:$0xff] }
 0x21d   :  { %8211 = vst [vmem:[#allocation77_spill] sm:$0xff] %v5313_v33  ;;  %v5343_v33 = vld [vmem:[#allocation5 + $0x1a0] sm:$0xff]  ;;  %1330 = vmatpush.msrb.mxu0 %v5333_v15  ;;  %1370 = vmatpush.msra.mxu2 %v5335_v52 }
 0x21e   :  { %8212 = vst [vmem:[#allocation64_spill] sm:$0xff] %v5315_v62  ;;  %1358 = vmatpush.msra.mxu1 %v5327_v29  ;;  %1398 = vmatpush.msrb.mxu3 %v5331_v50  ;;  %v5341_v62 = vld [vmem:[#allocation5 + $0x2a8] sm:$0xff] }
 0x21f   :  { %8213 = vst [vmem:[#allocation59_spill] sm:$0xff] %v5317_v61  ;;  %v5339_v61 = vld [vmem:[#allocation5 + $0x2a0] sm:$0xff]  ;;  %1331 = vmatpush.msrb.mxu0 %v5343_v33 }
 0x220   :  { %8214 = vst [vmem:[#allocation78_spill] sm:$0xff] %v5323_v51  ;;  %v5349_v51 = vld [vmem:[#allocation5 + $0x280] sm:$0xff]  ;;  %1359 = vmatpush.msra.mxu1 %v5339_v61  ;;  %1399 = vmatpush.msrb.mxu3 %v5341_v62 }
 0x221   :  { %8215 = vst [vmem:[#allocation66_spill] sm:$0xff] %v5325_v23  ;;  %v5347_v23 = vld [vmem:[#allocation5 + $0x1a8] sm:$0xff] }
 0x222   :  { %8216 = vst [vmem:[#allocation61_spill] sm:$0xff] %v5327_v29  ;;  %1371 = vmatpush.msra.mxu2 %v5347_v23  ;;  %1360 = vmatpush.msra.mxu1 %v5349_v51  ;;  %v5365_v29 = vld [vmem:[#allocation5 + $0x260] sm:$0xff] }
 0x223   :  { %8217 = vst [vmem:[#allocation79_spill] sm:$0xff] %v5331_v50  ;;  %1400 = vmatpush.msrb.mxu3 %v5351_v21  ;;  %v5359_v50 = vld [vmem:[#allocation5 + $0x180] sm:$0xff] }
 0x224   :  { %8218 = vst [vmem:[#allocation68_spill] sm:$0xff] %v5335_v52  ;;  %v5361_v52 = vld [vmem:[#allocation5 + $0x188] sm:$0xff]  ;;  %1332 = vmatpush.msrb.mxu0 %v5359_v50  ;;  %1361 = vmatpush.msra.mxu1 %v5365_v29 }
 0x225   :  { %8219 = vst [vmem:[#allocation63_spill] sm:$0xff] %v5339_v61  ;;  %1372 = vmatpush.msra.mxu2 %v5361_v52  ;;  %v5367_v61 = vld [vmem:[#allocation5 + $0x268] sm:$0xff] }
 0x226   :  { %8220 = vst [vmem:[#allocation80_spill] sm:$0xff] %v5341_v62  ;;  %1401 = vmatpush.msrb.mxu3 %v5367_v61  ;;  %v5371_v62 = vld [vmem:[#allocation5 + $0x160] sm:$0xff] }
 0x227   :  { %8221 = vst [vmem:[#allocation85_spill] sm:$0xff] %v5347_v23  ;;  %1333 = vmatpush.msrb.mxu0 %v5371_v62  ;;  %v5427_v23 = vld [vmem:[#allocation5 + $0x3d8] sm:$0xff] }
 0x228   :  { %8222 = vst [vmem:[#allocation69_spill] sm:$0xff] %v5349_v51  ;;  %v5373_v51 = vld [vmem:[#allocation5 + $0x168] sm:$0xff] }
 0x229   :  { %8223 = vst [vmem:[#allocation81_spill] sm:$0xff] %v5351_v21  ;;  %1373 = vmatpush.msra.mxu2 %v5373_v51  ;;  %v5377_v21 = vld [vmem:[#allocation5 + $0x240] sm:$0xff] }
 0x22a   :  { %8224 = vst [vmem:[#allocation71_spill] sm:$0xff] %v5359_v50  ;;  %v5379_v50 = vld [vmem:[#allocation5 + $0x248] sm:$0xff]  ;;  %1362 = vmatpush.msra.mxu1 %v5377_v21 }
 0x22b   :  { %8225 = vst [vmem:[#allocation82_spill] sm:$0xff] %v5361_v52  ;;  %1402 = vmatpush.msrb.mxu3 %v5379_v50  ;;  %v5383_v52 = vld [vmem:[#allocation5 + $0x140] sm:$0xff] }
 0x22c   :  { %8226 = vst [vmem:[#allocation73_spill] sm:$0xff] %v5365_v29  ;;  %v5385_v29 = vld [vmem:[#allocation5 + $0x148] sm:$0xff]  ;;  %1334 = vmatpush.msrb.mxu0 %v5383_v52 }
 0x22d   :  { %8227 = vst [vmem:[#allocation83_spill] sm:$0xff] %v5367_v61  ;;  %1374 = vmatpush.msra.mxu2 %v5385_v29  ;;  %v5389_v61 = vld [vmem:[#allocation5 + $0x220] sm:$0xff] }
 0x22e   :  { %8228 = vst [vmem:[#allocation84_spill] sm:$0xff] %v5371_v62  ;;  %v5391_v62 = vld [vmem:[#allocation5 + $0x228] sm:$0xff]  ;;  %1363 = vmatpush.msra.mxu1 %v5389_v61 }
 0x22f   :  { %8229 = vst [vmem:[#allocation87_spill] sm:$0xff] %v5373_v51  ;;  %1403 = vmatpush.msrb.mxu3 %v5391_v62  ;;  %v5395_v51 = vld [vmem:[#allocation5 + $0x120] sm:$0xff] }
 0x230   :  { %8230 = vst [vmem:[#allocation89_spill] sm:$0xff] %v5377_v21  ;;  %v5397_v21 = vld [vmem:[#allocation5 + $0x128] sm:$0xff]  ;;  %1335 = vmatpush.msrb.mxu0 %v5395_v51 }
 0x231   :  { %8231 = vst [vmem:[#allocation90_spill] sm:$0xff] %v5379_v50  ;;  %1375 = vmatpush.msra.mxu2 %v5397_v21  ;;  %v5401_v50 = vld [vmem:[#allocation5 + $0x200] sm:$0xff] }
 0x232   :  { %8232 = vst [vmem:[#allocation10_spill] sm:$0xff] %v5383_v52  ;;  %v5403_v52 = vld [vmem:[#allocation5 + $0x208] sm:$0xff]  ;;  %1364 = vmatpush.msra.mxu1 %v5401_v50 }
 0x233   :  { %8233 = vst [vmem:[#allocation12_spill] sm:$0xff] %v5385_v29  ;;  %1404 = vmatpush.msrb.mxu3 %v5403_v52  ;;  %v5407_v29 = vld [vmem:[#allocation5 + $0x100] sm:$0xff] }
 0x234   :  { %8234 = vst [vmem:[#allocation13_spill] sm:$0xff] %v5389_v61  ;;  %v5409_v61 = vld [vmem:[#allocation5 + $0x108] sm:$0xff]  ;;  %1336 = vmatpush.msrb.mxu0 %v5407_v29 }
 0x235   :  { %8235 = vst [vmem:[#allocation14_spill] sm:$0xff] %v5391_v62  ;;  %v5411_v62 = vld [vmem:[#allocation5 + $0x3f0] sm:$0xff]  ;;  %1376 = vmatpush.msra.mxu2 %v5409_v61 }
 0x236   :  { %8236 = vst [vmem:[#allocation86_spill] sm:$0xff] %v5395_v51  ;;  %v5415_v51 = vld [vmem:[#allocation5 + $0x3f8] sm:$0xff]  ;;  %1429 = vmatpush.msrb.mxu1 %v5411_v62 }
 0x237   :  { %8237 = vst [vmem:[#allocation88_spill] sm:$0xff] %v5397_v21  ;;  %1469 = vmatpush.msra.mxu3 %v5415_v51  ;;  %v5419_v21 = vld [vmem:[#allocation5 + $0xe0] sm:$0xff] }
 0x238   :  { %8238 = vst [vmem:[#allocation91_spill] sm:$0xff] %v5401_v50  ;;  %v5421_v50 = vld [vmem:[#allocation5 + $0xe8] sm:$0xff]  ;;  %1337 = vmatpush.msrb.mxu0 %v5419_v21 }
 0x239   :  { %8239 = vst [vmem:[#allocation92_spill] sm:$0xff] %v5403_v52  ;;  %v5423_v52 = vld [vmem:[#allocation5 + $0x3d0] sm:$0xff]  ;;  %1377 = vmatpush.msra.mxu2 %v5421_v50  ;;  %1470 = vmatpush.msra.mxu3 %v5427_v23 }
 0x23a   :  { %8240 = vst [vmem:[#allocation93_spill] sm:$0xff] %v5407_v29  ;;  %1430 = vmatpush.msrb.mxu1 %v5423_v52  ;;  %v5439_v29 = vld [vmem:[#allocation5 + $0x3b8] sm:$0xff] }
 0x23b   :  { %8241 = vst [vmem:[#allocation94_spill] sm:$0xff] %v5409_v61  ;;  %v5431_v61 = vld [vmem:[#allocation5 + $0xc0] sm:$0xff]  ;;  %1471 = vmatpush.msra.mxu3 %v5439_v29 }
 0x23c   :  { %8242 = vst [vmem:[#allocation95_spill] sm:$0xff] %v5411_v62  ;;  %v5433_v62 = vld [vmem:[#allocation5 + $0xc8] sm:$0xff]  ;;  %1338 = vmatpush.msrb.mxu0 %v5431_v61 }
 0x23d   :  { %8243 = vst [vmem:[#allocation96_spill] sm:$0xff] %v5415_v51  ;;  %v5435_v51 = vld [vmem:[#allocation5 + $0x3b0] sm:$0xff]  ;;  %1378 = vmatpush.msra.mxu2 %v5433_v62 }
 0x23e   :  { %8244 = vst [vmem:[#allocation97_spill] sm:$0xff] %v5419_v21  ;;  %1431 = vmatpush.msrb.mxu1 %v5435_v51  ;;  %v5451_v21 = vld [vmem:[#allocation5 + $0x398] sm:$0xff] }
 0x23f   :  { %8245 = vst [vmem:[#allocation98_spill] sm:$0xff] %v5421_v50  ;;  %v5443_v50 = vld [vmem:[#allocation5 + $0xa0] sm:$0xff]  ;;  %1472 = vmatpush.msra.mxu3 %v5451_v21 }
 0x240   :  { %8246 = vst [vmem:[#allocation99_spill] sm:$0xff] %v5423_v52  ;;  %v5445_v52 = vld [vmem:[#allocation5 + $0xa8] sm:$0xff]  ;;  %1339 = vmatpush.msrb.mxu0 %v5443_v50 }
 0x241   :  { %8247 = vst [vmem:[#allocation100_spill] sm:$0xff] %v5427_v23  ;;  %v5447_v23 = vld [vmem:[#allocation5 + $0x390] sm:$0xff]  ;;  %1379 = vmatpush.msra.mxu2 %v5445_v52 }
 0x242   :  { %8248 = vst [vmem:[#allocation101_spill] sm:$0xff] %v5431_v61  ;;  %1432 = vmatpush.msrb.mxu1 %v5447_v23  ;;  %v5463_v61 = vld [vmem:[#allocation5 + $0x378] sm:$0xff] }
 0x243   :  { %8249 = vst [vmem:[#allocation102_spill] sm:$0xff] %v5433_v62  ;;  %v5455_v62 = vld [vmem:[#allocation5 + $0x80] sm:$0xff]  ;;  %1473 = vmatpush.msra.mxu3 %v5463_v61 }
 0x244   :  { %8250 = vst [vmem:[#allocation103_spill] sm:$0xff] %v5435_v51  ;;  %v5457_v51 = vld [vmem:[#allocation5 + $0x88] sm:$0xff]  ;;  %1340 = vmatpush.msrb.mxu0 %v5455_v62 }
 0x245   :  { %8251 = vst [vmem:[#allocation104_spill] sm:$0xff] %v5439_v29  ;;  %v5459_v29 = vld [vmem:[#allocation5 + $0x370] sm:$0xff]  ;;  %1380 = vmatpush.msra.mxu2 %v5457_v51 }
 0x246   :  { %8252 = vst [vmem:[#allocation105_spill] sm:$0xff] %v5443_v50  ;;  %1433 = vmatpush.msrb.mxu1 %v5459_v29  ;;  %v5475_v50 = vld [vmem:[#allocation5 + $0x358] sm:$0xff] }
 0x247   :  { %8253 = vst [vmem:[#allocation106_spill] sm:$0xff] %v5445_v52  ;;  %v5467_v52 = vld [vmem:[#allocation5 + $0x60] sm:$0xff]  ;;  %1474 = vmatpush.msra.mxu3 %v5475_v50 }
 0x248   :  { %8254 = vst [vmem:[#allocation107_spill] sm:$0xff] %v5447_v23  ;;  %v5469_v23 = vld [vmem:[#allocation5 + $0x68] sm:$0xff]  ;;  %1341 = vmatpush.msrb.mxu0 %v5467_v52 }
 0x249   :  { %8255 = vst [vmem:[#allocation108_spill] sm:$0xff] %v5451_v21  ;;  %v5471_v21 = vld [vmem:[#allocation5 + $0x350] sm:$0xff]  ;;  %1381 = vmatpush.msra.mxu2 %v5469_v23 }
 0x24a   :  { %8256 = vst [vmem:[#allocation109_spill] sm:$0xff] %v5455_v62  ;;  %1434 = vmatpush.msrb.mxu1 %v5471_v21  ;;  %v5487_v62 = vld [vmem:[#allocation5 + $0x338] sm:$0xff] }
 0x24b   :  { %8257 = vst [vmem:[#allocation110_spill] sm:$0xff] %v5457_v51  ;;  %v5479_v51 = vld [vmem:[#allocation5 + $0x40] sm:$0xff]  ;;  %1475 = vmatpush.msra.mxu3 %v5487_v62 }
 0x24c   :  { %8258 = vst [vmem:[#allocation111_spill] sm:$0xff] %v5459_v29  ;;  %v5481_v29 = vld [vmem:[#allocation5 + $0x48] sm:$0xff]  ;;  %1342 = vmatpush.msrb.mxu0 %v5479_v51 }
 0x24d   :  { %8259 = vst [vmem:[#allocation112_spill] sm:$0xff] %v5463_v61  ;;  %v5483_v61 = vld [vmem:[#allocation5 + $0x330] sm:$0xff]  ;;  %1382 = vmatpush.msra.mxu2 %v5481_v29 }
 0x24e   :  { %8260 = vst [vmem:[#allocation113_spill] sm:$0xff] %v5467_v52  ;;  %1435 = vmatpush.msrb.mxu1 %v5483_v61  ;;  %v5499_v52 = vld [vmem:[#allocation5 + $0x318] sm:$0xff] }
 0x24f   :  { %8261 = vst [vmem:[#allocation114_spill] sm:$0xff] %v5469_v23  ;;  %v5491_v23 = vld [vmem:[#allocation5 + $0x20] sm:$0xff]  ;;  %1476 = vmatpush.msra.mxu3 %v5499_v52 }
 0x250   :  { %8262 = vst [vmem:[#allocation115_spill] sm:$0xff] %v5471_v21  ;;  %v5493_v21 = vld [vmem:[#allocation5 + $0x28] sm:$0xff]  ;;  %1343 = vmatpush.msrb.mxu0 %v5491_v23 }
 0x251   :  { %8263 = vst [vmem:[#allocation116_spill] sm:$0xff] %v5475_v50  ;;  %v5495_v50 = vld [vmem:[#allocation5 + $0x310] sm:$0xff]  ;;  %1383 = vmatpush.msra.mxu2 %v5493_v21 }
 0x252   :  { %8264 = vst [vmem:[#allocation117_spill] sm:$0xff] %v5479_v51  ;;  %1436 = vmatpush.msrb.mxu1 %v5495_v50  ;;  %v5511_v51 = vld [vmem:[#allocation5 + $0x2f8] sm:$0xff] }
 0x253   :  { %8265 = vst [vmem:[#allocation118_spill] sm:$0xff] %v5481_v29  ;;  %v5503_v29 = vld [vmem:[#allocation5] sm:$0xff]  ;;  %1477 = vmatpush.msra.mxu3 %v5511_v51 }
 0x254   :  { %8266 = vst [vmem:[#allocation119_spill] sm:$0xff] %v5483_v61  ;;  %v5505_v61 = vld [vmem:[#allocation5 + $0x8] sm:$0xff]  ;;  %1344 = vmatpush.msrb.mxu0 %v5503_v29 }
 0x255   :  { %8267 = vst [vmem:[#allocation120_spill] sm:$0xff] %v5487_v62  ;;  %v5507_v62 = vld [vmem:[#allocation5 + $0x2f0] sm:$0xff]  ;;  %1384 = vmatpush.msra.mxu2 %v5505_v61 }
 0x256   :  { %8268 = vst [vmem:[#allocation121_spill] sm:$0xff] %v5491_v23  ;;  %v5513_v23 = vld [vmem:[#allocation5 + $0x1f8] sm:$0xff]  ;;  %1437 = vmatpush.msrb.mxu1 %v5507_v62  ;;  %1409 = vmatpush.msra.mxu0 %v5000_v49 }
 0x257   :  { %8269 = vst [vmem:[#allocation122_spill] sm:$0xff] %v5493_v21  ;;  %1449 = vmatpush.msrb.mxu2 %v5513_v23  ;;  %v5523_v21 = vld [vmem:[#allocation5 + $0x1d8] sm:$0xff] }
 0x258   :  { %8270 = vst [vmem:[#allocation123_spill] sm:$0xff] %v5495_v50  ;;  %v5517_v50 = vld [vmem:[#allocation5 + $0x2d0] sm:$0xff]  ;;  %1410 = vmatpush.msra.mxu0 %v5005_v13  ;;  %v5537_v49 = vld [vmem:[#allocation5 + $0x298] sm:$0xff] }
 0x259   :  { %8271 = vst [vmem:[#allocation124_spill] sm:$0xff] %v5499_v52  ;;  %v5519_v52 = vld [vmem:[#allocation5 + $0x2d8] sm:$0xff]  ;;  %1438 = vmatpush.msrb.mxu1 %v5517_v50  ;;  %1450 = vmatpush.msrb.mxu2 %v5523_v21  ;;  %v5547_v13 = vld [vmem:[#allocation5 + $0x270] sm:$0xff] }
 0x25a   :  { %8272 = vst [vmem:[#allocation125_spill] sm:$0xff] %v5503_v29  ;;  %1478 = vmatpush.msra.mxu3 %v5519_v52  ;;  %v5529_v29 = vld [vmem:[#allocation5 + $0x2b8] sm:$0xff]  ;;  %1411 = vmatpush.msra.mxu0 %v5007_v2 }
 0x25b   :  { %8273 = vst [vmem:[#allocation126_spill] sm:$0xff] %v5505_v61  ;;  %v5527_v61 = vld [vmem:[#allocation5 + $0x2b0] sm:$0xff] }
 0x25c   :  { %8274 = vst [vmem:[#allocation127_spill] sm:$0xff] %v5507_v62  ;;  %v5535_v62 = vld [vmem:[#allocation5 + $0x290] sm:$0xff]  ;;  %1439 = vmatpush.msrb.mxu1 %v5527_v61  ;;  %1479 = vmatpush.msra.mxu3 %v5529_v29 }
 0x25d   :  { %8275 = vst [vmem:[#allocation128_spill] sm:$0xff] %v5511_v51  ;;  %v5533_v51 = vld [vmem:[#allocation5 + $0x1b8] sm:$0xff]  ;;  %1412 = vmatpush.msra.mxu0 %v5012_v4 }
 0x25e   :  { %8276 = vst [vmem:[#allocation129_spill] sm:$0xff] %v5517_v50  ;;  %1451 = vmatpush.msrb.mxu2 %v5533_v51  ;;  %1440 = vmatpush.msrb.mxu1 %v5535_v62 }
 0x25f   :  { %8277 = vst [vmem:[#allocation130_spill] sm:$0xff] %v5519_v52  ;;  %v5543_v52 = vld [vmem:[#allocation5 + $0x198] sm:$0xff]  ;;  %1480 = vmatpush.msra.mxu3 %v5537_v49  ;;  %1413 = vmatpush.msra.mxu0 %v5016_v11 }
 0x260   :  { %8278 = vst [vmem:[#allocation131_spill] sm:$0xff] %v5523_v21  ;;  %v5549_v21 = vld [vmem:[#allocation5 + $0x278] sm:$0xff]  ;;  %1452 = vmatpush.msrb.mxu2 %v5543_v52  ;;  %1441 = vmatpush.msrb.mxu1 %v5547_v13 }
 0x261   :  { %8279 = vst [vmem:[#allocation132_spill] sm:$0xff] %v5527_v61  ;;  %1481 = vmatpush.msra.mxu3 %v5549_v21  ;;  %1414 = vmatpush.msra.mxu0 %v5020_v19  ;;  %v5575_v11 = vld [vmem:[#allocation5 + $0x138] sm:$0xff] }
 0x262   :  { %8280 = vst [vmem:[#allocation133_spill] sm:$0xff] %v5529_v29  ;;  %v5553_v29 = vld [vmem:[#allocation5 + $0x178] sm:$0xff] }
 0x263   :  { %8281 = vst [vmem:[#allocation134_spill] sm:$0xff] %v5533_v51  ;;  %v5558_v51 = vld [vmem:[#allocation5 + $0x250] sm:$0xff]  ;;  %1453 = vmatpush.msrb.mxu2 %v5553_v29  ;;  %1415 = vmatpush.msra.mxu0 %v5024_v26  ;;  %v5595_v26 = vld [vmem:[#allocation5 + $0xd8] sm:$0xff] }
 0x264   :  { %8282 = vst [vmem:[#allocation135_spill] sm:$0xff] %v5535_v62  ;;  %v5560_v62 = vld [vmem:[#allocation5 + $0x258] sm:$0xff]  ;;  %1442 = vmatpush.msrb.mxu1 %v5558_v51 }
 0x265   :  { %8283 = vst [vmem:[#allocation136_spill] sm:$0xff] %v5537_v49  ;;  %v5564_v49 = vld [vmem:[#allocation5 + $0x158] sm:$0xff]  ;;  %1482 = vmatpush.msra.mxu3 %v5560_v62  ;;  %1416 = vmatpush.msra.mxu0 %v5029_v32 }
 0x266   :  { %8284 = vst [vmem:[#allocation137_spill] sm:$0xff] %v5543_v52  ;;  %1454 = vmatpush.msrb.mxu2 %v5564_v49  ;;  %v5600_v32 = vld [vmem:[#allocation5 + $0xb8] sm:$0xff] }
 0x267   :  { %8285 = vst [vmem:[#allocation138_spill] sm:$0xff] %v5547_v13  ;;  %v934_v13 = vpop.f32.mrf.mxu3  ;;  %1417 = vmatpush.msra.mxu0 %v5034_v42  ;;  %v5605_v42 = vld [vmem:[#allocation5 + $0x98] sm:$0xff] }
 0x268   :  { %8286 = vst [vmem:[#allocation139_spill] sm:$0xff] %v5549_v21  ;;  %v894_v21 = vpop.f32.mrf.mxu1  ;;  %1455 = vmatpush.msrb.mxu2 %v5575_v11 }
 0x269   :  { %8287 = vst [vmem:[#allocation140_spill] sm:$0xff] %v5553_v29  ;;  %1418 = vmatpush.msra.mxu0 %v5038_v59  ;;  %v5609_v59 = vld [vmem:[#allocation5 + $0x78] sm:$0xff] }
 0x26a   :  { %8288 = vst [vmem:[#allocation141_spill] sm:$0xff] %v5558_v51  ;;  %v5581_v51 = vld [vmem:[#allocation5 + $0x218] sm:$0xff] }
 0x26b   :  { %8289 = vst [vmem:[#allocation142_spill] sm:$0xff] %v5560_v62  ;;  %v5579_v62 = vld [vmem:[#allocation5 + $0x210] sm:$0xff]  ;;  %1419 = vmatpush.msra.mxu0 %v5042_v18  ;;  %v5613_v18 = vld [vmem:[#allocation5 + $0x58] sm:$0xff] }
 0x26c   :  { %8292 = vst [vmem:[#allocation145_spill] sm:$0xff] %v5613_v18 }
 0x26d   :  { %1420 = vmatpush.msra.mxu0 %v5045_v34 }
 0x26f   :  { %1421 = vmatpush.msra.mxu0 %v5048_v0 }
 0x270   :  { %v874_v50 = vpop.f32.mrf.mxu0 }
 0x271   :  { %v875_v2 = vadd.f32 %v874_v50, %v5009_v3  ;;  %v5568_v50 = vld [vmem:[#allocation5 + $0x230] sm:$0xff]  ;;  %v5570_v3 = vld [vmem:[#allocation5 + $0x238] sm:$0xff]  ;;  %1422 = vmatpush.msra.mxu0 %v5051_v6 }
 0x272   :  { %1443 = vmatpush.msrb.mxu1 %v5568_v50  ;;  %1483 = vmatpush.msra.mxu3 %v5570_v3 }
 0x273   :  { %v895_v29 = vadd.f32 %v894_v21, %v875_v2  ;;  %v5591_v21 = vld [vmem:[#allocation5 + $0xf8] sm:$0xff]  ;;  %1423 = vmatpush.msra.mxu0 %v5054_v28 }
 0x274   :  { %1444 = vmatpush.msrb.mxu1 %v5579_v62  ;;  %1484 = vmatpush.msra.mxu3 %v5581_v51  ;;  %8291 = vst [vmem:[#allocation144_spill] sm:$0xff] %v5591_v21 }
 0x275   :  { %1424 = vmatpush.msra.mxu0 %v5058_v30 }
 0x276   :  { %v914_v4 = vpop.f32.mrf.mxu2 }
 0x277   :  { %v915_v52 = vadd.f32 %v914_v4, %v5002_v7  ;;  %v5585_v4 = vld [vmem:[#allocation5 + $0x118] sm:$0xff] }
 0x278   :  { %8290 = vst [vmem:[#allocation143_spill] sm:$0xff] %v5585_v4  ;;  %1456 = vmatpush.msrb.mxu2 %v5585_v4 }
 0x279   :  { %v935_v61 = vadd.f32 %v934_v13, %v915_v52  ;;  %v954_v19 = vpop.f32.mrf.mxu0 }
 0x27a   :  { %1457 = vmatpush.msrb.mxu2 %v5591_v21  ;;  %v955_v52 = vadd.f32 %v954_v19, %v5027_v27  ;;  %v974_v21 = vpop.f32.mrf.mxu1 }
 0x27b   :  { %4004 = vtanh.f32 %v935_v61 }
 0x27c   :  { %4006 = vtanh.f32 %v895_v29  ;;  %1458 = vmatpush.msrb.mxu2 %v5595_v26  ;;  %v1014_v29 = vpop.f32.mrf.mxu3  ;;  %v975_v4 = vadd.f32 %v974_v21, %v955_v52  ;;  %v5617_v21 = vld [vmem:[#allocation5 + $0x38] sm:$0xff] }
 0x27d   :  { %8293 = vst [vmem:[#allocation146_spill] sm:$0xff] %v5617_v21 }
 0x27e   :  { %1459 = vmatpush.msrb.mxu2 %v5600_v32 }
 0x27f   :  { %v994_v13 = vpop.f32.mrf.mxu2 }
 0x280   :  { %v995_v61 = vadd.f32 %v994_v13, %v5031_v38  ;;  %1460 = vmatpush.msrb.mxu2 %v5605_v42 }
 0x281   :  { %v4005_v2 = vpop.eup %4004 }
 0x282   :  { %v4007_v7 = vpop.eup %4006  ;;  %v1015_v19 = vadd.f32 %v1014_v29, %v995_v61  ;;  %v1022_v27 = vmul.f32 0.5, %v4005_v2  ;;  %1461 = vmatpush.msrb.mxu2 %v5609_v59  ;;  %v1143_v52 = vpop.f32.mrf.mxu1 }
 0x283   :  { %v1021_v13 = vmul.f32 0.5, %v4007_v7  ;;  %v5621_v7 = vld [vmem:[#allocation5 + $0x18] sm:$0xff] }
 0x284   :  { %4008 = vtanh.f32 %v1015_v19  ;;  %v1025_v38 = vadd.f32 0.5, %v1022_v27  ;;  %1462 = vmatpush.msrb.mxu2 %v5613_v18 }
 0x285   :  { %4010 = vtanh.f32 %v975_v4  ;;  %v1024_v34 = vadd.f32 0.5, %v1021_v13  ;;  %v1183_v13 = vpop.f32.mrf.mxu3 }
 0x286   :  { %1463 = vmatpush.msrb.mxu2 %v5617_v21  ;;  %v1027_v61 = vmul.f32 %v1025_v38, %v5061_v36  ;;  %4012 = vtanh.f32 %v1143_v52 }
 0x288   :  { %1464 = vmatpush.msrb.mxu2 %v5621_v7 }
 0x28a   :  { %v4009_v0 = vpop.eup %4008 }
 0x28b   :  { %v1028_v2 = vmul.f32 %v4009_v0, %v1024_v34  ;;  %v4011_v27 = vpop.eup %4010 }
 0x28c   :  { %v1023_v28 = vmul.f32 0.5, %v4011_v27  ;;  %v4013_v29 = vpop.eup %4012  ;;  %v8317_v27 = vld [vmem:[#allocation24_spill] sm:$0xff] }
 0x28d   :  { %v5626_v6 = vadd.f32 %v1028_v2, %v1027_v61  ;;  %v1191_v18 = vmul.f32 0.5, %v4013_v29  ;;  %v8321_v29 = vld [vmem:[#allocation38_spill] sm:$0xff] }
 0x28e   :  { %v1026_v19 = vadd.f32 0.5, %v1023_v28  ;;  %v8318_v28 = vld [vmem:[#allocation31_spill] sm:$0xff] }
 0x28f   :  { %4014 = vtanh.f32 %v5626_v6  ;;  %v1194_v34 = vadd.f32 0.5, %v1191_v18  ;;  %v8316_v18 = vld [vmem:[#allocation41_spill] sm:$0xff] }
 0x291   :  { %v1196_v61 = vmul.f32 %v1194_v34, %v5097_v25  ;;  %v8299_v25 = vld [vmem:[#allocation39_spill] sm:$0xff]  ;;  %v8327_v34 = vld [vmem:[#allocation74_spill] sm:$0xff] }
 0x292   :  { %v1123_v4 = vpop.f32.mrf.mxu0 }
 0x293   :  { %4016 = vtanh.f32 %v1123_v4  ;;  %v8319_v4 = vld [vmem:[#allocation26_spill] sm:$0xff] }
 0x294   :  { %4018 = vtanh.f32 %v1183_v13  ;;  %v8324_v13 = vld [vmem:[#allocation34_spill] sm:$0xff] }
 0x295   :  { %v4015_v21 = vpop.eup %4014 }
 0x296   :  { %v5629_v38 = vmul.f32 %v4015_v21, %v1026_v19  ;;  %v8322_v19 = vld [vmem:[#allocation44_spill] sm:$0xff] }
 0x298   :  { %8294 = vst [vmem:[#allocation147_spill] sm:$0xff] %v5629_v38  ;;  %v1163_v30 = vpop.f32.mrf.mxu2  ;;  %1365 = vmatmul.f32.vlgmr.msra.gmra.mxu1 %v5629_v38  ;;  %1405 = vmatmul.f32.vlgmr.msrb.gmra.mxu3 %v5629_v38 }
 0x299   :  { %v4017_v36 = vpop.eup %4016  ;;  %1598 = vmatpush.msra.mxu1 %v5066_v53  ;;  %1638 = vmatpush.msrb.mxu3 %v5068_v55  ;;  %4020 = vtanh.f32 %v1163_v30  ;;  %v8325_v30 = vld [vmem:[#allocation47_spill] sm:$0xff] }
 0x29a   :  { %v1190_v0 = vmul.f32 0.5, %v4017_v36  ;;  %v4019_v52 = vpop.eup %4018  ;;  %v8326_v36 = vld [vmem:[#allocation67_spill] sm:$0xff] }
 0x29b   :  { %1599 = vmatpush.msra.mxu1 %v5072_v45  ;;  %1639 = vmatpush.msrb.mxu3 %v5074_v10 }
 0x29c   :  { %v1193_v21 = vadd.f32 0.5, %v1190_v0  ;;  %v8328_v0 = vld [vmem:[#allocation46_spill] sm:$0xff] }
 0x29d   :  { %1600 = vmatpush.msra.mxu1 %v5078_v14  ;;  %1640 = vmatpush.msrb.mxu3 %v5080_v16 }
 0x29e   :  { %v1197_v2 = vmul.f32 %v4019_v52, %v1193_v21  ;;  %v8329_v21 = vld [vmem:[#allocation58_spill] sm:$0xff]  ;;  %v8330_v52 = vld [vmem:[#allocation37_spill] sm:$0xff] }
 0x29f   :  { %1601 = vmatpush.msra.mxu1 %v5084_v24  ;;  %1641 = vmatpush.msrb.mxu3 %v5086_v35  ;;  %v4021_v53 = vpop.eup %4020  ;;  %v8295_v24 = vld [vmem:[#allocation36_spill] sm:$0xff]  ;;  %v8296_v35 = vld [vmem:[#allocation19_spill] sm:$0xff] }
 0x2a0   :  { %v5642_v55 = vadd.f32 %v1197_v2, %v1196_v61  ;;  %1445 = vmatmul.f32.vlgmr.msrb.gmra.mxu1 %v5629_v38  ;;  %1485 = vmatmul.f32.vlgmr.msra.gmra.mxu3 %v5629_v38  ;;  %v1192_v45 = vmul.f32 0.5, %v4021_v53  ;;  %v8331_v61 = vld [vmem:[#allocation50_spill] sm:$0xff]  ;;  %v8332_v2 = vld [vmem:[#allocation49_spill] sm:$0xff]  ;;  %v8333_v53 = vld [vmem:[#allocation75_spill] sm:$0xff] }
 0x2a1   :  { %1602 = vmatpush.msra.mxu1 %v5091_v54  ;;  %1642 = vmatpush.msrb.mxu3 %v5093_v63  ;;  %v8297_v54 = vld [vmem:[#allocation42_spill] sm:$0xff] }
 0x2a2   :  { %4022 = vtanh.f32 %v5642_v55  ;;  %v1195_v10 = vadd.f32 0.5, %v1192_v45  ;;  %v8298_v63 = vld [vmem:[#allocation18_spill] sm:$0xff]  ;;  %v8334_v45 = vld [vmem:[#allocation40_spill] sm:$0xff] }
 0x2a3   :  { %1603 = vmatpush.msra.mxu1 %v5101_v37  ;;  %1643 = vmatpush.msrb.mxu3 %v5103_v56  ;;  %v8300_v37 = vld [vmem:[#allocation45_spill] sm:$0xff]  ;;  %v8301_v56 = vld [vmem:[#allocation48_spill] sm:$0xff]  ;;  %v6000_v38 = vld [vmem:[#allocation3 + $0x140] sm:$0xff] }
 0x2a5   :  { %1604 = vmatpush.msra.mxu1 %v5107_v57  ;;  %1644 = vmatpush.msrb.mxu3 %v5109_v58  ;;  %v8302_v57 = vld [vmem:[#allocation20_spill] sm:$0xff]  ;;  %v8303_v58 = vld [vmem:[#allocation22_spill] sm:$0xff] }
 0x2a7   :  { %1605 = vmatpush.msra.mxu1 %v5114_v60  ;;  %1645 = vmatpush.msrb.mxu3 %v5116_v31  ;;  %v8304_v60 = vld [vmem:[#allocation21_spill] sm:$0xff] }
 0x2a8   :  { %v4023_v14 = vpop.eup %4022 }
 0x2a9   :  { %v1200_v16 = vmul.f32 %v4023_v14, %v1195_v10  ;;  %1606 = vmatpush.msra.mxu1 %v5120_v1  ;;  %1646 = vmatpush.msrb.mxu3 %v5122_v12  ;;  %v8305_v1 = vld [vmem:[#allocation27_spill] sm:$0xff]  ;;  %v8335_v10 = vld [vmem:[#allocation60_spill] sm:$0xff]  ;;  %v8336_v14 = vld [vmem:[#allocation70_spill] sm:$0xff] }
 0x2aa   :  { %v8306_v12 = vld [vmem:[#allocation23_spill] sm:$0xff] }
 0x2ab   :  { %1345 = vmatmul.f32.vlgmr.msrb.gmra.mxu0 %v1200_v16  ;;  %1385 = vmatmul.f32.vlgmr.msra.gmra.mxu2 %v1200_v16  ;;  %v1512_v31 = vadd.f32 %v8304_v60, %v1200_v16  ;;  %8441 = vst [vmem:[#allocation23_spill] sm:$0xff] %v6000_v38 }
 0x2ac   :  { %1578 = vmatpush.msrb.mxu0 %v5134_v39  ;;  %1618 = vmatpush.msra.mxu2 %v5138_v41  ;;  %v8308_v39 = vld [vmem:[#allocation29_spill] sm:$0xff]  ;;  %v8310_v41 = vld [vmem:[#allocation51_spill] sm:$0xff] }
 0x2ad   :  { %1607 = vmatpush.msra.mxu1 %v5126_v17  ;;  %1647 = vmatpush.msrb.mxu3 %v5128_v20  ;;  %v8307_v17 = vld [vmem:[#allocation25_spill] sm:$0xff]  ;;  %v1510_v20 = vpop.permute.xlu1 %1509 }
 0x2ae   :  { %1579 = vmatpush.msrb.mxu0 %v5142_v44  ;;  %1619 = vmatpush.msra.mxu2 %v5148_v48  ;;  %v3956_v48 = vld [vmem:[%s7491_s0 + $0x20] sm:$0xff] }
 0x2af   :  { %1608 = vmatpush.msra.mxu1 %v5136_v46  ;;  %1648 = vmatpush.msrb.mxu3 %v5140_v22  ;;  %v8309_v46 = vld [vmem:[#allocation57_spill] sm:$0xff]  ;;  %v8311_v22 = vld [vmem:[#allocation54_spill] sm:$0xff] }
 0x2b0   :  { %1580 = vmatpush.msrb.mxu0 %v5154_v43  ;;  %1620 = vmatpush.msra.mxu2 %v5160_v40  ;;  %v8313_v43 = vld [vmem:[#allocation35_spill] sm:$0xff]  ;;  %v8314_v40 = vld [vmem:[#allocation28_spill] sm:$0xff]  ;;  %v6045_v44 = vld [vmem:[#allocation3 + $0xc0] sm:$0xff] }
 0x2b1   :  { %1609 = vmatpush.msra.mxu1 %v5144_v47  ;;  %1649 = vmatpush.msrb.mxu3 %v8295_v24  ;;  %v1513_v47 = vsel %vm75_vm2, %v1510_v20, %v1512_v31  ;;  %v8338_v24 = vld [vmem:[#allocation52_spill] sm:$0xff]  ;;  %v8347_v31 = vld [vmem:[#allocation66_spill] sm:$0xff]  ;;  %v8351_v20 = vld [vmem:[#allocation79_spill] sm:$0xff]  ;;  %8453 = vst [vmem:[#allocation26_spill] sm:$0xff] %v6045_v44 }
 0x2b2   :  { %1581 = vmatpush.msrb.mxu0 %v8296_v35  ;;  %1621 = vmatpush.msra.mxu2 %v8297_v54  ;;  %v8339_v35 = vld [vmem:[#allocation76_spill] sm:$0xff]  ;;  %v8340_v54 = vld [vmem:[#allocation43_spill] sm:$0xff] }
 0x2b3   :  { %1610 = vmatpush.msra.mxu1 %v8298_v63  ;;  %1650 = vmatpush.msrb.mxu3 %v8299_v25  ;;  %v8341_v63 = vld [vmem:[#allocation62_spill] sm:$0xff]  ;;  %v8342_v25 = vld [vmem:[#allocation72_spill] sm:$0xff] }
 0x2b4   :  { %1425 = vmatmul.f32.vlgmr.msra.gmra.mxu0 %v1200_v16  ;;  %1465 = vmatmul.f32.vlgmr.msrb.gmra.mxu2 %v1200_v16  ;;  %v8337_v16 = vld [vmem:[#allocation53_spill] sm:$0xff] }
 0x2b5   :  { %1582 = vmatpush.msrb.mxu0 %v8300_v37  ;;  %1622 = vmatpush.msra.mxu2 %v8301_v56  ;;  %v8343_v37 = vld [vmem:[#allocation56_spill] sm:$0xff]  ;;  %v8344_v56 = vld [vmem:[#allocation77_spill] sm:$0xff] }
 0x2b6   :  { %1611 = vmatpush.msra.mxu1 %v8302_v57  ;;  %1651 = vmatpush.msrb.mxu3 %v8303_v58  ;;  %v8345_v57 = vld [vmem:[#allocation78_spill] sm:$0xff]  ;;  %v8346_v58 = vld [vmem:[#allocation64_spill] sm:$0xff] }
 0x2b7   :  { %1583 = vmatpush.msrb.mxu0 %v5191_v9  ;;  %1623 = vmatpush.msra.mxu2 %v8305_v1  ;;  %v8315_v9 = vld [vmem:[#allocation32_spill] sm:$0xff]  ;;  %v8348_v1 = vld [vmem:[#allocation59_spill] sm:$0xff] }
 0x2b8   :  { %1612 = vmatpush.msra.mxu1 %v8306_v12  ;;  %1652 = vmatpush.msrb.mxu3 %v8307_v17  ;;  %v8349_v12 = vld [vmem:[#allocation61_spill] sm:$0xff]  ;;  %v8350_v17 = vld [vmem:[#allocation68_spill] sm:$0xff] }
 0x2b9   :  { %1584 = vmatpush.msrb.mxu0 %v8308_v39  ;;  %1624 = vmatpush.msra.mxu2 %v8309_v46  ;;  %v8352_v39 = vld [vmem:[#allocation63_spill] sm:$0xff]  ;;  %v8353_v46 = vld [vmem:[#allocation85_spill] sm:$0xff] }
 0x2ba   :  { %1613 = vmatpush.msra.mxu1 %v8310_v41  ;;  %1653 = vmatpush.msrb.mxu3 %v8311_v22  ;;  %v8354_v41 = vld [vmem:[#allocation80_spill] sm:$0xff]  ;;  %v8355_v22 = vld [vmem:[#allocation71_spill] sm:$0xff] }
 0x2bb   :  { %1585 = vmatpush.msrb.mxu0 %v5217_v5  ;;  %1614 = vmatmul.f32.vlgmr.msra.gmra.mxu1 %v1513_v47  ;;  %v8320_v5 = vld [vmem:[#allocation65_spill] sm:$0xff] }
 0x2bc   :  { %1625 = vmatpush.msra.mxu2 %v8313_v43  ;;  %1654 = vmatmul.f32.vlgmr.msrb.gmra.mxu3 %v1513_v47  ;;  %v8359_v43 = vld [vmem:[#allocation84_spill] sm:$0xff] }
 0x2bd   :  { %1586 = vmatpush.msrb.mxu0 %v5227_v8  ;;  %1981 = vperm.xlu2 %3972, %v3956_v48   ;;  %v8323_v8 = vld [vmem:[#allocation55_spill] sm:$0xff]  ;;  %v8357_v48 = vld [vmem:[#allocation82_spill] sm:$0xff] }
 0x2be   :  { %1626 = vmatpush.msra.mxu2 %v8314_v40  ;;  %1821 = vmatpush.msrb.mxu1 %v8315_v9  ;;  %v8360_v40 = vld [vmem:[#allocation73_spill] sm:$0xff]  ;;  %v8361_v9 = vld [vmem:[#allocation87_spill] sm:$0xff] }
 0x2bf   :  { %1587 = vmatpush.msrb.mxu0 %v8316_v18  ;;  %1861 = vmatpush.msra.mxu3 %v8317_v27  ;;  %v8363_v18 = vld [vmem:[#allocation10_spill] sm:$0xff]  ;;  %v8364_v27 = vld [vmem:[#allocation89_spill] sm:$0xff] }
 0x2c0   :  { %1627 = vmatpush.msra.mxu2 %v8318_v28  ;;  %1822 = vmatpush.msrb.mxu1 %v8319_v4  ;;  %v8365_v28 = vld [vmem:[#allocation12_spill] sm:$0xff]  ;;  %v8366_v4 = vld [vmem:[#allocation90_spill] sm:$0xff] }
 0x2c1   :  { %1588 = vmatpush.msrb.mxu0 %v8320_v5  ;;  %1862 = vmatpush.msra.mxu3 %v8321_v29  ;;  %v8367_v5 = vld [vmem:[#allocation86_spill] sm:$0xff]  ;;  %v8368_v29 = vld [vmem:[#allocation13_spill] sm:$0xff] }
 0x2c2   :  { %1628 = vmatpush.msra.mxu2 %v8322_v19  ;;  %1823 = vmatpush.msrb.mxu1 %v8323_v8  ;;  %v8369_v19 = vld [vmem:[#allocation88_spill] sm:$0xff]  ;;  %v8370_v8 = vld [vmem:[#allocation14_spill] sm:$0xff] }
 0x2c3   :  { %1589 = vmatpush.msrb.mxu0 %v8324_v13  ;;  %1863 = vmatpush.msra.mxu3 %v8325_v30  ;;  %v8371_v13 = vld [vmem:[#allocation93_spill] sm:$0xff]  ;;  %v8372_v30 = vld [vmem:[#allocation91_spill] sm:$0xff] }
 0x2c4   :  { %1629 = vmatpush.msra.mxu2 %v8326_v36  ;;  %1824 = vmatpush.msrb.mxu1 %v8327_v34  ;;  %v8373_v36 = vld [vmem:[#allocation94_spill] sm:$0xff]  ;;  %v8374_v34 = vld [vmem:[#allocation92_spill] sm:$0xff] }
 0x2c5   :  { %1590 = vmatpush.msrb.mxu0 %v8328_v0  ;;  %1864 = vmatpush.msra.mxu3 %v8329_v21  ;;  %v8375_v0 = vld [vmem:[#allocation95_spill] sm:$0xff]  ;;  %v8376_v21 = vld [vmem:[#allocation96_spill] sm:$0xff] }
 0x2c6   :  { %1630 = vmatpush.msra.mxu2 %v8330_v52  ;;  %1825 = vmatpush.msrb.mxu1 %v8331_v61  ;;  %v8377_v52 = vld [vmem:[#allocation97_spill] sm:$0xff]  ;;  %v8378_v61 = vld [vmem:[#allocation98_spill] sm:$0xff] }
 0x2c7   :  { %1591 = vmatpush.msrb.mxu0 %v8332_v2  ;;  %1865 = vmatpush.msra.mxu3 %v8333_v53  ;;  %v8379_v2 = vld [vmem:[#allocation99_spill] sm:$0xff]  ;;  %v8380_v53 = vld [vmem:[#allocation100_spill] sm:$0xff] }
 0x2c8   :  { %1631 = vmatpush.msra.mxu2 %v8334_v45  ;;  %1826 = vmatpush.msrb.mxu1 %v8335_v10  ;;  %v8381_v45 = vld [vmem:[#allocation101_spill] sm:$0xff]  ;;  %v8382_v10 = vld [vmem:[#allocation102_spill] sm:$0xff] }
 0x2c9   :  { %1592 = vmatpush.msrb.mxu0 %v8336_v14  ;;  %1866 = vmatpush.msra.mxu3 %v8337_v16  ;;  %v8383_v14 = vld [vmem:[#allocation103_spill] sm:$0xff]  ;;  %v8384_v16 = vld [vmem:[#allocation104_spill] sm:$0xff] }
 0x2ca   :  { %1632 = vmatpush.msra.mxu2 %v8338_v24  ;;  %1827 = vmatpush.msrb.mxu1 %v8339_v35  ;;  %v8385_v24 = vld [vmem:[#allocation105_spill] sm:$0xff]  ;;  %v8386_v35 = vld [vmem:[#allocation106_spill] sm:$0xff] }
 0x2cb   :  { %1593 = vmatpush.msrb.mxu0 %v8340_v54  ;;  %1867 = vmatpush.msra.mxu3 %v8341_v63  ;;  %v8387_v54 = vld [vmem:[#allocation107_spill] sm:$0xff]  ;;  %v8388_v63 = vld [vmem:[#allocation108_spill] sm:$0xff] }
 0x2cc   :  { %1633 = vmatpush.msra.mxu2 %v8342_v25  ;;  %1594 = vmatmul.f32.vlgmr.msrb.gmra.mxu0 %v1513_v47  ;;  %v8389_v25 = vld [vmem:[#allocation109_spill] sm:$0xff] }
 0x2cd   :  { %1634 = vmatmul.f32.vlgmr.msra.gmra.mxu2 %v1513_v47  ;;  %1828 = vmatpush.msrb.mxu1 %v8343_v37  ;;  %v8356_v47 = vld [vmem:[#allocation69_spill] sm:$0xff]  ;;  %v8390_v37 = vld [vmem:[#allocation110_spill] sm:$0xff] }
 0x2ce   :  { %1868 = vmatpush.msra.mxu3 %v8344_v56  ;;  %1801 = vmatpush.msra.mxu0 %v8345_v57  ;;  %v8391_v56 = vld [vmem:[#allocation111_spill] sm:$0xff]  ;;  %v8392_v57 = vld [vmem:[#allocation112_spill] sm:$0xff] }
 0x2cf   :  { %1829 = vmatpush.msrb.mxu1 %v8346_v58  ;;  %1841 = vmatpush.msrb.mxu2 %v8347_v31  ;;  %v8393_v58 = vld [vmem:[#allocation113_spill] sm:$0xff]  ;;  %v8394_v31 = vld [vmem:[#allocation114_spill] sm:$0xff] }
 0x2d0   :  { %1869 = vmatpush.msra.mxu3 %v8348_v1  ;;  %1802 = vmatpush.msra.mxu0 %v5333_v15  ;;  %v8358_v15 = vld [vmem:[#allocation81_spill] sm:$0xff]  ;;  %v8395_v1 = vld [vmem:[#allocation115_spill] sm:$0xff] }
 0x2d1   :  { %1830 = vmatpush.msrb.mxu1 %v8349_v12  ;;  %1842 = vmatpush.msrb.mxu2 %v8350_v17  ;;  %v8396_v12 = vld [vmem:[#allocation116_spill] sm:$0xff]  ;;  %v8397_v17 = vld [vmem:[#allocation117_spill] sm:$0xff] }
 0x2d2   :  { %1870 = vmatpush.msra.mxu3 %v8351_v20  ;;  %1803 = vmatpush.msra.mxu0 %v5343_v33  ;;  %v8362_v33 = vld [vmem:[#allocation83_spill] sm:$0xff]  ;;  %v8398_v20 = vld [vmem:[#allocation118_spill] sm:$0xff] }
 0x2d3   :  { %1831 = vmatpush.msrb.mxu1 %v8352_v39  ;;  %1843 = vmatpush.msrb.mxu2 %v8353_v46  ;;  %v8399_v39 = vld [vmem:[#allocation119_spill] sm:$0xff]  ;;  %v8400_v46 = vld [vmem:[#allocation120_spill] sm:$0xff] }
 0x2d4   :  { %1871 = vmatpush.msra.mxu3 %v8354_v41  ;;  %1804 = vmatpush.msra.mxu0 %v8355_v22  ;;  %v8401_v41 = vld [vmem:[#allocation121_spill] sm:$0xff]  ;;  %v8402_v22 = vld [vmem:[#allocation122_spill] sm:$0xff] }
 0x2d5   :  { %1832 = vmatpush.msrb.mxu1 %v8356_v47  ;;  %1844 = vmatpush.msrb.mxu2 %v8357_v48  ;;  %v8403_v47 = vld [vmem:[#allocation123_spill] sm:$0xff]  ;;  %v8404_v48 = vld [vmem:[#allocation124_spill] sm:$0xff] }
 0x2d6   :  { %1872 = vmatpush.msra.mxu3 %v8358_v15  ;;  %1805 = vmatpush.msra.mxu0 %v8359_v43  ;;  %v8405_v15 = vld [vmem:[#allocation125_spill] sm:$0xff]  ;;  %v8406_v43 = vld [vmem:[#allocation126_spill] sm:$0xff] }
 0x2d7   :  { %1833 = vmatpush.msrb.mxu1 %v8360_v40  ;;  %1845 = vmatpush.msrb.mxu2 %v8361_v9  ;;  %v8407_v40 = vld [vmem:[#allocation127_spill] sm:$0xff]  ;;  %v8408_v9 = vld [vmem:[#allocation128_spill] sm:$0xff] }
 0x2d8   :  { %1873 = vmatpush.msra.mxu3 %v8362_v33  ;;  %1806 = vmatpush.msra.mxu0 %v8363_v18  ;;  %v8409_v33 = vld [vmem:[#allocation129_spill] sm:$0xff]  ;;  %v8410_v18 = vld [vmem:[#allocation130_spill] sm:$0xff] }
 0x2d9   :  { %1834 = vmatpush.msrb.mxu1 %v8364_v27  ;;  %1846 = vmatpush.msrb.mxu2 %v8365_v28  ;;  %v8411_v27 = vld [vmem:[#allocation131_spill] sm:$0xff]  ;;  %v8412_v28 = vld [vmem:[#allocation132_spill] sm:$0xff] }
 0x2da   :  { %1874 = vmatpush.msra.mxu3 %v8366_v4  ;;  %1807 = vmatpush.msra.mxu0 %v8367_v5  ;;  %v8413_v4 = vld [vmem:[#allocation133_spill] sm:$0xff]  ;;  %v8414_v5 = vld [vmem:[#allocation134_spill] sm:$0xff] }
 0x2db   :  { %1835 = vmatpush.msrb.mxu1 %v8368_v29  ;;  %1847 = vmatpush.msrb.mxu2 %v8369_v19  ;;  %v8415_v29 = vld [vmem:[#allocation135_spill] sm:$0xff]  ;;  %v8416_v19 = vld [vmem:[#allocation136_spill] sm:$0xff] }
 0x2dc   :  { %1875 = vmatpush.msra.mxu3 %v8370_v8  ;;  %1808 = vmatpush.msra.mxu0 %v8371_v13  ;;  %v8417_v8 = vld [vmem:[#allocation137_spill] sm:$0xff]  ;;  %v8418_v13 = vld [vmem:[#allocation138_spill] sm:$0xff] }
 0x2dd   :  { %1836 = vmatpush.msrb.mxu1 %v8372_v30  ;;  %1848 = vmatpush.msrb.mxu2 %v8373_v36  ;;  %v8420_v30 = vld [vmem:[#allocation140_spill] sm:$0xff]  ;;  %v8421_v36 = vld [vmem:[#allocation141_spill] sm:$0xff] }
 0x2de   :  { %1876 = vmatpush.msra.mxu3 %v8374_v34  ;;  %1809 = vmatpush.msra.mxu0 %v8377_v52  ;;  %v8422_v34 = vld [vmem:[#allocation142_spill] sm:$0xff]  ;;  %v8424_v52 = vld [vmem:[#allocation144_spill] sm:$0xff] }
 0x2df   :  { %1901 = vmatpush.msra.mxu1 %v8375_v0  ;;  %1849 = vmatpush.msrb.mxu2 %v8378_v61  ;;  %v3957_v0 = vld [vmem:[%s7491_s0 + $0x28] sm:$0xff] }
 0x2e0   :  { %1941 = vmatpush.msrb.mxu3 %v8376_v21  ;;  %1810 = vmatpush.msra.mxu0 %v8381_v45  ;;  %v8423_v21 = vld [vmem:[#allocation143_spill] sm:$0xff] }
 0x2e1   :  { %1902 = vmatpush.msra.mxu1 %v8379_v2  ;;  %1850 = vmatpush.msrb.mxu2 %v8382_v10  ;;  %v8428_v45 = vld [vmem:[#allocation11_spill] sm:$0xff] }
 0x2e2   :  { %1942 = vmatpush.msrb.mxu3 %v8380_v53  ;;  %1811 = vmatpush.msra.mxu0 %v8385_v24 }
 0x2e3   :  { %1903 = vmatpush.msra.mxu1 %v8383_v14  ;;  %1851 = vmatpush.msrb.mxu2 %v8386_v35  ;;  %v5844_v14 = vld [vmem:[#allocation5 + $0x130] sm:$0xff] }
 0x2e4   :  { %1943 = vmatpush.msrb.mxu3 %v8384_v16  ;;  %1812 = vmatpush.msra.mxu0 %v8389_v25  ;;  %v5847_v35 = vld [vmem:[#allocation5 + $0x110] sm:$0xff] }
 0x2e5   :  { %1904 = vmatpush.msra.mxu1 %v8387_v54  ;;  %1852 = vmatpush.msrb.mxu2 %v8390_v37  ;;  %v5850_v54 = vld [vmem:[#allocation5 + $0xf0] sm:$0xff]  ;;  %v8429_v37 = vld [vmem:[#allocation15_spill] sm:$0xff] }
 0x2e6   :  { %1944 = vmatpush.msrb.mxu3 %v8388_v63  ;;  %1813 = vmatpush.msra.mxu0 %v8393_v58  ;;  %v5853_v25 = vld [vmem:[#allocation5 + $0xd0] sm:$0xff] }
 0x2e7   :  { %1905 = vmatpush.msra.mxu1 %v8391_v56  ;;  %1853 = vmatpush.msrb.mxu2 %v8394_v31  ;;  %v5857_v58 = vld [vmem:[#allocation5 + $0xb0] sm:$0xff]  ;;  %v8430_v31 = vld [vmem:[#allocation33_spill] sm:$0xff] }
 0x2e8   :  { %1945 = vmatpush.msrb.mxu3 %v8392_v57  ;;  %1814 = vmatpush.msra.mxu0 %v8397_v17 }
 0x2e9   :  { %1906 = vmatpush.msra.mxu1 %v8395_v1  ;;  %1854 = vmatpush.msrb.mxu2 %v8398_v20 }
 0x2ea   :  { %1946 = vmatpush.msrb.mxu3 %v8396_v12  ;;  %1815 = vmatpush.msra.mxu0 %v8401_v41 }
 0x2eb   :  { %1907 = vmatpush.msra.mxu1 %v8399_v39  ;;  %1855 = vmatpush.msrb.mxu2 %v8402_v22  ;;  %v5861_v39 = vld [vmem:[#allocation5 + $0x90] sm:$0xff] }
 0x2ec   :  { %1947 = vmatpush.msrb.mxu3 %v8400_v46  ;;  %1816 = vmatpush.msra.mxu0 %v8405_v15 }
 0x2ed   :  { %1908 = vmatpush.msra.mxu1 %v8403_v47  ;;  %1856 = vmatpush.msrb.mxu2 %v8406_v43  ;;  %v5867_v43 = vld [vmem:[#allocation5 + $0x50] sm:$0xff] }
 0x2ee   :  { %1948 = vmatpush.msrb.mxu3 %v8404_v48  ;;  %2453 = vperm.xlu2 %3972, %v3957_v0   ;;  %v5864_v48 = vld [vmem:[#allocation5 + $0x70] sm:$0xff] }
 0x2ef   :  { %1909 = vmatpush.msra.mxu1 %v8407_v40  ;;  %1921 = vmatpush.msra.mxu2 %v5513_v23  ;;  %v8419_v23 = vld [vmem:[#allocation139_spill] sm:$0xff] }
 0x2f0   :  { %1949 = vmatpush.msrb.mxu3 %v8408_v9  ;;  %v5870_v9 = vld [vmem:[#allocation5 + $0x30] sm:$0xff] }
 0x2f1   :  { %1910 = vmatpush.msra.mxu1 %v8409_v33  ;;  %1922 = vmatpush.msra.mxu2 %v8411_v27  ;;  %v5873_v33 = vld [vmem:[#allocation5 + $0x10] sm:$0xff] }
 0x2f2   :  { %1950 = vmatpush.msrb.mxu3 %v8410_v18 }
 0x2f3   :  { %1911 = vmatpush.msra.mxu1 %v8412_v28  ;;  %1923 = vmatpush.msra.mxu2 %v8414_v5 }
 0x2f4   :  { %1951 = vmatpush.msrb.mxu3 %v8413_v4 }
 0x2f5   :  { %1912 = vmatpush.msra.mxu1 %v8415_v29  ;;  %1924 = vmatpush.msra.mxu2 %v8417_v8 }
 0x2f6   :  { %1952 = vmatpush.msrb.mxu3 %v8416_v19 }
 0x2f7   :  { %1913 = vmatpush.msra.mxu1 %v8418_v13  ;;  %1925 = vmatpush.msra.mxu2 %v8420_v30 }
 0x2f8   :  { %1953 = vmatpush.msrb.mxu3 %v8419_v23 }
 0x2f9   :  { %1914 = vmatpush.msra.mxu1 %v8421_v36  ;;  %1926 = vmatpush.msra.mxu2 %v5564_v49  ;;  %v5827_v49 = vld [vmem:[#allocation5 + $0x1d0] sm:$0xff] }
 0x2fa   :  { %1954 = vmatpush.msrb.mxu3 %v8422_v34 }
 0x2fb   :  { %1915 = vmatpush.msra.mxu1 %v5568_v50  ;;  %1927 = vmatpush.msra.mxu2 %v5575_v11  ;;  %v5830_v50 = vld [vmem:[#allocation5 + $0x1b0] sm:$0xff] }
 0x2fc   :  { %1955 = vmatpush.msrb.mxu3 %v5570_v3  ;;  %v8426_v3 = vld [vmem:[#allocation146_spill] sm:$0xff] }
 0x2fd   :  { %1916 = vmatpush.msra.mxu1 %v5579_v62  ;;  %1928 = vmatpush.msra.mxu2 %v8423_v21  ;;  %v8425_v62 = vld [vmem:[#allocation145_spill] sm:$0xff] }
 0x2fe   :  { %1956 = vmatpush.msrb.mxu3 %v5581_v51  ;;  %v5824_v51 = vld [vmem:[#allocation5 + $0x1f0] sm:$0xff] }
 0x2ff   :  { %1929 = vmatpush.msra.mxu2 %v8424_v52  ;;  %1881 = vmatpush.msrb.mxu0 %v5824_v51  ;;  %v5882_v52 = vld [vmem:[#allocation3 + $0x1e8] sm:$0xff] }
 0x301   :  { %1930 = vmatpush.msra.mxu2 %v5595_v26  ;;  %1882 = vmatpush.msrb.mxu0 %v5827_v49  ;;  %v5833_v26 = vld [vmem:[#allocation5 + $0x190] sm:$0xff] }
 0x303   :  { %1931 = vmatpush.msra.mxu2 %v5600_v32  ;;  %1883 = vmatpush.msrb.mxu0 %v5830_v50  ;;  %v5836_v32 = vld [vmem:[#allocation5 + $0x170] sm:$0xff] }
 0x305   :  { %1932 = vmatpush.msra.mxu2 %v5605_v42  ;;  %1884 = vmatpush.msrb.mxu0 %v5833_v26  ;;  %v8427_v42 = vld [vmem:[#allocation30_spill] sm:$0xff] }
 0x307   :  { %1933 = vmatpush.msra.mxu2 %v5609_v59  ;;  %1885 = vmatpush.msrb.mxu0 %v5836_v32 }
 0x309   :  { %1934 = vmatpush.msra.mxu2 %v8425_v62 }
 0x30b   :  { %1935 = vmatpush.msra.mxu2 %v8426_v3 }
 0x30d   :  { %1936 = vmatpush.msra.mxu2 %v5621_v7  ;;  %v5840_v7 = vld [vmem:[#allocation5 + $0x150] sm:$0xff] }
 0x30e   :  { %1886 = vmatpush.msrb.mxu0 %v5840_v7 }
 0x310   :  { %1887 = vmatpush.msrb.mxu0 %v5844_v14 }
 0x312   :  { %1888 = vmatpush.msrb.mxu0 %v5847_v35 }
 0x314   :  { %1889 = vmatpush.msrb.mxu0 %v5850_v54 }
 0x315   :  { %v1366_v2 = vpop.f32.mrf.mxu1 }
 0x316   :  { %1890 = vmatpush.msrb.mxu0 %v5853_v25 }
 0x318   :  { %1891 = vmatpush.msrb.mxu0 %v5857_v58 }
 0x31a   :  { %1892 = vmatpush.msrb.mxu0 %v5861_v39 }
 0x31b   :  { %v1406_v53 = vpop.f32.mrf.mxu3 }
 0x31c   :  { %1893 = vmatpush.msrb.mxu0 %v5864_v48 }
 0x31d   :  { %v1446_v17 = vpop.f32.mrf.mxu1 }
 0x31e   :  { %1894 = vmatpush.msrb.mxu0 %v5867_v43 }
 0x320   :  { %1895 = vmatpush.msrb.mxu0 %v5870_v9 }
 0x322   :  { %1896 = vmatpush.msrb.mxu0 %v5873_v33 }
 0x323   :  { %v1486_v20 = vpop.f32.mrf.mxu3 }
 0x328   :  { %v1346_v11 = vpop.f32.mrf.mxu0 }
 0x329   :  { %v1347_v59 = vadd.f32 %v1346_v11, %v8427_v42  ;;  %v5888_v11 = vld [vmem:[#allocation3 + $0x1c8] sm:$0xff] }
 0x32b   :  { %v1367_v16 = vadd.f32 %v1366_v2, %v1347_v59  ;;  %v5890_v59 = vld [vmem:[#allocation3 + $0x1d8] sm:$0xff] }
 0x32e   :  { %v1386_v61 = vpop.f32.mrf.mxu2 }
 0x32f   :  { %v1387_v10 = vadd.f32 %v1386_v61, %v8428_v45 }
 0x331   :  { %v1407_v24 = vadd.f32 %v1406_v53, %v1387_v10  ;;  %v1426_v63 = vpop.f32.mrf.mxu0  ;;  %v5894_v53 = vld [vmem:[#allocation3 + $0x1a8] sm:$0xff]  ;;  %v5896_v10 = vld [vmem:[#allocation3 + $0x1b8] sm:$0xff] }
 0x332   :  { %v1427_v56 = vadd.f32 %v1426_v63, %v8429_v37  ;;  %v5900_v63 = vld [vmem:[#allocation3 + $0x188] sm:$0xff] }
 0x333   :  { %4024 = vtanh.f32 %v1407_v24 }
 0x334   :  { %4026 = vtanh.f32 %v1367_v16  ;;  %v1447_v47 = vadd.f32 %v1446_v17, %v1427_v56  ;;  %v5902_v56 = vld [vmem:[#allocation3 + $0x198] sm:$0xff] }
 0x335   :  { %v5909_v17 = vld [vmem:[#allocation3 + $0x178] sm:$0xff] }
 0x337   :  { %v1466_v57 = vpop.f32.mrf.mxu2 }
 0x338   :  { %v1467_v1 = vadd.f32 %v1466_v57, %v8430_v31  ;;  %v1615_v27 = vpop.f32.mrf.mxu1 }
 0x339   :  { %v4025_v12 = vpop.eup %4024 }
 0x33a   :  { %v4027_v46 = vpop.eup %4026  ;;  %v1487_v41 = vadd.f32 %v1486_v20, %v1467_v1  ;;  %v1494_v22 = vmul.f32 0.5, %v4025_v12  ;;  %v5907_v12 = vld [vmem:[#allocation3 + $0x168] sm:$0xff] }
 0x33b   :  { %v1493_v15 = vmul.f32 0.5, %v4027_v46 }
 0x33c   :  { %4028 = vtanh.f32 %v1487_v41  ;;  %v1497_v40 = vadd.f32 0.5, %v1494_v22  ;;  %v5919_v41 = vld [vmem:[#allocation3 + $0x158] sm:$0xff] }
 0x33d   :  { %4030 = vtanh.f32 %v1447_v47  ;;  %v1496_v18 = vadd.f32 0.5, %v1493_v15  ;;  %v5924_v47 = vld [vmem:[#allocation3 + $0x128] sm:$0xff]  ;;  %v5926_v15 = vld [vmem:[#allocation3 + $0x138] sm:$0xff] }
 0x33e   :  { %v1499_v4 = vmul.f32 %v1497_v40, %v5626_v6  ;;  %4032 = vtanh.f32 %v1615_v27  ;;  %v5884_v6 = vld [vmem:[#allocation3 + $0x1f8] sm:$0xff]  ;;  %v5930_v40 = vld [vmem:[#allocation3 + $0x108] sm:$0xff] }
 0x33f   :  { %v1655_v30 = vpop.f32.mrf.mxu3 }
 0x342   :  { %v4029_v28 = vpop.eup %4028 }
 0x343   :  { %v1500_v5 = vmul.f32 %v4029_v28, %v1496_v18  ;;  %v4031_v29 = vpop.eup %4030  ;;  %v5932_v18 = vld [vmem:[#allocation3 + $0x118] sm:$0xff]  ;;  %v5936_v28 = vld [vmem:[#allocation3 + $0xe8] sm:$0xff] }
 0x344   :  { %v1495_v8 = vmul.f32 0.5, %v4031_v29  ;;  %v4033_v23 = vpop.eup %4032 }
 0x345   :  { %v5877_v19 = vadd.f32 %v1500_v5, %v1499_v4  ;;  %v1663_v0 = vmul.f32 0.5, %v4033_v23  ;;  %v5938_v4 = vld [vmem:[#allocation3 + $0xf8] sm:$0xff]  ;;  %v5948_v23 = vld [vmem:[#allocation3 + $0xc8] sm:$0xff] }
 0x346   :  { %v1498_v36 = vadd.f32 0.5, %v1495_v8  ;;  %v5942_v8 = vld [vmem:[#allocation3 + $0x1e0] sm:$0xff] }
 0x347   :  { %4034 = vtanh.f32 %v5877_v19  ;;  %v1666_v61 = vadd.f32 0.5, %v1663_v0  ;;  %v5958_v0 = vld [vmem:[#allocation3 + $0xa8] sm:$0xff] }
 0x349   :  { %v1595_v13 = vpop.f32.mrf.mxu0  ;;  %v1668_v57 = vmul.f32 %v1666_v61, %v5642_v55  ;;  %v5917_v55 = vld [vmem:[#allocation3 + $0x148] sm:$0xff]  ;;  %v5966_v61 = vld [vmem:[#allocation3 + $0x1b0] sm:$0xff] }
 0x34a   :  { %4036 = vtanh.f32 %v1595_v13  ;;  %v5944_v13 = vld [vmem:[#allocation3 + $0x1f0] sm:$0xff]  ;;  %8432 = vst [vmem:[#allocation19_spill] sm:$0xff] %v5966_v61 }
 0x34b   :  { %4038 = vtanh.f32 %v1655_v30  ;;  %v5950_v30 = vld [vmem:[#allocation3 + $0xd8] sm:$0xff] }
 0x34d   :  { %v4035_v34 = vpop.eup %4034 }
 0x34e   :  { %v5880_v21 = vmul.f32 %v4035_v34, %v1498_v36  ;;  %v5952_v36 = vld [vmem:[#allocation3 + $0x1c0] sm:$0xff]  ;;  %v5954_v34 = vld [vmem:[#allocation3 + $0x1d0] sm:$0xff] }
 0x350   :  { %8431 = vst [vmem:[#allocation36_spill] sm:$0xff] %v5880_v21  ;;  %v4037_v62 = vpop.eup %4036  ;;  %v1635_v3 = vpop.f32.mrf.mxu2  ;;  %1837 = vmatmul.f32.vlgmr.msrb.gmra.mxu1 %v5880_v21  ;;  %1877 = vmatmul.f32.vlgmr.msra.gmra.mxu3 %v5880_v21 }
 0x351   :  { %v1662_v2 = vmul.f32 0.5, %v4037_v62  ;;  %4040 = vtanh.f32 %v1635_v3  ;;  %2070 = vmatpush.msrb.mxu1 %v5882_v52  ;;  %2110 = vmatpush.msra.mxu3 %v5884_v6  ;;  %v4039_v24 = vpop.eup %4038  ;;  %v5960_v62 = vld [vmem:[#allocation3 + $0xb8] sm:$0xff]  ;;  %v5964_v3 = vld [vmem:[#allocation3 + $0x1a0] sm:$0xff] }
 0x353   :  { %v1665_v16 = vadd.f32 0.5, %v1662_v2  ;;  %2071 = vmatpush.msrb.mxu1 %v5888_v11  ;;  %2111 = vmatpush.msra.mxu3 %v5890_v59  ;;  %v5970_v2 = vld [vmem:[#allocation3 + $0x88] sm:$0xff] }
 0x354   :  { %8433 = vst [vmem:[#allocation42_spill] sm:$0xff] %v5970_v2 }
 0x355   :  { %v1669_v1 = vmul.f32 %v4039_v24, %v1665_v16  ;;  %2072 = vmatpush.msrb.mxu1 %v5894_v53  ;;  %2112 = vmatpush.msra.mxu3 %v5896_v10  ;;  %v5972_v16 = vld [vmem:[#allocation3 + $0x98] sm:$0xff]  ;;  %v5976_v24 = vld [vmem:[#allocation3 + $0x180] sm:$0xff] }
 0x356   :  { %8434 = vst [vmem:[#allocation18_spill] sm:$0xff] %v5972_v16 }
 0x357   :  { %v4041_v20 = vpop.eup %4040  ;;  %v5911_v46 = vadd.f32 %v1669_v1, %v1668_v57  ;;  %2073 = vmatpush.msrb.mxu1 %v5900_v63  ;;  %2113 = vmatpush.msra.mxu3 %v5902_v56  ;;  %8435 = vst [vmem:[#allocation39_spill] sm:$0xff] %v5976_v24  ;;  %v5978_v57 = vld [vmem:[#allocation3 + $0x190] sm:$0xff]  ;;  %v5982_v1 = vld [vmem:[#allocation3 + $0x68] sm:$0xff] }
 0x358   :  { %1917 = vmatmul.f32.vlgmr.msra.gmra.mxu1 %v5880_v21  ;;  %1957 = vmatmul.f32.vlgmr.msrb.gmra.mxu3 %v5880_v21  ;;  %v1664_v22 = vmul.f32 0.5, %v4041_v20  ;;  %8436 = vst [vmem:[#allocation45_spill] sm:$0xff] %v5978_v57  ;;  %v5984_v20 = vld [vmem:[#allocation3 + $0x78] sm:$0xff] }
 0x359   :  { %4042 = vtanh.f32 %v5911_v46  ;;  %2074 = vmatpush.msrb.mxu1 %v5907_v12  ;;  %2114 = vmatpush.msra.mxu3 %v5909_v17  ;;  %8437 = vst [vmem:[#allocation48_spill] sm:$0xff] %v5982_v1  ;;  %v5998_v21 = vld [vmem:[#allocation3 + $0x58] sm:$0xff] }
 0x35a   :  { %v1667_v27 = vadd.f32 0.5, %v1664_v22  ;;  %8438 = vst [vmem:[#allocation20_spill] sm:$0xff] %v5984_v20  ;;  %v5990_v22 = vld [vmem:[#allocation3 + $0x160] sm:$0xff] }
 0x35b   :  { %2075 = vmatpush.msrb.mxu1 %v5917_v55  ;;  %2115 = vmatpush.msra.mxu3 %v5919_v41  ;;  %8439 = vst [vmem:[#allocation22_spill] sm:$0xff] %v5990_v22 }
 0x35d   :  { %2076 = vmatpush.msrb.mxu1 %v5924_v47  ;;  %2116 = vmatpush.msra.mxu3 %v5926_v15 }
 0x35f   :  { %v4043_v5 = vpop.eup %4042  ;;  %2077 = vmatpush.msrb.mxu1 %v5930_v40  ;;  %2117 = vmatpush.msra.mxu3 %v5932_v18 }
 0x360   :  { %v1672_v29 = vmul.f32 %v4043_v5, %v1667_v27  ;;  %v5992_v27 = vld [vmem:[#allocation3 + $0x170] sm:$0xff]  ;;  %v5996_v5 = vld [vmem:[#allocation3 + $0x48] sm:$0xff] }
 0x361   :  { %2078 = vmatpush.msrb.mxu1 %v5936_v28  ;;  %2118 = vmatpush.msra.mxu3 %v5938_v4  ;;  %8440 = vst [vmem:[#allocation27_spill] sm:$0xff] %v5992_v27 }
 0x362   :  { %1817 = vmatmul.f32.vlgmr.msra.gmra.mxu0 %v1672_v29  ;;  %1857 = vmatmul.f32.vlgmr.msrb.gmra.mxu2 %v1672_v29 }
 0x363   :  { %2050 = vmatpush.msra.mxu0 %v5942_v8  ;;  %2090 = vmatpush.msrb.mxu2 %v5944_v13 }
 0x364   :  { %2079 = vmatpush.msrb.mxu1 %v5948_v23  ;;  %2119 = vmatpush.msra.mxu3 %v5950_v30 }
 0x365   :  { %2051 = vmatpush.msra.mxu0 %v5952_v36  ;;  %2091 = vmatpush.msrb.mxu2 %v5954_v34 }
 0x366   :  { %2080 = vmatpush.msrb.mxu1 %v5958_v0  ;;  %2120 = vmatpush.msra.mxu3 %v5960_v62 }
 0x367   :  { %2052 = vmatpush.msra.mxu0 %v5964_v3  ;;  %2092 = vmatpush.msrb.mxu2 %v5966_v61  ;;  %v1982_v61 = vpop.permute.xlu2 %1981 }
 0x368   :  { %2081 = vmatpush.msrb.mxu1 %v5970_v2  ;;  %2121 = vmatpush.msra.mxu3 %v5972_v16  ;;  %v6002_v16 = vld [vmem:[#allocation3 + $0x150] sm:$0xff] }
 0x369   :  { %2053 = vmatpush.msra.mxu0 %v5976_v24  ;;  %2093 = vmatpush.msrb.mxu2 %v5978_v57  ;;  %8442 = vst [vmem:[#allocation25_spill] sm:$0xff] %v6002_v16  ;;  %v6006_v57 = vld [vmem:[#allocation3 + $0x28] sm:$0xff]  ;;  %v6008_v24 = vld [vmem:[#allocation3 + $0x38] sm:$0xff]  ;;  %v6015_v2 = vld [vmem:[#allocation3 + $0x130] sm:$0xff] }
 0x36a   :  { %2082 = vmatpush.msrb.mxu1 %v5982_v1  ;;  %2122 = vmatpush.msra.mxu3 %v5984_v20  ;;  %8443 = vst [vmem:[#allocation29_spill] sm:$0xff] %v6006_v57  ;;  %v1984_v20 = vadd.f32 %v8304_v60, %v1672_v29  ;;  %v6013_v1 = vld [vmem:[#allocation3 + $0x120] sm:$0xff]  ;;  %v6029_v60 = vld [vmem:[#allocation3 + $0x110] sm:$0xff] }
 0x36b   :  { %1897 = vmatmul.f32.vlgmr.msrb.gmra.mxu0 %v1672_v29  ;;  %1937 = vmatmul.f32.vlgmr.msra.gmra.mxu2 %v1672_v29  ;;  %8444 = vst [vmem:[#allocation57_spill] sm:$0xff] %v6008_v24  ;;  %v6025_v29 = vld [vmem:[#allocation3 + $0x100] sm:$0xff] }
 0x36c   :  { %2054 = vmatpush.msra.mxu0 %v5990_v22  ;;  %2094 = vmatpush.msrb.mxu2 %v5992_v27  ;;  %8445 = vst [vmem:[#allocation51_spill] sm:$0xff] %v6013_v1  ;;  %v6019_v27 = vld [vmem:[#allocation3 + $0x8] sm:$0xff]  ;;  %v6021_v22 = vld [vmem:[#allocation3 + $0x18] sm:$0xff] }
 0x36d   :  { %2083 = vmatpush.msrb.mxu1 %v5996_v5  ;;  %2123 = vmatpush.msra.mxu3 %v5998_v21  ;;  %8446 = vst [vmem:[#allocation54_spill] sm:$0xff] %v6019_v27 }
 0x36e   :  { %2055 = vmatpush.msra.mxu0 %v6000_v38  ;;  %2095 = vmatpush.msrb.mxu2 %v6002_v16  ;;  %8447 = vst [vmem:[#allocation35_spill] sm:$0xff] %v6021_v22  ;;  %v1985_v38 = vsel %vm75_vm2, %v1982_v61, %v1984_v20  ;;  %v6035_v16 = vld [vmem:[#allocation3 + $0xe0] sm:$0xff]  ;;  %v6050_v20 = vld [vmem:[#allocation3 + $0xd0] sm:$0xff] }
 0x36f   :  { %2084 = vmatpush.msrb.mxu1 %v6006_v57  ;;  %2124 = vmatpush.msra.mxu3 %v6008_v24  ;;  %8448 = vst [vmem:[#allocation28_spill] sm:$0xff] %v6025_v29  ;;  %v6037_v57 = vld [vmem:[#allocation5 + $0x3e0] sm:$0xff]  ;;  %v6040_v24 = vld [vmem:[#allocation3 + $0xf0] sm:$0xff] }
 0x370   :  { %2056 = vmatpush.msra.mxu0 %v6013_v1  ;;  %2096 = vmatpush.msrb.mxu2 %v6015_v2  ;;  %8449 = vst [vmem:[#allocation32_spill] sm:$0xff] %v6029_v60  ;;  %v6042_v1 = vld [vmem:[#allocation5 + $0x3e8] sm:$0xff]  ;;  %v6047_v61 = vld [vmem:[#allocation5 + $0x3c0] sm:$0xff] }
 0x371   :  { %2085 = vmatpush.msrb.mxu1 %v6019_v27  ;;  %2125 = vmatpush.msra.mxu3 %v6021_v22  ;;  %8450 = vst [vmem:[#allocation41_spill] sm:$0xff] %v6035_v16  ;;  %v6053_v22 = vld [vmem:[#allocation5 + $0x3c8] sm:$0xff]  ;;  %v6062_v27 = vld [vmem:[#allocation3 + $0xb0] sm:$0xff] }
 0x372   :  { %8451 = vst [vmem:[#allocation24_spill] sm:$0xff] %v6037_v57  ;;  %2057 = vmatpush.msra.mxu0 %v6025_v29  ;;  %2086 = vmatmul.f32.vlgmr.msrb.gmra.mxu1 %v1985_v38  ;;  %v6056_v29 = vld [vmem:[#allocation3 + $0xa0] sm:$0xff] }
 0x373   :  { %8452 = vst [vmem:[#allocation31_spill] sm:$0xff] %v6040_v24  ;;  %2097 = vmatpush.msrb.mxu2 %v6029_v60  ;;  %2126 = vmatmul.f32.vlgmr.msra.gmra.mxu3 %v1985_v38  ;;  %v6059_v60 = vld [vmem:[#allocation5 + $0x3a0] sm:$0xff] }
 0x374   :  { %8454 = vst [vmem:[#allocation65_spill] sm:$0xff] %v6047_v61  ;;  %2058 = vmatpush.msra.mxu0 %v6035_v16  ;;  %2293 = vmatpush.msra.mxu1 %v6037_v57  ;;  %v6065_v16 = vld [vmem:[#allocation5 + $0x3a8] sm:$0xff]  ;;  %v6068_v57 = vld [vmem:[#allocation3 + $0x80] sm:$0xff] }
 0x375   :  { %8455 = vst [vmem:[#allocation38_spill] sm:$0xff] %v6050_v20  ;;  %2098 = vmatpush.msrb.mxu2 %v6040_v24  ;;  %2333 = vmatpush.msrb.mxu3 %v6042_v1  ;;  %v6072_v24 = vld [vmem:[#allocation3 + $0x90] sm:$0xff] }
 0x376   :  { %8456 = vst [vmem:[#allocation44_spill] sm:$0xff] %v6056_v29  ;;  %2059 = vmatpush.msra.mxu0 %v6045_v44  ;;  %2294 = vmatpush.msra.mxu1 %v6047_v61  ;;  %v6076_v44 = vld [vmem:[#allocation3 + $0x60] sm:$0xff]  ;;  %v6080_v61 = vld [vmem:[#allocation3 + $0x70] sm:$0xff] }
 0x377   :  { %8457 = vst [vmem:[#allocation55_spill] sm:$0xff] %v6059_v60  ;;  %2099 = vmatpush.msrb.mxu2 %v6050_v20  ;;  %2334 = vmatpush.msrb.mxu3 %v6053_v22  ;;  %v6083_v20 = vld [vmem:[#allocation3 + $0x40] sm:$0xff] }
 0x378   :  { %8458 = vst [vmem:[#allocation34_spill] sm:$0xff] %v6062_v27  ;;  %2060 = vmatpush.msra.mxu0 %v6056_v29  ;;  %2295 = vmatpush.msra.mxu1 %v6059_v60  ;;  %v6086_v29 = vld [vmem:[#allocation3 + $0x50] sm:$0xff]  ;;  %v6089_v60 = vld [vmem:[#allocation3 + $0x20] sm:$0xff] }
 0x379   :  { %8459 = vst [vmem:[#allocation47_spill] sm:$0xff] %v6068_v57  ;;  %2100 = vmatpush.msrb.mxu2 %v6062_v27  ;;  %2335 = vmatpush.msrb.mxu3 %v6065_v16  ;;  %v6092_v27 = vld [vmem:[#allocation3 + $0x30] sm:$0xff] }
 0x37a   :  { %8460 = vst [vmem:[#allocation67_spill] sm:$0xff] %v6072_v24  ;;  %2061 = vmatpush.msra.mxu0 %v6068_v57  ;;  %v6095_v57 = vld [vmem:[#allocation3] sm:$0xff] }
 0x37b   :  { %8461 = vst [vmem:[#allocation74_spill] sm:$0xff] %v6076_v44  ;;  %2101 = vmatpush.msrb.mxu2 %v6072_v24  ;;  %v6098_v24 = vld [vmem:[#allocation3 + $0x10] sm:$0xff] }
 0x37c   :  { %8462 = vst [vmem:[#allocation46_spill] sm:$0xff] %v6080_v61  ;;  %2062 = vmatpush.msra.mxu0 %v6076_v44  ;;  %v6107_v44 = vld [vmem:[#allocation5 + $0x360] sm:$0xff] }
 0x37d   :  { %8463 = vst [vmem:[#allocation58_spill] sm:$0xff] %v6083_v20  ;;  %2102 = vmatpush.msrb.mxu2 %v6080_v61  ;;  %v6103_v61 = vld [vmem:[#allocation5 + $0x380] sm:$0xff] }
 0x37e   :  { %8464 = vst [vmem:[#allocation37_spill] sm:$0xff] %v6086_v29  ;;  %2063 = vmatpush.msra.mxu0 %v6083_v20  ;;  %v6105_v20 = vld [vmem:[#allocation5 + $0x388] sm:$0xff]  ;;  %2296 = vmatpush.msra.mxu1 %v6103_v61 }
 0x37f   :  { %8465 = vst [vmem:[#allocation50_spill] sm:$0xff] %v6089_v60  ;;  %2103 = vmatpush.msrb.mxu2 %v6086_v29  ;;  %2336 = vmatpush.msrb.mxu3 %v6105_v20  ;;  %v6113_v29 = vld [vmem:[#allocation5 + $0x340] sm:$0xff] }
 0x380   :  { %8466 = vst [vmem:[#allocation49_spill] sm:$0xff] %v6092_v27  ;;  %2064 = vmatpush.msra.mxu0 %v6089_v60  ;;  %v6111_v60 = vld [vmem:[#allocation5 + $0x368] sm:$0xff]  ;;  %2297 = vmatpush.msra.mxu1 %v6107_v44 }
 0x381   :  { %8467 = vst [vmem:[#allocation75_spill] sm:$0xff] %v6095_v57  ;;  %2104 = vmatpush.msrb.mxu2 %v6092_v27  ;;  %v6115_v27 = vld [vmem:[#allocation5 + $0x348] sm:$0xff]  ;;  %2337 = vmatpush.msrb.mxu3 %v6111_v60 }
 0x382   :  { %8468 = vst [vmem:[#allocation40_spill] sm:$0xff] %v6098_v24  ;;  %2065 = vmatpush.msra.mxu0 %v6095_v57  ;;  %2298 = vmatpush.msra.mxu1 %v6113_v29  ;;  %v6127_v57 = vld [vmem:[#allocation5 + $0x300] sm:$0xff] }
 0x383   :  { %2105 = vmatpush.msrb.mxu2 %v6098_v24  ;;  %2066 = vmatmul.f32.vlgmr.msra.gmra.mxu0 %v1985_v38  ;;  %8469 = vst [vmem:[#allocation60_spill] sm:$0xff] %v6103_v61  ;;  %v6123_v24 = vld [vmem:[#allocation5 + $0x328] sm:$0xff]  ;;  %v6131_v61 = vld [vmem:[#allocation5 + $0x2e0] sm:$0xff] }
 0x384   :  { %2106 = vmatmul.f32.vlgmr.msrb.gmra.mxu2 %v1985_v38  ;;  %8470 = vst [vmem:[#allocation70_spill] sm:$0xff] %v6105_v20  ;;  %2338 = vmatpush.msrb.mxu3 %v6115_v27  ;;  %v6121_v38 = vld [vmem:[#allocation5 + $0x320] sm:$0xff]  ;;  %v6129_v20 = vld [vmem:[#allocation5 + $0x308] sm:$0xff] }
 0x385   :  { %8471 = vst [vmem:[#allocation53_spill] sm:$0xff] %v6107_v44  ;;  %2299 = vmatpush.msra.mxu1 %v6121_v38  ;;  %v6147_v44 = vld [vmem:[#allocation5 + $0x1c0] sm:$0xff] }
 0x386   :  { %8472 = vst [vmem:[#allocation52_spill] sm:$0xff] %v6111_v60  ;;  %2339 = vmatpush.msrb.mxu3 %v6123_v24  ;;  %v6139_v60 = vld [vmem:[#allocation5 + $0x1e8] sm:$0xff] }
 0x387   :  { %8473 = vst [vmem:[#allocation76_spill] sm:$0xff] %v6113_v29  ;;  %2300 = vmatpush.msra.mxu1 %v6127_v57  ;;  %v6135_v29 = vld [vmem:[#allocation5 + $0x2e8] sm:$0xff]  ;;  %2313 = vmatpush.msra.mxu2 %v6139_v60 }
 0x388   :  { %8474 = vst [vmem:[#allocation43_spill] sm:$0xff] %v6115_v27  ;;  %2340 = vmatpush.msrb.mxu3 %v6129_v20  ;;  %v6137_v27 = vld [vmem:[#allocation5 + $0x1e0] sm:$0xff] }
 0x389   :  { %8475 = vst [vmem:[#allocation62_spill] sm:$0xff] %v6121_v38  ;;  %2273 = vmatpush.msrb.mxu0 %v6137_v27  ;;  %v6145_v38 = vld [vmem:[#allocation5 + $0x2c8] sm:$0xff]  ;;  %2301 = vmatpush.msra.mxu1 %v6131_v61 }
 0x38a   :  { %8476 = vst [vmem:[#allocation72_spill] sm:$0xff] %v6123_v24  ;;  %v6143_v24 = vld [vmem:[#allocation5 + $0x2c0] sm:$0xff]  ;;  %2341 = vmatpush.msrb.mxu3 %v6135_v29 }
 0x38b   :  { %8477 = vst [vmem:[#allocation56_spill] sm:$0xff] %v6127_v57  ;;  %2274 = vmatpush.msrb.mxu0 %v6147_v44  ;;  %2302 = vmatpush.msra.mxu1 %v6143_v24  ;;  %v6161_v57 = vld [vmem:[#allocation5 + $0x1a0] sm:$0xff] }
 0x38c   :  { %8478 = vst [vmem:[#allocation77_spill] sm:$0xff] %v6129_v20  ;;  %v6151_v20 = vld [vmem:[#allocation5 + $0x1c8] sm:$0xff]  ;;  %2342 = vmatpush.msrb.mxu3 %v6145_v38 }
 0x38d   :  { %8479 = vst [vmem:[#allocation78_spill] sm:$0xff] %v6131_v61  ;;  %2314 = vmatpush.msra.mxu2 %v6151_v20  ;;  %v6167_v61 = vld [vmem:[#allocation5 + $0x280] sm:$0xff]  ;;  %2275 = vmatpush.msrb.mxu0 %v6161_v57 }
 0x38e   :  { %8480 = vst [vmem:[#allocation64_spill] sm:$0xff] %v6135_v29  ;;  %v6165_v29 = vld [vmem:[#allocation5 + $0x1a8] sm:$0xff] }
 0x38f   :  { %8481 = vst [vmem:[#allocation66_spill] sm:$0xff] %v6137_v27  ;;  %v6159_v27 = vld [vmem:[#allocation5 + $0x2a8] sm:$0xff]  ;;  %2315 = vmatpush.msra.mxu2 %v6165_v29 }
 0x390   :  { %8482 = vst [vmem:[#allocation59_spill] sm:$0xff] %v6139_v60  ;;  %v6157_v60 = vld [vmem:[#allocation5 + $0x2a0] sm:$0xff]  ;;  %2343 = vmatpush.msrb.mxu3 %v6159_v27 }
 0x391   :  { %8483 = vst [vmem:[#allocation61_spill] sm:$0xff] %v6145_v38  ;;  %2303 = vmatpush.msra.mxu1 %v6157_v60  ;;  %v6177_v38 = vld [vmem:[#allocation5 + $0x188] sm:$0xff] }
 0x392   :  { %8484 = vst [vmem:[#allocation68_spill] sm:$0xff] %v6147_v44  ;;  %v6169_v44 = vld [vmem:[#allocation5 + $0x288] sm:$0xff]  ;;  %2316 = vmatpush.msra.mxu2 %v6177_v38 }
 0x393   :  { %8485 = vst [vmem:[#allocation79_spill] sm:$0xff] %v6151_v20  ;;  %2304 = vmatpush.msra.mxu1 %v6167_v61  ;;  %2344 = vmatpush.msrb.mxu3 %v6169_v44  ;;  %v6175_v20 = vld [vmem:[#allocation5 + $0x180] sm:$0xff] }
 0x394   :  { %8486 = vst [vmem:[#allocation63_spill] sm:$0xff] %v6157_v60  ;;  %2276 = vmatpush.msrb.mxu0 %v6175_v20  ;;  %v6183_v60 = vld [vmem:[#allocation5 + $0x268] sm:$0xff] }
 0x395   :  { %8487 = vst [vmem:[#allocation85_spill] sm:$0xff] %v6159_v27  ;;  %v6181_v27 = vld [vmem:[#allocation5 + $0x260] sm:$0xff]  ;;  %2345 = vmatpush.msrb.mxu3 %v6183_v60 }
 0x396   :  { %8488 = vst [vmem:[#allocation80_spill] sm:$0xff] %v6161_v57  ;;  %2305 = vmatpush.msra.mxu1 %v6181_v27  ;;  %v6243_v57 = vld [vmem:[#allocation5 + $0x3d8] sm:$0xff] }
 0x397   :  { %8489 = vst [vmem:[#allocation71_spill] sm:$0xff] %v6165_v29  ;;  %v6187_v29 = vld [vmem:[#allocation5 + $0x160] sm:$0xff] }
 0x398   :  { %8490 = vst [vmem:[#allocation69_spill] sm:$0xff] %v6167_v61  ;;  %v6189_v61 = vld [vmem:[#allocation5 + $0x168] sm:$0xff]  ;;  %2277 = vmatpush.msrb.mxu0 %v6187_v29 }
 0x399   :  { %8491 = vst [vmem:[#allocation82_spill] sm:$0xff] %v6169_v44  ;;  %2317 = vmatpush.msra.mxu2 %v6189_v61  ;;  %v6193_v44 = vld [vmem:[#allocation5 + $0x240] sm:$0xff] }
 0x39a   :  { %8492 = vst [vmem:[#allocation81_spill] sm:$0xff] %v6175_v20  ;;  %v6195_v20 = vld [vmem:[#allocation5 + $0x248] sm:$0xff]  ;;  %2306 = vmatpush.msra.mxu1 %v6193_v44 }
 0x39b   :  { %8493 = vst [vmem:[#allocation84_spill] sm:$0xff] %v6177_v38  ;;  %2346 = vmatpush.msrb.mxu3 %v6195_v20  ;;  %v6199_v38 = vld [vmem:[#allocation5 + $0x140] sm:$0xff] }
 0x39c   :  { %8494 = vst [vmem:[#allocation73_spill] sm:$0xff] %v6181_v27  ;;  %v6201_v27 = vld [vmem:[#allocation5 + $0x148] sm:$0xff]  ;;  %2278 = vmatpush.msrb.mxu0 %v6199_v38 }
 0x39d   :  { %8495 = vst [vmem:[#allocation87_spill] sm:$0xff] %v6183_v60  ;;  %2318 = vmatpush.msra.mxu2 %v6201_v27  ;;  %v6205_v60 = vld [vmem:[#allocation5 + $0x220] sm:$0xff] }
 0x39e   :  { %8496 = vst [vmem:[#allocation83_spill] sm:$0xff] %v6187_v29  ;;  %v6207_v29 = vld [vmem:[#allocation5 + $0x228] sm:$0xff]  ;;  %2307 = vmatpush.msra.mxu1 %v6205_v60 }
 0x39f   :  { %8497 = vst [vmem:[#allocation10_spill] sm:$0xff] %v6189_v61  ;;  %2347 = vmatpush.msrb.mxu3 %v6207_v29  ;;  %v6211_v61 = vld [vmem:[#allocation5 + $0x120] sm:$0xff] }
 0x3a0   :  { %8498 = vst [vmem:[#allocation89_spill] sm:$0xff] %v6193_v44  ;;  %v6213_v44 = vld [vmem:[#allocation5 + $0x128] sm:$0xff]  ;;  %2279 = vmatpush.msrb.mxu0 %v6211_v61 }
 0x3a1   :  { %8499 = vst [vmem:[#allocation12_spill] sm:$0xff] %v6195_v20  ;;  %2319 = vmatpush.msra.mxu2 %v6213_v44  ;;  %v6217_v20 = vld [vmem:[#allocation5 + $0x200] sm:$0xff] }
 0x3a2   :  { %8500 = vst [vmem:[#allocation90_spill] sm:$0xff] %v6199_v38  ;;  %v6219_v38 = vld [vmem:[#allocation5 + $0x208] sm:$0xff]  ;;  %2308 = vmatpush.msra.mxu1 %v6217_v20 }
 0x3a3   :  { %8501 = vst [vmem:[#allocation86_spill] sm:$0xff] %v6201_v27  ;;  %2348 = vmatpush.msrb.mxu3 %v6219_v38  ;;  %v6223_v27 = vld [vmem:[#allocation5 + $0x100] sm:$0xff] }
 0x3a4   :  { %8502 = vst [vmem:[#allocation13_spill] sm:$0xff] %v6205_v60  ;;  %v6225_v60 = vld [vmem:[#allocation5 + $0x108] sm:$0xff]  ;;  %2280 = vmatpush.msrb.mxu0 %v6223_v27 }
 0x3a5   :  { %8503 = vst [vmem:[#allocation88_spill] sm:$0xff] %v6207_v29  ;;  %v6227_v29 = vld [vmem:[#allocation5 + $0x3f0] sm:$0xff]  ;;  %2320 = vmatpush.msra.mxu2 %v6225_v60 }
 0x3a6   :  { %8504 = vst [vmem:[#allocation14_spill] sm:$0xff] %v6211_v61  ;;  %v6231_v61 = vld [vmem:[#allocation5 + $0x3f8] sm:$0xff]  ;;  %2373 = vmatpush.msrb.mxu1 %v6227_v29 }
 0x3a7   :  { %8505 = vst [vmem:[#allocation93_spill] sm:$0xff] %v6213_v44  ;;  %2413 = vmatpush.msra.mxu3 %v6231_v61  ;;  %v6235_v44 = vld [vmem:[#allocation5 + $0xe0] sm:$0xff] }
 0x3a8   :  { %8506 = vst [vmem:[#allocation91_spill] sm:$0xff] %v6217_v20  ;;  %v6237_v20 = vld [vmem:[#allocation5 + $0xe8] sm:$0xff]  ;;  %2281 = vmatpush.msrb.mxu0 %v6235_v44 }
 0x3a9   :  { %8507 = vst [vmem:[#allocation94_spill] sm:$0xff] %v6219_v38  ;;  %v6239_v38 = vld [vmem:[#allocation5 + $0x3d0] sm:$0xff]  ;;  %2321 = vmatpush.msra.mxu2 %v6237_v20  ;;  %2414 = vmatpush.msra.mxu3 %v6243_v57 }
 0x3aa   :  { %8508 = vst [vmem:[#allocation92_spill] sm:$0xff] %v6223_v27  ;;  %2374 = vmatpush.msrb.mxu1 %v6239_v38  ;;  %v6255_v27 = vld [vmem:[#allocation5 + $0x3b8] sm:$0xff] }
 0x3ab   :  { %8509 = vst [vmem:[#allocation95_spill] sm:$0xff] %v6225_v60  ;;  %v6247_v60 = vld [vmem:[#allocation5 + $0xc0] sm:$0xff]  ;;  %2415 = vmatpush.msra.mxu3 %v6255_v27 }
 0x3ac   :  { %8510 = vst [vmem:[#allocation96_spill] sm:$0xff] %v6227_v29  ;;  %v6249_v29 = vld [vmem:[#allocation5 + $0xc8] sm:$0xff]  ;;  %2282 = vmatpush.msrb.mxu0 %v6247_v60 }
 0x3ad   :  { %8511 = vst [vmem:[#allocation97_spill] sm:$0xff] %v6231_v61  ;;  %v6251_v61 = vld [vmem:[#allocation5 + $0x3b0] sm:$0xff]  ;;  %2322 = vmatpush.msra.mxu2 %v6249_v29 }
 0x3ae   :  { %8512 = vst [vmem:[#allocation98_spill] sm:$0xff] %v6235_v44  ;;  %2375 = vmatpush.msrb.mxu1 %v6251_v61  ;;  %v6267_v44 = vld [vmem:[#allocation5 + $0x398] sm:$0xff] }
 0x3af   :  { %8513 = vst [vmem:[#allocation99_spill] sm:$0xff] %v6237_v20  ;;  %v6259_v20 = vld [vmem:[#allocation5 + $0xa0] sm:$0xff]  ;;  %2416 = vmatpush.msra.mxu3 %v6267_v44 }
 0x3b0   :  { %8514 = vst [vmem:[#allocation100_spill] sm:$0xff] %v6239_v38  ;;  %v6261_v38 = vld [vmem:[#allocation5 + $0xa8] sm:$0xff]  ;;  %2283 = vmatpush.msrb.mxu0 %v6259_v20 }
 0x3b1   :  { %8515 = vst [vmem:[#allocation101_spill] sm:$0xff] %v6243_v57  ;;  %v6263_v57 = vld [vmem:[#allocation5 + $0x390] sm:$0xff]  ;;  %2323 = vmatpush.msra.mxu2 %v6261_v38 }
 0x3b2   :  { %8516 = vst [vmem:[#allocation102_spill] sm:$0xff] %v6247_v60  ;;  %2376 = vmatpush.msrb.mxu1 %v6263_v57  ;;  %v6279_v60 = vld [vmem:[#allocation5 + $0x378] sm:$0xff] }
 0x3b3   :  { %8517 = vst [vmem:[#allocation103_spill] sm:$0xff] %v6249_v29  ;;  %v6271_v29 = vld [vmem:[#allocation5 + $0x80] sm:$0xff]  ;;  %2417 = vmatpush.msra.mxu3 %v6279_v60 }
 0x3b4   :  { %8518 = vst [vmem:[#allocation104_spill] sm:$0xff] %v6251_v61  ;;  %v6273_v61 = vld [vmem:[#allocation5 + $0x88] sm:$0xff]  ;;  %2284 = vmatpush.msrb.mxu0 %v6271_v29 }
 0x3b5   :  { %8519 = vst [vmem:[#allocation105_spill] sm:$0xff] %v6255_v27  ;;  %v6275_v27 = vld [vmem:[#allocation5 + $0x370] sm:$0xff]  ;;  %2324 = vmatpush.msra.mxu2 %v6273_v61 }
 0x3b6   :  { %8520 = vst [vmem:[#allocation106_spill] sm:$0xff] %v6259_v20  ;;  %2377 = vmatpush.msrb.mxu1 %v6275_v27  ;;  %v6291_v20 = vld [vmem:[#allocation5 + $0x358] sm:$0xff] }
 0x3b7   :  { %8521 = vst [vmem:[#allocation107_spill] sm:$0xff] %v6261_v38  ;;  %v6283_v38 = vld [vmem:[#allocation5 + $0x60] sm:$0xff]  ;;  %2418 = vmatpush.msra.mxu3 %v6291_v20 }
 0x3b8   :  { %8522 = vst [vmem:[#allocation108_spill] sm:$0xff] %v6263_v57  ;;  %v6285_v57 = vld [vmem:[#allocation5 + $0x68] sm:$0xff]  ;;  %2285 = vmatpush.msrb.mxu0 %v6283_v38 }
 0x3b9   :  { %8523 = vst [vmem:[#allocation109_spill] sm:$0xff] %v6267_v44  ;;  %v6287_v44 = vld [vmem:[#allocation5 + $0x350] sm:$0xff]  ;;  %2325 = vmatpush.msra.mxu2 %v6285_v57 }
 0x3ba   :  { %8524 = vst [vmem:[#allocation110_spill] sm:$0xff] %v6271_v29  ;;  %2378 = vmatpush.msrb.mxu1 %v6287_v44  ;;  %v6303_v29 = vld [vmem:[#allocation5 + $0x338] sm:$0xff] }
 0x3bb   :  { %8525 = vst [vmem:[#allocation111_spill] sm:$0xff] %v6273_v61  ;;  %v6295_v61 = vld [vmem:[#allocation5 + $0x40] sm:$0xff]  ;;  %2419 = vmatpush.msra.mxu3 %v6303_v29 }
 0x3bc   :  { %8526 = vst [vmem:[#allocation112_spill] sm:$0xff] %v6275_v27  ;;  %v6297_v27 = vld [vmem:[#allocation5 + $0x48] sm:$0xff]  ;;  %2286 = vmatpush.msrb.mxu0 %v6295_v61 }
 0x3bd   :  { %8527 = vst [vmem:[#allocation113_spill] sm:$0xff] %v6279_v60  ;;  %v6299_v60 = vld [vmem:[#allocation5 + $0x330] sm:$0xff]  ;;  %2326 = vmatpush.msra.mxu2 %v6297_v27 }
 0x3be   :  { %8528 = vst [vmem:[#allocation114_spill] sm:$0xff] %v6283_v38  ;;  %2379 = vmatpush.msrb.mxu1 %v6299_v60  ;;  %v6315_v38 = vld [vmem:[#allocation5 + $0x318] sm:$0xff] }
 0x3bf   :  { %8529 = vst [vmem:[#allocation115_spill] sm:$0xff] %v6285_v57  ;;  %v6307_v57 = vld [vmem:[#allocation5 + $0x20] sm:$0xff]  ;;  %2420 = vmatpush.msra.mxu3 %v6315_v38 }
 0x3c0   :  { %8530 = vst [vmem:[#allocation116_spill] sm:$0xff] %v6287_v44  ;;  %v6309_v44 = vld [vmem:[#allocation5 + $0x28] sm:$0xff]  ;;  %2287 = vmatpush.msrb.mxu0 %v6307_v57 }
 0x3c1   :  { %8531 = vst [vmem:[#allocation117_spill] sm:$0xff] %v6291_v20  ;;  %v6311_v20 = vld [vmem:[#allocation5 + $0x310] sm:$0xff]  ;;  %2327 = vmatpush.msra.mxu2 %v6309_v44 }
 0x3c2   :  { %8532 = vst [vmem:[#allocation118_spill] sm:$0xff] %v6295_v61  ;;  %2380 = vmatpush.msrb.mxu1 %v6311_v20  ;;  %v6327_v61 = vld [vmem:[#allocation5 + $0x2f8] sm:$0xff] }
 0x3c3   :  { %8533 = vst [vmem:[#allocation119_spill] sm:$0xff] %v6297_v27  ;;  %v6319_v27 = vld [vmem:[#allocation5] sm:$0xff]  ;;  %2421 = vmatpush.msra.mxu3 %v6327_v61 }
 0x3c4   :  { %8534 = vst [vmem:[#allocation120_spill] sm:$0xff] %v6299_v60  ;;  %v6321_v60 = vld [vmem:[#allocation5 + $0x8] sm:$0xff]  ;;  %2288 = vmatpush.msrb.mxu0 %v6319_v27 }
 0x3c5   :  { %8535 = vst [vmem:[#allocation121_spill] sm:$0xff] %v6303_v29  ;;  %v6323_v29 = vld [vmem:[#allocation5 + $0x2f0] sm:$0xff]  ;;  %2328 = vmatpush.msra.mxu2 %v6321_v60 }
 0x3c6   :  { %8536 = vst [vmem:[#allocation122_spill] sm:$0xff] %v6307_v57  ;;  %v6329_v57 = vld [vmem:[#allocation5 + $0x1f8] sm:$0xff]  ;;  %2381 = vmatpush.msrb.mxu1 %v6323_v29  ;;  %2353 = vmatpush.msra.mxu0 %v5824_v51 }
 0x3c7   :  { %8537 = vst [vmem:[#allocation123_spill] sm:$0xff] %v6309_v44  ;;  %2393 = vmatpush.msrb.mxu2 %v6329_v57  ;;  %v6339_v44 = vld [vmem:[#allocation5 + $0x1d8] sm:$0xff] }
 0x3c8   :  { %8538 = vst [vmem:[#allocation124_spill] sm:$0xff] %v6311_v20  ;;  %v6333_v20 = vld [vmem:[#allocation5 + $0x2d0] sm:$0xff]  ;;  %2354 = vmatpush.msra.mxu0 %v5827_v49  ;;  %v6353_v51 = vld [vmem:[#allocation5 + $0x298] sm:$0xff] }
 0x3c9   :  { %8539 = vst [vmem:[#allocation125_spill] sm:$0xff] %v6315_v38  ;;  %v6335_v38 = vld [vmem:[#allocation5 + $0x2d8] sm:$0xff]  ;;  %2382 = vmatpush.msrb.mxu1 %v6333_v20  ;;  %2394 = vmatpush.msrb.mxu2 %v6339_v44  ;;  %v6363_v49 = vld [vmem:[#allocation5 + $0x270] sm:$0xff] }
 0x3ca   :  { %8540 = vst [vmem:[#allocation126_spill] sm:$0xff] %v6319_v27  ;;  %2422 = vmatpush.msra.mxu3 %v6335_v38  ;;  %v6345_v27 = vld [vmem:[#allocation5 + $0x2b8] sm:$0xff]  ;;  %2355 = vmatpush.msra.mxu0 %v5830_v50 }
 0x3cb   :  { %8541 = vst [vmem:[#allocation127_spill] sm:$0xff] %v6321_v60  ;;  %v6343_v60 = vld [vmem:[#allocation5 + $0x2b0] sm:$0xff] }
 0x3cc   :  { %8542 = vst [vmem:[#allocation128_spill] sm:$0xff] %v6323_v29  ;;  %v6351_v29 = vld [vmem:[#allocation5 + $0x290] sm:$0xff]  ;;  %2383 = vmatpush.msrb.mxu1 %v6343_v60  ;;  %2423 = vmatpush.msra.mxu3 %v6345_v27 }
 0x3cd   :  { %8543 = vst [vmem:[#allocation129_spill] sm:$0xff] %v6327_v61  ;;  %v6349_v61 = vld [vmem:[#allocation5 + $0x1b8] sm:$0xff]  ;;  %2356 = vmatpush.msra.mxu0 %v5833_v26 }
 0x3ce   :  { %8544 = vst [vmem:[#allocation130_spill] sm:$0xff] %v6333_v20  ;;  %2395 = vmatpush.msrb.mxu2 %v6349_v61  ;;  %2384 = vmatpush.msrb.mxu1 %v6351_v29 }
 0x3cf   :  { %8545 = vst [vmem:[#allocation131_spill] sm:$0xff] %v6335_v38  ;;  %v6359_v38 = vld [vmem:[#allocation5 + $0x198] sm:$0xff]  ;;  %2424 = vmatpush.msra.mxu3 %v6353_v51  ;;  %2357 = vmatpush.msra.mxu0 %v5836_v32 }
 0x3d0   :  { %8546 = vst [vmem:[#allocation132_spill] sm:$0xff] %v6339_v44  ;;  %v6365_v44 = vld [vmem:[#allocation5 + $0x278] sm:$0xff]  ;;  %2396 = vmatpush.msrb.mxu2 %v6359_v38  ;;  %2385 = vmatpush.msrb.mxu1 %v6363_v49 }
 0x3d1   :  { %8547 = vst [vmem:[#allocation133_spill] sm:$0xff] %v6343_v60  ;;  %2425 = vmatpush.msra.mxu3 %v6365_v44  ;;  %2358 = vmatpush.msra.mxu0 %v5840_v7  ;;  %v6391_v32 = vld [vmem:[#allocation5 + $0x138] sm:$0xff] }
 0x3d2   :  { %8548 = vst [vmem:[#allocation134_spill] sm:$0xff] %v6345_v27  ;;  %v6369_v27 = vld [vmem:[#allocation5 + $0x178] sm:$0xff] }
 0x3d3   :  { %8549 = vst [vmem:[#allocation135_spill] sm:$0xff] %v6349_v61  ;;  %v6374_v61 = vld [vmem:[#allocation5 + $0x250] sm:$0xff]  ;;  %2397 = vmatpush.msrb.mxu2 %v6369_v27  ;;  %2359 = vmatpush.msra.mxu0 %v5844_v14  ;;  %v6411_v14 = vld [vmem:[#allocation5 + $0xd8] sm:$0xff] }
 0x3d4   :  { %8550 = vst [vmem:[#allocation136_spill] sm:$0xff] %v6351_v29  ;;  %v6376_v29 = vld [vmem:[#allocation5 + $0x258] sm:$0xff]  ;;  %2386 = vmatpush.msrb.mxu1 %v6374_v61 }
 0x3d5   :  { %8551 = vst [vmem:[#allocation137_spill] sm:$0xff] %v6353_v51  ;;  %v6380_v51 = vld [vmem:[#allocation5 + $0x158] sm:$0xff]  ;;  %2426 = vmatpush.msra.mxu3 %v6376_v29  ;;  %2360 = vmatpush.msra.mxu0 %v5847_v35 }
 0x3d6   :  { %8552 = vst [vmem:[#allocation138_spill] sm:$0xff] %v6359_v38  ;;  %2398 = vmatpush.msrb.mxu2 %v6380_v51 }
 0x3d7   :  { %8553 = vst [vmem:[#allocation139_spill] sm:$0xff] %v6363_v49  ;;  %v1878_v49 = vpop.f32.mrf.mxu3  ;;  %2361 = vmatpush.msra.mxu0 %v5850_v54  ;;  %v6421_v54 = vld [vmem:[#allocation5 + $0x98] sm:$0xff] }
 0x3d8   :  { %8554 = vst [vmem:[#allocation140_spill] sm:$0xff] %v6365_v44  ;;  %v1838_v44 = vpop.f32.mrf.mxu1  ;;  %2399 = vmatpush.msrb.mxu2 %v6391_v32 }
 0x3d9   :  { %8555 = vst [vmem:[#allocation141_spill] sm:$0xff] %v6369_v27  ;;  %2362 = vmatpush.msra.mxu0 %v5853_v25  ;;  %v6425_v25 = vld [vmem:[#allocation5 + $0x78] sm:$0xff] }
 0x3da   :  { %8556 = vst [vmem:[#allocation142_spill] sm:$0xff] %v6374_v61  ;;  %v6397_v61 = vld [vmem:[#allocation5 + $0x218] sm:$0xff] }
 0x3db   :  { %8557 = vst [vmem:[#allocation143_spill] sm:$0xff] %v6376_v29  ;;  %v6395_v29 = vld [vmem:[#allocation5 + $0x210] sm:$0xff]  ;;  %2363 = vmatpush.msra.mxu0 %v5857_v58  ;;  %v6429_v58 = vld [vmem:[#allocation5 + $0x58] sm:$0xff] }
 0x3dc   :  { %8560 = vst [vmem:[#allocation146_spill] sm:$0xff] %v6429_v58 }
 0x3dd   :  { %2364 = vmatpush.msra.mxu0 %v5861_v39  ;;  %v6435_v39 = vld [vmem:[#allocation5 + $0x18] sm:$0xff] }
 0x3df   :  { %v1818_v20 = vpop.f32.mrf.mxu0  ;;  %2365 = vmatpush.msra.mxu0 %v5864_v48 }
 0x3e0   :  { %v1819_v50 = vadd.f32 %v1818_v20, %v8427_v42  ;;  %v6384_v20 = vld [vmem:[#allocation5 + $0x230] sm:$0xff]  ;;  %v6386_v42 = vld [vmem:[#allocation5 + $0x238] sm:$0xff] }
 0x3e1   :  { %2387 = vmatpush.msrb.mxu1 %v6384_v20  ;;  %2427 = vmatpush.msra.mxu3 %v6386_v42 }
 0x3e2   :  { %v1839_v27 = vadd.f32 %v1838_v44, %v1819_v50  ;;  %v6407_v44 = vld [vmem:[#allocation5 + $0xf8] sm:$0xff]  ;;  %2366 = vmatpush.msra.mxu0 %v5867_v43 }
 0x3e3   :  { %2388 = vmatpush.msrb.mxu1 %v6395_v29  ;;  %2428 = vmatpush.msra.mxu3 %v6397_v61  ;;  %8559 = vst [vmem:[#allocation145_spill] sm:$0xff] %v6407_v44 }
 0x3e4   :  { %2367 = vmatpush.msra.mxu0 %v5870_v9 }
 0x3e5   :  { %v1858_v26 = vpop.f32.mrf.mxu2 }
 0x3e6   :  { %v1859_v38 = vadd.f32 %v1858_v26, %v8428_v45  ;;  %v6401_v26 = vld [vmem:[#allocation5 + $0x118] sm:$0xff]  ;;  %v1958_v45 = vpop.f32.mrf.mxu3  ;;  %2368 = vmatpush.msra.mxu0 %v5873_v33 }
 0x3e7   :  { %8558 = vst [vmem:[#allocation144_spill] sm:$0xff] %v6401_v26  ;;  %2400 = vmatpush.msrb.mxu2 %v6401_v26 }
 0x3e8   :  { %v1879_v60 = vadd.f32 %v1878_v49, %v1859_v38  ;;  %v1898_v7 = vpop.f32.mrf.mxu0 }
 0x3e9   :  { %2401 = vmatpush.msrb.mxu2 %v6407_v44  ;;  %v1899_v38 = vadd.f32 %v1898_v7, %v8429_v37 }
 0x3ea   :  { %4044 = vtanh.f32 %v1879_v60  ;;  %v6416_v60 = vld [vmem:[#allocation5 + $0xb8] sm:$0xff] }
 0x3eb   :  { %4046 = vtanh.f32 %v1839_v27  ;;  %2402 = vmatpush.msrb.mxu2 %v6411_v14  ;;  %v1918_v27 = vpop.f32.mrf.mxu1 }
 0x3ec   :  { %v1919_v26 = vadd.f32 %v1918_v27, %v1899_v38 }
 0x3ed   :  { %2403 = vmatpush.msrb.mxu2 %v6416_v60 }
 0x3ee   :  { %v1938_v49 = vpop.f32.mrf.mxu2 }
 0x3ef   :  { %v1939_v35 = vadd.f32 %v1938_v49, %v8430_v31  ;;  %2404 = vmatpush.msrb.mxu2 %v6421_v54 }
 0x3f0   :  { %v4045_v50 = vpop.eup %4044 }
 0x3f1   :  { %v4047_v44 = vpop.eup %4046  ;;  %v1959_v7 = vadd.f32 %v1958_v45, %v1939_v35  ;;  %v1966_v37 = vmul.f32 0.5, %v4045_v50  ;;  %2405 = vmatpush.msrb.mxu2 %v6425_v25  ;;  %v6433_v45 = vld [vmem:[#allocation5 + $0x38] sm:$0xff] }
 0x3f2   :  { %v1965_v49 = vmul.f32 0.5, %v4047_v44  ;;  %8561 = vst [vmem:[#allocation148_spill] sm:$0xff] %v6433_v45 }
 0x3f3   :  { %4048 = vtanh.f32 %v1959_v7  ;;  %v1969_v31 = vadd.f32 0.5, %v1966_v37  ;;  %2406 = vmatpush.msrb.mxu2 %v6429_v58  ;;  %v2087_v35 = vpop.f32.mrf.mxu1 }
 0x3f4   :  { %4050 = vtanh.f32 %v1919_v26  ;;  %v1968_v38 = vadd.f32 0.5, %v1965_v49 }
 0x3f5   :  { %2407 = vmatpush.msrb.mxu2 %v6433_v45  ;;  %v1971_v44 = vmul.f32 %v1969_v31, %v5877_v19  ;;  %4052 = vtanh.f32 %v2087_v35 }
 0x3f6   :  { %v2127_v9 = vpop.f32.mrf.mxu3 }
 0x3f7   :  { %2408 = vmatpush.msrb.mxu2 %v6435_v39 }
 0x3f9   :  { %v4049_v48 = vpop.eup %4048 }
 0x3fa   :  { %v1972_v50 = vmul.f32 %v4049_v48, %v1968_v38  ;;  %v4051_v37 = vpop.eup %4050 }
 0x3fb   :  { %v1967_v26 = vmul.f32 0.5, %v4051_v37  ;;  %v4053_v7 = vpop.eup %4052 }
 0x3fc   :  { %v6442_v43 = vadd.f32 %v1972_v50, %v1971_v44  ;;  %v2135_v58 = vmul.f32 0.5, %v4053_v7  ;;  %v8589_v7 = vld [vmem:[#allocation44_spill] sm:$0xff] }
 0x3fd   :  { %v1970_v49 = vadd.f32 0.5, %v1967_v26  ;;  %v8587_v26 = vld [vmem:[#allocation65_spill] sm:$0xff] }
 0x3fe   :  { %4054 = vtanh.f32 %v6442_v43  ;;  %v2138_v38 = vadd.f32 0.5, %v2135_v58 }
 0x400   :  { %v2067_v27 = vpop.f32.mrf.mxu0  ;;  %v2140_v44 = vmul.f32 %v2138_v38, %v5911_v46  ;;  %v8569_v46 = vld [vmem:[#allocation20_spill] sm:$0xff]  ;;  %v8595_v38 = vld [vmem:[#allocation70_spill] sm:$0xff] }
 0x401   :  { %4056 = vtanh.f32 %v2067_v27  ;;  %v8588_v27 = vld [vmem:[#allocation38_spill] sm:$0xff] }
 0x402   :  { %4058 = vtanh.f32 %v2127_v9  ;;  %v8590_v9 = vld [vmem:[#allocation55_spill] sm:$0xff] }
 0x404   :  { %v4055_v45 = vpop.eup %4054 }
 0x405   :  { %v6445_v31 = vmul.f32 %v4055_v45, %v1970_v49  ;;  %v8591_v49 = vld [vmem:[#allocation34_spill] sm:$0xff] }
 0x407   :  { %8562 = vst [vmem:[#allocation149_spill] sm:$0xff] %v6445_v31  ;;  %v4057_v33 = vpop.eup %4056  ;;  %v2107_v19 = vpop.f32.mrf.mxu2  ;;  %2309 = vmatmul.f32.vlgmr.msra.gmra.mxu1 %v6445_v31  ;;  %2349 = vmatmul.f32.vlgmr.msrb.gmra.mxu3 %v6445_v31 }
 0x408   :  { %v2134_v35 = vmul.f32 0.5, %v4057_v33  ;;  %4060 = vtanh.f32 %v2107_v19  ;;  %2542 = vmatpush.msra.mxu1 %v5882_v52  ;;  %2582 = vmatpush.msrb.mxu3 %v5884_v6  ;;  %v4059_v45 = vpop.eup %4058  ;;  %v8592_v33 = vld [vmem:[#allocation47_spill] sm:$0xff]  ;;  %v8593_v19 = vld [vmem:[#allocation60_spill] sm:$0xff] }
 0x40a   :  { %v2137_v48 = vadd.f32 0.5, %v2134_v35  ;;  %2543 = vmatpush.msra.mxu1 %v5888_v11  ;;  %2583 = vmatpush.msrb.mxu3 %v5890_v59  ;;  %v8596_v35 = vld [vmem:[#allocation74_spill] sm:$0xff] }
 0x40c   :  { %v2141_v50 = vmul.f32 %v4059_v45, %v2137_v48  ;;  %2544 = vmatpush.msra.mxu1 %v5894_v53  ;;  %2584 = vmatpush.msrb.mxu3 %v5896_v10  ;;  %v8563_v53 = vld [vmem:[#allocation19_spill] sm:$0xff]  ;;  %v8564_v10 = vld [vmem:[#allocation42_spill] sm:$0xff]  ;;  %v8597_v48 = vld [vmem:[#allocation53_spill] sm:$0xff] }
 0x40d   :  { %v8599_v45 = vld [vmem:[#allocation52_spill] sm:$0xff] }
 0x40e   :  { %v4061_v58 = vpop.eup %4060  ;;  %v6456_v37 = vadd.f32 %v2141_v50, %v2140_v44  ;;  %2545 = vmatpush.msra.mxu1 %v5900_v63  ;;  %2585 = vmatpush.msrb.mxu3 %v5902_v56  ;;  %v8565_v63 = vld [vmem:[#allocation18_spill] sm:$0xff]  ;;  %v8566_v56 = vld [vmem:[#allocation39_spill] sm:$0xff]  ;;  %v8601_v50 = vld [vmem:[#allocation76_spill] sm:$0xff] }
 0x40f   :  { %2389 = vmatmul.f32.vlgmr.msrb.gmra.mxu1 %v6445_v31  ;;  %2429 = vmatmul.f32.vlgmr.msra.gmra.mxu3 %v6445_v31  ;;  %v2136_v52 = vmul.f32 0.5, %v4061_v58  ;;  %v8600_v44 = vld [vmem:[#allocation58_spill] sm:$0xff]  ;;  %v8603_v58 = vld [vmem:[#allocation43_spill] sm:$0xff] }
 0x410   :  { %4062 = vtanh.f32 %v6456_v37  ;;  %2546 = vmatpush.msra.mxu1 %v5907_v12  ;;  %2586 = vmatpush.msrb.mxu3 %v5909_v17  ;;  %v8567_v12 = vld [vmem:[#allocation45_spill] sm:$0xff]  ;;  %v8568_v17 = vld [vmem:[#allocation48_spill] sm:$0xff]  ;;  %v6810_v31 = vld [vmem:[#allocation3 + $0x140] sm:$0xff] }
 0x411   :  { %v2139_v6 = vadd.f32 0.5, %v2136_v52  ;;  %v8604_v52 = vld [vmem:[#allocation50_spill] sm:$0xff] }
 0x412   :  { %2547 = vmatpush.msra.mxu1 %v5917_v55  ;;  %2587 = vmatpush.msrb.mxu3 %v5919_v41  ;;  %v8570_v55 = vld [vmem:[#allocation22_spill] sm:$0xff]  ;;  %v8571_v41 = vld [vmem:[#allocation27_spill] sm:$0xff] }
 0x414   :  { %2548 = vmatpush.msra.mxu1 %v5924_v47  ;;  %2588 = vmatpush.msrb.mxu3 %v5926_v15  ;;  %v8572_v47 = vld [vmem:[#allocation21_spill] sm:$0xff] }
 0x416   :  { %v4063_v11 = vpop.eup %4062  ;;  %2549 = vmatpush.msra.mxu1 %v5930_v40  ;;  %2589 = vmatpush.msrb.mxu3 %v5932_v18  ;;  %v8573_v40 = vld [vmem:[#allocation23_spill] sm:$0xff]  ;;  %v8574_v18 = vld [vmem:[#allocation25_spill] sm:$0xff] }
 0x417   :  { %v2144_v59 = vmul.f32 %v4063_v11, %v2139_v6  ;;  %v8605_v6 = vld [vmem:[#allocation62_spill] sm:$0xff]  ;;  %v8606_v11 = vld [vmem:[#allocation49_spill] sm:$0xff]  ;;  %8710 = vst [vmem:[#allocation25_spill] sm:$0xff] %v6810_v31 }
 0x418   :  { %2550 = vmatpush.msra.mxu1 %v5936_v28  ;;  %2590 = vmatpush.msrb.mxu3 %v5938_v4  ;;  %v8575_v28 = vld [vmem:[#allocation29_spill] sm:$0xff] }
 0x419   :  { %2289 = vmatmul.f32.vlgmr.msrb.gmra.mxu0 %v2144_v59  ;;  %2329 = vmatmul.f32.vlgmr.msra.gmra.mxu2 %v2144_v59  ;;  %v2456_v15 = vadd.f32 %v8572_v47, %v2144_v59  ;;  %v8576_v4 = vld [vmem:[#allocation57_spill] sm:$0xff] }
 0x41a   :  { %2522 = vmatpush.msrb.mxu0 %v5942_v8  ;;  %2562 = vmatpush.msra.mxu2 %v5944_v13  ;;  %v2454_v8 = vpop.permute.xlu2 %2453  ;;  %v8577_v13 = vld [vmem:[#allocation51_spill] sm:$0xff] }
 0x41b   :  { %2551 = vmatpush.msra.mxu1 %v5948_v23  ;;  %2591 = vmatpush.msrb.mxu3 %v5950_v30  ;;  %v8578_v23 = vld [vmem:[#allocation54_spill] sm:$0xff]  ;;  %v8579_v30 = vld [vmem:[#allocation35_spill] sm:$0xff] }
 0x41c   :  { %2523 = vmatpush.msrb.mxu0 %v5952_v36  ;;  %2563 = vmatpush.msra.mxu2 %v5954_v34  ;;  %v2457_v36 = vsel %vm75_vm2, %v2454_v8, %v2456_v15  ;;  %v8581_v34 = vld [vmem:[#allocation28_spill] sm:$0xff]  ;;  %v8617_v15 = vld [vmem:[#allocation61_spill] sm:$0xff]  ;;  %v8622_v8 = vld [vmem:[#allocation71_spill] sm:$0xff] }
 0x41d   :  { %2552 = vmatpush.msra.mxu1 %v5958_v0  ;;  %2592 = vmatpush.msrb.mxu3 %v5960_v62  ;;  %v8582_v0 = vld [vmem:[#allocation32_spill] sm:$0xff]  ;;  %v8583_v62 = vld [vmem:[#allocation41_spill] sm:$0xff] }
 0x41e   :  { %2524 = vmatpush.msrb.mxu0 %v5964_v3  ;;  %2564 = vmatpush.msra.mxu2 %v8563_v53  ;;  %v8584_v3 = vld [vmem:[#allocation24_spill] sm:$0xff]  ;;  %v8608_v53 = vld [vmem:[#allocation75_spill] sm:$0xff] }
 0x41f   :  { %2553 = vmatpush.msra.mxu1 %v8564_v10  ;;  %2593 = vmatpush.msrb.mxu3 %v8565_v63  ;;  %v8609_v10 = vld [vmem:[#allocation56_spill] sm:$0xff] }
 0x420   :  { %2525 = vmatpush.msrb.mxu0 %v8566_v56  ;;  %2565 = vmatpush.msra.mxu2 %v8567_v12  ;;  %v8610_v63 = vld [vmem:[#allocation40_spill] sm:$0xff]  ;;  %v8611_v56 = vld [vmem:[#allocation77_spill] sm:$0xff]  ;;  %v8612_v12 = vld [vmem:[#allocation78_spill] sm:$0xff] }
 0x421   :  { %2554 = vmatpush.msra.mxu1 %v8568_v17  ;;  %2594 = vmatpush.msrb.mxu3 %v8569_v46  ;;  %v8613_v17 = vld [vmem:[#allocation66_spill] sm:$0xff]  ;;  %v8614_v46 = vld [vmem:[#allocation64_spill] sm:$0xff] }
 0x422   :  { %2369 = vmatmul.f32.vlgmr.msra.gmra.mxu0 %v2144_v59  ;;  %2409 = vmatmul.f32.vlgmr.msrb.gmra.mxu2 %v2144_v59  ;;  %v8607_v59 = vld [vmem:[#allocation72_spill] sm:$0xff] }
 0x423   :  { %2526 = vmatpush.msrb.mxu0 %v8570_v55  ;;  %2566 = vmatpush.msra.mxu2 %v8571_v41  ;;  %v8615_v55 = vld [vmem:[#allocation59_spill] sm:$0xff]  ;;  %v8616_v41 = vld [vmem:[#allocation68_spill] sm:$0xff] }
 0x424   :  { %2555 = vmatpush.msra.mxu1 %v5996_v5  ;;  %2595 = vmatpush.msrb.mxu3 %v5998_v21  ;;  %v8585_v5 = vld [vmem:[#allocation31_spill] sm:$0xff]  ;;  %v6872_v21 = vld [vmem:[#allocation3 + $0xb0] sm:$0xff] }
 0x425   :  { %2527 = vmatpush.msrb.mxu0 %v8573_v40  ;;  %2567 = vmatpush.msra.mxu2 %v8574_v18  ;;  %v8618_v40 = vld [vmem:[#allocation79_spill] sm:$0xff]  ;;  %8727 = vst [vmem:[#allocation47_spill] sm:$0xff] %v6872_v21 }
 0x426   :  { %2556 = vmatpush.msra.mxu1 %v8575_v28  ;;  %2596 = vmatpush.msrb.mxu3 %v8576_v4  ;;  %v8619_v18 = vld [vmem:[#allocation63_spill] sm:$0xff]  ;;  %v8620_v28 = vld [vmem:[#allocation80_spill] sm:$0xff]  ;;  %v8621_v4 = vld [vmem:[#allocation85_spill] sm:$0xff] }
 0x427   :  { %2528 = vmatpush.msrb.mxu0 %v8577_v13  ;;  %2568 = vmatpush.msra.mxu2 %v6015_v2  ;;  %v8586_v2 = vld [vmem:[#allocation26_spill] sm:$0xff]  ;;  %v8623_v13 = vld [vmem:[#allocation69_spill] sm:$0xff] }
 0x428   :  { %2557 = vmatpush.msra.mxu1 %v8578_v23  ;;  %2597 = vmatpush.msrb.mxu3 %v8579_v30  ;;  %v8624_v23 = vld [vmem:[#allocation81_spill] sm:$0xff]  ;;  %v8625_v30 = vld [vmem:[#allocation82_spill] sm:$0xff] }
 0x429   :  { %2529 = vmatpush.msrb.mxu0 %v8581_v34  ;;  %2558 = vmatmul.f32.vlgmr.msra.gmra.mxu1 %v2457_v36  ;;  %v8628_v34 = vld [vmem:[#allocation83_spill] sm:$0xff] }
 0x42a   :  { %2569 = vmatpush.msra.mxu2 %v8582_v0  ;;  %2598 = vmatmul.f32.vlgmr.msrb.gmra.mxu3 %v2457_v36  ;;  %v8629_v0 = vld [vmem:[#allocation87_spill] sm:$0xff] }
 0x42b   :  { %2530 = vmatpush.msrb.mxu0 %v8583_v62  ;;  %2765 = vmatpush.msrb.mxu1 %v8584_v3  ;;  %v8630_v62 = vld [vmem:[#allocation10_spill] sm:$0xff]  ;;  %v8631_v3 = vld [vmem:[#allocation89_spill] sm:$0xff] }
 0x42c   :  { %2570 = vmatpush.msra.mxu2 %v8585_v5  ;;  %2805 = vmatpush.msra.mxu3 %v6042_v1  ;;  %v8594_v1 = vld [vmem:[#allocation67_spill] sm:$0xff]  ;;  %v8632_v5 = vld [vmem:[#allocation90_spill] sm:$0xff] }
 0x42d   :  { %2531 = vmatpush.msrb.mxu0 %v8586_v2  ;;  %2766 = vmatpush.msrb.mxu1 %v8587_v26  ;;  %v8633_v2 = vld [vmem:[#allocation12_spill] sm:$0xff]  ;;  %v8634_v26 = vld [vmem:[#allocation86_spill] sm:$0xff] }
 0x42e   :  { %2571 = vmatpush.msra.mxu2 %v8588_v27  ;;  %2806 = vmatpush.msra.mxu3 %v6053_v22  ;;  %v8598_v22 = vld [vmem:[#allocation46_spill] sm:$0xff]  ;;  %v8635_v27 = vld [vmem:[#allocation13_spill] sm:$0xff] }
 0x42f   :  { %2532 = vmatpush.msrb.mxu0 %v8589_v7  ;;  %2767 = vmatpush.msrb.mxu1 %v8590_v9  ;;  %v8636_v7 = vld [vmem:[#allocation14_spill] sm:$0xff]  ;;  %v8637_v9 = vld [vmem:[#allocation88_spill] sm:$0xff] }
 0x430   :  { %2572 = vmatpush.msra.mxu2 %v8591_v49  ;;  %2807 = vmatpush.msra.mxu3 %v6065_v16  ;;  %v8602_v16 = vld [vmem:[#allocation37_spill] sm:$0xff] }
 0x431   :  { %2533 = vmatpush.msrb.mxu0 %v8592_v33  ;;  %2768 = vmatpush.msrb.mxu1 %v8593_v19  ;;  %v8638_v49 = vld [vmem:[#allocation93_spill] sm:$0xff]  ;;  %v8639_v33 = vld [vmem:[#allocation91_spill] sm:$0xff]  ;;  %v8640_v19 = vld [vmem:[#allocation92_spill] sm:$0xff] }
 0x432   :  { %2573 = vmatpush.msra.mxu2 %v8594_v1  ;;  %2808 = vmatpush.msra.mxu3 %v8595_v38  ;;  %v8641_v1 = vld [vmem:[#allocation94_spill] sm:$0xff]  ;;  %v8642_v38 = vld [vmem:[#allocation95_spill] sm:$0xff] }
 0x433   :  { %2534 = vmatpush.msrb.mxu0 %v8596_v35  ;;  %2769 = vmatpush.msrb.mxu1 %v8597_v48  ;;  %v8643_v35 = vld [vmem:[#allocation96_spill] sm:$0xff]  ;;  %v8644_v48 = vld [vmem:[#allocation97_spill] sm:$0xff] }
 0x434   :  { %2574 = vmatpush.msra.mxu2 %v8598_v22  ;;  %2809 = vmatpush.msra.mxu3 %v8599_v45  ;;  %v8645_v22 = vld [vmem:[#allocation98_spill] sm:$0xff]  ;;  %v8646_v45 = vld [vmem:[#allocation99_spill] sm:$0xff] }
 0x435   :  { %2535 = vmatpush.msrb.mxu0 %v8600_v44  ;;  %2770 = vmatpush.msrb.mxu1 %v8601_v50  ;;  %v8647_v44 = vld [vmem:[#allocation100_spill] sm:$0xff]  ;;  %v8648_v50 = vld [vmem:[#allocation101_spill] sm:$0xff] }
 0x436   :  { %2575 = vmatpush.msra.mxu2 %v8602_v16  ;;  %2810 = vmatpush.msra.mxu3 %v8603_v58  ;;  %v8649_v16 = vld [vmem:[#allocation102_spill] sm:$0xff]  ;;  %v8650_v58 = vld [vmem:[#allocation103_spill] sm:$0xff] }
 0x437   :  { %2536 = vmatpush.msrb.mxu0 %v8604_v52  ;;  %2771 = vmatpush.msrb.mxu1 %v8605_v6  ;;  %v8651_v52 = vld [vmem:[#allocation104_spill] sm:$0xff]  ;;  %v8652_v6 = vld [vmem:[#allocation105_spill] sm:$0xff] }
 0x438   :  { %2576 = vmatpush.msra.mxu2 %v8606_v11  ;;  %2811 = vmatpush.msra.mxu3 %v8607_v59  ;;  %v8653_v11 = vld [vmem:[#allocation106_spill] sm:$0xff]  ;;  %v8654_v59 = vld [vmem:[#allocation107_spill] sm:$0xff] }
 0x439   :  { %2537 = vmatpush.msrb.mxu0 %v8608_v53  ;;  %2772 = vmatpush.msrb.mxu1 %v8609_v10  ;;  %v8655_v53 = vld [vmem:[#allocation108_spill] sm:$0xff]  ;;  %v8656_v10 = vld [vmem:[#allocation109_spill] sm:$0xff] }
 0x43a   :  { %2577 = vmatpush.msra.mxu2 %v8610_v63  ;;  %2538 = vmatmul.f32.vlgmr.msrb.gmra.mxu0 %v2457_v36  ;;  %v8657_v63 = vld [vmem:[#allocation110_spill] sm:$0xff] }
 0x43b   :  { %2578 = vmatmul.f32.vlgmr.msra.gmra.mxu2 %v2457_v36  ;;  %2812 = vmatpush.msra.mxu3 %v8611_v56  ;;  %v8627_v36 = vld [vmem:[#allocation73_spill] sm:$0xff]  ;;  %v8658_v56 = vld [vmem:[#allocation111_spill] sm:$0xff] }
 0x43c   :  { %2773 = vmatpush.msrb.mxu1 %v8612_v12  ;;  %2745 = vmatpush.msra.mxu0 %v8613_v17  ;;  %v8659_v12 = vld [vmem:[#allocation112_spill] sm:$0xff]  ;;  %v8660_v17 = vld [vmem:[#allocation113_spill] sm:$0xff] }
 0x43d   :  { %2813 = vmatpush.msra.mxu3 %v8614_v46  ;;  %2785 = vmatpush.msrb.mxu2 %v8615_v55  ;;  %v8661_v46 = vld [vmem:[#allocation114_spill] sm:$0xff]  ;;  %v8662_v55 = vld [vmem:[#allocation115_spill] sm:$0xff] }
 0x43e   :  { %2774 = vmatpush.msrb.mxu1 %v6143_v24  ;;  %2746 = vmatpush.msra.mxu0 %v8616_v41  ;;  %v8626_v24 = vld [vmem:[#allocation84_spill] sm:$0xff] }
 0x43f   :  { %2814 = vmatpush.msra.mxu3 %v8617_v15  ;;  %2786 = vmatpush.msrb.mxu2 %v8618_v40  ;;  %v8663_v41 = vld [vmem:[#allocation116_spill] sm:$0xff]  ;;  %v8664_v15 = vld [vmem:[#allocation117_spill] sm:$0xff]  ;;  %v8665_v40 = vld [vmem:[#allocation118_spill] sm:$0xff] }
 0x440   :  { %2775 = vmatpush.msrb.mxu1 %v8619_v18  ;;  %2747 = vmatpush.msra.mxu0 %v8620_v28  ;;  %v8666_v18 = vld [vmem:[#allocation119_spill] sm:$0xff]  ;;  %v8667_v28 = vld [vmem:[#allocation120_spill] sm:$0xff] }
 0x441   :  { %2815 = vmatpush.msra.mxu3 %v8621_v4  ;;  %2787 = vmatpush.msrb.mxu2 %v8622_v8  ;;  %v8668_v4 = vld [vmem:[#allocation121_spill] sm:$0xff]  ;;  %v8669_v8 = vld [vmem:[#allocation122_spill] sm:$0xff] }
 0x442   :  { %2776 = vmatpush.msrb.mxu1 %v8623_v13  ;;  %2748 = vmatpush.msra.mxu0 %v8624_v23  ;;  %v8670_v13 = vld [vmem:[#allocation123_spill] sm:$0xff]  ;;  %v8671_v23 = vld [vmem:[#allocation124_spill] sm:$0xff] }
 0x443   :  { %2816 = vmatpush.msra.mxu3 %v8625_v30  ;;  %2788 = vmatpush.msrb.mxu2 %v8626_v24  ;;  %v8672_v30 = vld [vmem:[#allocation125_spill] sm:$0xff]  ;;  %v8673_v24 = vld [vmem:[#allocation126_spill] sm:$0xff] }
 0x444   :  { %2777 = vmatpush.msrb.mxu1 %v8627_v36  ;;  %2749 = vmatpush.msra.mxu0 %v8628_v34  ;;  %v8674_v36 = vld [vmem:[#allocation127_spill] sm:$0xff]  ;;  %v8675_v34 = vld [vmem:[#allocation128_spill] sm:$0xff] }
 0x445   :  { %2817 = vmatpush.msra.mxu3 %v8629_v0  ;;  %2789 = vmatpush.msrb.mxu2 %v8630_v62  ;;  %v8676_v0 = vld [vmem:[#allocation129_spill] sm:$0xff]  ;;  %v8677_v62 = vld [vmem:[#allocation130_spill] sm:$0xff] }
 0x446   :  { %2778 = vmatpush.msrb.mxu1 %v8631_v3  ;;  %2750 = vmatpush.msra.mxu0 %v8632_v5  ;;  %v8678_v3 = vld [vmem:[#allocation131_spill] sm:$0xff]  ;;  %v8679_v5 = vld [vmem:[#allocation132_spill] sm:$0xff] }
 0x447   :  { %2818 = vmatpush.msra.mxu3 %v8633_v2  ;;  %2790 = vmatpush.msrb.mxu2 %v8634_v26  ;;  %v8680_v2 = vld [vmem:[#allocation133_spill] sm:$0xff]  ;;  %v8681_v26 = vld [vmem:[#allocation134_spill] sm:$0xff] }
 0x448   :  { %2779 = vmatpush.msrb.mxu1 %v8635_v27  ;;  %2751 = vmatpush.msra.mxu0 %v8636_v7  ;;  %v8682_v27 = vld [vmem:[#allocation135_spill] sm:$0xff]  ;;  %v8683_v7 = vld [vmem:[#allocation136_spill] sm:$0xff] }
 0x449   :  { %2819 = vmatpush.msra.mxu3 %v8637_v9  ;;  %2791 = vmatpush.msrb.mxu2 %v8638_v49  ;;  %v8684_v9 = vld [vmem:[#allocation137_spill] sm:$0xff]  ;;  %v8685_v49 = vld [vmem:[#allocation138_spill] sm:$0xff] }
 0x44a   :  { %2780 = vmatpush.msrb.mxu1 %v8639_v33  ;;  %2752 = vmatpush.msra.mxu0 %v8640_v19  ;;  %v8686_v33 = vld [vmem:[#allocation139_spill] sm:$0xff]  ;;  %v8688_v19 = vld [vmem:[#allocation141_spill] sm:$0xff] }
 0x44b   :  { %2820 = vmatpush.msra.mxu3 %v8641_v1  ;;  %2792 = vmatpush.msrb.mxu2 %v8642_v38  ;;  %v8689_v1 = vld [vmem:[#allocation142_spill] sm:$0xff]  ;;  %v8690_v38 = vld [vmem:[#allocation143_spill] sm:$0xff] }
 0x44c   :  { %2845 = vmatpush.msra.mxu1 %v8643_v35  ;;  %2753 = vmatpush.msra.mxu0 %v8645_v22  ;;  %v8691_v35 = vld [vmem:[#allocation144_spill] sm:$0xff] }
 0x44d   :  { %2885 = vmatpush.msrb.mxu3 %v8644_v48  ;;  %2793 = vmatpush.msrb.mxu2 %v8646_v45  ;;  %v8692_v48 = vld [vmem:[#allocation145_spill] sm:$0xff] }
 0x44e   :  { %2846 = vmatpush.msra.mxu1 %v8647_v44  ;;  %2754 = vmatpush.msra.mxu0 %v8649_v16 }
 0x44f   :  { %2886 = vmatpush.msrb.mxu3 %v8648_v50  ;;  %2794 = vmatpush.msrb.mxu2 %v8650_v58  ;;  %v8696_v50 = vld [vmem:[#allocation11_spill] sm:$0xff]  ;;  %v6654_v58 = vld [vmem:[#allocation5 + $0x130] sm:$0xff] }
 0x450   :  { %2847 = vmatpush.msra.mxu1 %v8651_v52  ;;  %2755 = vmatpush.msra.mxu0 %v8653_v11  ;;  %v6657_v11 = vld [vmem:[#allocation5 + $0x110] sm:$0xff] }
 0x451   :  { %2887 = vmatpush.msrb.mxu3 %v8652_v6  ;;  %2795 = vmatpush.msrb.mxu2 %v8654_v59  ;;  %v6660_v59 = vld [vmem:[#allocation5 + $0xf0] sm:$0xff] }
 0x452   :  { %2848 = vmatpush.msra.mxu1 %v8655_v53  ;;  %2756 = vmatpush.msra.mxu0 %v8657_v63  ;;  %v8697_v63 = vld [vmem:[#allocation15_spill] sm:$0xff] }
 0x453   :  { %2888 = vmatpush.msrb.mxu3 %v8656_v10  ;;  %2796 = vmatpush.msrb.mxu2 %v8658_v56  ;;  %v6663_v10 = vld [vmem:[#allocation5 + $0xd0] sm:$0xff] }
 0x454   :  { %2849 = vmatpush.msra.mxu1 %v8659_v12  ;;  %2757 = vmatpush.msra.mxu0 %v8661_v46  ;;  %v8698_v46 = vld [vmem:[#allocation33_spill] sm:$0xff] }
 0x455   :  { %2889 = vmatpush.msrb.mxu3 %v8660_v17  ;;  %2797 = vmatpush.msrb.mxu2 %v8662_v55  ;;  %v6667_v17 = vld [vmem:[#allocation5 + $0xb0] sm:$0xff] }
 0x456   :  { %2850 = vmatpush.msra.mxu1 %v8663_v41  ;;  %2758 = vmatpush.msra.mxu0 %v8665_v40 }
 0x457   :  { %2890 = vmatpush.msrb.mxu3 %v8664_v15  ;;  %2798 = vmatpush.msrb.mxu2 %v8666_v18  ;;  %v6671_v18 = vld [vmem:[#allocation5 + $0x90] sm:$0xff] }
 0x458   :  { %2851 = vmatpush.msra.mxu1 %v8667_v28  ;;  %2759 = vmatpush.msra.mxu0 %v8669_v8 }
 0x459   :  { %2891 = vmatpush.msrb.mxu3 %v8668_v4  ;;  %2799 = vmatpush.msrb.mxu2 %v8670_v13 }
 0x45a   :  { %2852 = vmatpush.msra.mxu1 %v8671_v23  ;;  %2760 = vmatpush.msra.mxu0 %v8673_v24  ;;  %v6674_v23 = vld [vmem:[#allocation5 + $0x70] sm:$0xff] }
 0x45b   :  { %2892 = vmatpush.msrb.mxu3 %v8672_v30  ;;  %2800 = vmatpush.msrb.mxu2 %v8674_v36  ;;  %v6677_v24 = vld [vmem:[#allocation5 + $0x50] sm:$0xff] }
 0x45c   :  { %2853 = vmatpush.msra.mxu1 %v8675_v34  ;;  %v6680_v34 = vld [vmem:[#allocation5 + $0x30] sm:$0xff] }
 0x45d   :  { %2893 = vmatpush.msrb.mxu3 %v8676_v0  ;;  %2865 = vmatpush.msra.mxu2 %v6329_v57  ;;  %v8687_v57 = vld [vmem:[#allocation140_spill] sm:$0xff] }
 0x45e   :  { %2854 = vmatpush.msra.mxu1 %v8677_v62  ;;  %v6683_v0 = vld [vmem:[#allocation5 + $0x10] sm:$0xff] }
 0x45f   :  { %2894 = vmatpush.msrb.mxu3 %v8678_v3  ;;  %2866 = vmatpush.msra.mxu2 %v8679_v5 }
 0x460   :  { %2855 = vmatpush.msra.mxu1 %v8680_v2 }
 0x461   :  { %2895 = vmatpush.msrb.mxu3 %v8681_v26  ;;  %2867 = vmatpush.msra.mxu2 %v8682_v27 }
 0x462   :  { %2856 = vmatpush.msra.mxu1 %v8683_v7 }
 0x463   :  { %2896 = vmatpush.msrb.mxu3 %v8684_v9  ;;  %2868 = vmatpush.msra.mxu2 %v8685_v49 }
 0x464   :  { %2857 = vmatpush.msra.mxu1 %v8686_v33 }
 0x465   :  { %2897 = vmatpush.msrb.mxu3 %v8687_v57  ;;  %2869 = vmatpush.msra.mxu2 %v8688_v19 }
 0x466   :  { %2858 = vmatpush.msra.mxu1 %v8689_v1 }
 0x467   :  { %2898 = vmatpush.msrb.mxu3 %v8690_v38  ;;  %2870 = vmatpush.msra.mxu2 %v6380_v51  ;;  %v8693_v51 = vld [vmem:[#allocation146_spill] sm:$0xff] }
 0x468   :  { %2859 = vmatpush.msra.mxu1 %v6384_v20  ;;  %v6640_v20 = vld [vmem:[#allocation5 + $0x1b0] sm:$0xff] }
 0x469   :  { %2899 = vmatpush.msrb.mxu3 %v6386_v42  ;;  %2871 = vmatpush.msra.mxu2 %v6391_v32  ;;  %v8694_v42 = vld [vmem:[#allocation148_spill] sm:$0xff] }
 0x46a   :  { %2860 = vmatpush.msra.mxu1 %v6395_v29  ;;  %v6634_v29 = vld [vmem:[#allocation5 + $0x1f0] sm:$0xff] }
 0x46b   :  { %2900 = vmatpush.msrb.mxu3 %v6397_v61  ;;  %2872 = vmatpush.msra.mxu2 %v8691_v35  ;;  %v6637_v61 = vld [vmem:[#allocation5 + $0x1d0] sm:$0xff] }
 0x46c   :  { %2825 = vmatpush.msrb.mxu0 %v6634_v29 }
 0x46d   :  { %2873 = vmatpush.msra.mxu2 %v8692_v48  ;;  %v6692_v48 = vld [vmem:[#allocation3 + $0x1e8] sm:$0xff] }
 0x46e   :  { %2826 = vmatpush.msrb.mxu0 %v6637_v61 }
 0x46f   :  { %2874 = vmatpush.msra.mxu2 %v6411_v14  ;;  %v6643_v14 = vld [vmem:[#allocation5 + $0x190] sm:$0xff] }
 0x470   :  { %2827 = vmatpush.msrb.mxu0 %v6640_v20 }
 0x471   :  { %2875 = vmatpush.msra.mxu2 %v6416_v60  ;;  %v6646_v60 = vld [vmem:[#allocation5 + $0x170] sm:$0xff] }
 0x472   :  { %2828 = vmatpush.msrb.mxu0 %v6643_v14 }
 0x473   :  { %2876 = vmatpush.msra.mxu2 %v6421_v54  ;;  %v8695_v54 = vld [vmem:[#allocation30_spill] sm:$0xff] }
 0x474   :  { %2829 = vmatpush.msrb.mxu0 %v6646_v60 }
 0x475   :  { %2877 = vmatpush.msra.mxu2 %v6425_v25 }
 0x477   :  { %2878 = vmatpush.msra.mxu2 %v8693_v51 }
 0x479   :  { %2879 = vmatpush.msra.mxu2 %v8694_v42 }
 0x47b   :  { %2880 = vmatpush.msra.mxu2 %v6435_v39  ;;  %v6650_v39 = vld [vmem:[#allocation5 + $0x150] sm:$0xff] }
 0x47c   :  { %2830 = vmatpush.msrb.mxu0 %v6650_v39 }
 0x47e   :  { %2831 = vmatpush.msrb.mxu0 %v6654_v58 }
 0x480   :  { %2832 = vmatpush.msrb.mxu0 %v6657_v11 }
 0x482   :  { %2833 = vmatpush.msrb.mxu0 %v6660_v59 }
 0x484   :  { %v2310_v45 = vpop.f32.mrf.mxu1  ;;  %2834 = vmatpush.msrb.mxu0 %v6663_v10 }
 0x486   :  { %2835 = vmatpush.msrb.mxu0 %v6667_v17 }
 0x488   :  { %2836 = vmatpush.msrb.mxu0 %v6671_v18 }
 0x48a   :  { %v2350_v44 = vpop.f32.mrf.mxu3  ;;  %2837 = vmatpush.msrb.mxu0 %v6674_v23 }
 0x48c   :  { %v2390_v15 = vpop.f32.mrf.mxu1  ;;  %2838 = vmatpush.msrb.mxu0 %v6677_v24 }
 0x48e   :  { %2839 = vmatpush.msrb.mxu0 %v6680_v34 }
 0x490   :  { %2840 = vmatpush.msrb.mxu0 %v6683_v0 }
 0x492   :  { %v2430_v40 = vpop.f32.mrf.mxu3 }
 0x496   :  { %v2290_v32 = vpop.f32.mrf.mxu0 }
 0x497   :  { %v2291_v25 = vadd.f32 %v2290_v32, %v8695_v54  ;;  %v6698_v32 = vld [vmem:[#allocation3 + $0x1c8] sm:$0xff] }
 0x499   :  { %v2311_v52 = vadd.f32 %v2310_v45, %v2291_v25  ;;  %v6700_v25 = vld [vmem:[#allocation3 + $0x1d8] sm:$0xff] }
 0x49c   :  { %v2330_v22 = vpop.f32.mrf.mxu2 }
 0x49d   :  { %v2331_v16 = vadd.f32 %v2330_v22, %v8696_v50 }
 0x49f   :  { %v2351_v6 = vadd.f32 %v2350_v44, %v2331_v16  ;;  %v2370_v53 = vpop.f32.mrf.mxu0  ;;  %v6704_v44 = vld [vmem:[#allocation3 + $0x1a8] sm:$0xff]  ;;  %v6706_v16 = vld [vmem:[#allocation3 + $0x1b8] sm:$0xff] }
 0x4a0   :  { %v2371_v56 = vadd.f32 %v2370_v53, %v8697_v63  ;;  %v6710_v53 = vld [vmem:[#allocation3 + $0x188] sm:$0xff] }
 0x4a1   :  { %4064 = vtanh.f32 %v2351_v6 }
 0x4a2   :  { %4066 = vtanh.f32 %v2311_v52  ;;  %v2391_v13 = vadd.f32 %v2390_v15, %v2371_v56  ;;  %v6712_v56 = vld [vmem:[#allocation3 + $0x198] sm:$0xff] }
 0x4a3   :  { %v6719_v15 = vld [vmem:[#allocation3 + $0x178] sm:$0xff] }
 0x4a5   :  { %v2410_v12 = vpop.f32.mrf.mxu2 }
 0x4a6   :  { %v2411_v55 = vadd.f32 %v2410_v12, %v8698_v46  ;;  %v2559_v3 = vpop.f32.mrf.mxu1 }
 0x4a7   :  { %v4065_v41 = vpop.eup %4064 }
 0x4a8   :  { %v4067_v28 = vpop.eup %4066  ;;  %v2431_v4 = vadd.f32 %v2430_v40, %v2411_v55  ;;  %v2438_v8 = vmul.f32 0.5, %v4065_v41  ;;  %v6717_v41 = vld [vmem:[#allocation3 + $0x168] sm:$0xff] }
 0x4a9   :  { %v2437_v30 = vmul.f32 0.5, %v4067_v28 }
 0x4aa   :  { %4068 = vtanh.f32 %v2431_v4  ;;  %v2441_v36 = vadd.f32 0.5, %v2438_v8  ;;  %v6729_v4 = vld [vmem:[#allocation3 + $0x158] sm:$0xff] }
 0x4ab   :  { %4070 = vtanh.f32 %v2391_v13  ;;  %v2440_v62 = vadd.f32 0.5, %v2437_v30  ;;  %v6734_v13 = vld [vmem:[#allocation3 + $0x128] sm:$0xff]  ;;  %v6736_v30 = vld [vmem:[#allocation3 + $0x138] sm:$0xff] }
 0x4ac   :  { %v2443_v2 = vmul.f32 %v2441_v36, %v6442_v43  ;;  %4072 = vtanh.f32 %v2559_v3  ;;  %v6694_v43 = vld [vmem:[#allocation3 + $0x1f8] sm:$0xff]  ;;  %v6740_v36 = vld [vmem:[#allocation3 + $0x108] sm:$0xff] }
 0x4ad   :  { %v2599_v57 = vpop.f32.mrf.mxu3 }
 0x4b0   :  { %v4069_v5 = vpop.eup %4068 }
 0x4b1   :  { %v2444_v26 = vmul.f32 %v4069_v5, %v2440_v62  ;;  %v4071_v27 = vpop.eup %4070  ;;  %v6742_v62 = vld [vmem:[#allocation3 + $0x118] sm:$0xff]  ;;  %v6746_v5 = vld [vmem:[#allocation3 + $0xe8] sm:$0xff] }
 0x4b2   :  { %v2439_v9 = vmul.f32 0.5, %v4071_v27  ;;  %v4073_v33 = vpop.eup %4072 }
 0x4b3   :  { %v6687_v7 = vadd.f32 %v2444_v26, %v2443_v2  ;;  %v2607_v38 = vmul.f32 0.5, %v4073_v33  ;;  %v6748_v2 = vld [vmem:[#allocation3 + $0xf8] sm:$0xff]  ;;  %v6758_v33 = vld [vmem:[#allocation3 + $0xc8] sm:$0xff] }
 0x4b4   :  { %v2442_v19 = vadd.f32 0.5, %v2439_v9  ;;  %v6752_v9 = vld [vmem:[#allocation3 + $0x1e0] sm:$0xff] }
 0x4b5   :  { %4074 = vtanh.f32 %v6687_v7  ;;  %v2610_v22 = vadd.f32 0.5, %v2607_v38  ;;  %v6768_v38 = vld [vmem:[#allocation3 + $0xa8] sm:$0xff] }
 0x4b7   :  { %v2539_v49 = vpop.f32.mrf.mxu0  ;;  %v2612_v12 = vmul.f32 %v2610_v22, %v6456_v37  ;;  %v6727_v37 = vld [vmem:[#allocation3 + $0x148] sm:$0xff]  ;;  %v6776_v22 = vld [vmem:[#allocation3 + $0x1b0] sm:$0xff] }
 0x4b8   :  { %4076 = vtanh.f32 %v2539_v49  ;;  %v6754_v49 = vld [vmem:[#allocation3 + $0x1f0] sm:$0xff] }
 0x4b9   :  { %4078 = vtanh.f32 %v2599_v57  ;;  %v6760_v57 = vld [vmem:[#allocation3 + $0xd8] sm:$0xff] }
 0x4bb   :  { %v4075_v1 = vpop.eup %4074 }
 0x4bc   :  { %v6690_v35 = vmul.f32 %v4075_v1, %v2442_v19  ;;  %v6762_v19 = vld [vmem:[#allocation3 + $0x1c0] sm:$0xff]  ;;  %v6764_v1 = vld [vmem:[#allocation3 + $0x1d0] sm:$0xff] }
 0x4be   :  { %8699 = vst [vmem:[#allocation19_spill] sm:$0xff] %v6690_v35  ;;  %v4077_v51 = vpop.eup %4076  ;;  %v2579_v42 = vpop.f32.mrf.mxu2  ;;  %2781 = vmatmul.f32.vlgmr.msrb.gmra.mxu1 %v6690_v35  ;;  %2821 = vmatmul.f32.vlgmr.msra.gmra.mxu3 %v6690_v35 }
 0x4bf   :  { %v2606_v45 = vmul.f32 0.5, %v4077_v51  ;;  %4080 = vtanh.f32 %v2579_v42  ;;  %3014 = vmatpush.msrb.mxu1 %v6692_v48  ;;  %3054 = vmatpush.msra.mxu3 %v6694_v43  ;;  %v4079_v6 = vpop.eup %4078  ;;  %v6770_v51 = vld [vmem:[#allocation3 + $0xb8] sm:$0xff]  ;;  %v6774_v42 = vld [vmem:[#allocation3 + $0x1a0] sm:$0xff] }
 0x4c1   :  { %v2609_v52 = vadd.f32 0.5, %v2606_v45  ;;  %3015 = vmatpush.msrb.mxu1 %v6698_v32  ;;  %3055 = vmatpush.msra.mxu3 %v6700_v25  ;;  %v6780_v45 = vld [vmem:[#allocation3 + $0x88] sm:$0xff] }
 0x4c2   :  { %8700 = vst [vmem:[#allocation42_spill] sm:$0xff] %v6780_v45 }
 0x4c3   :  { %v2613_v55 = vmul.f32 %v4079_v6, %v2609_v52  ;;  %3016 = vmatpush.msrb.mxu1 %v6704_v44  ;;  %3056 = vmatpush.msra.mxu3 %v6706_v16  ;;  %v6782_v52 = vld [vmem:[#allocation3 + $0x98] sm:$0xff]  ;;  %v6786_v6 = vld [vmem:[#allocation3 + $0x180] sm:$0xff] }
 0x4c4   :  { %8701 = vst [vmem:[#allocation18_spill] sm:$0xff] %v6782_v52 }
 0x4c5   :  { %v4081_v40 = vpop.eup %4080  ;;  %v6721_v28 = vadd.f32 %v2613_v55, %v2612_v12  ;;  %3017 = vmatpush.msrb.mxu1 %v6710_v53  ;;  %3057 = vmatpush.msra.mxu3 %v6712_v56  ;;  %8702 = vst [vmem:[#allocation39_spill] sm:$0xff] %v6786_v6  ;;  %v6788_v12 = vld [vmem:[#allocation3 + $0x190] sm:$0xff]  ;;  %v6792_v55 = vld [vmem:[#allocation3 + $0x68] sm:$0xff] }
 0x4c6   :  { %2861 = vmatmul.f32.vlgmr.msra.gmra.mxu1 %v6690_v35  ;;  %2901 = vmatmul.f32.vlgmr.msrb.gmra.mxu3 %v6690_v35  ;;  %v2608_v8 = vmul.f32 0.5, %v4081_v40  ;;  %8703 = vst [vmem:[#allocation45_spill] sm:$0xff] %v6788_v12  ;;  %v6794_v40 = vld [vmem:[#allocation3 + $0x78] sm:$0xff] }
 0x4c7   :  { %4082 = vtanh.f32 %v6721_v28  ;;  %3018 = vmatpush.msrb.mxu1 %v6717_v41  ;;  %3058 = vmatpush.msra.mxu3 %v6719_v15  ;;  %8704 = vst [vmem:[#allocation48_spill] sm:$0xff] %v6792_v55  ;;  %v6808_v35 = vld [vmem:[#allocation3 + $0x58] sm:$0xff] }
 0x4c8   :  { %v2611_v3 = vadd.f32 0.5, %v2608_v8  ;;  %8705 = vst [vmem:[#allocation20_spill] sm:$0xff] %v6794_v40  ;;  %v6800_v8 = vld [vmem:[#allocation3 + $0x160] sm:$0xff] }
 0x4c9   :  { %3019 = vmatpush.msrb.mxu1 %v6727_v37  ;;  %3059 = vmatpush.msra.mxu3 %v6729_v4  ;;  %8706 = vst [vmem:[#allocation22_spill] sm:$0xff] %v6800_v8 }
 0x4ca   :  { %8709 = vst [vmem:[#allocation23_spill] sm:$0xff] %v6808_v35 }
 0x4cb   :  { %3020 = vmatpush.msrb.mxu1 %v6734_v13  ;;  %3060 = vmatpush.msra.mxu3 %v6736_v30 }
 0x4cd   :  { %v4083_v26 = vpop.eup %4082  ;;  %3021 = vmatpush.msrb.mxu1 %v6740_v36  ;;  %3061 = vmatpush.msra.mxu3 %v6742_v62 }
 0x4ce   :  { %v2616_v27 = vmul.f32 %v4083_v26, %v2611_v3  ;;  %v6802_v3 = vld [vmem:[#allocation3 + $0x170] sm:$0xff]  ;;  %v6806_v26 = vld [vmem:[#allocation3 + $0x48] sm:$0xff] }
 0x4cf   :  { %3022 = vmatpush.msrb.mxu1 %v6746_v5  ;;  %3062 = vmatpush.msra.mxu3 %v6748_v2  ;;  %8707 = vst [vmem:[#allocation27_spill] sm:$0xff] %v6802_v3 }
 0x4d0   :  { %2761 = vmatmul.f32.vlgmr.msra.gmra.mxu0 %v2616_v27  ;;  %2801 = vmatmul.f32.vlgmr.msrb.gmra.mxu2 %v2616_v27  ;;  %8708 = vst [vmem:[#allocation21_spill] sm:$0xff] %v6806_v26 }
 0x4d1   :  { %2994 = vmatpush.msra.mxu0 %v6752_v9  ;;  %3034 = vmatpush.msrb.mxu2 %v6754_v49 }
 0x4d2   :  { %3023 = vmatpush.msrb.mxu1 %v6758_v33  ;;  %3063 = vmatpush.msra.mxu3 %v6760_v57 }
 0x4d3   :  { %2995 = vmatpush.msra.mxu0 %v6762_v19  ;;  %3035 = vmatpush.msrb.mxu2 %v6764_v1 }
 0x4d4   :  { %3024 = vmatpush.msrb.mxu1 %v6768_v38  ;;  %3064 = vmatpush.msra.mxu3 %v6770_v51 }
 0x4d5   :  { %2996 = vmatpush.msra.mxu0 %v6774_v42  ;;  %3036 = vmatpush.msrb.mxu2 %v6776_v22 }
 0x4d6   :  { %3025 = vmatpush.msrb.mxu1 %v6780_v45  ;;  %3065 = vmatpush.msra.mxu3 %v6782_v52  ;;  %v6812_v52 = vld [vmem:[#allocation3 + $0x150] sm:$0xff]  ;;  %v2928_v45 = vadd.f32 %v8572_v47, %v2616_v27 }
 0x4d7   :  { %2997 = vmatpush.msra.mxu0 %v6786_v6  ;;  %3037 = vmatpush.msrb.mxu2 %v6788_v12  ;;  %8711 = vst [vmem:[#allocation29_spill] sm:$0xff] %v6812_v52  ;;  %v6816_v12 = vld [vmem:[#allocation3 + $0x28] sm:$0xff]  ;;  %v6818_v6 = vld [vmem:[#allocation3 + $0x38] sm:$0xff] }
 0x4d8   :  { %3026 = vmatpush.msrb.mxu1 %v6792_v55  ;;  %3066 = vmatpush.msra.mxu3 %v6794_v40  ;;  %8712 = vst [vmem:[#allocation57_spill] sm:$0xff] %v6816_v12  ;;  %v6822_v40 = vld [vmem:[#allocation3 + $0x120] sm:$0xff]  ;;  %v6824_v55 = vld [vmem:[#allocation3 + $0x130] sm:$0xff] }
 0x4d9   :  { %2841 = vmatmul.f32.vlgmr.msrb.gmra.mxu0 %v2616_v27  ;;  %2881 = vmatmul.f32.vlgmr.msra.gmra.mxu2 %v2616_v27  ;;  %8713 = vst [vmem:[#allocation51_spill] sm:$0xff] %v6818_v6  ;;  %v6839_v27 = vld [vmem:[#allocation3 + $0x110] sm:$0xff] }
 0x4da   :  { %2998 = vmatpush.msra.mxu0 %v6800_v8  ;;  %3038 = vmatpush.msrb.mxu2 %v6802_v3  ;;  %8714 = vst [vmem:[#allocation54_spill] sm:$0xff] %v6822_v40  ;;  %v6829_v8 = vld [vmem:[#allocation3 + $0x8] sm:$0xff]  ;;  %v6831_v3 = vld [vmem:[#allocation3 + $0x18] sm:$0xff] }
 0x4db   :  { %3027 = vmatpush.msrb.mxu1 %v6806_v26  ;;  %3067 = vmatpush.msra.mxu3 %v6808_v35  ;;  %8715 = vst [vmem:[#allocation35_spill] sm:$0xff] %v6829_v8  ;;  %v6835_v26 = vld [vmem:[#allocation3 + $0x100] sm:$0xff]  ;;  %v2926_v35 = vpop.permute.xlu0 %2925 }
 0x4dc   :  { %2999 = vmatpush.msra.mxu0 %v6810_v31  ;;  %3039 = vmatpush.msrb.mxu2 %v6812_v52  ;;  %8716 = vst [vmem:[#allocation28_spill] sm:$0xff] %v6831_v3  ;;  %v2929_v52 = vsel %vm75_vm2, %v2926_v35, %v2928_v45  ;;  %v6845_v31 = vld [vmem:[#allocation3 + $0xe0] sm:$0xff]  ;;  %v6860_v35 = vld [vmem:[#allocation3 + $0xd0] sm:$0xff]  ;;  %v6863_v45 = vld [vmem:[#allocation5 + $0x3c8] sm:$0xff] }
 0x4dd   :  { %3028 = vmatpush.msrb.mxu1 %v6816_v12  ;;  %3068 = vmatpush.msra.mxu3 %v6818_v6  ;;  %8717 = vst [vmem:[#allocation32_spill] sm:$0xff] %v6835_v26  ;;  %v6847_v12 = vld [vmem:[#allocation5 + $0x3e0] sm:$0xff]  ;;  %v6850_v6 = vld [vmem:[#allocation3 + $0xf0] sm:$0xff] }
 0x4de   :  { %3000 = vmatpush.msra.mxu0 %v6822_v40  ;;  %3040 = vmatpush.msrb.mxu2 %v6824_v55  ;;  %8718 = vst [vmem:[#allocation41_spill] sm:$0xff] %v6839_v27  ;;  %v6852_v40 = vld [vmem:[#allocation5 + $0x3e8] sm:$0xff] }
 0x4df   :  { %3029 = vmatpush.msrb.mxu1 %v6829_v8  ;;  %3069 = vmatpush.msra.mxu3 %v6831_v3  ;;  %8719 = vst [vmem:[#allocation24_spill] sm:$0xff] %v6845_v31  ;;  %v6855_v8 = vld [vmem:[#allocation3 + $0xc0] sm:$0xff] }
 0x4e0   :  { %8720 = vst [vmem:[#allocation31_spill] sm:$0xff] %v6847_v12  ;;  %3001 = vmatpush.msra.mxu0 %v6835_v26  ;;  %3030 = vmatmul.f32.vlgmr.msrb.gmra.mxu1 %v2929_v52  ;;  %v6857_v3 = vld [vmem:[#allocation5 + $0x3c0] sm:$0xff] }
 0x4e1   :  { %8721 = vst [vmem:[#allocation26_spill] sm:$0xff] %v6850_v6  ;;  %3041 = vmatpush.msrb.mxu2 %v6839_v27  ;;  %3070 = vmatmul.f32.vlgmr.msra.gmra.mxu3 %v2929_v52  ;;  %v6866_v26 = vld [vmem:[#allocation3 + $0xa0] sm:$0xff] }
 0x4e2   :  { %8722 = vst [vmem:[#allocation65_spill] sm:$0xff] %v6855_v8  ;;  %3002 = vmatpush.msra.mxu0 %v6845_v31  ;;  %3237 = vmatpush.msra.mxu1 %v6847_v12  ;;  %v6869_v27 = vld [vmem:[#allocation5 + $0x3a0] sm:$0xff]  ;;  %v6875_v31 = vld [vmem:[#allocation5 + $0x3a8] sm:$0xff] }
 0x4e3   :  { %8723 = vst [vmem:[#allocation38_spill] sm:$0xff] %v6857_v3  ;;  %3042 = vmatpush.msrb.mxu2 %v6850_v6  ;;  %3277 = vmatpush.msrb.mxu3 %v6852_v40  ;;  %v6878_v12 = vld [vmem:[#allocation3 + $0x80] sm:$0xff]  ;;  %v6882_v6 = vld [vmem:[#allocation3 + $0x90] sm:$0xff] }
 0x4e4   :  { %8724 = vst [vmem:[#allocation44_spill] sm:$0xff] %v6860_v35  ;;  %3003 = vmatpush.msra.mxu0 %v6855_v8  ;;  %3238 = vmatpush.msra.mxu1 %v6857_v3  ;;  %v6886_v8 = vld [vmem:[#allocation3 + $0x60] sm:$0xff]  ;;  %v6890_v3 = vld [vmem:[#allocation3 + $0x70] sm:$0xff] }
 0x4e5   :  { %8725 = vst [vmem:[#allocation55_spill] sm:$0xff] %v6866_v26  ;;  %3043 = vmatpush.msrb.mxu2 %v6860_v35  ;;  %3278 = vmatpush.msrb.mxu3 %v6863_v45  ;;  %v6893_v35 = vld [vmem:[#allocation3 + $0x40] sm:$0xff] }
 0x4e6   :  { %8726 = vst [vmem:[#allocation34_spill] sm:$0xff] %v6869_v27  ;;  %3004 = vmatpush.msra.mxu0 %v6866_v26  ;;  %3239 = vmatpush.msra.mxu1 %v6869_v27  ;;  %v6896_v26 = vld [vmem:[#allocation3 + $0x50] sm:$0xff]  ;;  %v6899_v27 = vld [vmem:[#allocation3 + $0x20] sm:$0xff] }
 0x4e7   :  { %8728 = vst [vmem:[#allocation60_spill] sm:$0xff] %v6878_v12  ;;  %3044 = vmatpush.msrb.mxu2 %v6872_v21  ;;  %3279 = vmatpush.msrb.mxu3 %v6875_v31  ;;  %v6902_v21 = vld [vmem:[#allocation3 + $0x30] sm:$0xff] }
 0x4e8   :  { %8729 = vst [vmem:[#allocation67_spill] sm:$0xff] %v6882_v6  ;;  %3005 = vmatpush.msra.mxu0 %v6878_v12  ;;  %v6905_v12 = vld [vmem:[#allocation3] sm:$0xff] }
 0x4e9   :  { %8730 = vst [vmem:[#allocation70_spill] sm:$0xff] %v6886_v8  ;;  %3045 = vmatpush.msrb.mxu2 %v6882_v6  ;;  %v6908_v6 = vld [vmem:[#allocation3 + $0x10] sm:$0xff] }
 0x4ea   :  { %8731 = vst [vmem:[#allocation74_spill] sm:$0xff] %v6890_v3  ;;  %3006 = vmatpush.msra.mxu0 %v6886_v8  ;;  %v6917_v8 = vld [vmem:[#allocation5 + $0x360] sm:$0xff] }
 0x4eb   :  { %8732 = vst [vmem:[#allocation53_spill] sm:$0xff] %v6893_v35  ;;  %3046 = vmatpush.msrb.mxu2 %v6890_v3  ;;  %v6913_v3 = vld [vmem:[#allocation5 + $0x380] sm:$0xff] }
 0x4ec   :  { %8733 = vst [vmem:[#allocation46_spill] sm:$0xff] %v6896_v26  ;;  %3007 = vmatpush.msra.mxu0 %v6893_v35  ;;  %v6915_v35 = vld [vmem:[#allocation5 + $0x388] sm:$0xff]  ;;  %3240 = vmatpush.msra.mxu1 %v6913_v3 }
 0x4ed   :  { %8734 = vst [vmem:[#allocation52_spill] sm:$0xff] %v6899_v27  ;;  %3047 = vmatpush.msrb.mxu2 %v6896_v26  ;;  %3280 = vmatpush.msrb.mxu3 %v6915_v35  ;;  %v6923_v26 = vld [vmem:[#allocation5 + $0x340] sm:$0xff] }
 0x4ee   :  { %8735 = vst [vmem:[#allocation58_spill] sm:$0xff] %v6902_v21  ;;  %3008 = vmatpush.msra.mxu0 %v6899_v27  ;;  %v6921_v27 = vld [vmem:[#allocation5 + $0x368] sm:$0xff]  ;;  %3241 = vmatpush.msra.mxu1 %v6917_v8 }
 0x4ef   :  { %8736 = vst [vmem:[#allocation76_spill] sm:$0xff] %v6905_v12  ;;  %3048 = vmatpush.msrb.mxu2 %v6902_v21  ;;  %v6925_v21 = vld [vmem:[#allocation5 + $0x348] sm:$0xff]  ;;  %3281 = vmatpush.msrb.mxu3 %v6921_v27 }
 0x4f0   :  { %8737 = vst [vmem:[#allocation37_spill] sm:$0xff] %v6908_v6  ;;  %3009 = vmatpush.msra.mxu0 %v6905_v12  ;;  %3242 = vmatpush.msra.mxu1 %v6923_v26  ;;  %v6937_v12 = vld [vmem:[#allocation5 + $0x300] sm:$0xff] }
 0x4f1   :  { %3049 = vmatpush.msrb.mxu2 %v6908_v6  ;;  %3010 = vmatmul.f32.vlgmr.msra.gmra.mxu0 %v2929_v52  ;;  %8738 = vst [vmem:[#allocation43_spill] sm:$0xff] %v6913_v3  ;;  %v6933_v6 = vld [vmem:[#allocation5 + $0x328] sm:$0xff]  ;;  %v6941_v3 = vld [vmem:[#allocation5 + $0x2e0] sm:$0xff] }
 0x4f2   :  { %3050 = vmatmul.f32.vlgmr.msrb.gmra.mxu2 %v2929_v52  ;;  %8739 = vst [vmem:[#allocation50_spill] sm:$0xff] %v6915_v35  ;;  %3282 = vmatpush.msrb.mxu3 %v6925_v21  ;;  %v6931_v52 = vld [vmem:[#allocation5 + $0x320] sm:$0xff]  ;;  %v6939_v35 = vld [vmem:[#allocation5 + $0x308] sm:$0xff] }
 0x4f3   :  { %8740 = vst [vmem:[#allocation62_spill] sm:$0xff] %v6917_v8  ;;  %3243 = vmatpush.msra.mxu1 %v6931_v52  ;;  %v6957_v8 = vld [vmem:[#allocation5 + $0x1c0] sm:$0xff] }
 0x4f4   :  { %8741 = vst [vmem:[#allocation49_spill] sm:$0xff] %v6921_v27  ;;  %3283 = vmatpush.msrb.mxu3 %v6933_v6  ;;  %v6949_v27 = vld [vmem:[#allocation5 + $0x1e8] sm:$0xff] }
 0x4f5   :  { %8742 = vst [vmem:[#allocation72_spill] sm:$0xff] %v6923_v26  ;;  %3244 = vmatpush.msra.mxu1 %v6937_v12  ;;  %v6945_v26 = vld [vmem:[#allocation5 + $0x2e8] sm:$0xff]  ;;  %3257 = vmatpush.msra.mxu2 %v6949_v27 }
 0x4f6   :  { %8743 = vst [vmem:[#allocation75_spill] sm:$0xff] %v6925_v21  ;;  %3284 = vmatpush.msrb.mxu3 %v6939_v35  ;;  %v6947_v21 = vld [vmem:[#allocation5 + $0x1e0] sm:$0xff] }
 0x4f7   :  { %8744 = vst [vmem:[#allocation56_spill] sm:$0xff] %v6931_v52  ;;  %3217 = vmatpush.msrb.mxu0 %v6947_v21  ;;  %v6955_v52 = vld [vmem:[#allocation5 + $0x2c8] sm:$0xff]  ;;  %3245 = vmatpush.msra.mxu1 %v6941_v3 }
 0x4f8   :  { %8745 = vst [vmem:[#allocation40_spill] sm:$0xff] %v6933_v6  ;;  %v6953_v6 = vld [vmem:[#allocation5 + $0x2c0] sm:$0xff]  ;;  %3285 = vmatpush.msrb.mxu3 %v6945_v26 }
 0x4f9   :  { %8746 = vst [vmem:[#allocation77_spill] sm:$0xff] %v6937_v12  ;;  %3218 = vmatpush.msrb.mxu0 %v6957_v8  ;;  %3246 = vmatpush.msra.mxu1 %v6953_v6  ;;  %v6971_v12 = vld [vmem:[#allocation5 + $0x1a0] sm:$0xff] }
 0x4fa   :  { %8747 = vst [vmem:[#allocation78_spill] sm:$0xff] %v6939_v35  ;;  %v6961_v35 = vld [vmem:[#allocation5 + $0x1c8] sm:$0xff]  ;;  %3286 = vmatpush.msrb.mxu3 %v6955_v52 }
 0x4fb   :  { %8748 = vst [vmem:[#allocation66_spill] sm:$0xff] %v6941_v3  ;;  %3258 = vmatpush.msra.mxu2 %v6961_v35  ;;  %v6977_v3 = vld [vmem:[#allocation5 + $0x280] sm:$0xff]  ;;  %3219 = vmatpush.msrb.mxu0 %v6971_v12 }
 0x4fc   :  { %8749 = vst [vmem:[#allocation64_spill] sm:$0xff] %v6945_v26  ;;  %v6975_v26 = vld [vmem:[#allocation5 + $0x1a8] sm:$0xff] }
 0x4fd   :  { %8750 = vst [vmem:[#allocation59_spill] sm:$0xff] %v6947_v21  ;;  %v6969_v21 = vld [vmem:[#allocation5 + $0x2a8] sm:$0xff]  ;;  %3259 = vmatpush.msra.mxu2 %v6975_v26 }
 0x4fe   :  { %8751 = vst [vmem:[#allocation68_spill] sm:$0xff] %v6949_v27  ;;  %v6967_v27 = vld [vmem:[#allocation5 + $0x2a0] sm:$0xff]  ;;  %3287 = vmatpush.msrb.mxu3 %v6969_v21 }
 0x4ff   :  { %8752 = vst [vmem:[#allocation61_spill] sm:$0xff] %v6955_v52  ;;  %3247 = vmatpush.msra.mxu1 %v6967_v27  ;;  %v6985_v52 = vld [vmem:[#allocation5 + $0x180] sm:$0xff] }
 0x500   :  { %8753 = vst [vmem:[#allocation79_spill] sm:$0xff] %v6957_v8  ;;  %v6979_v8 = vld [vmem:[#allocation5 + $0x288] sm:$0xff]  ;;  %3220 = vmatpush.msrb.mxu0 %v6985_v52 }
 0x501   :  { %8754 = vst [vmem:[#allocation63_spill] sm:$0xff] %v6961_v35  ;;  %3248 = vmatpush.msra.mxu1 %v6977_v3  ;;  %3288 = vmatpush.msrb.mxu3 %v6979_v8  ;;  %v6987_v35 = vld [vmem:[#allocation5 + $0x188] sm:$0xff] }
 0x502   :  { %8755 = vst [vmem:[#allocation80_spill] sm:$0xff] %v6967_v27  ;;  %3260 = vmatpush.msra.mxu2 %v6987_v35  ;;  %v6993_v27 = vld [vmem:[#allocation5 + $0x268] sm:$0xff] }
 0x503   :  { %8756 = vst [vmem:[#allocation85_spill] sm:$0xff] %v6969_v21  ;;  %v6991_v21 = vld [vmem:[#allocation5 + $0x260] sm:$0xff]  ;;  %3289 = vmatpush.msrb.mxu3 %v6993_v27 }
 0x504   :  { %8757 = vst [vmem:[#allocation71_spill] sm:$0xff] %v6971_v12  ;;  %3249 = vmatpush.msra.mxu1 %v6991_v21  ;;  %v7053_v12 = vld [vmem:[#allocation5 + $0x3d8] sm:$0xff] }
 0x505   :  { %8758 = vst [vmem:[#allocation69_spill] sm:$0xff] %v6975_v26  ;;  %v6997_v26 = vld [vmem:[#allocation5 + $0x160] sm:$0xff] }
 0x506   :  { %8759 = vst [vmem:[#allocation81_spill] sm:$0xff] %v6977_v3  ;;  %v6999_v3 = vld [vmem:[#allocation5 + $0x168] sm:$0xff]  ;;  %3221 = vmatpush.msrb.mxu0 %v6997_v26 }
 0x507   :  { %8760 = vst [vmem:[#allocation82_spill] sm:$0xff] %v6979_v8  ;;  %3261 = vmatpush.msra.mxu2 %v6999_v3  ;;  %v7003_v8 = vld [vmem:[#allocation5 + $0x240] sm:$0xff] }
 0x508   :  { %8761 = vst [vmem:[#allocation84_spill] sm:$0xff] %v6985_v52  ;;  %v7005_v52 = vld [vmem:[#allocation5 + $0x248] sm:$0xff]  ;;  %3250 = vmatpush.msra.mxu1 %v7003_v8 }
 0x509   :  { %8762 = vst [vmem:[#allocation73_spill] sm:$0xff] %v6987_v35  ;;  %3290 = vmatpush.msrb.mxu3 %v7005_v52  ;;  %v7009_v35 = vld [vmem:[#allocation5 + $0x140] sm:$0xff] }
 0x50a   :  { %8763 = vst [vmem:[#allocation83_spill] sm:$0xff] %v6991_v21  ;;  %v7011_v21 = vld [vmem:[#allocation5 + $0x148] sm:$0xff]  ;;  %3222 = vmatpush.msrb.mxu0 %v7009_v35 }
 0x50b   :  { %8764 = vst [vmem:[#allocation87_spill] sm:$0xff] %v6993_v27  ;;  %3262 = vmatpush.msra.mxu2 %v7011_v21  ;;  %v7015_v27 = vld [vmem:[#allocation5 + $0x220] sm:$0xff] }
 0x50c   :  { %8765 = vst [vmem:[#allocation10_spill] sm:$0xff] %v6997_v26  ;;  %v7017_v26 = vld [vmem:[#allocation5 + $0x228] sm:$0xff]  ;;  %3251 = vmatpush.msra.mxu1 %v7015_v27 }
 0x50d   :  { %8766 = vst [vmem:[#allocation89_spill] sm:$0xff] %v6999_v3  ;;  %3291 = vmatpush.msrb.mxu3 %v7017_v26  ;;  %v7021_v3 = vld [vmem:[#allocation5 + $0x120] sm:$0xff] }
 0x50e   :  { %8767 = vst [vmem:[#allocation90_spill] sm:$0xff] %v7003_v8  ;;  %v7023_v8 = vld [vmem:[#allocation5 + $0x128] sm:$0xff]  ;;  %3223 = vmatpush.msrb.mxu0 %v7021_v3 }
 0x50f   :  { %8768 = vst [vmem:[#allocation12_spill] sm:$0xff] %v7005_v52  ;;  %3263 = vmatpush.msra.mxu2 %v7023_v8  ;;  %v7027_v52 = vld [vmem:[#allocation5 + $0x200] sm:$0xff] }
 0x510   :  { %8769 = vst [vmem:[#allocation86_spill] sm:$0xff] %v7009_v35  ;;  %v7029_v35 = vld [vmem:[#allocation5 + $0x208] sm:$0xff]  ;;  %3252 = vmatpush.msra.mxu1 %v7027_v52 }
 0x511   :  { %8770 = vst [vmem:[#allocation13_spill] sm:$0xff] %v7011_v21  ;;  %3292 = vmatpush.msrb.mxu3 %v7029_v35  ;;  %v7033_v21 = vld [vmem:[#allocation5 + $0x100] sm:$0xff] }
 0x512   :  { %8771 = vst [vmem:[#allocation14_spill] sm:$0xff] %v7015_v27  ;;  %v7035_v27 = vld [vmem:[#allocation5 + $0x108] sm:$0xff]  ;;  %3224 = vmatpush.msrb.mxu0 %v7033_v21 }
 0x513   :  { %8772 = vst [vmem:[#allocation88_spill] sm:$0xff] %v7017_v26  ;;  %v7037_v26 = vld [vmem:[#allocation5 + $0x3f0] sm:$0xff]  ;;  %3264 = vmatpush.msra.mxu2 %v7035_v27 }
 0x514   :  { %8773 = vst [vmem:[#allocation93_spill] sm:$0xff] %v7021_v3  ;;  %v7041_v3 = vld [vmem:[#allocation5 + $0x3f8] sm:$0xff]  ;;  %3317 = vmatpush.msrb.mxu1 %v7037_v26 }
 0x515   :  { %8774 = vst [vmem:[#allocation91_spill] sm:$0xff] %v7023_v8  ;;  %3357 = vmatpush.msra.mxu3 %v7041_v3  ;;  %v7045_v8 = vld [vmem:[#allocation5 + $0xe0] sm:$0xff] }
 0x516   :  { %8775 = vst [vmem:[#allocation92_spill] sm:$0xff] %v7027_v52  ;;  %v7047_v52 = vld [vmem:[#allocation5 + $0xe8] sm:$0xff]  ;;  %3225 = vmatpush.msrb.mxu0 %v7045_v8 }
 0x517   :  { %8776 = vst [vmem:[#allocation94_spill] sm:$0xff] %v7029_v35  ;;  %v7049_v35 = vld [vmem:[#allocation5 + $0x3d0] sm:$0xff]  ;;  %3265 = vmatpush.msra.mxu2 %v7047_v52  ;;  %3358 = vmatpush.msra.mxu3 %v7053_v12 }
 0x518   :  { %8777 = vst [vmem:[#allocation95_spill] sm:$0xff] %v7033_v21  ;;  %3318 = vmatpush.msrb.mxu1 %v7049_v35  ;;  %v7065_v21 = vld [vmem:[#allocation5 + $0x3b8] sm:$0xff] }
 0x519   :  { %8778 = vst [vmem:[#allocation96_spill] sm:$0xff] %v7035_v27  ;;  %v7057_v27 = vld [vmem:[#allocation5 + $0xc0] sm:$0xff]  ;;  %3359 = vmatpush.msra.mxu3 %v7065_v21 }
 0x51a   :  { %8779 = vst [vmem:[#allocation97_spill] sm:$0xff] %v7037_v26  ;;  %v7059_v26 = vld [vmem:[#allocation5 + $0xc8] sm:$0xff]  ;;  %3226 = vmatpush.msrb.mxu0 %v7057_v27 }
 0x51b   :  { %8780 = vst [vmem:[#allocation98_spill] sm:$0xff] %v7041_v3  ;;  %v7061_v3 = vld [vmem:[#allocation5 + $0x3b0] sm:$0xff]  ;;  %3266 = vmatpush.msra.mxu2 %v7059_v26 }
 0x51c   :  { %8781 = vst [vmem:[#allocation99_spill] sm:$0xff] %v7045_v8  ;;  %3319 = vmatpush.msrb.mxu1 %v7061_v3  ;;  %v7077_v8 = vld [vmem:[#allocation5 + $0x398] sm:$0xff] }
 0x51d   :  { %8782 = vst [vmem:[#allocation100_spill] sm:$0xff] %v7047_v52  ;;  %v7069_v52 = vld [vmem:[#allocation5 + $0xa0] sm:$0xff]  ;;  %3360 = vmatpush.msra.mxu3 %v7077_v8 }
 0x51e   :  { %8783 = vst [vmem:[#allocation101_spill] sm:$0xff] %v7049_v35  ;;  %v7071_v35 = vld [vmem:[#allocation5 + $0xa8] sm:$0xff]  ;;  %3227 = vmatpush.msrb.mxu0 %v7069_v52 }
 0x51f   :  { %8784 = vst [vmem:[#allocation102_spill] sm:$0xff] %v7053_v12  ;;  %v7073_v12 = vld [vmem:[#allocation5 + $0x390] sm:$0xff]  ;;  %3267 = vmatpush.msra.mxu2 %v7071_v35 }
 0x520   :  { %8785 = vst [vmem:[#allocation103_spill] sm:$0xff] %v7057_v27  ;;  %3320 = vmatpush.msrb.mxu1 %v7073_v12  ;;  %v7089_v27 = vld [vmem:[#allocation5 + $0x378] sm:$0xff] }
 0x521   :  { %8786 = vst [vmem:[#allocation104_spill] sm:$0xff] %v7059_v26  ;;  %v7081_v26 = vld [vmem:[#allocation5 + $0x80] sm:$0xff]  ;;  %3361 = vmatpush.msra.mxu3 %v7089_v27 }
 0x522   :  { %8787 = vst [vmem:[#allocation105_spill] sm:$0xff] %v7061_v3  ;;  %v7083_v3 = vld [vmem:[#allocation5 + $0x88] sm:$0xff]  ;;  %3228 = vmatpush.msrb.mxu0 %v7081_v26 }
 0x523   :  { %8788 = vst [vmem:[#allocation106_spill] sm:$0xff] %v7065_v21  ;;  %v7085_v21 = vld [vmem:[#allocation5 + $0x370] sm:$0xff]  ;;  %3268 = vmatpush.msra.mxu2 %v7083_v3 }
 0x524   :  { %8789 = vst [vmem:[#allocation107_spill] sm:$0xff] %v7069_v52  ;;  %3321 = vmatpush.msrb.mxu1 %v7085_v21  ;;  %v7101_v52 = vld [vmem:[#allocation5 + $0x358] sm:$0xff] }
 0x525   :  { %8790 = vst [vmem:[#allocation108_spill] sm:$0xff] %v7071_v35  ;;  %v7093_v35 = vld [vmem:[#allocation5 + $0x60] sm:$0xff]  ;;  %3362 = vmatpush.msra.mxu3 %v7101_v52 }
 0x526   :  { %8791 = vst [vmem:[#allocation109_spill] sm:$0xff] %v7073_v12  ;;  %v7095_v12 = vld [vmem:[#allocation5 + $0x68] sm:$0xff]  ;;  %3229 = vmatpush.msrb.mxu0 %v7093_v35 }
 0x527   :  { %8792 = vst [vmem:[#allocation110_spill] sm:$0xff] %v7077_v8  ;;  %v7097_v8 = vld [vmem:[#allocation5 + $0x350] sm:$0xff]  ;;  %3269 = vmatpush.msra.mxu2 %v7095_v12 }
 0x528   :  { %8793 = vst [vmem:[#allocation111_spill] sm:$0xff] %v7081_v26  ;;  %3322 = vmatpush.msrb.mxu1 %v7097_v8  ;;  %v7113_v26 = vld [vmem:[#allocation5 + $0x338] sm:$0xff] }
 0x529   :  { %8794 = vst [vmem:[#allocation112_spill] sm:$0xff] %v7083_v3  ;;  %v7105_v3 = vld [vmem:[#allocation5 + $0x40] sm:$0xff]  ;;  %3363 = vmatpush.msra.mxu3 %v7113_v26 }
 0x52a   :  { %8795 = vst [vmem:[#allocation113_spill] sm:$0xff] %v7085_v21  ;;  %v7107_v21 = vld [vmem:[#allocation5 + $0x48] sm:$0xff]  ;;  %3230 = vmatpush.msrb.mxu0 %v7105_v3 }
 0x52b   :  { %8796 = vst [vmem:[#allocation114_spill] sm:$0xff] %v7089_v27  ;;  %v7109_v27 = vld [vmem:[#allocation5 + $0x330] sm:$0xff]  ;;  %3270 = vmatpush.msra.mxu2 %v7107_v21 }
 0x52c   :  { %8797 = vst [vmem:[#allocation115_spill] sm:$0xff] %v7093_v35  ;;  %3323 = vmatpush.msrb.mxu1 %v7109_v27  ;;  %v7125_v35 = vld [vmem:[#allocation5 + $0x318] sm:$0xff] }
 0x52d   :  { %8798 = vst [vmem:[#allocation116_spill] sm:$0xff] %v7095_v12  ;;  %v7117_v12 = vld [vmem:[#allocation5 + $0x20] sm:$0xff]  ;;  %3364 = vmatpush.msra.mxu3 %v7125_v35 }
 0x52e   :  { %8799 = vst [vmem:[#allocation117_spill] sm:$0xff] %v7097_v8  ;;  %v7119_v8 = vld [vmem:[#allocation5 + $0x28] sm:$0xff]  ;;  %3231 = vmatpush.msrb.mxu0 %v7117_v12 }
 0x52f   :  { %8800 = vst [vmem:[#allocation118_spill] sm:$0xff] %v7101_v52  ;;  %v7121_v52 = vld [vmem:[#allocation5 + $0x310] sm:$0xff]  ;;  %3271 = vmatpush.msra.mxu2 %v7119_v8 }
 0x530   :  { %8801 = vst [vmem:[#allocation119_spill] sm:$0xff] %v7105_v3  ;;  %3324 = vmatpush.msrb.mxu1 %v7121_v52  ;;  %v7137_v3 = vld [vmem:[#allocation5 + $0x2f8] sm:$0xff] }
 0x531   :  { %8802 = vst [vmem:[#allocation120_spill] sm:$0xff] %v7107_v21  ;;  %v7129_v21 = vld [vmem:[#allocation5] sm:$0xff]  ;;  %3365 = vmatpush.msra.mxu3 %v7137_v3 }
 0x532   :  { %8803 = vst [vmem:[#allocation121_spill] sm:$0xff] %v7109_v27  ;;  %v7131_v27 = vld [vmem:[#allocation5 + $0x8] sm:$0xff]  ;;  %3232 = vmatpush.msrb.mxu0 %v7129_v21 }
 0x533   :  { %8804 = vst [vmem:[#allocation122_spill] sm:$0xff] %v7113_v26  ;;  %v7133_v26 = vld [vmem:[#allocation5 + $0x2f0] sm:$0xff]  ;;  %3272 = vmatpush.msra.mxu2 %v7131_v27 }
 0x534   :  { %8805 = vst [vmem:[#allocation123_spill] sm:$0xff] %v7117_v12  ;;  %v7139_v12 = vld [vmem:[#allocation5 + $0x1f8] sm:$0xff]  ;;  %3325 = vmatpush.msrb.mxu1 %v7133_v26  ;;  %3297 = vmatpush.msra.mxu0 %v6634_v29 }
 0x535   :  { %8806 = vst [vmem:[#allocation124_spill] sm:$0xff] %v7119_v8  ;;  %3337 = vmatpush.msrb.mxu2 %v7139_v12  ;;  %v7149_v8 = vld [vmem:[#allocation5 + $0x1d8] sm:$0xff] }
 0x536   :  { %8807 = vst [vmem:[#allocation125_spill] sm:$0xff] %v7121_v52  ;;  %v7143_v52 = vld [vmem:[#allocation5 + $0x2d0] sm:$0xff]  ;;  %3298 = vmatpush.msra.mxu0 %v6637_v61  ;;  %v7163_v29 = vld [vmem:[#allocation5 + $0x298] sm:$0xff] }
 0x537   :  { %8808 = vst [vmem:[#allocation126_spill] sm:$0xff] %v7125_v35  ;;  %v7145_v35 = vld [vmem:[#allocation5 + $0x2d8] sm:$0xff]  ;;  %3326 = vmatpush.msrb.mxu1 %v7143_v52  ;;  %3338 = vmatpush.msrb.mxu2 %v7149_v8  ;;  %v7173_v61 = vld [vmem:[#allocation5 + $0x270] sm:$0xff] }
 0x538   :  { %8809 = vst [vmem:[#allocation127_spill] sm:$0xff] %v7129_v21  ;;  %3366 = vmatpush.msra.mxu3 %v7145_v35  ;;  %v7155_v21 = vld [vmem:[#allocation5 + $0x2b8] sm:$0xff]  ;;  %3299 = vmatpush.msra.mxu0 %v6640_v20 }
 0x539   :  { %8810 = vst [vmem:[#allocation128_spill] sm:$0xff] %v7131_v27  ;;  %v7153_v27 = vld [vmem:[#allocation5 + $0x2b0] sm:$0xff] }
 0x53a   :  { %8811 = vst [vmem:[#allocation129_spill] sm:$0xff] %v7133_v26  ;;  %v7161_v26 = vld [vmem:[#allocation5 + $0x290] sm:$0xff]  ;;  %3327 = vmatpush.msrb.mxu1 %v7153_v27  ;;  %3367 = vmatpush.msra.mxu3 %v7155_v21 }
 0x53b   :  { %8812 = vst [vmem:[#allocation130_spill] sm:$0xff] %v7137_v3  ;;  %v7159_v3 = vld [vmem:[#allocation5 + $0x1b8] sm:$0xff]  ;;  %3300 = vmatpush.msra.mxu0 %v6643_v14 }
 0x53c   :  { %8813 = vst [vmem:[#allocation131_spill] sm:$0xff] %v7143_v52  ;;  %3339 = vmatpush.msrb.mxu2 %v7159_v3  ;;  %3328 = vmatpush.msrb.mxu1 %v7161_v26 }
 0x53d   :  { %8814 = vst [vmem:[#allocation132_spill] sm:$0xff] %v7145_v35  ;;  %v7169_v35 = vld [vmem:[#allocation5 + $0x198] sm:$0xff]  ;;  %3368 = vmatpush.msra.mxu3 %v7163_v29  ;;  %3301 = vmatpush.msra.mxu0 %v6646_v60 }
 0x53e   :  { %8815 = vst [vmem:[#allocation133_spill] sm:$0xff] %v7149_v8  ;;  %v7175_v8 = vld [vmem:[#allocation5 + $0x278] sm:$0xff]  ;;  %3340 = vmatpush.msrb.mxu2 %v7169_v35  ;;  %3329 = vmatpush.msrb.mxu1 %v7173_v61 }
 0x53f   :  { %8816 = vst [vmem:[#allocation134_spill] sm:$0xff] %v7153_v27  ;;  %3369 = vmatpush.msra.mxu3 %v7175_v8  ;;  %3302 = vmatpush.msra.mxu0 %v6650_v39  ;;  %v7201_v60 = vld [vmem:[#allocation5 + $0x138] sm:$0xff] }
 0x540   :  { %8817 = vst [vmem:[#allocation135_spill] sm:$0xff] %v7155_v21  ;;  %v7179_v21 = vld [vmem:[#allocation5 + $0x178] sm:$0xff] }
 0x541   :  { %8818 = vst [vmem:[#allocation136_spill] sm:$0xff] %v7159_v3  ;;  %v7184_v3 = vld [vmem:[#allocation5 + $0x250] sm:$0xff]  ;;  %3341 = vmatpush.msrb.mxu2 %v7179_v21  ;;  %3303 = vmatpush.msra.mxu0 %v6654_v58  ;;  %v7217_v39 = vld [vmem:[#allocation5 + $0xf8] sm:$0xff] }
 0x542   :  { %8819 = vst [vmem:[#allocation137_spill] sm:$0xff] %v7161_v26  ;;  %v7186_v26 = vld [vmem:[#allocation5 + $0x258] sm:$0xff]  ;;  %3330 = vmatpush.msrb.mxu1 %v7184_v3 }
 0x543   :  { %8820 = vst [vmem:[#allocation138_spill] sm:$0xff] %v7163_v29  ;;  %v7190_v29 = vld [vmem:[#allocation5 + $0x158] sm:$0xff]  ;;  %3370 = vmatpush.msra.mxu3 %v7186_v26  ;;  %3304 = vmatpush.msra.mxu0 %v6657_v11 }
 0x544   :  { %8821 = vst [vmem:[#allocation139_spill] sm:$0xff] %v7169_v35  ;;  %3342 = vmatpush.msrb.mxu2 %v7190_v29  ;;  %v7221_v58 = vld [vmem:[#allocation5 + $0xd8] sm:$0xff] }
 0x545   :  { %8822 = vst [vmem:[#allocation140_spill] sm:$0xff] %v7173_v61  ;;  %v2822_v61 = vpop.f32.mrf.mxu3  ;;  %3305 = vmatpush.msra.mxu0 %v6660_v59  ;;  %v7226_v11 = vld [vmem:[#allocation5 + $0xb8] sm:$0xff] }
 0x546   :  { %8823 = vst [vmem:[#allocation141_spill] sm:$0xff] %v7175_v8  ;;  %v2782_v8 = vpop.f32.mrf.mxu1  ;;  %3343 = vmatpush.msrb.mxu2 %v7201_v60  ;;  %v7231_v59 = vld [vmem:[#allocation5 + $0x98] sm:$0xff] }
 0x547   :  { %8824 = vst [vmem:[#allocation142_spill] sm:$0xff] %v7179_v21  ;;  %3306 = vmatpush.msra.mxu0 %v6663_v10  ;;  %v7235_v10 = vld [vmem:[#allocation5 + $0x78] sm:$0xff] }
 0x548   :  { %8825 = vst [vmem:[#allocation143_spill] sm:$0xff] %v7184_v3  ;;  %v7207_v3 = vld [vmem:[#allocation5 + $0x218] sm:$0xff] }
 0x549   :  { %8826 = vst [vmem:[#allocation144_spill] sm:$0xff] %v7186_v26  ;;  %v7205_v26 = vld [vmem:[#allocation5 + $0x210] sm:$0xff]  ;;  %3307 = vmatpush.msra.mxu0 %v6667_v17  ;;  %v7239_v17 = vld [vmem:[#allocation5 + $0x58] sm:$0xff] }
 0x54a   :  { %8828 = vst [vmem:[#allocation146_spill] sm:$0xff] %v7217_v39 }
 0x54b   :  { %3308 = vmatpush.msra.mxu0 %v6671_v18  ;;  %8829 = vst [vmem:[#allocation148_spill] sm:$0xff] %v7239_v17  ;;  %v7245_v18 = vld [vmem:[#allocation5 + $0x18] sm:$0xff] }
 0x54d   :  { %v2762_v52 = vpop.f32.mrf.mxu0  ;;  %3309 = vmatpush.msra.mxu0 %v6674_v23 }
 0x54e   :  { %v2763_v20 = vadd.f32 %v2762_v52, %v8695_v54  ;;  %v7194_v52 = vld [vmem:[#allocation5 + $0x230] sm:$0xff]  ;;  %v7196_v54 = vld [vmem:[#allocation5 + $0x238] sm:$0xff] }
 0x54f   :  { %3331 = vmatpush.msrb.mxu1 %v7194_v52  ;;  %3371 = vmatpush.msra.mxu3 %v7196_v54 }
 0x550   :  { %v2783_v21 = vadd.f32 %v2782_v8, %v2763_v20  ;;  %3310 = vmatpush.msra.mxu0 %v6677_v24 }
 0x551   :  { %3332 = vmatpush.msrb.mxu1 %v7205_v26  ;;  %3372 = vmatpush.msra.mxu3 %v7207_v3 }
 0x552   :  { %3311 = vmatpush.msra.mxu0 %v6680_v34 }
 0x553   :  { %v2802_v14 = vpop.f32.mrf.mxu2 }
 0x554   :  { %v2803_v35 = vadd.f32 %v2802_v14, %v8696_v50  ;;  %v7211_v14 = vld [vmem:[#allocation5 + $0x118] sm:$0xff]  ;;  %v2902_v50 = vpop.f32.mrf.mxu3  ;;  %3312 = vmatpush.msra.mxu0 %v6683_v0 }
 0x555   :  { %8827 = vst [vmem:[#allocation145_spill] sm:$0xff] %v7211_v14  ;;  %3344 = vmatpush.msrb.mxu2 %v7211_v14 }
 0x556   :  { %v2823_v27 = vadd.f32 %v2822_v61, %v2803_v35  ;;  %v2842_v8 = vpop.f32.mrf.mxu0 }
 0x557   :  { %3345 = vmatpush.msrb.mxu2 %v7217_v39  ;;  %v2843_v35 = vadd.f32 %v2842_v8, %v8697_v63 }
 0x558   :  { %4084 = vtanh.f32 %v2823_v27 }
 0x559   :  { %4086 = vtanh.f32 %v2783_v21  ;;  %3346 = vmatpush.msrb.mxu2 %v7221_v58  ;;  %v2862_v21 = vpop.f32.mrf.mxu1 }
 0x55a   :  { %v2863_v14 = vadd.f32 %v2862_v21, %v2843_v35 }
 0x55b   :  { %3347 = vmatpush.msrb.mxu2 %v7226_v11 }
 0x55c   :  { %v2882_v61 = vpop.f32.mrf.mxu2 }
 0x55d   :  { %v2883_v27 = vadd.f32 %v2882_v61, %v8698_v46  ;;  %3348 = vmatpush.msrb.mxu2 %v7231_v59 }
 0x55e   :  { %v4085_v20 = vpop.eup %4084 }
 0x55f   :  { %v4087_v39 = vpop.eup %4086  ;;  %v2903_v8 = vadd.f32 %v2902_v50, %v2883_v27  ;;  %v2910_v63 = vmul.f32 0.5, %v4085_v20  ;;  %3349 = vmatpush.msrb.mxu2 %v7235_v10  ;;  %v7243_v50 = vld [vmem:[#allocation5 + $0x38] sm:$0xff] }
 0x560   :  { %v2909_v61 = vmul.f32 0.5, %v4087_v39  ;;  %8830 = vst [vmem:[#allocation150_spill] sm:$0xff] %v7243_v50 }
 0x561   :  { %4088 = vtanh.f32 %v2903_v8  ;;  %v2913_v46 = vadd.f32 0.5, %v2910_v63  ;;  %3350 = vmatpush.msrb.mxu2 %v7239_v17  ;;  %v3031_v27 = vpop.f32.mrf.mxu1 }
 0x562   :  { %4090 = vtanh.f32 %v2863_v14  ;;  %v2912_v35 = vadd.f32 0.5, %v2909_v61 }
 0x563   :  { %3351 = vmatpush.msrb.mxu2 %v7243_v50  ;;  %v2915_v39 = vmul.f32 %v2913_v46, %v6687_v7  ;;  %4092 = vtanh.f32 %v3031_v27 }
 0x564   :  { %v3071_v34 = vpop.f32.mrf.mxu3 }
 0x565   :  { %3352 = vmatpush.msrb.mxu2 %v7245_v18 }
 0x567   :  { %v4089_v23 = vpop.eup %4088 }
 0x568   :  { %v2916_v20 = vmul.f32 %v4089_v23, %v2912_v35  ;;  %v4091_v63 = vpop.eup %4090 }
 0x569   :  { %v2911_v14 = vmul.f32 0.5, %v4091_v63  ;;  %v4093_v8 = vpop.eup %4092 }
 0x56a   :  { %v7252_v24 = vadd.f32 %v2916_v20, %v2915_v39  ;;  %v3079_v17 = vmul.f32 0.5, %v4093_v8  ;;  %v8857_v8 = vld [vmem:[#allocation55_spill] sm:$0xff] }
 0x56b   :  { %v2914_v61 = vadd.f32 0.5, %v2911_v14  ;;  %v8855_v14 = vld [vmem:[#allocation38_spill] sm:$0xff] }
 0x56c   :  { %4094 = vtanh.f32 %v7252_v24  ;;  %v3082_v35 = vadd.f32 0.5, %v3079_v17 }
 0x56e   :  { %v3011_v21 = vpop.f32.mrf.mxu0  ;;  %v3084_v39 = vmul.f32 %v3082_v35, %v6721_v28  ;;  %v8837_v28 = vld [vmem:[#allocation22_spill] sm:$0xff] }
 0x56f   :  { %4096 = vtanh.f32 %v3011_v21  ;;  %v8856_v21 = vld [vmem:[#allocation44_spill] sm:$0xff]  ;;  %v8863_v35 = vld [vmem:[#allocation50_spill] sm:$0xff] }
 0x570   :  { %4098 = vtanh.f32 %v3071_v34  ;;  %v8858_v34 = vld [vmem:[#allocation34_spill] sm:$0xff] }
 0x572   :  { %v4095_v50 = vpop.eup %4094 }
 0x573   :  { %v7255_v46 = vmul.f32 %v4095_v50, %v2914_v61  ;;  %v8859_v61 = vld [vmem:[#allocation47_spill] sm:$0xff] }
 0x575   :  { %v4097_v0 = vpop.eup %4096  ;;  %v3051_v7 = vpop.f32.mrf.mxu2  ;;  %3253 = vmatmul.f32.vlgmr.msra.gmra.mxu1 %v7255_v46  ;;  %3293 = vmatmul.f32.vlgmr.msrb.gmra.mxu3 %v7255_v46 }
 0x576   :  { %v3078_v27 = vmul.f32 0.5, %v4097_v0  ;;  %4100 = vtanh.f32 %v3051_v7  ;;  %3486 = vmatpush.msra.mxu1 %v6692_v48  ;;  %3526 = vmatpush.msrb.mxu3 %v6694_v43  ;;  %v4099_v50 = vpop.eup %4098  ;;  %v8860_v0 = vld [vmem:[#allocation60_spill] sm:$0xff]  ;;  %v8861_v7 = vld [vmem:[#allocation43_spill] sm:$0xff] }
 0x578   :  { %v3081_v23 = vadd.f32 0.5, %v3078_v27  ;;  %3487 = vmatpush.msra.mxu1 %v6698_v32  ;;  %3527 = vmatpush.msrb.mxu3 %v6700_v25  ;;  %v8864_v27 = vld [vmem:[#allocation70_spill] sm:$0xff] }
 0x57a   :  { %v3085_v20 = vmul.f32 %v4099_v50, %v3081_v23  ;;  %3488 = vmatpush.msra.mxu1 %v6704_v44  ;;  %3528 = vmatpush.msrb.mxu3 %v6706_v16  ;;  %v8831_v44 = vld [vmem:[#allocation42_spill] sm:$0xff]  ;;  %v8867_v50 = vld [vmem:[#allocation49_spill] sm:$0xff] }
 0x57b   :  { %v8832_v16 = vld [vmem:[#allocation18_spill] sm:$0xff] }
 0x57c   :  { %v4101_v17 = vpop.eup %4100  ;;  %v7266_v63 = vadd.f32 %v3085_v20, %v3084_v39  ;;  %3489 = vmatpush.msra.mxu1 %v6710_v53  ;;  %3529 = vmatpush.msrb.mxu3 %v6712_v56  ;;  %v8833_v53 = vld [vmem:[#allocation39_spill] sm:$0xff]  ;;  %v8834_v56 = vld [vmem:[#allocation45_spill] sm:$0xff]  ;;  %v8865_v23 = vld [vmem:[#allocation62_spill] sm:$0xff] }
 0x57d   :  { %3333 = vmatmul.f32.vlgmr.msrb.gmra.mxu1 %v7255_v46  ;;  %3373 = vmatmul.f32.vlgmr.msra.gmra.mxu3 %v7255_v46  ;;  %v3080_v48 = vmul.f32 0.5, %v4101_v17  ;;  %v8868_v39 = vld [vmem:[#allocation53_spill] sm:$0xff]  ;;  %v8869_v20 = vld [vmem:[#allocation72_spill] sm:$0xff]  ;;  %v8871_v17 = vld [vmem:[#allocation75_spill] sm:$0xff] }
 0x57e   :  { %4102 = vtanh.f32 %v7266_v63  ;;  %3490 = vmatpush.msra.mxu1 %v6717_v41  ;;  %3530 = vmatpush.msrb.mxu3 %v6719_v15  ;;  %v8835_v41 = vld [vmem:[#allocation48_spill] sm:$0xff] }
 0x57f   :  { %v3083_v43 = vadd.f32 0.5, %v3080_v48  ;;  %v8836_v15 = vld [vmem:[#allocation20_spill] sm:$0xff] }
 0x580   :  { %3491 = vmatpush.msra.mxu1 %v6727_v37  ;;  %3531 = vmatpush.msrb.mxu3 %v6729_v4  ;;  %v8838_v37 = vld [vmem:[#allocation27_spill] sm:$0xff]  ;;  %v8839_v4 = vld [vmem:[#allocation21_spill] sm:$0xff]  ;;  %v8872_v48 = vld [vmem:[#allocation52_spill] sm:$0xff] }
 0x582   :  { %3492 = vmatpush.msra.mxu1 %v6734_v13  ;;  %3532 = vmatpush.msrb.mxu3 %v6736_v30  ;;  %v8840_v13 = vld [vmem:[#allocation23_spill] sm:$0xff] }
 0x584   :  { %v4103_v32 = vpop.eup %4102  ;;  %3493 = vmatpush.msra.mxu1 %v6740_v36  ;;  %3533 = vmatpush.msrb.mxu3 %v6742_v62  ;;  %v8841_v36 = vld [vmem:[#allocation25_spill] sm:$0xff] }
 0x585   :  { %v3088_v25 = vmul.f32 %v4103_v32, %v3083_v43  ;;  %v8842_v62 = vld [vmem:[#allocation29_spill] sm:$0xff]  ;;  %v8873_v43 = vld [vmem:[#allocation56_spill] sm:$0xff]  ;;  %v8874_v32 = vld [vmem:[#allocation58_spill] sm:$0xff] }
 0x586   :  { %3494 = vmatpush.msra.mxu1 %v6746_v5  ;;  %3534 = vmatpush.msrb.mxu3 %v6748_v2  ;;  %v8843_v5 = vld [vmem:[#allocation57_spill] sm:$0xff]  ;;  %v8844_v2 = vld [vmem:[#allocation51_spill] sm:$0xff] }
 0x587   :  { %3233 = vmatmul.f32.vlgmr.msrb.gmra.mxu0 %v3088_v25  ;;  %3273 = vmatmul.f32.vlgmr.msra.gmra.mxu2 %v3088_v25  ;;  %v3400_v30 = vadd.f32 %v8572_v47, %v3088_v25 }
 0x588   :  { %3466 = vmatpush.msrb.mxu0 %v6752_v9  ;;  %3506 = vmatpush.msra.mxu2 %v6754_v49  ;;  %v3398_v9 = vpop.permute.xlu1 %3397  ;;  %v8845_v49 = vld [vmem:[#allocation54_spill] sm:$0xff] }
 0x589   :  { %3495 = vmatpush.msra.mxu1 %v6758_v33  ;;  %3535 = vmatpush.msrb.mxu3 %v6760_v57  ;;  %v8846_v33 = vld [vmem:[#allocation35_spill] sm:$0xff]  ;;  %v8847_v57 = vld [vmem:[#allocation28_spill] sm:$0xff]  ;;  %v3401_v47 = vsel %vm75_vm2, %v3398_v9, %v3400_v30  ;;  %v8891_v9 = vld [vmem:[#allocation85_spill] sm:$0xff] }
 0x58a   :  { %3467 = vmatpush.msrb.mxu0 %v6762_v19  ;;  %3507 = vmatpush.msra.mxu2 %v6764_v1  ;;  %v8849_v1 = vld [vmem:[#allocation32_spill] sm:$0xff]  ;;  %v8886_v30 = vld [vmem:[#allocation63_spill] sm:$0xff] }
 0x58b   :  { %3496 = vmatpush.msra.mxu1 %v6768_v38  ;;  %3536 = vmatpush.msrb.mxu3 %v6770_v51  ;;  %v8850_v38 = vld [vmem:[#allocation41_spill] sm:$0xff]  ;;  %v8851_v51 = vld [vmem:[#allocation24_spill] sm:$0xff]  ;;  %v8896_v19 = vld [vmem:[#allocation83_spill] sm:$0xff] }
 0x58c   :  { %3468 = vmatpush.msrb.mxu0 %v6774_v42  ;;  %3508 = vmatpush.msra.mxu2 %v6776_v22  ;;  %v8852_v42 = vld [vmem:[#allocation31_spill] sm:$0xff]  ;;  %v8853_v22 = vld [vmem:[#allocation26_spill] sm:$0xff] }
 0x58d   :  { %3497 = vmatpush.msra.mxu1 %v8831_v44  ;;  %3537 = vmatpush.msrb.mxu3 %v8832_v16  ;;  %v8876_v44 = vld [vmem:[#allocation76_spill] sm:$0xff]  ;;  %v8877_v16 = vld [vmem:[#allocation77_spill] sm:$0xff] }
 0x58e   :  { %3469 = vmatpush.msrb.mxu0 %v8833_v53  ;;  %3509 = vmatpush.msra.mxu2 %v8834_v56  ;;  %v8878_v53 = vld [vmem:[#allocation37_spill] sm:$0xff]  ;;  %v8879_v56 = vld [vmem:[#allocation59_spill] sm:$0xff] }
 0x58f   :  { %3498 = vmatpush.msra.mxu1 %v8835_v41  ;;  %3538 = vmatpush.msrb.mxu3 %v8836_v15  ;;  %v8880_v41 = vld [vmem:[#allocation78_spill] sm:$0xff] }
 0x590   :  { %3313 = vmatmul.f32.vlgmr.msra.gmra.mxu0 %v3088_v25  ;;  %3353 = vmatmul.f32.vlgmr.msrb.gmra.mxu2 %v3088_v25  ;;  %v8875_v25 = vld [vmem:[#allocation40_spill] sm:$0xff]  ;;  %v8881_v15 = vld [vmem:[#allocation66_spill] sm:$0xff] }
 0x591   :  { %3470 = vmatpush.msrb.mxu0 %v8837_v28  ;;  %3510 = vmatpush.msra.mxu2 %v8838_v37  ;;  %v8882_v28 = vld [vmem:[#allocation79_spill] sm:$0xff]  ;;  %v8883_v37 = vld [vmem:[#allocation68_spill] sm:$0xff] }
 0x592   :  { %3499 = vmatpush.msra.mxu1 %v8839_v4  ;;  %3539 = vmatpush.msrb.mxu3 %v8840_v13  ;;  %v8884_v4 = vld [vmem:[#allocation64_spill] sm:$0xff]  ;;  %v8885_v13 = vld [vmem:[#allocation71_spill] sm:$0xff] }
 0x593   :  { %3471 = vmatpush.msrb.mxu0 %v8841_v36  ;;  %3511 = vmatpush.msra.mxu2 %v8842_v62  ;;  %v8887_v36 = vld [vmem:[#allocation61_spill] sm:$0xff]  ;;  %v8888_v62 = vld [vmem:[#allocation80_spill] sm:$0xff] }
 0x594   :  { %3500 = vmatpush.msra.mxu1 %v8843_v5  ;;  %3540 = vmatpush.msrb.mxu3 %v8844_v2  ;;  %v8889_v5 = vld [vmem:[#allocation84_spill] sm:$0xff]  ;;  %v8890_v2 = vld [vmem:[#allocation69_spill] sm:$0xff] }
 0x595   :  { %3472 = vmatpush.msrb.mxu0 %v8845_v49  ;;  %3512 = vmatpush.msra.mxu2 %v6824_v55  ;;  %v8854_v55 = vld [vmem:[#allocation65_spill] sm:$0xff] }
 0x596   :  { %3501 = vmatpush.msra.mxu1 %v8846_v33  ;;  %3541 = vmatpush.msrb.mxu3 %v8847_v57  ;;  %v8892_v49 = vld [vmem:[#allocation81_spill] sm:$0xff]  ;;  %v8893_v33 = vld [vmem:[#allocation10_spill] sm:$0xff] }
 0x597   :  { %3473 = vmatpush.msrb.mxu0 %v8849_v1  ;;  %3502 = vmatmul.f32.vlgmr.msra.gmra.mxu1 %v3401_v47  ;;  %v8894_v57 = vld [vmem:[#allocation73_spill] sm:$0xff] }
 0x598   :  { %3513 = vmatpush.msra.mxu2 %v8850_v38  ;;  %3542 = vmatmul.f32.vlgmr.msrb.gmra.mxu3 %v3401_v47  ;;  %v8898_v1 = vld [vmem:[#allocation89_spill] sm:$0xff]  ;;  %v8899_v38 = vld [vmem:[#allocation87_spill] sm:$0xff] }
 0x599   :  { %3474 = vmatpush.msrb.mxu0 %v8851_v51  ;;  %3709 = vmatpush.msrb.mxu1 %v8852_v42  ;;  %v8900_v51 = vld [vmem:[#allocation90_spill] sm:$0xff]  ;;  %v8901_v42 = vld [vmem:[#allocation93_spill] sm:$0xff] }
 0x59a   :  { %3514 = vmatpush.msra.mxu2 %v8853_v22  ;;  %3749 = vmatpush.msra.mxu3 %v6852_v40  ;;  %v8862_v40 = vld [vmem:[#allocation67_spill] sm:$0xff]  ;;  %v8902_v22 = vld [vmem:[#allocation13_spill] sm:$0xff] }
 0x59b   :  { %3475 = vmatpush.msrb.mxu0 %v8854_v55  ;;  %3710 = vmatpush.msrb.mxu1 %v8855_v14  ;;  %v8903_v55 = vld [vmem:[#allocation12_spill] sm:$0xff]  ;;  %v8904_v14 = vld [vmem:[#allocation14_spill] sm:$0xff] }
 0x59c   :  { %3515 = vmatpush.msra.mxu2 %v8856_v21  ;;  %3750 = vmatpush.msra.mxu3 %v6863_v45  ;;  %v8866_v45 = vld [vmem:[#allocation74_spill] sm:$0xff]  ;;  %v8905_v21 = vld [vmem:[#allocation95_spill] sm:$0xff] }
 0x59d   :  { %3476 = vmatpush.msrb.mxu0 %v8857_v8  ;;  %3711 = vmatpush.msrb.mxu1 %v8858_v34  ;;  %v8906_v8 = vld [vmem:[#allocation91_spill] sm:$0xff]  ;;  %v8907_v34 = vld [vmem:[#allocation88_spill] sm:$0xff] }
 0x59e   :  { %3516 = vmatpush.msra.mxu2 %v8859_v61  ;;  %3751 = vmatpush.msra.mxu3 %v6875_v31  ;;  %v8870_v31 = vld [vmem:[#allocation46_spill] sm:$0xff]  ;;  %v8908_v61 = vld [vmem:[#allocation92_spill] sm:$0xff] }
 0x59f   :  { %3477 = vmatpush.msrb.mxu0 %v8860_v0  ;;  %3712 = vmatpush.msrb.mxu1 %v8861_v7  ;;  %v8909_v0 = vld [vmem:[#allocation99_spill] sm:$0xff]  ;;  %v8910_v7 = vld [vmem:[#allocation96_spill] sm:$0xff] }
 0x5a0   :  { %3517 = vmatpush.msra.mxu2 %v8862_v40  ;;  %3752 = vmatpush.msra.mxu3 %v8863_v35  ;;  %v8911_v40 = vld [vmem:[#allocation94_spill] sm:$0xff]  ;;  %v8912_v35 = vld [vmem:[#allocation97_spill] sm:$0xff] }
 0x5a1   :  { %3478 = vmatpush.msrb.mxu0 %v8864_v27  ;;  %3713 = vmatpush.msrb.mxu1 %v8865_v23  ;;  %v8913_v27 = vld [vmem:[#allocation103_spill] sm:$0xff]  ;;  %v8914_v23 = vld [vmem:[#allocation98_spill] sm:$0xff] }
 0x5a2   :  { %3518 = vmatpush.msra.mxu2 %v8866_v45  ;;  %3753 = vmatpush.msra.mxu3 %v8867_v50  ;;  %v8915_v45 = vld [vmem:[#allocation100_spill] sm:$0xff]  ;;  %v8916_v50 = vld [vmem:[#allocation101_spill] sm:$0xff] }
 0x5a3   :  { %3479 = vmatpush.msrb.mxu0 %v8868_v39  ;;  %3714 = vmatpush.msrb.mxu1 %v8869_v20  ;;  %v8917_v39 = vld [vmem:[#allocation107_spill] sm:$0xff]  ;;  %v8918_v20 = vld [vmem:[#allocation102_spill] sm:$0xff] }
 0x5a4   :  { %3519 = vmatpush.msra.mxu2 %v8870_v31  ;;  %3754 = vmatpush.msra.mxu3 %v8871_v17  ;;  %v8919_v31 = vld [vmem:[#allocation104_spill] sm:$0xff]  ;;  %v8920_v17 = vld [vmem:[#allocation105_spill] sm:$0xff] }
 0x5a5   :  { %3480 = vmatpush.msrb.mxu0 %v8872_v48  ;;  %3715 = vmatpush.msrb.mxu1 %v8873_v43  ;;  %v8921_v48 = vld [vmem:[#allocation111_spill] sm:$0xff]  ;;  %v8922_v43 = vld [vmem:[#allocation106_spill] sm:$0xff] }
 0x5a6   :  { %3520 = vmatpush.msra.mxu2 %v8874_v32  ;;  %3755 = vmatpush.msra.mxu3 %v8875_v25  ;;  %v8923_v32 = vld [vmem:[#allocation108_spill] sm:$0xff]  ;;  %v8924_v25 = vld [vmem:[#allocation109_spill] sm:$0xff] }
 0x5a7   :  { %3481 = vmatpush.msrb.mxu0 %v8876_v44  ;;  %3716 = vmatpush.msrb.mxu1 %v8877_v16  ;;  %v8925_v44 = vld [vmem:[#allocation115_spill] sm:$0xff]  ;;  %v8926_v16 = vld [vmem:[#allocation110_spill] sm:$0xff] }
 0x5a8   :  { %3521 = vmatpush.msra.mxu2 %v8878_v53  ;;  %3482 = vmatmul.f32.vlgmr.msrb.gmra.mxu0 %v3401_v47  ;;  %v8927_v53 = vld [vmem:[#allocation112_spill] sm:$0xff] }
 0x5a9   :  { %3522 = vmatmul.f32.vlgmr.msra.gmra.mxu2 %v3401_v47  ;;  %3689 = vmatpush.msra.mxu0 %v8879_v56  ;;  %v8897_v47 = vld [vmem:[#allocation86_spill] sm:$0xff]  ;;  %v8928_v56 = vld [vmem:[#allocation113_spill] sm:$0xff] }
 0x5aa   :  { %3756 = vmatpush.msra.mxu3 %v8880_v41  ;;  %3717 = vmatpush.msrb.mxu1 %v8881_v15  ;;  %v8929_v41 = vld [vmem:[#allocation119_spill] sm:$0xff]  ;;  %v8930_v15 = vld [vmem:[#allocation114_spill] sm:$0xff] }
 0x5ab   :  { %3690 = vmatpush.msra.mxu0 %v8882_v28  ;;  %3729 = vmatpush.msrb.mxu2 %v8883_v37  ;;  %v8931_v28 = vld [vmem:[#allocation116_spill] sm:$0xff]  ;;  %v8932_v37 = vld [vmem:[#allocation117_spill] sm:$0xff] }
 0x5ac   :  { %3757 = vmatpush.msra.mxu3 %v8884_v4  ;;  %3718 = vmatpush.msrb.mxu1 %v6953_v6  ;;  %v8895_v6 = vld [vmem:[#allocation82_spill] sm:$0xff]  ;;  %v8933_v4 = vld [vmem:[#allocation123_spill] sm:$0xff] }
 0x5ad   :  { %3691 = vmatpush.msra.mxu0 %v8885_v13  ;;  %3730 = vmatpush.msrb.mxu2 %v8886_v30  ;;  %v8934_v13 = vld [vmem:[#allocation118_spill] sm:$0xff]  ;;  %v8935_v30 = vld [vmem:[#allocation120_spill] sm:$0xff] }
 0x5ae   :  { %3758 = vmatpush.msra.mxu3 %v8887_v36  ;;  %3719 = vmatpush.msrb.mxu1 %v8888_v62  ;;  %v8936_v36 = vld [vmem:[#allocation121_spill] sm:$0xff]  ;;  %v8937_v62 = vld [vmem:[#allocation127_spill] sm:$0xff] }
 0x5af   :  { %3692 = vmatpush.msra.mxu0 %v8889_v5  ;;  %3731 = vmatpush.msrb.mxu2 %v8890_v2  ;;  %v8938_v5 = vld [vmem:[#allocation122_spill] sm:$0xff]  ;;  %v8939_v2 = vld [vmem:[#allocation124_spill] sm:$0xff] }
 0x5b0   :  { %3759 = vmatpush.msra.mxu3 %v8891_v9  ;;  %3720 = vmatpush.msrb.mxu1 %v8892_v49  ;;  %v8940_v9 = vld [vmem:[#allocation125_spill] sm:$0xff]  ;;  %v8941_v49 = vld [vmem:[#allocation126_spill] sm:$0xff] }
 0x5b1   :  { %3693 = vmatpush.msra.mxu0 %v8893_v33  ;;  %3732 = vmatpush.msrb.mxu2 %v8894_v57  ;;  %v8942_v33 = vld [vmem:[#allocation128_spill] sm:$0xff]  ;;  %v8943_v57 = vld [vmem:[#allocation129_spill] sm:$0xff] }
 0x5b2   :  { %3760 = vmatpush.msra.mxu3 %v8895_v6  ;;  %3721 = vmatpush.msrb.mxu1 %v8896_v19  ;;  %v8944_v6 = vld [vmem:[#allocation130_spill] sm:$0xff]  ;;  %v8945_v19 = vld [vmem:[#allocation131_spill] sm:$0xff] }
 0x5b3   :  { %3694 = vmatpush.msra.mxu0 %v8897_v47  ;;  %3733 = vmatpush.msrb.mxu2 %v8898_v1  ;;  %v8946_v47 = vld [vmem:[#allocation132_spill] sm:$0xff]  ;;  %v8947_v1 = vld [vmem:[#allocation133_spill] sm:$0xff] }
 0x5b4   :  { %3761 = vmatpush.msra.mxu3 %v8899_v38  ;;  %3722 = vmatpush.msrb.mxu1 %v8900_v51  ;;  %v8948_v38 = vld [vmem:[#allocation134_spill] sm:$0xff]  ;;  %v8949_v51 = vld [vmem:[#allocation135_spill] sm:$0xff] }
 0x5b5   :  { %3695 = vmatpush.msra.mxu0 %v8901_v42  ;;  %3734 = vmatpush.msrb.mxu2 %v8902_v22  ;;  %v8950_v42 = vld [vmem:[#allocation136_spill] sm:$0xff]  ;;  %v8951_v22 = vld [vmem:[#allocation137_spill] sm:$0xff] }
 0x5b6   :  { %3762 = vmatpush.msra.mxu3 %v8903_v55  ;;  %3723 = vmatpush.msrb.mxu1 %v8904_v14  ;;  %v8952_v55 = vld [vmem:[#allocation138_spill] sm:$0xff]  ;;  %v8953_v14 = vld [vmem:[#allocation139_spill] sm:$0xff] }
 0x5b7   :  { %3696 = vmatpush.msra.mxu0 %v8905_v21  ;;  %3735 = vmatpush.msrb.mxu2 %v8906_v8  ;;  %v8954_v21 = vld [vmem:[#allocation140_spill] sm:$0xff]  ;;  %v8956_v8 = vld [vmem:[#allocation142_spill] sm:$0xff] }
 0x5b8   :  { %3763 = vmatpush.msra.mxu3 %v8907_v34  ;;  %3724 = vmatpush.msrb.mxu1 %v8908_v61  ;;  %v8957_v34 = vld [vmem:[#allocation143_spill] sm:$0xff]  ;;  %v8958_v61 = vld [vmem:[#allocation144_spill] sm:$0xff] }
 0x5b9   :  { %3697 = vmatpush.msra.mxu0 %v8909_v0  ;;  %3736 = vmatpush.msrb.mxu2 %v8910_v7  ;;  %v8959_v0 = vld [vmem:[#allocation145_spill] sm:$0xff]  ;;  %v8960_v7 = vld [vmem:[#allocation146_spill] sm:$0xff] }
 0x5ba   :  { %3764 = vmatpush.msra.mxu3 %v8911_v40  ;;  %3789 = vmatpush.msra.mxu1 %v8912_v35  ;;  %v8963_v40 = vld [vmem:[#allocation30_spill] sm:$0xff] }
 0x5bb   :  { %3698 = vmatpush.msra.mxu0 %v8913_v27  ;;  %3737 = vmatpush.msrb.mxu2 %v8915_v45  ;;  %v8964_v45 = vld [vmem:[#allocation11_spill] sm:$0xff] }
 0x5bc   :  { %3829 = vmatpush.msrb.mxu3 %v8914_v23  ;;  %3790 = vmatpush.msra.mxu1 %v8916_v50  ;;  %v3599_v50 = vld [vmem:[#allocation5 + $0x130] sm:$0xff] }
 0x5bd   :  { %3699 = vmatpush.msra.mxu0 %v8917_v39  ;;  %3738 = vmatpush.msrb.mxu2 %v8919_v31  ;;  %v3595_v31 = vld [vmem:[#allocation5 + $0x110] sm:$0xff] }
 0x5be   :  { %3830 = vmatpush.msrb.mxu3 %v8918_v20  ;;  %3791 = vmatpush.msra.mxu1 %v8920_v17  ;;  %v3591_v17 = vld [vmem:[#allocation5 + $0xf0] sm:$0xff] }
 0x5bf   :  { %3700 = vmatpush.msra.mxu0 %v8921_v48  ;;  %3739 = vmatpush.msrb.mxu2 %v8923_v32  ;;  %v8965_v32 = vld [vmem:[#allocation15_spill] sm:$0xff] }
 0x5c0   :  { %3831 = vmatpush.msrb.mxu3 %v8922_v43  ;;  %3792 = vmatpush.msra.mxu1 %v8924_v25  ;;  %v3587_v43 = vld [vmem:[#allocation5 + $0xd0] sm:$0xff] }
 0x5c1   :  { %3701 = vmatpush.msra.mxu0 %v8925_v44  ;;  %3740 = vmatpush.msrb.mxu2 %v8927_v53  ;;  %v8966_v53 = vld [vmem:[#allocation33_spill] sm:$0xff] }
 0x5c2   :  { %3832 = vmatpush.msrb.mxu3 %v8926_v16  ;;  %3793 = vmatpush.msra.mxu1 %v8928_v56  ;;  %v3583_v16 = vld [vmem:[#allocation5 + $0xb0] sm:$0xff] }
 0x5c3   :  { %3702 = vmatpush.msra.mxu0 %v8929_v41  ;;  %3741 = vmatpush.msrb.mxu2 %v8931_v28 }
 0x5c4   :  { %3833 = vmatpush.msrb.mxu3 %v8930_v15  ;;  %3794 = vmatpush.msra.mxu1 %v8932_v37  ;;  %v3579_v37 = vld [vmem:[#allocation5 + $0x90] sm:$0xff] }
 0x5c5   :  { %3703 = vmatpush.msra.mxu0 %v8933_v4  ;;  %3742 = vmatpush.msrb.mxu2 %v8935_v30 }
 0x5c6   :  { %3834 = vmatpush.msrb.mxu3 %v8934_v13  ;;  %3795 = vmatpush.msra.mxu1 %v8936_v36 }
 0x5c7   :  { %3704 = vmatpush.msra.mxu0 %v8937_v62  ;;  %3743 = vmatpush.msrb.mxu2 %v8939_v2  ;;  %v3575_v62 = vld [vmem:[#allocation5 + $0x70] sm:$0xff] }
 0x5c8   :  { %3835 = vmatpush.msrb.mxu3 %v8938_v5  ;;  %3796 = vmatpush.msra.mxu1 %v8940_v9  ;;  %v3571_v2 = vld [vmem:[#allocation5 + $0x50] sm:$0xff] }
 0x5c9   :  { %3744 = vmatpush.msrb.mxu2 %v8942_v33  ;;  %v3563_v33 = vld [vmem:[#allocation5 + $0x10] sm:$0xff] }
 0x5ca   :  { %3836 = vmatpush.msrb.mxu3 %v8941_v49  ;;  %3797 = vmatpush.msra.mxu1 %v8943_v57  ;;  %v3567_v49 = vld [vmem:[#allocation5 + $0x30] sm:$0xff] }
 0x5cb   :  { %3809 = vmatpush.msra.mxu2 %v7139_v12  ;;  %v8955_v12 = vld [vmem:[#allocation141_spill] sm:$0xff] }
 0x5cc   :  { %3837 = vmatpush.msrb.mxu3 %v8944_v6  ;;  %3798 = vmatpush.msra.mxu1 %v8945_v19 }
 0x5cd   :  { %3810 = vmatpush.msra.mxu2 %v8947_v1 }
 0x5ce   :  { %3838 = vmatpush.msrb.mxu3 %v8946_v47  ;;  %3799 = vmatpush.msra.mxu1 %v8948_v38 }
 0x5cf   :  { %3811 = vmatpush.msra.mxu2 %v8950_v42 }
 0x5d0   :  { %3839 = vmatpush.msrb.mxu3 %v8949_v51  ;;  %3800 = vmatpush.msra.mxu1 %v8951_v22 }
 0x5d1   :  { %3812 = vmatpush.msra.mxu2 %v8953_v14 }
 0x5d2   :  { %3840 = vmatpush.msrb.mxu3 %v8952_v55  ;;  %3801 = vmatpush.msra.mxu1 %v8954_v21 }
 0x5d3   :  { %3813 = vmatpush.msra.mxu2 %v8956_v8 }
 0x5d4   :  { %3841 = vmatpush.msrb.mxu3 %v8955_v12  ;;  %3802 = vmatpush.msra.mxu1 %v8957_v34 }
 0x5d5   :  { %3814 = vmatpush.msra.mxu2 %v7190_v29  ;;  %v8961_v29 = vld [vmem:[#allocation148_spill] sm:$0xff] }
 0x5d6   :  { %3842 = vmatpush.msrb.mxu3 %v8958_v61  ;;  %3803 = vmatpush.msra.mxu1 %v7194_v52  ;;  %v3615_v52 = vld [vmem:[#allocation5 + $0x1b0] sm:$0xff] }
 0x5d7   :  { %3815 = vmatpush.msra.mxu2 %v7201_v60 }
 0x5d8   :  { %3843 = vmatpush.msrb.mxu3 %v7196_v54  ;;  %3804 = vmatpush.msra.mxu1 %v7205_v26  ;;  %v8962_v54 = vld [vmem:[#allocation150_spill] sm:$0xff]  ;;  %v3623_v26 = vld [vmem:[#allocation5 + $0x1f0] sm:$0xff] }
 0x5d9   :  { %3816 = vmatpush.msra.mxu2 %v8959_v0  ;;  %3769 = vmatpush.msrb.mxu0 %v3623_v26 }
 0x5da   :  { %3844 = vmatpush.msrb.mxu3 %v7207_v3  ;;  %v3619_v3 = vld [vmem:[#allocation5 + $0x1d0] sm:$0xff] }
 0x5db   :  { %3817 = vmatpush.msra.mxu2 %v8960_v7  ;;  %3770 = vmatpush.msrb.mxu0 %v3619_v3 }
 0x5dd   :  { %3818 = vmatpush.msra.mxu2 %v7221_v58  ;;  %3771 = vmatpush.msrb.mxu0 %v3615_v52  ;;  %v3611_v58 = vld [vmem:[#allocation5 + $0x190] sm:$0xff] }
 0x5df   :  { %3819 = vmatpush.msra.mxu2 %v7226_v11  ;;  %3772 = vmatpush.msrb.mxu0 %v3611_v58  ;;  %v3607_v11 = vld [vmem:[#allocation5 + $0x170] sm:$0xff] }
 0x5e1   :  { %3820 = vmatpush.msra.mxu2 %v7231_v59  ;;  %3773 = vmatpush.msrb.mxu0 %v3607_v11 }
 0x5e3   :  { %3821 = vmatpush.msra.mxu2 %v7235_v10  ;;  %v3603_v10 = vld [vmem:[#allocation5 + $0x150] sm:$0xff] }
 0x5e4   :  { %3774 = vmatpush.msrb.mxu0 %v3603_v10 }
 0x5e5   :  { %3822 = vmatpush.msra.mxu2 %v8961_v29 }
 0x5e6   :  { %3775 = vmatpush.msrb.mxu0 %v3599_v50  ;;  %v3883_v50 = vld [vmem:[#allocation7 + $0x50] sm:$0xff] }
 0x5e7   :  { %3823 = vmatpush.msra.mxu2 %v8962_v54 }
 0x5e8   :  { %3776 = vmatpush.msrb.mxu0 %v3595_v31  ;;  %v3880_v31 = vld [vmem:[#allocation7 + $0x38] sm:$0xff] }
 0x5e9   :  { %3824 = vmatpush.msra.mxu2 %v7245_v18 }
 0x5ea   :  { %3777 = vmatpush.msrb.mxu0 %v3591_v17  ;;  %v3879_v17 = vld [vmem:[#allocation7 + $0x30] sm:$0xff] }
 0x5ec   :  { %3778 = vmatpush.msrb.mxu0 %v3587_v43  ;;  %v3877_v43 = vld [vmem:[#allocation7 + $0x20] sm:$0xff] }
 0x5ee   :  { %3779 = vmatpush.msrb.mxu0 %v3583_v16  ;;  %v3874_v16 = vld [vmem:[#allocation7 + $0x8] sm:$0xff] }
 0x5f0   :  { %3780 = vmatpush.msrb.mxu0 %v3579_v37  ;;  %v8970_v37 = vld [vmem:[#allocation149_spill] sm:$0xff] }
 0x5f2   :  { %v3254_v27 = vpop.f32.mrf.mxu1  ;;  %3781 = vmatpush.msrb.mxu0 %v3575_v62 }
 0x5f4   :  { %3782 = vmatpush.msrb.mxu0 %v3571_v2 }
 0x5f6   :  { %3783 = vmatpush.msrb.mxu0 %v3567_v49 }
 0x5f8   :  { %v3294_v23 = vpop.f32.mrf.mxu3  ;;  %3784 = vmatpush.msrb.mxu0 %v3563_v33 }
 0x5fa   :  { %v3334_v15 = vpop.f32.mrf.mxu1 }
 0x600   :  { %v3374_v28 = vpop.f32.mrf.mxu3 }
 0x604   :  { %v3234_v60 = vpop.f32.mrf.mxu0 }
 0x605   :  { %v3235_v59 = vadd.f32 %v3234_v60, %v8963_v40 }
 0x607   :  { %v3255_v39 = vadd.f32 %v3254_v27, %v3235_v59  ;;  %v3887_v27 = vld [vmem:[#allocation7 + $0x70] sm:$0xff] }
 0x60a   :  { %v3274_v35 = vpop.f32.mrf.mxu2 }
 0x60b   :  { %v3275_v18 = vadd.f32 %v3274_v35, %v8964_v45  ;;  %v3888_v35 = vld [vmem:[#allocation7 + $0x78] sm:$0xff] }
 0x60d   :  { %v3295_v20 = vadd.f32 %v3294_v23, %v3275_v18  ;;  %v3314_v48 = vpop.f32.mrf.mxu0  ;;  %v3886_v23 = vld [vmem:[#allocation7 + $0x68] sm:$0xff]  ;;  %v3885_v18 = vld [vmem:[#allocation7 + $0x60] sm:$0xff] }
 0x60e   :  { %v3315_v25 = vadd.f32 %v3314_v48, %v8965_v32  ;;  %v3878_v48 = vld [vmem:[#allocation7 + $0x28] sm:$0xff] }
 0x60f   :  { %4104 = vtanh.f32 %v3295_v20  ;;  %v3881_v20 = vld [vmem:[#allocation7 + $0x40] sm:$0xff] }
 0x610   :  { %4106 = vtanh.f32 %v3255_v39  ;;  %v3335_v36 = vadd.f32 %v3334_v15, %v3315_v25  ;;  %v3882_v39 = vld [vmem:[#allocation7 + $0x48] sm:$0xff]  ;;  %v3876_v25 = vld [vmem:[#allocation7 + $0x18] sm:$0xff] }
 0x611   :  { %v8968_v15 = vld [vmem:[#allocation147_spill] sm:$0xff] }
 0x613   :  { %v3354_v44 = vpop.f32.mrf.mxu2 }
 0x614   :  { %v3355_v56 = vadd.f32 %v3354_v44, %v8966_v53  ;;  %v3503_v6 = vpop.f32.mrf.mxu1  ;;  %v3875_v44 = vld [vmem:[#allocation7 + $0x10] sm:$0xff] }
 0x615   :  { %v4105_v41 = vpop.eup %4104 }
 0x616   :  { %v4107_v4 = vpop.eup %4106  ;;  %v3375_v13 = vadd.f32 %v3374_v28, %v3355_v56  ;;  %v3382_v30 = vmul.f32 0.5, %v4105_v41  ;;  %v3873_v56 = vld [vmem:[#allocation7] sm:$0xff]  ;;  %v8967_v41 = vld [vmem:[#allocation17_spill] sm:$0xff]  ;;  %v8969_v28 = vld [vmem:[#allocation36_spill] sm:$0xff] }
 0x617   :  { %v3381_v5 = vmul.f32 0.5, %v4107_v4  ;;  %v8971_v4 = vld [vmem:[#allocation19_spill] sm:$0xff] }
 0x618   :  { %4108 = vtanh.f32 %v3375_v13  ;;  %v3385_v9 = vadd.f32 0.5, %v3382_v30 }
 0x619   :  { %4110 = vtanh.f32 %v3335_v36  ;;  %v3384_v57 = vadd.f32 0.5, %v3381_v5 }
 0x61a   :  { %v3387_v47 = vmul.f32 %v3385_v9, %v7252_v24  ;;  %4112 = vtanh.f32 %v3503_v6 }
 0x61b   :  { %v3543_v14 = vpop.f32.mrf.mxu3 }
 0x61e   :  { %v4109_v19 = vpop.eup %4108 }
 0x61f   :  { %v3388_v1 = vmul.f32 %v4109_v19, %v3384_v57  ;;  %v4111_v38 = vpop.eup %4110 }
 0x620   :  { %v3383_v42 = vmul.f32 0.5, %v4111_v38  ;;  %v4113_v55 = vpop.eup %4112 }
 0x621   :  { %v7449_v51 = vadd.f32 %v3388_v1, %v3387_v47  ;;  %v3551_v8 = vmul.f32 0.5, %v4113_v55 }
 0x622   :  { %v3386_v21 = vadd.f32 0.5, %v3383_v42 }
 0x623   :  { %4114 = vtanh.f32 %v7449_v51  ;;  %v3554_v24 = vadd.f32 0.5, %v3551_v8 }
 0x625   :  { %v3483_v22 = vpop.f32.mrf.mxu0  ;;  %v3556_v26 = vmul.f32 %v3554_v24, %v7266_v63  ;;  %v3884_v63 = vld [vmem:[#allocation7 + $0x58] sm:$0xff] }
 0x626   :  { %4116 = vtanh.f32 %v3483_v22 }
 0x627   :  { %4118 = vtanh.f32 %v3543_v14 }
 0x629   :  { %v4115_v12 = vpop.eup %4114 }
 0x62a   :  { %v3391_v34 = vmul.f32 %v4115_v12, %v3386_v21 }
 0x62c   :  { %v4117_v61 = vpop.eup %4116  ;;  %v3523_v0 = vpop.f32.mrf.mxu2  ;;  %3725 = vmatmul.f32.vlgmr.msrb.gmra.mxu1 %v3391_v34  ;;  %3765 = vmatmul.f32.vlgmr.msra.gmra.mxu3 %v3391_v34 }
 0x62d   :  { %v3550_v7 = vmul.f32 0.5, %v4117_v61  ;;  %4120 = vtanh.f32 %v3523_v0  ;;  %v4119_v54 = vpop.eup %4118 }
 0x62f   :  { %v3553_v29 = vadd.f32 0.5, %v3550_v7 }
 0x631   :  { %v3557_v3 = vmul.f32 %v4119_v54, %v3553_v29 }
 0x633   :  { %v4121_v52 = vpop.eup %4120  ;;  %v3558_v60 = vadd.f32 %v3557_v3, %v3556_v26 }
 0x634   :  { %3805 = vmatmul.f32.vlgmr.msra.gmra.mxu1 %v3391_v34  ;;  %3845 = vmatmul.f32.vlgmr.msrb.gmra.mxu3 %v3391_v34  ;;  %v3552_v58 = vmul.f32 0.5, %v4121_v52 }
 0x635   :  { %4122 = vtanh.f32 %v3558_v60 }
 0x636   :  { %v3555_v11 = vadd.f32 0.5, %v3552_v58 }
 0x63b   :  { %v4123_v59 = vpop.eup %4122 }
 0x63c   :  { %v3560_v10 = vmul.f32 %v4123_v59, %v3555_v11 }
 0x63e   :  { %3705 = vmatmul.f32.vlgmr.msra.gmra.mxu0 %v3560_v10  ;;  %3745 = vmatmul.f32.vlgmr.msrb.gmra.mxu2 %v3560_v10 }
 0x63f   :  { %3892 = vmatpush.msra.mxu0 %v3888_v35 }
 0x641   :  { %3893 = vmatpush.msra.mxu0 %v3887_v27 }
 0x643   :  { %3894 = vmatpush.msra.mxu0 %v3886_v23 }
 0x645   :  { %3895 = vmatpush.msra.mxu0 %v3885_v18 }
 0x646   :  { %3785 = vmatmul.f32.vlgmr.msrb.gmra.mxu0 %v3560_v10  ;;  %3825 = vmatmul.f32.vlgmr.msra.gmra.mxu2 %v3560_v10 }
 0x647   :  { %3896 = vmatpush.msra.mxu0 %v3884_v63 }
 0x649   :  { %3897 = vmatpush.msra.mxu0 %v3883_v50 }
 0x64b   :  { %3898 = vmatpush.msra.mxu0 %v3882_v39 }
 0x64d   :  { %3899 = vmatpush.msra.mxu0 %v3881_v20 }
 0x64f   :  { %3900 = vmatpush.msra.mxu0 %v3880_v31 }
 0x651   :  { %3901 = vmatpush.msra.mxu0 %v3879_v17 }
 0x653   :  { %3902 = vmatpush.msra.mxu0 %v3878_v48 }
 0x655   :  { %3903 = vmatpush.msra.mxu0 %v3877_v43 }
 0x657   :  { %3904 = vmatpush.msra.mxu0 %v3876_v25 }
 0x659   :  { %3905 = vmatpush.msra.mxu0 %v3875_v44 }
 0x65b   :  { %3906 = vmatpush.msra.mxu0 %v3874_v16 }
 0x65d   :  { %3907 = vmatpush.msra.mxu0 %v3873_v56 }
 0x65e   :  { %3908 = vmatmul.f32.vlgmr.msra.gmra.mxu0 %v8967_v41 }
 0x666   :  { %3911 = vmatmul.f32.gmra.mxu0 %v8968_v15 }
 0x66e   :  { %3914 = vmatmul.f32.gmra.mxu0 %v8969_v28 }
 0x676   :  { %3917 = vmatmul.f32.gmra.mxu0 %v8970_v37 }
 0x67e   :  { %3920 = vmatmul.f32.gmra.mxu0 %v8971_v4 }
 0x686   :  { %3923 = vmatmul.f32.gmra.mxu0 %v7255_v46 }
 0x68e   :  { %3926 = vmatmul.f32.gmra.mxu0 %v3391_v34 }
 0x6a9   :  { %v3726_v36 = vpop.f32.mrf.mxu1 }
 0x6af   :  { %v3766_v62 = vpop.f32.mrf.mxu3 }
 0x6b1   :  { %v3806_v38 = vpop.f32.mrf.mxu1 }
 0x6b7   :  { %v3846_v47 = vpop.f32.mrf.mxu3 }
 0x6bb   :  { %v3706_v13 = vpop.f32.mrf.mxu0 }
 0x6bc   :  { %v3707_v30 = vadd.f32 %v3706_v13, %v8963_v40 }
 0x6be   :  { %v3727_v5 = vadd.f32 %v3726_v36, %v3707_v30 }
 0x6c0   :  { %4124 = vtanh.f32 %v3727_v5 }
 0x6c1   :  { %v3746_v2 = vpop.f32.mrf.mxu2 }
 0x6c2   :  { %v3747_v9 = vadd.f32 %v3746_v2, %v8964_v45 }
 0x6c3   :  { %v3786_v33 = vpop.f32.mrf.mxu0 }
 0x6c4   :  { %v3767_v49 = vadd.f32 %v3766_v62, %v3747_v9  ;;  %v3787_v57 = vadd.f32 %v3786_v33, %v8965_v32 }
 0x6c6   :  { %4126 = vtanh.f32 %v3767_v49  ;;  %v4125_v46 = vpop.eup %4124  ;;  %v3807_v22 = vadd.f32 %v3806_v38, %v3787_v57 }
 0x6c7   :  { %v3853_v55 = vmul.f32 0.5, %v4125_v46 }
 0x6c9   :  { %v3826_v6 = vpop.f32.mrf.mxu2  ;;  %v3856_v45 = vadd.f32 0.5, %v3853_v55 }
 0x6ca   :  { %v3827_v19 = vadd.f32 %v3826_v6, %v8966_v53  ;;  %v3973_v53 = vld [vmem:[%s7496_s5] ss:$0 sm:$0xff] }
 0x6cc   :  { %v4127_v1 = vpop.eup %4126  ;;  %v3847_v40 = vadd.f32 %v3846_v47, %v3827_v19 }
 0x6cd   :  { %v3854_v42 = vmul.f32 0.5, %v4127_v1 }
 0x6ce   :  { %4128 = vtanh.f32 %v3847_v40 }
 0x6cf   :  { %v3857_v14 = vadd.f32 0.5, %v3854_v42  ;;  %4130 = vtanh.f32 %v3807_v22 }
 0x6d1   :  { %v3859_v12 = vmul.f32 %v3857_v14, %v7449_v51 }
 0x6d4   :  { %v4129_v21 = vpop.eup %4128 }
 0x6d5   :  { %v3860_v8 = vmul.f32 %v4129_v21, %v3856_v45  ;;  %v4131_v32 = vpop.eup %4130 }
 0x6d6   :  { %v3855_v61 = vmul.f32 0.5, %v4131_v32 }
 0x6d7   :  { %v3861_v34 = vadd.f32 %v3860_v8, %v3859_v12 }
 0x6d8   :  { %v3858_v7 = vadd.f32 0.5, %v3855_v61 }
 0x6d9   :  { %4132 = vtanh.f32 %v3861_v34 }
 0x6db   :  { %v3909_v0 = vpop.f32.mrf.mxu0 }
 0x6dc   :  { %v3910_v24 = vadd.f32 %v3973_v53, %v3909_v0 }
 0x6de   :  { %3933 = vst [vmem:[%s7497_s6] sm:$0xff] %v3910_v24 }
 0x6df   :  { %v4133_v29 = vpop.eup %4132 }
 0x6e0   :  { %v3863_v54 = vmul.f32 %v4133_v29, %v3858_v7 }
 0x6e2   :  { %3929 = vmatmul.f32.gmra.mxu0 %v3863_v54 }
 0x6e3   :  { %v3912_v51 = vpop.f32.mrf.mxu0 }
 0x6e4   :  { %v3913_v26 = vadd.f32 %v3973_v53, %v3912_v51 }
 0x6e6   :  { %3934 = vst [vmem:[%s7497_s6 + $0x8] sm:$0xff] %v3913_v26 }
 0x6eb   :  { %v3915_v3 = vpop.f32.mrf.mxu0 }
 0x6ec   :  { %v3916_v52 = vadd.f32 %v3973_v53, %v3915_v3 }
 0x6ee   :  { %3935 = vst [vmem:[%s7497_s6 + $0x10] sm:$0xff] %v3916_v52 }
 0x6f3   :  { %v3918_v60 = vpop.f32.mrf.mxu0 }
 0x6f4   :  { %v3919_v58 = vadd.f32 %v3973_v53, %v3918_v60 }
 0x6f6   :  { %3936 = vst [vmem:[%s7497_s6 + $0x18] sm:$0xff] %v3919_v58 }
 0x6fb   :  { %v3921_v11 = vpop.f32.mrf.mxu0 }
 0x6fc   :  { %v3922_v59 = vadd.f32 %v3973_v53, %v3921_v11 }
 0x6fe   :  { %3937 = vst [vmem:[%s7497_s6 + $0x20] sm:$0xff] %v3922_v59 }
 0x703   :  { %v3924_v10 = vpop.f32.mrf.mxu0 }
 0x704   :  { %v3925_v35 = vadd.f32 %v3973_v53, %v3924_v10 }
 0x706   :  { %3938 = vst [vmem:[%s7497_s6 + $0x28] sm:$0xff] %v3925_v35 }
 0x70b   :  { %v3927_v27 = vpop.f32.mrf.mxu0 }
 0x70c   :  { %v3928_v23 = vadd.f32 %v3973_v53, %v3927_v27 }
 0x70e   :  { %3939 = vst [vmem:[%s7497_s6 + $0x30] sm:$0xff] %v3928_v23 }
 0x75f   :  { %v3930_v18 = vpop.f32.mrf.mxu0 }
 0x760   :  { %v3931_v63 = vadd.f32 %v3973_v53, %v3930_v18 }
 0x762   :  { %3940 = vst [vmem:[%s7497_s6 + $0x38] sm:$0xff] %v3931_v63 }
 0x763   :  { %3945 = vsyncpa [#allocation4], 1 }
 0x764   :  { %3946 = vsyncpa [#allocation6], 1 }

</bundles_post_ra>
